<compile_context>
chip_gen: v5e
topology: v5e:2x2
jax: 0.10.0
libtpu: 0.0.40
codegen_flags: <defaults>
</compile_context>

<pallas_src>
import functools

import jax
import jax.numpy as jnp
from jax import lax
from jax.experimental import pallas as pl
from jax.experimental.pallas import tpu as pltpu


def _convlstm_kernel(x_ref, w_ref, b_ref, m_ref, h_out_ref, *, width):
    """Full T-step ConvLSTM recurrence for ONE batch element (grid = (B,)).

    Layout: channels in sublanes, flattened spatial (H*W) in lanes.

    x_ref:     (T, 1, C, H*W) f32   input sequence for batch b            [in]
    w_ref:     (9, 4C, 2C)   bf16   per-tap fused gate weights; rows =
                                    gates [i|f|o|g] x out-chan, cols =
                                    in-chan [x-half | h-half]   [in, resident]
    b_ref:     (4C, 1)       f32    fused gate bias (sublane vector)
                                                               [in, resident]
    m_ref:     (9, H*W)      f32    per-tap boundary masks (1 inside, 0 where
                                    the 3x3 tap reads out of bounds)
                                                               [in, resident]
    h_out_ref: (1, C, H*W)   f32    final hidden state                   [out]
    """
    T, _, C, HW = x_ref.shape
    C4 = 4 * C
    W = width

    masks = m_ref[...]          # (9, HW) f32 — tiny, stays in vregs
    b_vec = b_ref[...]          # (4C, 1) f32 — lane-broadcast at the bias add

    def shift_lanes(v, off):
        # y[:, p] = v[:, (p + off) % HW]; wrapped (out-of-grid) reads are
        # zeroed afterwards by the per-tap mask, so the wrap is harmless.
        s = off % HW
        if s == 0:
            return v
        return jnp.concatenate([v[:, s:], v[:, :s]], axis=1)

    def step(t, carry):
        c, h = carry
        x_t = x_ref[t, 0]                                   # (C, HW) f32
        xh = jnp.concatenate([x_t, h], axis=0)              # (2C, HW) f32

        # 3x3 "same" conv of all 4 gates == 9 accumulated per-tap matmuls.
        gates = jnp.zeros((C4, HW), jnp.float32)
        for k in range(9):
            dy, dx = k // 3 - 1, k % 3 - 1
            tap = shift_lanes(xh, dy * W + dx) * masks[k:k + 1, :]
            gates = gates + jnp.dot(w_ref[k], tap.astype(jnp.bfloat16),
                                    preferred_element_type=jnp.float32)
        gates = gates + b_vec                               # broadcast over lanes

        # One wide sigmoid over [i|f|o], one tanh over [g]; all gating in f32.
        sig = jax.nn.sigmoid(gates[0:3 * C, :])
        g_gate = jnp.tanh(gates[3 * C:4 * C, :])
        i_gate = sig[0:C, :]
        f_gate = sig[C:2 * C, :]
        o_gate = sig[2 * C:3 * C, :]

        c_new = f_gate * c + i_gate * g_gate
        h_new = o_gate * jnp.tanh(c_new)
        return c_new, h_new

    zeros = jnp.zeros((C, HW), jnp.float32)
    _, h_fin = lax.fori_loop(0, T, step, (zeros, zeros), unroll=True)
    h_out_ref[0] = h_fin


def make_tap_masks(H, W):
    """(9, H*W) f32: mask[k, y*W+x] = 1 iff tap k = ky*3+kx reads
    (y+ky-1, x+kx-1) inside the HxW grid (i.e. not in the zero pad)."""
    y = jnp.arange(H)[:, None]
    x = jnp.arange(W)[None, :]
    rows = []
    for ky in range(3):
        for kx in range(3):
            dy, dx = ky - 1, kx - 1
            ok = (y + dy >= 0) & (y + dy < H) & (x + dx >= 0) & (x + dx < W)
            rows.append(ok.reshape(H * W))
    return jnp.stack(rows, axis=0).astype(jnp.float32)


@jax.jit
def set_values_forward(xinp_nchw, w_taps, b_fused, masks):
    """Mirrors set_values.forward with seq = identity.

    xinp_nchw: (T, B, C, H, W) f32
    Returns (h_state (B, C, H, W), xout (T, B, C, H, W)).
    """
    T, B, C, H, W = xinp_nchw.shape
    HW = H * W

    # seq = identity and xout[t] = input_t  =>  xout == xinp bit-for-bit.
    xout = xinp_nchw

    # NCHW is already channels-major / spatial-minor: flattening (H, W) into the
    # lane dim is a free reshape — no transpose, no pad, lane-dense 16 KiB DMA rows.
    x_flat = xinp_nchw.reshape(T, B, C, HW)

    kernel = functools.partial(_convlstm_kernel, width=W)

    h_flat = pl.pallas_call(
        kernel,
        out_shape=jax.ShapeDtypeStruct((B, C, HW), jnp.float32),
        grid=(B,),
        in_specs=[
            pl.BlockSpec((T, 1, C, HW), lambda b: (0, b, 0, 0)),
            pl.BlockSpec((9, 4 * C, 2 * C), lambda b: (0, 0, 0)),
            pl.BlockSpec((4 * C, 1), lambda b: (0, 0)),
            pl.BlockSpec((9, HW), lambda b: (0, 0)),
        ],
        out_specs=pl.BlockSpec((1, C, HW), lambda b: (b, 0, 0)),
        compiler_params=pltpu.CompilerParams(
            dimension_semantics=("parallel",)),
    )(x_flat, w_taps, b_fused, masks)

    h_state = h_flat.reshape(B, C, H, W)
    return h_state, xout


def init_params(key, hidden_size):
    """4 gate convs in PyTorch Conv2d layout: w (C, 2C, 3, 3), b (C,); order [i,f,o,g]."""
    C = hidden_size
    keys = jax.random.split(key, 8)
    fan_in = 2 * C * 9
    bound = 1.0 / float(fan_in) ** 0.5
    ws = [jax.random.uniform(keys[g], (C, 2 * C, 3, 3), jnp.float32, -bound, bound)
          for g in range(4)]
    bs = [jax.random.uniform(keys[4 + g], (C,), jnp.float32, -bound, bound)
          for g in range(4)]
    return ws, bs


def fuse_gate_params(ws, bs):
    """Pre-arrange the 4 Conv2d gate params into the kernel layout:
    w_taps (9, 4C, 2C) bf16 (tap-major; rows = [i|f|o|g] x out-chan; cols =
    in-chan [x|h]) and b (4C, 1) f32 — no in-kernel transposes needed."""
    C = ws[0].shape[0]
    w_all = jnp.concatenate(ws, axis=0)                       # (4C, 2C, 3, 3)
    w_taps = jnp.transpose(w_all, (2, 3, 0, 1)).reshape(9, 4 * C, 2 * C)
    b_fused = jnp.concatenate(bs, axis=0).reshape(4 * C, 1)
    return w_taps.astype(jnp.bfloat16), b_fused


def _reference_forward(xinp_nchw, ws, bs):
    """Pure-JAX f32 NCHW reference that mirrors the PyTorch module exactly."""
    T, B, C, H, W = xinp_nchw.shape
    h = jnp.zeros((B, C, H, W), jnp.float32)
    c = jnp.zeros((B, C, H, W), jnp.float32)

    def conv(x, w, b):
        y = lax.conv_general_dilated(
            x, w, window_strides=(1, 1), padding=((1, 1), (1, 1)),
            dimension_numbers=("NCHW", "OIHW", "NCHW"))
        return y + b[None, :, None, None]

    for t in range(T):
        xh = jnp.concatenate([xinp_nchw[t], h], axis=1)
        i = jax.nn.sigmoid(conv(xh, ws[0], bs[0]))
        f = jax.nn.sigmoid(conv(xh, ws[1], bs[1]))
        o = jax.nn.sigmoid(conv(xh, ws[2], bs[2]))
        g = jnp.tanh(conv(xh, ws[3], bs[3]))
        c = f * c + i * g
        h = o * jnp.tanh(c)
    return h


if __name__ == "__main__":
    # T steps, batch B, channels == hidden_size (RNNCell(hidden, hidden)), HxW spatial.
    T, B, HIDDEN, H, W = 4, 2, 16, 16, 16

    key = jax.random.PRNGKey(0)
    k_x, k_p = jax.random.split(key)
    xinp = jax.random.normal(k_x, (T, B, HIDDEN, H, W), jnp.float32)
    ws, bs = init_params(k_p, HIDDEN)
    w_taps, b_fused = fuse_gate_params(ws, bs)
    masks = make_tap_masks(H, W)

    h_state, xout = set_values_forward(xinp, w_taps, b_fused, masks)
    jax.block_until_ready((h_state, xout))

    # Validate against a pure-JAX f32 NCHW-conv reference (mirrors PyTorch).
    # Tolerance is loose-ish because the kernel uses bf16 MXU operands.
    h_ref = _reference_forward(xinp, ws, bs)
    assert h_state.shape == (B, HIDDEN, H, W)
    assert xout.shape == (T, B, HIDDEN, H, W)
    max_err = float(jnp.max(jnp.abs(h_state - h_ref)))
    assert jnp.allclose(h_state, h_ref, atol=2e-2, rtol=2e-2), max_err
    assert jnp.array_equal(xout, xinp)   # seq = identity passthrough
    print("KERNEL_OK")
</pallas_src>

<mosaic_0001>
module attributes {stable_mosaic.version = 11 : i64} {
  func.func @_convlstm_kernel(%arg0: i32, %arg1: memref<4x1x16x256xf32, #tpu.memory_space<vmem>>, %arg2: memref<9x64x32xbf16, #tpu.memory_space<vmem>>, %arg3: memref<64x1xf32, #tpu.memory_space<vmem>>, %arg4: memref<9x256xf32, #tpu.memory_space<vmem>>, %arg5: memref<1x16x256xf32, #tpu.memory_space<vmem>>) attributes {dimension_semantics = [#tpu.dimension_semantics<parallel>], iteration_bounds = array<i64: 2>, scalar_prefetch = 0 : i64, scratch_operands = 0 : i64, tpu.core_type = #tpu.core_type<tc>, window_params = [{transform_indices = @transform_0, window_bounds = array<i64: 4, 1, 16, 256>}, {pipeline_mode = #tpu.pipeline_mode<synchronous>, transform_indices = @transform_1, window_bounds = array<i64: 9, 64, 32>}, {pipeline_mode = #tpu.pipeline_mode<synchronous>, transform_indices = @transform_2, window_bounds = array<i64: 64, 1>}, {pipeline_mode = #tpu.pipeline_mode<synchronous>, transform_indices = @transform_3, window_bounds = array<i64: 9, 256>}, {transform_indices = @transform_4, window_bounds = array<i64: 1, 16, 256>}]} {
    %c0 = arith.constant 0 : index
    %c0_0 = arith.constant 0 : index
    %0 = vector.load %arg4[%c0, %c0_0] : memref<9x256xf32, #tpu.memory_space<vmem>>, vector<9x256xf32>
    %c0_1 = arith.constant 0 : index
    %c0_2 = arith.constant 0 : index
    %1 = vector.load %arg3[%c0_1, %c0_2] : memref<64x1xf32, #tpu.memory_space<vmem>>, vector<64x1xf32>
    %cst = arith.constant 0.000000e+00 : f32
    %2 = vector.broadcast %cst : f32 to vector<16x256xf32>
    %c0_i32 = arith.constant 0 : i32
    %3 = arith.index_cast %c0_i32 : i32 to index
    %c0_3 = arith.constant 0 : index
    %c0_4 = arith.constant 0 : index
    %c0_5 = arith.constant 0 : index
    %4 = vector.load %arg1[%3, %c0_3, %c0_4, %c0_5] : memref<4x1x16x256xf32, #tpu.memory_space<vmem>>, vector<1x1x16x256xf32>
    %5 = vector.shape_cast %4 : vector<1x1x16x256xf32> to vector<16x256xf32>
    %6 = tpu.concatenate %5, %2 in 0 : vector<16x256xf32>, vector<16x256xf32> -> vector<32x256xf32>
    %cst_6 = arith.constant 0.000000e+00 : f32
    %7 = vector.broadcast %cst_6 : f32 to vector<64x256xf32>
    %8 = vector.extract_strided_slice %6 {offsets = [0, 239], sizes = [32, 17], strides = [1, 1]} : vector<32x256xf32> to vector<32x17xf32>
    %9 = vector.extract_strided_slice %6 {offsets = [0, 0], sizes = [32, 239], strides = [1, 1]} : vector<32x256xf32> to vector<32x239xf32>
    %10 = tpu.concatenate %8, %9 in 1 : vector<32x17xf32>, vector<32x239xf32> -> vector<32x256xf32>
    %11 = vector.extract_strided_slice %0 {offsets = [0, 0], sizes = [1, 256], strides = [1, 1]} : vector<9x256xf32> to vector<1x256xf32>
    %12 = vector.broadcast %11 : vector<1x256xf32> to vector<32x256xf32>
    %13 = arith.mulf %10, %12 : vector<32x256xf32>
    %c0_7 = arith.constant 0 : index
    %c0_8 = arith.constant 0 : index
    %c0_9 = arith.constant 0 : index
    %14 = vector.load %arg2[%c0_7, %c0_8, %c0_9] : memref<9x64x32xbf16, #tpu.memory_space<vmem>>, vector<1x64x32xbf16>
    %15 = vector.shape_cast %14 : vector<1x64x32xbf16> to vector<64x32xbf16>
    %16 = arith.truncf %13 : vector<32x256xf32> to vector<32x256xbf16>
    %cst_10 = arith.constant dense<0.000000e+00> : vector<64x256xf32>
    %17 = tpu.matmul %15, %16, %cst_10 {dimension_numbers = #tpu.dot_dimension_numbers<[1], [0], [0], [1], [0, 0, 1, 1], [], []>} : vector<64x32xbf16>, vector<32x256xbf16>, vector<64x256xf32> -> vector<64x256xf32>
    %18 = arith.addf %7, %17 : vector<64x256xf32>
    %19 = vector.extract_strided_slice %6 {offsets = [0, 240], sizes = [32, 16], strides = [1, 1]} : vector<32x256xf32> to vector<32x16xf32>
    %20 = vector.extract_strided_slice %6 {offsets = [0, 0], sizes = [32, 240], strides = [1, 1]} : vector<32x256xf32> to vector<32x240xf32>
    %21 = tpu.concatenate %19, %20 in 1 : vector<32x16xf32>, vector<32x240xf32> -> vector<32x256xf32>
    %22 = vector.extract_strided_slice %0 {offsets = [1, 0], sizes = [1, 256], strides = [1, 1]} : vector<9x256xf32> to vector<1x256xf32>
    %23 = vector.broadcast %22 : vector<1x256xf32> to vector<32x256xf32>
    %24 = arith.mulf %21, %23 : vector<32x256xf32>
    %c1 = arith.constant 1 : index
    %c0_11 = arith.constant 0 : index
    %c0_12 = arith.constant 0 : index
    %25 = vector.load %arg2[%c1, %c0_11, %c0_12] : memref<9x64x32xbf16, #tpu.memory_space<vmem>>, vector<1x64x32xbf16>
    %26 = vector.shape_cast %25 : vector<1x64x32xbf16> to vector<64x32xbf16>
    %27 = arith.truncf %24 : vector<32x256xf32> to vector<32x256xbf16>
    %cst_13 = arith.constant dense<0.000000e+00> : vector<64x256xf32>
    %28 = tpu.matmul %26, %27, %cst_13 {dimension_numbers = #tpu.dot_dimension_numbers<[1], [0], [0], [1], [0, 0, 1, 1], [], []>} : vector<64x32xbf16>, vector<32x256xbf16>, vector<64x256xf32> -> vector<64x256xf32>
    %29 = arith.addf %18, %28 : vector<64x256xf32>
    %30 = vector.extract_strided_slice %6 {offsets = [0, 241], sizes = [32, 15], strides = [1, 1]} : vector<32x256xf32> to vector<32x15xf32>
    %31 = vector.extract_strided_slice %6 {offsets = [0, 0], sizes = [32, 241], strides = [1, 1]} : vector<32x256xf32> to vector<32x241xf32>
    %32 = tpu.concatenate %30, %31 in 1 : vector<32x15xf32>, vector<32x241xf32> -> vector<32x256xf32>
    %33 = vector.extract_strided_slice %0 {offsets = [2, 0], sizes = [1, 256], strides = [1, 1]} : vector<9x256xf32> to vector<1x256xf32>
    %34 = vector.broadcast %33 : vector<1x256xf32> to vector<32x256xf32>
    %35 = arith.mulf %32, %34 : vector<32x256xf32>
    %c2 = arith.constant 2 : index
    %c0_14 = arith.constant 0 : index
    %c0_15 = arith.constant 0 : index
    %36 = vector.load %arg2[%c2, %c0_14, %c0_15] : memref<9x64x32xbf16, #tpu.memory_space<vmem>>, vector<1x64x32xbf16>
    %37 = vector.shape_cast %36 : vector<1x64x32xbf16> to vector<64x32xbf16>
    %38 = arith.truncf %35 : vector<32x256xf32> to vector<32x256xbf16>
    %cst_16 = arith.constant dense<0.000000e+00> : vector<64x256xf32>
    %39 = tpu.matmul %37, %38, %cst_16 {dimension_numbers = #tpu.dot_dimension_numbers<[1], [0], [0], [1], [0, 0, 1, 1], [], []>} : vector<64x32xbf16>, vector<32x256xbf16>, vector<64x256xf32> -> vector<64x256xf32>
    %40 = arith.addf %29, %39 : vector<64x256xf32>
    %41 = vector.extract_strided_slice %6 {offsets = [0, 255], sizes = [32, 1], strides = [1, 1]} : vector<32x256xf32> to vector<32x1xf32>
    %42 = vector.extract_strided_slice %6 {offsets = [0, 0], sizes = [32, 255], strides = [1, 1]} : vector<32x256xf32> to vector<32x255xf32>
    %43 = tpu.concatenate %41, %42 in 1 : vector<32x1xf32>, vector<32x255xf32> -> vector<32x256xf32>
    %44 = vector.extract_strided_slice %0 {offsets = [3, 0], sizes = [1, 256], strides = [1, 1]} : vector<9x256xf32> to vector<1x256xf32>
    %45 = vector.broadcast %44 : vector<1x256xf32> to vector<32x256xf32>
    %46 = arith.mulf %43, %45 : vector<32x256xf32>
    %c3 = arith.constant 3 : index
    %c0_17 = arith.constant 0 : index
    %c0_18 = arith.constant 0 : index
    %47 = vector.load %arg2[%c3, %c0_17, %c0_18] : memref<9x64x32xbf16, #tpu.memory_space<vmem>>, vector<1x64x32xbf16>
    %48 = vector.shape_cast %47 : vector<1x64x32xbf16> to vector<64x32xbf16>
    %49 = arith.truncf %46 : vector<32x256xf32> to vector<32x256xbf16>
    %cst_19 = arith.constant dense<0.000000e+00> : vector<64x256xf32>
    %50 = tpu.matmul %48, %49, %cst_19 {dimension_numbers = #tpu.dot_dimension_numbers<[1], [0], [0], [1], [0, 0, 1, 1], [], []>} : vector<64x32xbf16>, vector<32x256xbf16>, vector<64x256xf32> -> vector<64x256xf32>
    %51 = arith.addf %40, %50 : vector<64x256xf32>
    %52 = vector.extract_strided_slice %0 {offsets = [4, 0], sizes = [1, 256], strides = [1, 1]} : vector<9x256xf32> to vector<1x256xf32>
    %53 = vector.broadcast %52 : vector<1x256xf32> to vector<32x256xf32>
    %54 = arith.mulf %6, %53 : vector<32x256xf32>
    %c4 = arith.constant 4 : index
    %c0_20 = arith.constant 0 : index
    %c0_21 = arith.constant 0 : index
    %55 = vector.load %arg2[%c4, %c0_20, %c0_21] : memref<9x64x32xbf16, #tpu.memory_space<vmem>>, vector<1x64x32xbf16>
    %56 = vector.shape_cast %55 : vector<1x64x32xbf16> to vector<64x32xbf16>
    %57 = arith.truncf %54 : vector<32x256xf32> to vector<32x256xbf16>
    %cst_22 = arith.constant dense<0.000000e+00> : vector<64x256xf32>
    %58 = tpu.matmul %56, %57, %cst_22 {dimension_numbers = #tpu.dot_dimension_numbers<[1], [0], [0], [1], [0, 0, 1, 1], [], []>} : vector<64x32xbf16>, vector<32x256xbf16>, vector<64x256xf32> -> vector<64x256xf32>
    %59 = arith.addf %51, %58 : vector<64x256xf32>
    %60 = vector.extract_strided_slice %6 {offsets = [0, 1], sizes = [32, 255], strides = [1, 1]} : vector<32x256xf32> to vector<32x255xf32>
    %61 = vector.extract_strided_slice %6 {offsets = [0, 0], sizes = [32, 1], strides = [1, 1]} : vector<32x256xf32> to vector<32x1xf32>
    %62 = tpu.concatenate %60, %61 in 1 : vector<32x255xf32>, vector<32x1xf32> -> vector<32x256xf32>
    %63 = vector.extract_strided_slice %0 {offsets = [5, 0], sizes = [1, 256], strides = [1, 1]} : vector<9x256xf32> to vector<1x256xf32>
    %64 = vector.broadcast %63 : vector<1x256xf32> to vector<32x256xf32>
    %65 = arith.mulf %62, %64 : vector<32x256xf32>
    %c5 = arith.constant 5 : index
    %c0_23 = arith.constant 0 : index
    %c0_24 = arith.constant 0 : index
    %66 = vector.load %arg2[%c5, %c0_23, %c0_24] : memref<9x64x32xbf16, #tpu.memory_space<vmem>>, vector<1x64x32xbf16>
    %67 = vector.shape_cast %66 : vector<1x64x32xbf16> to vector<64x32xbf16>
    %68 = arith.truncf %65 : vector<32x256xf32> to vector<32x256xbf16>
    %cst_25 = arith.constant dense<0.000000e+00> : vector<64x256xf32>
    %69 = tpu.matmul %67, %68, %cst_25 {dimension_numbers = #tpu.dot_dimension_numbers<[1], [0], [0], [1], [0, 0, 1, 1], [], []>} : vector<64x32xbf16>, vector<32x256xbf16>, vector<64x256xf32> -> vector<64x256xf32>
    %70 = arith.addf %59, %69 : vector<64x256xf32>
    %71 = vector.extract_strided_slice %6 {offsets = [0, 15], sizes = [32, 241], strides = [1, 1]} : vector<32x256xf32> to vector<32x241xf32>
    %72 = vector.extract_strided_slice %6 {offsets = [0, 0], sizes = [32, 15], strides = [1, 1]} : vector<32x256xf32> to vector<32x15xf32>
    %73 = tpu.concatenate %71, %72 in 1 : vector<32x241xf32>, vector<32x15xf32> -> vector<32x256xf32>
    %74 = vector.extract_strided_slice %0 {offsets = [6, 0], sizes = [1, 256], strides = [1, 1]} : vector<9x256xf32> to vector<1x256xf32>
    %75 = vector.broadcast %74 : vector<1x256xf32> to vector<32x256xf32>
    %76 = arith.mulf %73, %75 : vector<32x256xf32>
    %c6 = arith.constant 6 : index
    %c0_26 = arith.constant 0 : index
    %c0_27 = arith.constant 0 : index
    %77 = vector.load %arg2[%c6, %c0_26, %c0_27] : memref<9x64x32xbf16, #tpu.memory_space<vmem>>, vector<1x64x32xbf16>
    %78 = vector.shape_cast %77 : vector<1x64x32xbf16> to vector<64x32xbf16>
    %79 = arith.truncf %76 : vector<32x256xf32> to vector<32x256xbf16>
    %cst_28 = arith.constant dense<0.000000e+00> : vector<64x256xf32>
    %80 = tpu.matmul %78, %79, %cst_28 {dimension_numbers = #tpu.dot_dimension_numbers<[1], [0], [0], [1], [0, 0, 1, 1], [], []>} : vector<64x32xbf16>, vector<32x256xbf16>, vector<64x256xf32> -> vector<64x256xf32>
    %81 = arith.addf %70, %80 : vector<64x256xf32>
    %82 = vector.extract_strided_slice %6 {offsets = [0, 16], sizes = [32, 240], strides = [1, 1]} : vector<32x256xf32> to vector<32x240xf32>
    %83 = vector.extract_strided_slice %6 {offsets = [0, 0], sizes = [32, 16], strides = [1, 1]} : vector<32x256xf32> to vector<32x16xf32>
    %84 = tpu.concatenate %82, %83 in 1 : vector<32x240xf32>, vector<32x16xf32> -> vector<32x256xf32>
    %85 = vector.extract_strided_slice %0 {offsets = [7, 0], sizes = [1, 256], strides = [1, 1]} : vector<9x256xf32> to vector<1x256xf32>
    %86 = vector.broadcast %85 : vector<1x256xf32> to vector<32x256xf32>
    %87 = arith.mulf %84, %86 : vector<32x256xf32>
    %c7 = arith.constant 7 : index
    %c0_29 = arith.constant 0 : index
    %c0_30 = arith.constant 0 : index
    %88 = vector.load %arg2[%c7, %c0_29, %c0_30] : memref<9x64x32xbf16, #tpu.memory_space<vmem>>, vector<1x64x32xbf16>
    %89 = vector.shape_cast %88 : vector<1x64x32xbf16> to vector<64x32xbf16>
    %90 = arith.truncf %87 : vector<32x256xf32> to vector<32x256xbf16>
    %cst_31 = arith.constant dense<0.000000e+00> : vector<64x256xf32>
    %91 = tpu.matmul %89, %90, %cst_31 {dimension_numbers = #tpu.dot_dimension_numbers<[1], [0], [0], [1], [0, 0, 1, 1], [], []>} : vector<64x32xbf16>, vector<32x256xbf16>, vector<64x256xf32> -> vector<64x256xf32>
    %92 = arith.addf %81, %91 : vector<64x256xf32>
    %93 = vector.extract_strided_slice %6 {offsets = [0, 17], sizes = [32, 239], strides = [1, 1]} : vector<32x256xf32> to vector<32x239xf32>
    %94 = vector.extract_strided_slice %6 {offsets = [0, 0], sizes = [32, 17], strides = [1, 1]} : vector<32x256xf32> to vector<32x17xf32>
    %95 = tpu.concatenate %93, %94 in 1 : vector<32x239xf32>, vector<32x17xf32> -> vector<32x256xf32>
    %96 = vector.extract_strided_slice %0 {offsets = [8, 0], sizes = [1, 256], strides = [1, 1]} : vector<9x256xf32> to vector<1x256xf32>
    %97 = vector.broadcast %96 : vector<1x256xf32> to vector<32x256xf32>
    %98 = arith.mulf %95, %97 : vector<32x256xf32>
    %c8 = arith.constant 8 : index
    %c0_32 = arith.constant 0 : index
    %c0_33 = arith.constant 0 : index
    %99 = vector.load %arg2[%c8, %c0_32, %c0_33] : memref<9x64x32xbf16, #tpu.memory_space<vmem>>, vector<1x64x32xbf16>
    %100 = vector.shape_cast %99 : vector<1x64x32xbf16> to vector<64x32xbf16>
    %101 = arith.truncf %98 : vector<32x256xf32> to vector<32x256xbf16>
    %cst_34 = arith.constant dense<0.000000e+00> : vector<64x256xf32>
    %102 = tpu.matmul %100, %101, %cst_34 {dimension_numbers = #tpu.dot_dimension_numbers<[1], [0], [0], [1], [0, 0, 1, 1], [], []>} : vector<64x32xbf16>, vector<32x256xbf16>, vector<64x256xf32> -> vector<64x256xf32>
    %103 = arith.addf %92, %102 : vector<64x256xf32>
    %104 = vector.broadcast %1 : vector<64x1xf32> to vector<64x256xf32>
    %105 = arith.addf %103, %104 : vector<64x256xf32>
    %106 = vector.extract_strided_slice %105 {offsets = [0, 0], sizes = [48, 256], strides = [1, 1]} : vector<64x256xf32> to vector<48x256xf32>
    %107 = arith.negf %106 : vector<48x256xf32>
    %108 = math.exp %107 : vector<48x256xf32>
    %cst_35 = arith.constant 1.000000e+00 : f32
    %109 = vector.broadcast %cst_35 : f32 to vector<48x256xf32>
    %110 = arith.addf %109, %108 : vector<48x256xf32>
    %111 = arith.divf %109, %110 : vector<48x256xf32>
    %112 = vector.extract_strided_slice %105 {offsets = [48, 0], sizes = [16, 256], strides = [1, 1]} : vector<64x256xf32> to vector<16x256xf32>
    %113 = math.tanh %112 : vector<16x256xf32>
    %114 = vector.extract_strided_slice %111 {offsets = [0, 0], sizes = [16, 256], strides = [1, 1]} : vector<48x256xf32> to vector<16x256xf32>
    %115 = vector.extract_strided_slice %111 {offsets = [16, 0], sizes = [16, 256], strides = [1, 1]} : vector<48x256xf32> to vector<16x256xf32>
    %116 = vector.extract_strided_slice %111 {offsets = [32, 0], sizes = [16, 256], strides = [1, 1]} : vector<48x256xf32> to vector<16x256xf32>
    %117 = arith.mulf %115, %2 : vector<16x256xf32>
    %118 = arith.mulf %114, %113 : vector<16x256xf32>
    %119 = arith.addf %117, %118 : vector<16x256xf32>
    %120 = math.tanh %119 : vector<16x256xf32>
    %121 = arith.mulf %116, %120 : vector<16x256xf32>
    %c1_i32 = arith.constant 1 : i32
    %122 = arith.index_cast %c1_i32 : i32 to index
    %c0_36 = arith.constant 0 : index
    %c0_37 = arith.constant 0 : index
    %c0_38 = arith.constant 0 : index
    %123 = vector.load %arg1[%122, %c0_36, %c0_37, %c0_38] : memref<4x1x16x256xf32, #tpu.memory_space<vmem>>, vector<1x1x16x256xf32>
    %124 = vector.shape_cast %123 : vector<1x1x16x256xf32> to vector<16x256xf32>
    %125 = tpu.concatenate %124, %121 in 0 : vector<16x256xf32>, vector<16x256xf32> -> vector<32x256xf32>
    %cst_39 = arith.constant 0.000000e+00 : f32
    %126 = vector.broadcast %cst_39 : f32 to vector<64x256xf32>
    %127 = vector.extract_strided_slice %125 {offsets = [0, 239], sizes = [32, 17], strides = [1, 1]} : vector<32x256xf32> to vector<32x17xf32>
    %128 = vector.extract_strided_slice %125 {offsets = [0, 0], sizes = [32, 239], strides = [1, 1]} : vector<32x256xf32> to vector<32x239xf32>
    %129 = tpu.concatenate %127, %128 in 1 : vector<32x17xf32>, vector<32x239xf32> -> vector<32x256xf32>
    %130 = vector.extract_strided_slice %0 {offsets = [0, 0], sizes = [1, 256], strides = [1, 1]} : vector<9x256xf32> to vector<1x256xf32>
    %131 = vector.broadcast %130 : vector<1x256xf32> to vector<32x256xf32>
    %132 = arith.mulf %129, %131 : vector<32x256xf32>
    %c0_40 = arith.constant 0 : index
    %c0_41 = arith.constant 0 : index
    %c0_42 = arith.constant 0 : index
    %133 = vector.load %arg2[%c0_40, %c0_41, %c0_42] : memref<9x64x32xbf16, #tpu.memory_space<vmem>>, vector<1x64x32xbf16>
    %134 = vector.shape_cast %133 : vector<1x64x32xbf16> to vector<64x32xbf16>
    %135 = arith.truncf %132 : vector<32x256xf32> to vector<32x256xbf16>
    %cst_43 = arith.constant dense<0.000000e+00> : vector<64x256xf32>
    %136 = tpu.matmul %134, %135, %cst_43 {dimension_numbers = #tpu.dot_dimension_numbers<[1], [0], [0], [1], [0, 0, 1, 1], [], []>} : vector<64x32xbf16>, vector<32x256xbf16>, vector<64x256xf32> -> vector<64x256xf32>
    %137 = arith.addf %126, %136 : vector<64x256xf32>
    %138 = vector.extract_strided_slice %125 {offsets = [0, 240], sizes = [32, 16], strides = [1, 1]} : vector<32x256xf32> to vector<32x16xf32>
    %139 = vector.extract_strided_slice %125 {offsets = [0, 0], sizes = [32, 240], strides = [1, 1]} : vector<32x256xf32> to vector<32x240xf32>
    %140 = tpu.concatenate %138, %139 in 1 : vector<32x16xf32>, vector<32x240xf32> -> vector<32x256xf32>
    %141 = vector.extract_strided_slice %0 {offsets = [1, 0], sizes = [1, 256], strides = [1, 1]} : vector<9x256xf32> to vector<1x256xf32>
    %142 = vector.broadcast %141 : vector<1x256xf32> to vector<32x256xf32>
    %143 = arith.mulf %140, %142 : vector<32x256xf32>
    %c1_44 = arith.constant 1 : index
    %c0_45 = arith.constant 0 : index
    %c0_46 = arith.constant 0 : index
    %144 = vector.load %arg2[%c1_44, %c0_45, %c0_46] : memref<9x64x32xbf16, #tpu.memory_space<vmem>>, vector<1x64x32xbf16>
    %145 = vector.shape_cast %144 : vector<1x64x32xbf16> to vector<64x32xbf16>
    %146 = arith.truncf %143 : vector<32x256xf32> to vector<32x256xbf16>
    %cst_47 = arith.constant dense<0.000000e+00> : vector<64x256xf32>
    %147 = tpu.matmul %145, %146, %cst_47 {dimension_numbers = #tpu.dot_dimension_numbers<[1], [0], [0], [1], [0, 0, 1, 1], [], []>} : vector<64x32xbf16>, vector<32x256xbf16>, vector<64x256xf32> -> vector<64x256xf32>
    %148 = arith.addf %137, %147 : vector<64x256xf32>
    %149 = vector.extract_strided_slice %125 {offsets = [0, 241], sizes = [32, 15], strides = [1, 1]} : vector<32x256xf32> to vector<32x15xf32>
    %150 = vector.extract_strided_slice %125 {offsets = [0, 0], sizes = [32, 241], strides = [1, 1]} : vector<32x256xf32> to vector<32x241xf32>
    %151 = tpu.concatenate %149, %150 in 1 : vector<32x15xf32>, vector<32x241xf32> -> vector<32x256xf32>
    %152 = vector.extract_strided_slice %0 {offsets = [2, 0], sizes = [1, 256], strides = [1, 1]} : vector<9x256xf32> to vector<1x256xf32>
    %153 = vector.broadcast %152 : vector<1x256xf32> to vector<32x256xf32>
    %154 = arith.mulf %151, %153 : vector<32x256xf32>
    %c2_48 = arith.constant 2 : index
    %c0_49 = arith.constant 0 : index
    %c0_50 = arith.constant 0 : index
    %155 = vector.load %arg2[%c2_48, %c0_49, %c0_50] : memref<9x64x32xbf16, #tpu.memory_space<vmem>>, vector<1x64x32xbf16>
    %156 = vector.shape_cast %155 : vector<1x64x32xbf16> to vector<64x32xbf16>
    %157 = arith.truncf %154 : vector<32x256xf32> to vector<32x256xbf16>
    %cst_51 = arith.constant dense<0.000000e+00> : vector<64x256xf32>
    %158 = tpu.matmul %156, %157, %cst_51 {dimension_numbers = #tpu.dot_dimension_numbers<[1], [0], [0], [1], [0, 0, 1, 1], [], []>} : vector<64x32xbf16>, vector<32x256xbf16>, vector<64x256xf32> -> vector<64x256xf32>
    %159 = arith.addf %148, %158 : vector<64x256xf32>
    %160 = vector.extract_strided_slice %125 {offsets = [0, 255], sizes = [32, 1], strides = [1, 1]} : vector<32x256xf32> to vector<32x1xf32>
    %161 = vector.extract_strided_slice %125 {offsets = [0, 0], sizes = [32, 255], strides = [1, 1]} : vector<32x256xf32> to vector<32x255xf32>
    %162 = tpu.concatenate %160, %161 in 1 : vector<32x1xf32>, vector<32x255xf32> -> vector<32x256xf32>
    %163 = vector.extract_strided_slice %0 {offsets = [3, 0], sizes = [1, 256], strides = [1, 1]} : vector<9x256xf32> to vector<1x256xf32>
    %164 = vector.broadcast %163 : vector<1x256xf32> to vector<32x256xf32>
    %165 = arith.mulf %162, %164 : vector<32x256xf32>
    %c3_52 = arith.constant 3 : index
    %c0_53 = arith.constant 0 : index
    %c0_54 = arith.constant 0 : index
    %166 = vector.load %arg2[%c3_52, %c0_53, %c0_54] : memref<9x64x32xbf16, #tpu.memory_space<vmem>>, vector<1x64x32xbf16>
    %167 = vector.shape_cast %166 : vector<1x64x32xbf16> to vector<64x32xbf16>
    %168 = arith.truncf %165 : vector<32x256xf32> to vector<32x256xbf16>
    %cst_55 = arith.constant dense<0.000000e+00> : vector<64x256xf32>
    %169 = tpu.matmul %167, %168, %cst_55 {dimension_numbers = #tpu.dot_dimension_numbers<[1], [0], [0], [1], [0, 0, 1, 1], [], []>} : vector<64x32xbf16>, vector<32x256xbf16>, vector<64x256xf32> -> vector<64x256xf32>
    %170 = arith.addf %159, %169 : vector<64x256xf32>
    %171 = vector.extract_strided_slice %0 {offsets = [4, 0], sizes = [1, 256], strides = [1, 1]} : vector<9x256xf32> to vector<1x256xf32>
    %172 = vector.broadcast %171 : vector<1x256xf32> to vector<32x256xf32>
    %173 = arith.mulf %125, %172 : vector<32x256xf32>
    %c4_56 = arith.constant 4 : index
    %c0_57 = arith.constant 0 : index
    %c0_58 = arith.constant 0 : index
    %174 = vector.load %arg2[%c4_56, %c0_57, %c0_58] : memref<9x64x32xbf16, #tpu.memory_space<vmem>>, vector<1x64x32xbf16>
    %175 = vector.shape_cast %174 : vector<1x64x32xbf16> to vector<64x32xbf16>
    %176 = arith.truncf %173 : vector<32x256xf32> to vector<32x256xbf16>
    %cst_59 = arith.constant dense<0.000000e+00> : vector<64x256xf32>
    %177 = tpu.matmul %175, %176, %cst_59 {dimension_numbers = #tpu.dot_dimension_numbers<[1], [0], [0], [1], [0, 0, 1, 1], [], []>} : vector<64x32xbf16>, vector<32x256xbf16>, vector<64x256xf32> -> vector<64x256xf32>
    %178 = arith.addf %170, %177 : vector<64x256xf32>
    %179 = vector.extract_strided_slice %125 {offsets = [0, 1], sizes = [32, 255], strides = [1, 1]} : vector<32x256xf32> to vector<32x255xf32>
    %180 = vector.extract_strided_slice %125 {offsets = [0, 0], sizes = [32, 1], strides = [1, 1]} : vector<32x256xf32> to vector<32x1xf32>
    %181 = tpu.concatenate %179, %180 in 1 : vector<32x255xf32>, vector<32x1xf32> -> vector<32x256xf32>
    %182 = vector.extract_strided_slice %0 {offsets = [5, 0], sizes = [1, 256], strides = [1, 1]} : vector<9x256xf32> to vector<1x256xf32>
    %183 = vector.broadcast %182 : vector<1x256xf32> to vector<32x256xf32>
    %184 = arith.mulf %181, %183 : vector<32x256xf32>
    %c5_60 = arith.constant 5 : index
    %c0_61 = arith.constant 0 : index
    %c0_62 = arith.constant 0 : index
    %185 = vector.load %arg2[%c5_60, %c0_61, %c0_62] : memref<9x64x32xbf16, #tpu.memory_space<vmem>>, vector<1x64x32xbf16>
    %186 = vector.shape_cast %185 : vector<1x64x32xbf16> to vector<64x32xbf16>
    %187 = arith.truncf %184 : vector<32x256xf32> to vector<32x256xbf16>
    %cst_63 = arith.constant dense<0.000000e+00> : vector<64x256xf32>
    %188 = tpu.matmul %186, %187, %cst_63 {dimension_numbers = #tpu.dot_dimension_numbers<[1], [0], [0], [1], [0, 0, 1, 1], [], []>} : vector<64x32xbf16>, vector<32x256xbf16>, vector<64x256xf32> -> vector<64x256xf32>
    %189 = arith.addf %178, %188 : vector<64x256xf32>
    %190 = vector.extract_strided_slice %125 {offsets = [0, 15], sizes = [32, 241], strides = [1, 1]} : vector<32x256xf32> to vector<32x241xf32>
    %191 = vector.extract_strided_slice %125 {offsets = [0, 0], sizes = [32, 15], strides = [1, 1]} : vector<32x256xf32> to vector<32x15xf32>
    %192 = tpu.concatenate %190, %191 in 1 : vector<32x241xf32>, vector<32x15xf32> -> vector<32x256xf32>
    %193 = vector.extract_strided_slice %0 {offsets = [6, 0], sizes = [1, 256], strides = [1, 1]} : vector<9x256xf32> to vector<1x256xf32>
    %194 = vector.broadcast %193 : vector<1x256xf32> to vector<32x256xf32>
    %195 = arith.mulf %192, %194 : vector<32x256xf32>
    %c6_64 = arith.constant 6 : index
    %c0_65 = arith.constant 0 : index
    %c0_66 = arith.constant 0 : index
    %196 = vector.load %arg2[%c6_64, %c0_65, %c0_66] : memref<9x64x32xbf16, #tpu.memory_space<vmem>>, vector<1x64x32xbf16>
    %197 = vector.shape_cast %196 : vector<1x64x32xbf16> to vector<64x32xbf16>
    %198 = arith.truncf %195 : vector<32x256xf32> to vector<32x256xbf16>
    %cst_67 = arith.constant dense<0.000000e+00> : vector<64x256xf32>
    %199 = tpu.matmul %197, %198, %cst_67 {dimension_numbers = #tpu.dot_dimension_numbers<[1], [0], [0], [1], [0, 0, 1, 1], [], []>} : vector<64x32xbf16>, vector<32x256xbf16>, vector<64x256xf32> -> vector<64x256xf32>
    %200 = arith.addf %189, %199 : vector<64x256xf32>
    %201 = vector.extract_strided_slice %125 {offsets = [0, 16], sizes = [32, 240], strides = [1, 1]} : vector<32x256xf32> to vector<32x240xf32>
    %202 = vector.extract_strided_slice %125 {offsets = [0, 0], sizes = [32, 16], strides = [1, 1]} : vector<32x256xf32> to vector<32x16xf32>
    %203 = tpu.concatenate %201, %202 in 1 : vector<32x240xf32>, vector<32x16xf32> -> vector<32x256xf32>
    %204 = vector.extract_strided_slice %0 {offsets = [7, 0], sizes = [1, 256], strides = [1, 1]} : vector<9x256xf32> to vector<1x256xf32>
    %205 = vector.broadcast %204 : vector<1x256xf32> to vector<32x256xf32>
    %206 = arith.mulf %203, %205 : vector<32x256xf32>
    %c7_68 = arith.constant 7 : index
    %c0_69 = arith.constant 0 : index
    %c0_70 = arith.constant 0 : index
    %207 = vector.load %arg2[%c7_68, %c0_69, %c0_70] : memref<9x64x32xbf16, #tpu.memory_space<vmem>>, vector<1x64x32xbf16>
    %208 = vector.shape_cast %207 : vector<1x64x32xbf16> to vector<64x32xbf16>
    %209 = arith.truncf %206 : vector<32x256xf32> to vector<32x256xbf16>
    %cst_71 = arith.constant dense<0.000000e+00> : vector<64x256xf32>
    %210 = tpu.matmul %208, %209, %cst_71 {dimension_numbers = #tpu.dot_dimension_numbers<[1], [0], [0], [1], [0, 0, 1, 1], [], []>} : vector<64x32xbf16>, vector<32x256xbf16>, vector<64x256xf32> -> vector<64x256xf32>
    %211 = arith.addf %200, %210 : vector<64x256xf32>
    %212 = vector.extract_strided_slice %125 {offsets = [0, 17], sizes = [32, 239], strides = [1, 1]} : vector<32x256xf32> to vector<32x239xf32>
    %213 = vector.extract_strided_slice %125 {offsets = [0, 0], sizes = [32, 17], strides = [1, 1]} : vector<32x256xf32> to vector<32x17xf32>
    %214 = tpu.concatenate %212, %213 in 1 : vector<32x239xf32>, vector<32x17xf32> -> vector<32x256xf32>
    %215 = vector.extract_strided_slice %0 {offsets = [8, 0], sizes = [1, 256], strides = [1, 1]} : vector<9x256xf32> to vector<1x256xf32>
    %216 = vector.broadcast %215 : vector<1x256xf32> to vector<32x256xf32>
    %217 = arith.mulf %214, %216 : vector<32x256xf32>
    %c8_72 = arith.constant 8 : index
    %c0_73 = arith.constant 0 : index
    %c0_74 = arith.constant 0 : index
    %218 = vector.load %arg2[%c8_72, %c0_73, %c0_74] : memref<9x64x32xbf16, #tpu.memory_space<vmem>>, vector<1x64x32xbf16>
    %219 = vector.shape_cast %218 : vector<1x64x32xbf16> to vector<64x32xbf16>
    %220 = arith.truncf %217 : vector<32x256xf32> to vector<32x256xbf16>
    %cst_75 = arith.constant dense<0.000000e+00> : vector<64x256xf32>
    %221 = tpu.matmul %219, %220, %cst_75 {dimension_numbers = #tpu.dot_dimension_numbers<[1], [0], [0], [1], [0, 0, 1, 1], [], []>} : vector<64x32xbf16>, vector<32x256xbf16>, vector<64x256xf32> -> vector<64x256xf32>
    %222 = arith.addf %211, %221 : vector<64x256xf32>
    %223 = vector.broadcast %1 : vector<64x1xf32> to vector<64x256xf32>
    %224 = arith.addf %222, %223 : vector<64x256xf32>
    %225 = vector.extract_strided_slice %224 {offsets = [0, 0], sizes = [48, 256], strides = [1, 1]} : vector<64x256xf32> to vector<48x256xf32>
    %226 = arith.negf %225 : vector<48x256xf32>
    %227 = math.exp %226 : vector<48x256xf32>
    %cst_76 = arith.constant 1.000000e+00 : f32
    %228 = vector.broadcast %cst_76 : f32 to vector<48x256xf32>
    %229 = arith.addf %228, %227 : vector<48x256xf32>
    %230 = arith.divf %228, %229 : vector<48x256xf32>
    %231 = vector.extract_strided_slice %224 {offsets = [48, 0], sizes = [16, 256], strides = [1, 1]} : vector<64x256xf32> to vector<16x256xf32>
    %232 = math.tanh %231 : vector<16x256xf32>
    %233 = vector.extract_strided_slice %230 {offsets = [0, 0], sizes = [16, 256], strides = [1, 1]} : vector<48x256xf32> to vector<16x256xf32>
    %234 = vector.extract_strided_slice %230 {offsets = [16, 0], sizes = [16, 256], strides = [1, 1]} : vector<48x256xf32> to vector<16x256xf32>
    %235 = vector.extract_strided_slice %230 {offsets = [32, 0], sizes = [16, 256], strides = [1, 1]} : vector<48x256xf32> to vector<16x256xf32>
    %236 = arith.mulf %234, %119 : vector<16x256xf32>
    %237 = arith.mulf %233, %232 : vector<16x256xf32>
    %238 = arith.addf %236, %237 : vector<16x256xf32>
    %239 = math.tanh %238 : vector<16x256xf32>
    %240 = arith.mulf %235, %239 : vector<16x256xf32>
    %c2_i32 = arith.constant 2 : i32
    %241 = arith.index_cast %c2_i32 : i32 to index
    %c0_77 = arith.constant 0 : index
    %c0_78 = arith.constant 0 : index
    %c0_79 = arith.constant 0 : index
    %242 = vector.load %arg1[%241, %c0_77, %c0_78, %c0_79] : memref<4x1x16x256xf32, #tpu.memory_space<vmem>>, vector<1x1x16x256xf32>
    %243 = vector.shape_cast %242 : vector<1x1x16x256xf32> to vector<16x256xf32>
    %244 = tpu.concatenate %243, %240 in 0 : vector<16x256xf32>, vector<16x256xf32> -> vector<32x256xf32>
    %cst_80 = arith.constant 0.000000e+00 : f32
    %245 = vector.broadcast %cst_80 : f32 to vector<64x256xf32>
    %246 = vector.extract_strided_slice %244 {offsets = [0, 239], sizes = [32, 17], strides = [1, 1]} : vector<32x256xf32> to vector<32x17xf32>
    %247 = vector.extract_strided_slice %244 {offsets = [0, 0], sizes = [32, 239], strides = [1, 1]} : vector<32x256xf32> to vector<32x239xf32>
    %248 = tpu.concatenate %246, %247 in 1 : vector<32x17xf32>, vector<32x239xf32> -> vector<32x256xf32>
    %249 = vector.extract_strided_slice %0 {offsets = [0, 0], sizes = [1, 256], strides = [1, 1]} : vector<9x256xf32> to vector<1x256xf32>
    %250 = vector.broadcast %249 : vector<1x256xf32> to vector<32x256xf32>
    %251 = arith.mulf %248, %250 : vector<32x256xf32>
    %c0_81 = arith.constant 0 : index
    %c0_82 = arith.constant 0 : index
    %c0_83 = arith.constant 0 : index
    %252 = vector.load %arg2[%c0_81, %c0_82, %c0_83] : memref<9x64x32xbf16, #tpu.memory_space<vmem>>, vector<1x64x32xbf16>
    %253 = vector.shape_cast %252 : vector<1x64x32xbf16> to vector<64x32xbf16>
    %254 = arith.truncf %251 : vector<32x256xf32> to vector<32x256xbf16>
    %cst_84 = arith.constant dense<0.000000e+00> : vector<64x256xf32>
    %255 = tpu.matmul %253, %254, %cst_84 {dimension_numbers = #tpu.dot_dimension_numbers<[1], [0], [0], [1], [0, 0, 1, 1], [], []>} : vector<64x32xbf16>, vector<32x256xbf16>, vector<64x256xf32> -> vector<64x256xf32>
    %256 = arith.addf %245, %255 : vector<64x256xf32>
    %257 = vector.extract_strided_slice %244 {offsets = [0, 240], sizes = [32, 16], strides = [1, 1]} : vector<32x256xf32> to vector<32x16xf32>
    %258 = vector.extract_strided_slice %244 {offsets = [0, 0], sizes = [32, 240], strides = [1, 1]} : vector<32x256xf32> to vector<32x240xf32>
    %259 = tpu.concatenate %257, %258 in 1 : vector<32x16xf32>, vector<32x240xf32> -> vector<32x256xf32>
    %260 = vector.extract_strided_slice %0 {offsets = [1, 0], sizes = [1, 256], strides = [1, 1]} : vector<9x256xf32> to vector<1x256xf32>
    %261 = vector.broadcast %260 : vector<1x256xf32> to vector<32x256xf32>
    %262 = arith.mulf %259, %261 : vector<32x256xf32>
    %c1_85 = arith.constant 1 : index
    %c0_86 = arith.constant 0 : index
    %c0_87 = arith.constant 0 : index
    %263 = vector.load %arg2[%c1_85, %c0_86, %c0_87] : memref<9x64x32xbf16, #tpu.memory_space<vmem>>, vector<1x64x32xbf16>
    %264 = vector.shape_cast %263 : vector<1x64x32xbf16> to vector<64x32xbf16>
    %265 = arith.truncf %262 : vector<32x256xf32> to vector<32x256xbf16>
    %cst_88 = arith.constant dense<0.000000e+00> : vector<64x256xf32>
    %266 = tpu.matmul %264, %265, %cst_88 {dimension_numbers = #tpu.dot_dimension_numbers<[1], [0], [0], [1], [0, 0, 1, 1], [], []>} : vector<64x32xbf16>, vector<32x256xbf16>, vector<64x256xf32> -> vector<64x256xf32>
    %267 = arith.addf %256, %266 : vector<64x256xf32>
    %268 = vector.extract_strided_slice %244 {offsets = [0, 241], sizes = [32, 15], strides = [1, 1]} : vector<32x256xf32> to vector<32x15xf32>
    %269 = vector.extract_strided_slice %244 {offsets = [0, 0], sizes = [32, 241], strides = [1, 1]} : vector<32x256xf32> to vector<32x241xf32>
    %270 = tpu.concatenate %268, %269 in 1 : vector<32x15xf32>, vector<32x241xf32> -> vector<32x256xf32>
    %271 = vector.extract_strided_slice %0 {offsets = [2, 0], sizes = [1, 256], strides = [1, 1]} : vector<9x256xf32> to vector<1x256xf32>
    %272 = vector.broadcast %271 : vector<1x256xf32> to vector<32x256xf32>
    %273 = arith.mulf %270, %272 : vector<32x256xf32>
    %c2_89 = arith.constant 2 : index
    %c0_90 = arith.constant 0 : index
    %c0_91 = arith.constant 0 : index
    %274 = vector.load %arg2[%c2_89, %c0_90, %c0_91] : memref<9x64x32xbf16, #tpu.memory_space<vmem>>, vector<1x64x32xbf16>
    %275 = vector.shape_cast %274 : vector<1x64x32xbf16> to vector<64x32xbf16>
    %276 = arith.truncf %273 : vector<32x256xf32> to vector<32x256xbf16>
    %cst_92 = arith.constant dense<0.000000e+00> : vector<64x256xf32>
    %277 = tpu.matmul %275, %276, %cst_92 {dimension_numbers = #tpu.dot_dimension_numbers<[1], [0], [0], [1], [0, 0, 1, 1], [], []>} : vector<64x32xbf16>, vector<32x256xbf16>, vector<64x256xf32> -> vector<64x256xf32>
    %278 = arith.addf %267, %277 : vector<64x256xf32>
    %279 = vector.extract_strided_slice %244 {offsets = [0, 255], sizes = [32, 1], strides = [1, 1]} : vector<32x256xf32> to vector<32x1xf32>
    %280 = vector.extract_strided_slice %244 {offsets = [0, 0], sizes = [32, 255], strides = [1, 1]} : vector<32x256xf32> to vector<32x255xf32>
    %281 = tpu.concatenate %279, %280 in 1 : vector<32x1xf32>, vector<32x255xf32> -> vector<32x256xf32>
    %282 = vector.extract_strided_slice %0 {offsets = [3, 0], sizes = [1, 256], strides = [1, 1]} : vector<9x256xf32> to vector<1x256xf32>
    %283 = vector.broadcast %282 : vector<1x256xf32> to vector<32x256xf32>
    %284 = arith.mulf %281, %283 : vector<32x256xf32>
    %c3_93 = arith.constant 3 : index
    %c0_94 = arith.constant 0 : index
    %c0_95 = arith.constant 0 : index
    %285 = vector.load %arg2[%c3_93, %c0_94, %c0_95] : memref<9x64x32xbf16, #tpu.memory_space<vmem>>, vector<1x64x32xbf16>
    %286 = vector.shape_cast %285 : vector<1x64x32xbf16> to vector<64x32xbf16>
    %287 = arith.truncf %284 : vector<32x256xf32> to vector<32x256xbf16>
    %cst_96 = arith.constant dense<0.000000e+00> : vector<64x256xf32>
    %288 = tpu.matmul %286, %287, %cst_96 {dimension_numbers = #tpu.dot_dimension_numbers<[1], [0], [0], [1], [0, 0, 1, 1], [], []>} : vector<64x32xbf16>, vector<32x256xbf16>, vector<64x256xf32> -> vector<64x256xf32>
    %289 = arith.addf %278, %288 : vector<64x256xf32>
    %290 = vector.extract_strided_slice %0 {offsets = [4, 0], sizes = [1, 256], strides = [1, 1]} : vector<9x256xf32> to vector<1x256xf32>
    %291 = vector.broadcast %290 : vector<1x256xf32> to vector<32x256xf32>
    %292 = arith.mulf %244, %291 : vector<32x256xf32>
    %c4_97 = arith.constant 4 : index
    %c0_98 = arith.constant 0 : index
    %c0_99 = arith.constant 0 : index
    %293 = vector.load %arg2[%c4_97, %c0_98, %c0_99] : memref<9x64x32xbf16, #tpu.memory_space<vmem>>, vector<1x64x32xbf16>
    %294 = vector.shape_cast %293 : vector<1x64x32xbf16> to vector<64x32xbf16>
    %295 = arith.truncf %292 : vector<32x256xf32> to vector<32x256xbf16>
    %cst_100 = arith.constant dense<0.000000e+00> : vector<64x256xf32>
    %296 = tpu.matmul %294, %295, %cst_100 {dimension_numbers = #tpu.dot_dimension_numbers<[1], [0], [0], [1], [0, 0, 1, 1], [], []>} : vector<64x32xbf16>, vector<32x256xbf16>, vector<64x256xf32> -> vector<64x256xf32>
    %297 = arith.addf %289, %296 : vector<64x256xf32>
    %298 = vector.extract_strided_slice %244 {offsets = [0, 1], sizes = [32, 255], strides = [1, 1]} : vector<32x256xf32> to vector<32x255xf32>
    %299 = vector.extract_strided_slice %244 {offsets = [0, 0], sizes = [32, 1], strides = [1, 1]} : vector<32x256xf32> to vector<32x1xf32>
    %300 = tpu.concatenate %298, %299 in 1 : vector<32x255xf32>, vector<32x1xf32> -> vector<32x256xf32>
    %301 = vector.extract_strided_slice %0 {offsets = [5, 0], sizes = [1, 256], strides = [1, 1]} : vector<9x256xf32> to vector<1x256xf32>
    %302 = vector.broadcast %301 : vector<1x256xf32> to vector<32x256xf32>
    %303 = arith.mulf %300, %302 : vector<32x256xf32>
    %c5_101 = arith.constant 5 : index
    %c0_102 = arith.constant 0 : index
    %c0_103 = arith.constant 0 : index
    %304 = vector.load %arg2[%c5_101, %c0_102, %c0_103] : memref<9x64x32xbf16, #tpu.memory_space<vmem>>, vector<1x64x32xbf16>
    %305 = vector.shape_cast %304 : vector<1x64x32xbf16> to vector<64x32xbf16>
    %306 = arith.truncf %303 : vector<32x256xf32> to vector<32x256xbf16>
    %cst_104 = arith.constant dense<0.000000e+00> : vector<64x256xf32>
    %307 = tpu.matmul %305, %306, %cst_104 {dimension_numbers = #tpu.dot_dimension_numbers<[1], [0], [0], [1], [0, 0, 1, 1], [], []>} : vector<64x32xbf16>, vector<32x256xbf16>, vector<64x256xf32> -> vector<64x256xf32>
    %308 = arith.addf %297, %307 : vector<64x256xf32>
    %309 = vector.extract_strided_slice %244 {offsets = [0, 15], sizes = [32, 241], strides = [1, 1]} : vector<32x256xf32> to vector<32x241xf32>
    %310 = vector.extract_strided_slice %244 {offsets = [0, 0], sizes = [32, 15], strides = [1, 1]} : vector<32x256xf32> to vector<32x15xf32>
    %311 = tpu.concatenate %309, %310 in 1 : vector<32x241xf32>, vector<32x15xf32> -> vector<32x256xf32>
    %312 = vector.extract_strided_slice %0 {offsets = [6, 0], sizes = [1, 256], strides = [1, 1]} : vector<9x256xf32> to vector<1x256xf32>
    %313 = vector.broadcast %312 : vector<1x256xf32> to vector<32x256xf32>
    %314 = arith.mulf %311, %313 : vector<32x256xf32>
    %c6_105 = arith.constant 6 : index
    %c0_106 = arith.constant 0 : index
    %c0_107 = arith.constant 0 : index
    %315 = vector.load %arg2[%c6_105, %c0_106, %c0_107] : memref<9x64x32xbf16, #tpu.memory_space<vmem>>, vector<1x64x32xbf16>
    %316 = vector.shape_cast %315 : vector<1x64x32xbf16> to vector<64x32xbf16>
    %317 = arith.truncf %314 : vector<32x256xf32> to vector<32x256xbf16>
    %cst_108 = arith.constant dense<0.000000e+00> : vector<64x256xf32>
    %318 = tpu.matmul %316, %317, %cst_108 {dimension_numbers = #tpu.dot_dimension_numbers<[1], [0], [0], [1], [0, 0, 1, 1], [], []>} : vector<64x32xbf16>, vector<32x256xbf16>, vector<64x256xf32> -> vector<64x256xf32>
    %319 = arith.addf %308, %318 : vector<64x256xf32>
    %320 = vector.extract_strided_slice %244 {offsets = [0, 16], sizes = [32, 240], strides = [1, 1]} : vector<32x256xf32> to vector<32x240xf32>
    %321 = vector.extract_strided_slice %244 {offsets = [0, 0], sizes = [32, 16], strides = [1, 1]} : vector<32x256xf32> to vector<32x16xf32>
    %322 = tpu.concatenate %320, %321 in 1 : vector<32x240xf32>, vector<32x16xf32> -> vector<32x256xf32>
    %323 = vector.extract_strided_slice %0 {offsets = [7, 0], sizes = [1, 256], strides = [1, 1]} : vector<9x256xf32> to vector<1x256xf32>
    %324 = vector.broadcast %323 : vector<1x256xf32> to vector<32x256xf32>
    %325 = arith.mulf %322, %324 : vector<32x256xf32>
    %c7_109 = arith.constant 7 : index
    %c0_110 = arith.constant 0 : index
    %c0_111 = arith.constant 0 : index
    %326 = vector.load %arg2[%c7_109, %c0_110, %c0_111] : memref<9x64x32xbf16, #tpu.memory_space<vmem>>, vector<1x64x32xbf16>
    %327 = vector.shape_cast %326 : vector<1x64x32xbf16> to vector<64x32xbf16>
    %328 = arith.truncf %325 : vector<32x256xf32> to vector<32x256xbf16>
    %cst_112 = arith.constant dense<0.000000e+00> : vector<64x256xf32>
    %329 = tpu.matmul %327, %328, %cst_112 {dimension_numbers = #tpu.dot_dimension_numbers<[1], [0], [0], [1], [0, 0, 1, 1], [], []>} : vector<64x32xbf16>, vector<32x256xbf16>, vector<64x256xf32> -> vector<64x256xf32>
    %330 = arith.addf %319, %329 : vector<64x256xf32>
    %331 = vector.extract_strided_slice %244 {offsets = [0, 17], sizes = [32, 239], strides = [1, 1]} : vector<32x256xf32> to vector<32x239xf32>
    %332 = vector.extract_strided_slice %244 {offsets = [0, 0], sizes = [32, 17], strides = [1, 1]} : vector<32x256xf32> to vector<32x17xf32>
    %333 = tpu.concatenate %331, %332 in 1 : vector<32x239xf32>, vector<32x17xf32> -> vector<32x256xf32>
    %334 = vector.extract_strided_slice %0 {offsets = [8, 0], sizes = [1, 256], strides = [1, 1]} : vector<9x256xf32> to vector<1x256xf32>
    %335 = vector.broadcast %334 : vector<1x256xf32> to vector<32x256xf32>
    %336 = arith.mulf %333, %335 : vector<32x256xf32>
    %c8_113 = arith.constant 8 : index
    %c0_114 = arith.constant 0 : index
    %c0_115 = arith.constant 0 : index
    %337 = vector.load %arg2[%c8_113, %c0_114, %c0_115] : memref<9x64x32xbf16, #tpu.memory_space<vmem>>, vector<1x64x32xbf16>
    %338 = vector.shape_cast %337 : vector<1x64x32xbf16> to vector<64x32xbf16>
    %339 = arith.truncf %336 : vector<32x256xf32> to vector<32x256xbf16>
    %cst_116 = arith.constant dense<0.000000e+00> : vector<64x256xf32>
    %340 = tpu.matmul %338, %339, %cst_116 {dimension_numbers = #tpu.dot_dimension_numbers<[1], [0], [0], [1], [0, 0, 1, 1], [], []>} : vector<64x32xbf16>, vector<32x256xbf16>, vector<64x256xf32> -> vector<64x256xf32>
    %341 = arith.addf %330, %340 : vector<64x256xf32>
    %342 = vector.broadcast %1 : vector<64x1xf32> to vector<64x256xf32>
    %343 = arith.addf %341, %342 : vector<64x256xf32>
    %344 = vector.extract_strided_slice %343 {offsets = [0, 0], sizes = [48, 256], strides = [1, 1]} : vector<64x256xf32> to vector<48x256xf32>
    %345 = arith.negf %344 : vector<48x256xf32>
    %346 = math.exp %345 : vector<48x256xf32>
    %cst_117 = arith.constant 1.000000e+00 : f32
    %347 = vector.broadcast %cst_117 : f32 to vector<48x256xf32>
    %348 = arith.addf %347, %346 : vector<48x256xf32>
    %349 = arith.divf %347, %348 : vector<48x256xf32>
    %350 = vector.extract_strided_slice %343 {offsets = [48, 0], sizes = [16, 256], strides = [1, 1]} : vector<64x256xf32> to vector<16x256xf32>
    %351 = math.tanh %350 : vector<16x256xf32>
    %352 = vector.extract_strided_slice %349 {offsets = [0, 0], sizes = [16, 256], strides = [1, 1]} : vector<48x256xf32> to vector<16x256xf32>
    %353 = vector.extract_strided_slice %349 {offsets = [16, 0], sizes = [16, 256], strides = [1, 1]} : vector<48x256xf32> to vector<16x256xf32>
    %354 = vector.extract_strided_slice %349 {offsets = [32, 0], sizes = [16, 256], strides = [1, 1]} : vector<48x256xf32> to vector<16x256xf32>
    %355 = arith.mulf %353, %238 : vector<16x256xf32>
    %356 = arith.mulf %352, %351 : vector<16x256xf32>
    %357 = arith.addf %355, %356 : vector<16x256xf32>
    %358 = math.tanh %357 : vector<16x256xf32>
    %359 = arith.mulf %354, %358 : vector<16x256xf32>
    %c3_i32 = arith.constant 3 : i32
    %360 = arith.index_cast %c3_i32 : i32 to index
    %c0_118 = arith.constant 0 : index
    %c0_119 = arith.constant 0 : index
    %c0_120 = arith.constant 0 : index
    %361 = vector.load %arg1[%360, %c0_118, %c0_119, %c0_120] : memref<4x1x16x256xf32, #tpu.memory_space<vmem>>, vector<1x1x16x256xf32>
    %362 = vector.shape_cast %361 : vector<1x1x16x256xf32> to vector<16x256xf32>
    %363 = tpu.concatenate %362, %359 in 0 : vector<16x256xf32>, vector<16x256xf32> -> vector<32x256xf32>
    %cst_121 = arith.constant 0.000000e+00 : f32
    %364 = vector.broadcast %cst_121 : f32 to vector<64x256xf32>
    %365 = vector.extract_strided_slice %363 {offsets = [0, 239], sizes = [32, 17], strides = [1, 1]} : vector<32x256xf32> to vector<32x17xf32>
    %366 = vector.extract_strided_slice %363 {offsets = [0, 0], sizes = [32, 239], strides = [1, 1]} : vector<32x256xf32> to vector<32x239xf32>
    %367 = tpu.concatenate %365, %366 in 1 : vector<32x17xf32>, vector<32x239xf32> -> vector<32x256xf32>
    %368 = vector.extract_strided_slice %0 {offsets = [0, 0], sizes = [1, 256], strides = [1, 1]} : vector<9x256xf32> to vector<1x256xf32>
    %369 = vector.broadcast %368 : vector<1x256xf32> to vector<32x256xf32>
    %370 = arith.mulf %367, %369 : vector<32x256xf32>
    %c0_122 = arith.constant 0 : index
    %c0_123 = arith.constant 0 : index
    %c0_124 = arith.constant 0 : index
    %371 = vector.load %arg2[%c0_122, %c0_123, %c0_124] : memref<9x64x32xbf16, #tpu.memory_space<vmem>>, vector<1x64x32xbf16>
    %372 = vector.shape_cast %371 : vector<1x64x32xbf16> to vector<64x32xbf16>
    %373 = arith.truncf %370 : vector<32x256xf32> to vector<32x256xbf16>
    %cst_125 = arith.constant dense<0.000000e+00> : vector<64x256xf32>
    %374 = tpu.matmul %372, %373, %cst_125 {dimension_numbers = #tpu.dot_dimension_numbers<[1], [0], [0], [1], [0, 0, 1, 1], [], []>} : vector<64x32xbf16>, vector<32x256xbf16>, vector<64x256xf32> -> vector<64x256xf32>
    %375 = arith.addf %364, %374 : vector<64x256xf32>
    %376 = vector.extract_strided_slice %363 {offsets = [0, 240], sizes = [32, 16], strides = [1, 1]} : vector<32x256xf32> to vector<32x16xf32>
    %377 = vector.extract_strided_slice %363 {offsets = [0, 0], sizes = [32, 240], strides = [1, 1]} : vector<32x256xf32> to vector<32x240xf32>
    %378 = tpu.concatenate %376, %377 in 1 : vector<32x16xf32>, vector<32x240xf32> -> vector<32x256xf32>
    %379 = vector.extract_strided_slice %0 {offsets = [1, 0], sizes = [1, 256], strides = [1, 1]} : vector<9x256xf32> to vector<1x256xf32>
    %380 = vector.broadcast %379 : vector<1x256xf32> to vector<32x256xf32>
    %381 = arith.mulf %378, %380 : vector<32x256xf32>
    %c1_126 = arith.constant 1 : index
    %c0_127 = arith.constant 0 : index
    %c0_128 = arith.constant 0 : index
    %382 = vector.load %arg2[%c1_126, %c0_127, %c0_128] : memref<9x64x32xbf16, #tpu.memory_space<vmem>>, vector<1x64x32xbf16>
    %383 = vector.shape_cast %382 : vector<1x64x32xbf16> to vector<64x32xbf16>
    %384 = arith.truncf %381 : vector<32x256xf32> to vector<32x256xbf16>
    %cst_129 = arith.constant dense<0.000000e+00> : vector<64x256xf32>
    %385 = tpu.matmul %383, %384, %cst_129 {dimension_numbers = #tpu.dot_dimension_numbers<[1], [0], [0], [1], [0, 0, 1, 1], [], []>} : vector<64x32xbf16>, vector<32x256xbf16>, vector<64x256xf32> -> vector<64x256xf32>
    %386 = arith.addf %375, %385 : vector<64x256xf32>
    %387 = vector.extract_strided_slice %363 {offsets = [0, 241], sizes = [32, 15], strides = [1, 1]} : vector<32x256xf32> to vector<32x15xf32>
    %388 = vector.extract_strided_slice %363 {offsets = [0, 0], sizes = [32, 241], strides = [1, 1]} : vector<32x256xf32> to vector<32x241xf32>
    %389 = tpu.concatenate %387, %388 in 1 : vector<32x15xf32>, vector<32x241xf32> -> vector<32x256xf32>
    %390 = vector.extract_strided_slice %0 {offsets = [2, 0], sizes = [1, 256], strides = [1, 1]} : vector<9x256xf32> to vector<1x256xf32>
    %391 = vector.broadcast %390 : vector<1x256xf32> to vector<32x256xf32>
    %392 = arith.mulf %389, %391 : vector<32x256xf32>
    %c2_130 = arith.constant 2 : index
    %c0_131 = arith.constant 0 : index
    %c0_132 = arith.constant 0 : index
    %393 = vector.load %arg2[%c2_130, %c0_131, %c0_132] : memref<9x64x32xbf16, #tpu.memory_space<vmem>>, vector<1x64x32xbf16>
    %394 = vector.shape_cast %393 : vector<1x64x32xbf16> to vector<64x32xbf16>
    %395 = arith.truncf %392 : vector<32x256xf32> to vector<32x256xbf16>
    %cst_133 = arith.constant dense<0.000000e+00> : vector<64x256xf32>
    %396 = tpu.matmul %394, %395, %cst_133 {dimension_numbers = #tpu.dot_dimension_numbers<[1], [0], [0], [1], [0, 0, 1, 1], [], []>} : vector<64x32xbf16>, vector<32x256xbf16>, vector<64x256xf32> -> vector<64x256xf32>
    %397 = arith.addf %386, %396 : vector<64x256xf32>
    %398 = vector.extract_strided_slice %363 {offsets = [0, 255], sizes = [32, 1], strides = [1, 1]} : vector<32x256xf32> to vector<32x1xf32>
    %399 = vector.extract_strided_slice %363 {offsets = [0, 0], sizes = [32, 255], strides = [1, 1]} : vector<32x256xf32> to vector<32x255xf32>
    %400 = tpu.concatenate %398, %399 in 1 : vector<32x1xf32>, vector<32x255xf32> -> vector<32x256xf32>
    %401 = vector.extract_strided_slice %0 {offsets = [3, 0], sizes = [1, 256], strides = [1, 1]} : vector<9x256xf32> to vector<1x256xf32>
    %402 = vector.broadcast %401 : vector<1x256xf32> to vector<32x256xf32>
    %403 = arith.mulf %400, %402 : vector<32x256xf32>
    %c3_134 = arith.constant 3 : index
    %c0_135 = arith.constant 0 : index
    %c0_136 = arith.constant 0 : index
    %404 = vector.load %arg2[%c3_134, %c0_135, %c0_136] : memref<9x64x32xbf16, #tpu.memory_space<vmem>>, vector<1x64x32xbf16>
    %405 = vector.shape_cast %404 : vector<1x64x32xbf16> to vector<64x32xbf16>
    %406 = arith.truncf %403 : vector<32x256xf32> to vector<32x256xbf16>
    %cst_137 = arith.constant dense<0.000000e+00> : vector<64x256xf32>
    %407 = tpu.matmul %405, %406, %cst_137 {dimension_numbers = #tpu.dot_dimension_numbers<[1], [0], [0], [1], [0, 0, 1, 1], [], []>} : vector<64x32xbf16>, vector<32x256xbf16>, vector<64x256xf32> -> vector<64x256xf32>
    %408 = arith.addf %397, %407 : vector<64x256xf32>
    %409 = vector.extract_strided_slice %0 {offsets = [4, 0], sizes = [1, 256], strides = [1, 1]} : vector<9x256xf32> to vector<1x256xf32>
    %410 = vector.broadcast %409 : vector<1x256xf32> to vector<32x256xf32>
    %411 = arith.mulf %363, %410 : vector<32x256xf32>
    %c4_138 = arith.constant 4 : index
    %c0_139 = arith.constant 0 : index
    %c0_140 = arith.constant 0 : index
    %412 = vector.load %arg2[%c4_138, %c0_139, %c0_140] : memref<9x64x32xbf16, #tpu.memory_space<vmem>>, vector<1x64x32xbf16>
    %413 = vector.shape_cast %412 : vector<1x64x32xbf16> to vector<64x32xbf16>
    %414 = arith.truncf %411 : vector<32x256xf32> to vector<32x256xbf16>
    %cst_141 = arith.constant dense<0.000000e+00> : vector<64x256xf32>
    %415 = tpu.matmul %413, %414, %cst_141 {dimension_numbers = #tpu.dot_dimension_numbers<[1], [0], [0], [1], [0, 0, 1, 1], [], []>} : vector<64x32xbf16>, vector<32x256xbf16>, vector<64x256xf32> -> vector<64x256xf32>
    %416 = arith.addf %408, %415 : vector<64x256xf32>
    %417 = vector.extract_strided_slice %363 {offsets = [0, 1], sizes = [32, 255], strides = [1, 1]} : vector<32x256xf32> to vector<32x255xf32>
    %418 = vector.extract_strided_slice %363 {offsets = [0, 0], sizes = [32, 1], strides = [1, 1]} : vector<32x256xf32> to vector<32x1xf32>
    %419 = tpu.concatenate %417, %418 in 1 : vector<32x255xf32>, vector<32x1xf32> -> vector<32x256xf32>
    %420 = vector.extract_strided_slice %0 {offsets = [5, 0], sizes = [1, 256], strides = [1, 1]} : vector<9x256xf32> to vector<1x256xf32>
    %421 = vector.broadcast %420 : vector<1x256xf32> to vector<32x256xf32>
    %422 = arith.mulf %419, %421 : vector<32x256xf32>
    %c5_142 = arith.constant 5 : index
    %c0_143 = arith.constant 0 : index
    %c0_144 = arith.constant 0 : index
    %423 = vector.load %arg2[%c5_142, %c0_143, %c0_144] : memref<9x64x32xbf16, #tpu.memory_space<vmem>>, vector<1x64x32xbf16>
    %424 = vector.shape_cast %423 : vector<1x64x32xbf16> to vector<64x32xbf16>
    %425 = arith.truncf %422 : vector<32x256xf32> to vector<32x256xbf16>
    %cst_145 = arith.constant dense<0.000000e+00> : vector<64x256xf32>
    %426 = tpu.matmul %424, %425, %cst_145 {dimension_numbers = #tpu.dot_dimension_numbers<[1], [0], [0], [1], [0, 0, 1, 1], [], []>} : vector<64x32xbf16>, vector<32x256xbf16>, vector<64x256xf32> -> vector<64x256xf32>
    %427 = arith.addf %416, %426 : vector<64x256xf32>
    %428 = vector.extract_strided_slice %363 {offsets = [0, 15], sizes = [32, 241], strides = [1, 1]} : vector<32x256xf32> to vector<32x241xf32>
    %429 = vector.extract_strided_slice %363 {offsets = [0, 0], sizes = [32, 15], strides = [1, 1]} : vector<32x256xf32> to vector<32x15xf32>
    %430 = tpu.concatenate %428, %429 in 1 : vector<32x241xf32>, vector<32x15xf32> -> vector<32x256xf32>
    %431 = vector.extract_strided_slice %0 {offsets = [6, 0], sizes = [1, 256], strides = [1, 1]} : vector<9x256xf32> to vector<1x256xf32>
    %432 = vector.broadcast %431 : vector<1x256xf32> to vector<32x256xf32>
    %433 = arith.mulf %430, %432 : vector<32x256xf32>
    %c6_146 = arith.constant 6 : index
    %c0_147 = arith.constant 0 : index
    %c0_148 = arith.constant 0 : index
    %434 = vector.load %arg2[%c6_146, %c0_147, %c0_148] : memref<9x64x32xbf16, #tpu.memory_space<vmem>>, vector<1x64x32xbf16>
    %435 = vector.shape_cast %434 : vector<1x64x32xbf16> to vector<64x32xbf16>
    %436 = arith.truncf %433 : vector<32x256xf32> to vector<32x256xbf16>
    %cst_149 = arith.constant dense<0.000000e+00> : vector<64x256xf32>
    %437 = tpu.matmul %435, %436, %cst_149 {dimension_numbers = #tpu.dot_dimension_numbers<[1], [0], [0], [1], [0, 0, 1, 1], [], []>} : vector<64x32xbf16>, vector<32x256xbf16>, vector<64x256xf32> -> vector<64x256xf32>
    %438 = arith.addf %427, %437 : vector<64x256xf32>
    %439 = vector.extract_strided_slice %363 {offsets = [0, 16], sizes = [32, 240], strides = [1, 1]} : vector<32x256xf32> to vector<32x240xf32>
    %440 = vector.extract_strided_slice %363 {offsets = [0, 0], sizes = [32, 16], strides = [1, 1]} : vector<32x256xf32> to vector<32x16xf32>
    %441 = tpu.concatenate %439, %440 in 1 : vector<32x240xf32>, vector<32x16xf32> -> vector<32x256xf32>
    %442 = vector.extract_strided_slice %0 {offsets = [7, 0], sizes = [1, 256], strides = [1, 1]} : vector<9x256xf32> to vector<1x256xf32>
    %443 = vector.broadcast %442 : vector<1x256xf32> to vector<32x256xf32>
    %444 = arith.mulf %441, %443 : vector<32x256xf32>
    %c7_150 = arith.constant 7 : index
    %c0_151 = arith.constant 0 : index
    %c0_152 = arith.constant 0 : index
    %445 = vector.load %arg2[%c7_150, %c0_151, %c0_152] : memref<9x64x32xbf16, #tpu.memory_space<vmem>>, vector<1x64x32xbf16>
    %446 = vector.shape_cast %445 : vector<1x64x32xbf16> to vector<64x32xbf16>
    %447 = arith.truncf %444 : vector<32x256xf32> to vector<32x256xbf16>
    %cst_153 = arith.constant dense<0.000000e+00> : vector<64x256xf32>
    %448 = tpu.matmul %446, %447, %cst_153 {dimension_numbers = #tpu.dot_dimension_numbers<[1], [0], [0], [1], [0, 0, 1, 1], [], []>} : vector<64x32xbf16>, vector<32x256xbf16>, vector<64x256xf32> -> vector<64x256xf32>
    %449 = arith.addf %438, %448 : vector<64x256xf32>
    %450 = vector.extract_strided_slice %363 {offsets = [0, 17], sizes = [32, 239], strides = [1, 1]} : vector<32x256xf32> to vector<32x239xf32>
    %451 = vector.extract_strided_slice %363 {offsets = [0, 0], sizes = [32, 17], strides = [1, 1]} : vector<32x256xf32> to vector<32x17xf32>
    %452 = tpu.concatenate %450, %451 in 1 : vector<32x239xf32>, vector<32x17xf32> -> vector<32x256xf32>
    %453 = vector.extract_strided_slice %0 {offsets = [8, 0], sizes = [1, 256], strides = [1, 1]} : vector<9x256xf32> to vector<1x256xf32>
    %454 = vector.broadcast %453 : vector<1x256xf32> to vector<32x256xf32>
    %455 = arith.mulf %452, %454 : vector<32x256xf32>
    %c8_154 = arith.constant 8 : index
    %c0_155 = arith.constant 0 : index
    %c0_156 = arith.constant 0 : index
    %456 = vector.load %arg2[%c8_154, %c0_155, %c0_156] : memref<9x64x32xbf16, #tpu.memory_space<vmem>>, vector<1x64x32xbf16>
    %457 = vector.shape_cast %456 : vector<1x64x32xbf16> to vector<64x32xbf16>
    %458 = arith.truncf %455 : vector<32x256xf32> to vector<32x256xbf16>
    %cst_157 = arith.constant dense<0.000000e+00> : vector<64x256xf32>
    %459 = tpu.matmul %457, %458, %cst_157 {dimension_numbers = #tpu.dot_dimension_numbers<[1], [0], [0], [1], [0, 0, 1, 1], [], []>} : vector<64x32xbf16>, vector<32x256xbf16>, vector<64x256xf32> -> vector<64x256xf32>
    %460 = arith.addf %449, %459 : vector<64x256xf32>
    %461 = vector.broadcast %1 : vector<64x1xf32> to vector<64x256xf32>
    %462 = arith.addf %460, %461 : vector<64x256xf32>
    %463 = vector.extract_strided_slice %462 {offsets = [0, 0], sizes = [48, 256], strides = [1, 1]} : vector<64x256xf32> to vector<48x256xf32>
    %464 = arith.negf %463 : vector<48x256xf32>
    %465 = math.exp %464 : vector<48x256xf32>
    %cst_158 = arith.constant 1.000000e+00 : f32
    %466 = vector.broadcast %cst_158 : f32 to vector<48x256xf32>
    %467 = arith.addf %466, %465 : vector<48x256xf32>
    %468 = arith.divf %466, %467 : vector<48x256xf32>
    %469 = vector.extract_strided_slice %462 {offsets = [48, 0], sizes = [16, 256], strides = [1, 1]} : vector<64x256xf32> to vector<16x256xf32>
    %470 = math.tanh %469 : vector<16x256xf32>
    %471 = vector.extract_strided_slice %468 {offsets = [0, 0], sizes = [16, 256], strides = [1, 1]} : vector<48x256xf32> to vector<16x256xf32>
    %472 = vector.extract_strided_slice %468 {offsets = [16, 0], sizes = [16, 256], strides = [1, 1]} : vector<48x256xf32> to vector<16x256xf32>
    %473 = vector.extract_strided_slice %468 {offsets = [32, 0], sizes = [16, 256], strides = [1, 1]} : vector<48x256xf32> to vector<16x256xf32>
    %474 = arith.mulf %472, %357 : vector<16x256xf32>
    %475 = arith.mulf %471, %470 : vector<16x256xf32>
    %476 = arith.addf %474, %475 : vector<16x256xf32>
    %477 = math.tanh %476 : vector<16x256xf32>
    %478 = arith.mulf %473, %477 : vector<16x256xf32>
    %c4_i32 = arith.constant 4 : i32
    %c0_159 = arith.constant 0 : index
    %c0_160 = arith.constant 0 : index
    %c0_161 = arith.constant 0 : index
    %479 = vector.load %arg5[%c0_159, %c0_160, %c0_161] : memref<1x16x256xf32, #tpu.memory_space<vmem>>, vector<1x16x256xf32>
    %480 = vector.shape_cast %479 : vector<1x16x256xf32> to vector<16x256xf32>
    %481 = vector.shape_cast %478 : vector<16x256xf32> to vector<1x16x256xf32>
    tpu.vector_store %arg5[%c0_159, %c0_160, %c0_161], %481 {strides = array<i32>} : memref<1x16x256xf32, #tpu.memory_space<vmem>>, vector<1x16x256xf32>,
    return
  }
  func.func @transform_0(%arg0: i32) -> (i32, i32, i32, i32) {
    %c0_i32 = arith.constant 0 : i32
    %c0_i32_0 = arith.constant 0 : i32
    %c0_i32_1 = arith.constant 0 : i32
    %c0_i32_2 = arith.constant 0 : i32
    return %c0_i32, %arg0, %c0_i32_0, %c0_i32_1 : i32, i32, i32, i32
  }
  func.func @transform_1(%arg0: i32) -> (i32, i32, i32) {
    %c0_i32 = arith.constant 0 : i32
    %c0_i32_0 = arith.constant 0 : i32
    %c0_i32_1 = arith.constant 0 : i32
    %c0_i32_2 = arith.constant 0 : i32
    return %c0_i32, %c0_i32_0, %c0_i32_1 : i32, i32, i32
  }
  func.func @transform_2(%arg0: i32) -> (i32, i32) {
    %c0_i32 = arith.constant 0 : i32
    %c0_i32_0 = arith.constant 0 : i32
    %c0_i32_1 = arith.constant 0 : i32
    return %c0_i32, %c0_i32_0 : i32, i32
  }
  func.func @transform_3(%arg0: i32) -> (i32, i32) {
    %c0_i32 = arith.constant 0 : i32
    %c0_i32_0 = arith.constant 0 : i32
    %c0_i32_1 = arith.constant 0 : i32
    return %c0_i32, %c0_i32_0 : i32, i32
  }
  func.func @transform_4(%arg0: i32) -> (i32, i32, i32) {
    %c0_i32 = arith.constant 0 : i32
    %c0_i32_0 = arith.constant 0 : i32
    %c0_i32_1 = arith.constant 0 : i32
    return %arg0, %c0_i32, %c0_i32_0 : i32, i32, i32
  }
}

</mosaic_0001>

<bundles_post_ra>
// kernel: set_values_forward.1
= control target key start
LH: loop header
LB: loop body
LE: loop exit
PB: predicated region body
PF: predicated region fallthrough
CT: control target
= control target key end

     0   :  { %s6938_s15 = smov 0   ;;  %s6940_s16 = smov 0   ;;  %s11203_s0 = inlined_call_operand.vmem [shape: f32[4,2,16,256], index: 0, kind: input, shape index: {}]   ;;  %s11204_s1 = inlined_call_operand.vmem [shape: bf16[9,64,32], index: 1, kind: input, shape index: {}]   ;;  %s11205_s2 = inlined_call_operand.vmem [shape: f32[64,1], index: 2, kind: input, shape index: {}]   ;;  %s11206_s3 = inlined_call_operand.vmem [shape: f32[9,256], index: 3, kind: input, shape index: {}]   ;;  %s11207_s4 = inlined_call_operand.vmem [shape: f32[2,16,256], index: 4, kind: output, shape index: {}]  }
   0x1   :  { %s6942_s17 = smov 0  }
   0x2 LB: > { %s5863_s18 = sadd.s32 4294967295, %s6901_s17   ;;  %s6955_s19 = sadd.s32 1, %s6901_s17   ;;  %s6901_s17 = sphi %s6942_s17, %s11900_s17   ;;  %s6897_s16 = sphi %s6940_s16, %s11899_s16   ;;  %s6893_s15 = sphi %s6938_s15, %s11898_s15  }
   0x3   : > { %s18_s20 = ssub.s32 %s6901_s17, %s6955_s19  ;;  %s21_s21 = sadd.s32 1, %s6897_s16 }
   0x4   : > { %p19_p0 = scmp.eq.s32.totalorder %s18_s20, 0  ;;  %p28_p1 = scmp.ne.s32.totalorder %s6897_s16, %s6893_s15 }
   0x5   : > { %p29_p2 = scmp.eq.s32.totalorder %s6901_s17, 0  ;;  %p5866_p4 = scmp.ge.s32.totalorder %s6901_s17, 2 }
   0x6   : > { %s6964_s22 = scalar_select %p19_p0, %s6897_s16, %s21_s21  }
   0x7   : > { %p30_p3 = por %p29_p2, %p28_p1  ;;  %152 = sbr.rel (%p5866_p4) target bundleno = 32 (0x20), region = 28 }
   0xc   : > { %155 = sbr.rel (!%p30_p3) target bundleno = 32 (0x20), region = 32  ;;  %s157_s23 = sand.u32 (%p30_p3), 1, %s6897_s16  }
   0xd   : > { %s6432_s24 = sshll.u32 (%p30_p3), %s6901_s17, 5  ;;  %s5867_s25 = sshll.u32 (%p30_p3), %s157_s23, 7 }
   0xe   : > { %s6972_s28 = scalar_lea.vmem (%p30_p3), %s11203_s0, %s6432_s24  ;;  %s159_s29 = scalar_lea.vmem (%p30_p3), [#allocation2], %s5867_s25 }
   0xf   : > { %v175_v0 = vld [vmem:[%s6972_s28] sm:$0xff] (%p30_p3)  ;;  %v177_v1 = vld [vmem:[%s6972_s28 + $0x8] sm:$0xff] (%p30_p3)  ;;  %v179_v2 = vld [vmem:[%s6972_s28 + $0x10] sm:$0xff] (%p30_p3) }
  0x10   : > { %176 = vst [vmem:[%s159_s29] sm:$0xff] (%p30_p3), %v175_v0  ;;  %v181_v3 = vld [vmem:[%s6972_s28 + $0x18] sm:$0xff] (%p30_p3)  ;;  %v183_v4 = vld [vmem:[%s6972_s28 + $0x40] sm:$0xff] (%p30_p3)  ;;  %v185_v5 = vld [vmem:[%s6972_s28 + $0x48] sm:$0xff] (%p30_p3) }
  0x11   : > { %178 = vst [vmem:[%s159_s29 + $0x8] sm:$0xff] %v177_v1  ;;  %v187_v6 = vld [vmem:[%s6972_s28 + $0x50] sm:$0xff]  ;;  %v189_v7 = vld [vmem:[%s6972_s28 + $0x58] sm:$0xff]  ;;  %v191_v8 = vld [vmem:[%s6972_s28 + $0x80] sm:$0xff] }
  0x12   : > { %180 = vst [vmem:[%s159_s29 + $0x10] sm:$0xff] %v179_v2  ;;  %v193_v9 = vld [vmem:[%s6972_s28 + $0x88] sm:$0xff]  ;;  %v195_v10 = vld [vmem:[%s6972_s28 + $0x90] sm:$0xff]  ;;  %v197_v11 = vld [vmem:[%s6972_s28 + $0x98] sm:$0xff] }
  0x13   : > { %182 = vst [vmem:[%s159_s29 + $0x18] sm:$0xff] %v181_v3  ;;  %v199_v12 = vld [vmem:[%s6972_s28 + $0xc0] sm:$0xff]  ;;  %v201_v13 = vld [vmem:[%s6972_s28 + $0xc8] sm:$0xff]  ;;  %v203_v14 = vld [vmem:[%s6972_s28 + $0xd0] sm:$0xff] }
  0x14   : > { %184 = vst [vmem:[%s159_s29 + $0x20] sm:$0xff] %v183_v4  ;;  %v205_v15 = vld [vmem:[%s6972_s28 + $0xd8] sm:$0xff] }
  0x15   : > { %186 = vst [vmem:[%s159_s29 + $0x28] sm:$0xff] %v185_v5 }
  0x16   : > { %188 = vst [vmem:[%s159_s29 + $0x30] sm:$0xff] %v187_v6 }
  0x17   : > { %190 = vst [vmem:[%s159_s29 + $0x38] sm:$0xff] %v189_v7 }
  0x18   : > { %192 = vst [vmem:[%s159_s29 + $0x40] sm:$0xff] %v191_v8 }
  0x19   : > { %194 = vst [vmem:[%s159_s29 + $0x48] sm:$0xff] %v193_v9 }
  0x1a   : > { %196 = vst [vmem:[%s159_s29 + $0x50] sm:$0xff] %v195_v10 }
  0x1b   : > { %198 = vst [vmem:[%s159_s29 + $0x58] sm:$0xff] %v197_v11 }
  0x1c   : > { %200 = vst [vmem:[%s159_s29 + $0x60] sm:$0xff] %v199_v12 }
  0x1d   : > { %202 = vst [vmem:[%s159_s29 + $0x68] sm:$0xff] %v201_v13 }
  0x1e   : > { %204 = vst [vmem:[%s159_s29 + $0x70] sm:$0xff] %v203_v14 }
  0x1f   : > { %206 = vst [vmem:[%s159_s29 + $0x78] sm:$0xff] %v205_v15 }
  0x20 PF: > { %p5870_p5 = scmp.ge.s32.totalorder %s6901_s17, 1  ;;  %p211_p6 = scmp.lt.s32.totalorder %s6901_s17, 3 }
  0x22   : > { %p212_p7 = pnand %p5870_p5, %p211_p6 }
  0x24   : > { %215 = sbr.rel (%p212_p7) target bundleno = 2455 (0x997), region = 55 }
  0x29   : > { %s218_s30 = sand.u32 1, %s6893_s15   ;;  %v6903_v16 = vmov 0.0   ;;  %s6904_s5 = smov 16   ;;  %v7080_v22 = vld [vmem:[%s11206_s3] sm:$0xff]  ;;  %v7085_v23 = vld [vmem:[%s11206_s3 + $0x8] sm:$0xff]  ;;  %vm325_vm0 = vcmask 130048  }
  0x2a   : > { %316 = vrot.lane.b32.xlu0 %v6903_v16, %s6904_s5  ;;  %s5871_s6 = sshll.u32 %s218_s30, 7  ;;  %s6905_s8 = smov 17   ;;  %v7088_v24 = vperm.slane %v7080_v22, 0  ;;  %v7091_v25 = vperm.slane %v7085_v23, 0  ;;  %v7096_v31 = vperm.slane %v7080_v22, 1  ;;  %v7099_v32 = vperm.slane %v7085_v23, 1 }
  0x2b   : > { %s6995_s7 = scalar_lea.vmem [#allocation2], %s5871_s6  ;;  %s6906_s9 = smov 15   ;;  %v6438_v53 = vld [vmem:[%s11204_s1 + $0x20] sm:$0xff]  ;;  %vm11275_vm1 = vcmask 261120   ;;  %vm11245_vm2 = vcmask 138240   ;;  %v7138_v5 = vperm.slane %v7080_v22, 2 }
  0x2c   : > { %v6998_v17 = vld [vmem:[%s6995_s7 + $0x18] sm:$0xff]  ;;  %v7003_v18 = vld [vmem:[%s6995_s7 + $0x10] sm:$0xff]  ;;  %v7008_v19 = vld [vmem:[%s6995_s7 + $0x8] sm:$0xff]  ;;  %s6907_s10 = smov 1   ;;  %s6908_s11 = smov 127   ;;  %11302 = vst [vmem:[#allocation3_spill] sm:$0xff] %v7088_v24 }
  0x2d   : > { %314 = vrot.lane.b32.xlu1 %v6998_v17, %s6904_s5  ;;  %323 = vrot.lane.b32.xlu2 %v7003_v18, %s6904_s5  ;;  %v7013_v20 = vld [vmem:[%s6995_s7] sm:$0xff]  ;;  %s6909_s12 = smov 113   ;;  %s6910_s13 = smov 112   ;;  %11303 = vst [vmem:[#allocation4_spill] sm:$0xff] %v7091_v25  ;;  %v7141_v6 = vperm.slane %v7085_v23, 2  ;;  %v6439_v7 = vld [vmem:[%s11204_s1 + $0x28] sm:$0xff] }
  0x2e   : > { %11304 = vst [vmem:[#allocation5_spill] sm:$0xff] %v7096_v31  ;;  %s6911_s23 = smov 111   ;;  %v6434_v4 = vld [vmem:[%s11204_s1] sm:$0xff]  ;;  %vm11246_vm3 = vcmask 121856   ;;  %vm11244_vm4 = vcmask 7168   ;;  %vm11242_vm5 = vcmask 1039360  }
  0x2f   : > { %11305 = vst [vmem:[#allocation6_spill] sm:$0xff] %v7099_v32  ;;  %vm11243_vm6 = vcmask 924672   ;;  %vm11240_vm7 = vcmask 916480   ;;  %vm11241_vm8 = vcmask 908288   ;;  %p11035_p8 = scmp.lt.s32.totalorder %s5863_s18, 1 }
  0x30   : > { %11306 = vst [vmem:[#allocation7_spill] sm:$0xff] %v7138_v5 }
  0x31   : > { %11307 = vst [vmem:[#allocation8_spill] sm:$0xff] %v7141_v6  ;;  %s11902_s18 = smov (!%p11035_p8, %s5863_s18), 1 }
  0x32   : > { %312 = vrot.lane.b32.xlu0 %v7008_v19, %s6904_s5  ;;  %s6433_s17 = sshll.u32 %s11902_s18, 5 }
  0x33   : > { %s11141_s20 = scalar_lea.vmem %s11207_s4, %s6433_s17 }
  0x35   : > { %321 = vrot.lane.b32.xlu1 %v7013_v20, %s6904_s5  ;;  %272 = vrot.lane.b32.xlu2 %v6903_v16, %s6905_s8 }
  0x3a   : > { %268 = vrot.lane.b32.xlu0 %v7008_v19, %s6905_s8 }
  0x3d   : > { %270 = vrot.lane.b32.xlu1 %v6998_v17, %s6905_s8  ;;  %279 = vrot.lane.b32.xlu2 %v7013_v20, %s6905_s8 }
  0x42   : > { %281 = vrot.lane.b32.xlu0 %v7003_v18, %s6905_s8 }
  0x45   : > { %540 = vrot.lane.b32.xlu1 %v6903_v16, %s6906_s9  ;;  %536 = vrot.lane.b32.xlu2 %v7008_v19, %s6906_s9 }
  0x4a   : > { %538 = vrot.lane.b32.xlu0 %v6998_v17, %s6906_s9 }
  0x4d   : > { %545 = vrot.lane.b32.xlu1 %v7013_v20, %s6906_s9  ;;  %547 = vrot.lane.b32.xlu2 %v7003_v18, %s6906_s9 }
  0x52   : > { %689 = vrot.lane.b32.xlu0 %v6903_v16, %s6907_s10 }
  0x55   : > { %685 = vrot.lane.b32.xlu1 %v7008_v19, %s6907_s10  ;;  %687 = vrot.lane.b32.xlu2 %v6998_v17, %s6907_s10 }
  0x5a   : > { %694 = vrot.lane.b32.xlu0 %v7013_v20, %s6907_s10 }
  0x5d   : > { %696 = vrot.lane.b32.xlu1 %v7003_v18, %s6907_s10  ;;  %969 = vrot.lane.b32.xlu2 %v6903_v16, %s6908_s11 }
  0x62   : > { %961 = vrot.lane.b32.xlu0 %v7013_v20, %s6908_s11 }
  0x65   : > { %963 = vrot.lane.b32.xlu1 %v7008_v19, %s6908_s11  ;;  %965 = vrot.lane.b32.xlu2 %v7003_v18, %s6908_s11 }
  0x6a   : > { %967 = vrot.lane.b32.xlu0 %v6998_v17, %s6908_s11 }
  0x6d   : > { %1118 = vrot.lane.b32.xlu1 %v6903_v16, %s6909_s12  ;;  %1110 = vrot.lane.b32.xlu2 %v7013_v20, %s6909_s12 }
  0x72   : > { %1112 = vrot.lane.b32.xlu0 %v7008_v19, %s6909_s12 }
  0x75   : > { %1114 = vrot.lane.b32.xlu1 %v7003_v18, %s6909_s12  ;;  %1116 = vrot.lane.b32.xlu2 %v6998_v17, %s6909_s12 }
  0x7a   : > { %1267 = vrot.lane.b32.xlu0 %v6903_v16, %s6910_s13 }
  0x7d   : > { %1259 = vrot.lane.b32.xlu1 %v7013_v20, %s6910_s13  ;;  %1261 = vrot.lane.b32.xlu2 %v7008_v19, %s6910_s13 }
  0x82   : > { %1263 = vrot.lane.b32.xlu0 %v7003_v18, %s6910_s13 }
  0x85   : > { %1265 = vrot.lane.b32.xlu1 %v6998_v17, %s6910_s13  ;;  %1416 = vrot.lane.b32.xlu2 %v6903_v16, %s6911_s23 }
  0x87   : > { %v324_v21 = vpop.permute.xlu2 %323 }
  0x8a   : > { %1408 = vrot.lane.b32.xlu0 %v7013_v20, %s6911_s23 }
  0x8d   : > { %1410 = vrot.lane.b32.xlu1 %v7008_v19, %s6911_s23  ;;  %1412 = vrot.lane.b32.xlu2 %v7003_v18, %s6911_s23 }
  0x8f   : > { %v273_v26 = vpop.permute.xlu2 %272 }
  0x90   : > { %v298_v27 = vmul.f32 %v7088_v24, %v273_v26  ;;  %v299_v28 = vmul.f32 %v7091_v25, %v273_v26 }
  0x92   : > { %v310_v29 = vpack.c.bf16 %v298_v27, %v298_v27  ;;  %v311_v30 = vpack.c.bf16 %v299_v28, %v299_v28  ;;  %1414 = vrot.lane.b32.xlu0 %v6998_v17, %s6911_s23 }
  0x94   : > { %484 = vmatpush.bf16.msra.mxu2 %v310_v29  ;;  %513 = vmatpush.bf16.msra.mxu3 %v311_v30 }
  0x97   : > { %v280_v51 = vpop.permute.xlu2 %279 }
  0x9c   : > { %v317_v33 = vpop.permute.xlu0 %316 }
  0x9d   : > { %v340_v34 = vmul.f32 %v7096_v31, %v317_v33  ;;  %v341_v35 = vmul.f32 %v7099_v32, %v317_v33 }
  0x9f   : > { %v315_v36 = vpop.permute.xlu1 %314  ;;  %v353_v37 = vpack.c.bf16 %v340_v34, %v340_v34  ;;  %v354_v38 = vpack.c.bf16 %v341_v35, %v341_v35  ;;  %v537_v57 = vpop.permute.xlu2 %536 }
  0xa0   : > { %v327_v40 = vsel %vm325_vm0, %v324_v21, %v315_v36  ;;  %v333_v41 = vsel %vm325_vm0, %v315_v36, %v324_v21 }
  0xa1   : > { %394 = vmatpush.bf16.msra.mxu0 %v353_v37  ;;  %423 = vmatpush.bf16.msra.mxu1 %v354_v38  ;;  %v338_v46 = vmul.f32 %v7096_v31, %v333_v41  ;;  %v339_v48 = vmul.f32 %v7099_v32, %v327_v40  ;;  %v6435_v37 = vld [vmem:[%s11204_s1 + $0x8] sm:$0xff]  ;;  %v6440_v38 = vld [vmem:[%s11204_s1 + $0x30] sm:$0xff]  ;;  %v7171_v41 = vperm.slane %v7080_v22, 3 }
  0xa3   : > { %11308 = vst [vmem:[#allocation9_spill] sm:$0xff] %v7171_v41 }
  0xa4   : > { %v313_v39 = vpop.permute.xlu0 %312 }
  0xa7   : > { %v322_v42 = vpop.permute.xlu1 %321  ;;  %v548_v9 = vpop.permute.xlu2 %547 }
  0xa8   : > { %v326_v43 = vsel %vm325_vm0, %v322_v42, %v313_v39  ;;  %v332_v44 = vsel %vm325_vm0, %v313_v39, %v322_v42  ;;  %v7174_v42 = vperm.slane %v7085_v23, 3 }
  0xa9   : > { %v336_v45 = vmul.f32 %v7096_v31, %v332_v44  ;;  %v337_v47 = vmul.f32 %v7099_v32, %v326_v43 }
  0xaa   : > { %11309 = vst [vmem:[#allocation10_spill] sm:$0xff] %v7174_v42 }
  0xab   : > { %v351_v49 = vpack.c.bf16 %v338_v46, %v336_v45  ;;  %v352_v50 = vpack.c.bf16 %v339_v48, %v337_v47 }
  0xac   : > { %v269_v52 = vpop.permute.xlu0 %268 }
  0xad   : > { %395 = vmatpush.bf16.msra.mxu0 %v351_v49  ;;  %424 = vmatpush.bf16.msra.mxu1 %v352_v50  ;;  %v284_v55 = vsel %vm11245_vm2, %v280_v51, %v269_v52  ;;  %v290_v56 = vsel %vm11245_vm2, %v269_v52, %v280_v51 }
  0xae   : > { %v294_v59 = vmul.f32 %v7088_v24, %v290_v56  ;;  %v295_v60 = vmul.f32 %v7091_v25, %v284_v55 }
  0xaf   : > { %v271_v54 = vpop.permute.xlu1 %270  ;;  %v688_v40 = vpop.permute.xlu2 %687 }
  0xb0   : > { %5898 = vmatmul.msk.bf16.vlgmr.msra.gmra.mxu0 %vm11275_vm1, %v6438_v53  ;;  %5902 = vmatmul.msk.bf16.vlgmr.msra.gmra.mxu1 %vm11275_vm1, %v6438_v53 }
  0xb4   : > { %v282_v58 = vpop.permute.xlu0 %281 }
  0xb5   : > { %v285_v61 = vsel %vm11245_vm2, %v282_v58, %v271_v54  ;;  %v291_v62 = vsel %vm11245_vm2, %v271_v54, %v282_v58  ;;  %v6436_v58 = vld [vmem:[%s11204_s1 + $0x10] sm:$0xff] }
  0xb6   : > { %v296_v63 = vmul.f32 %v7088_v24, %v291_v62  ;;  %v297_v0 = vmul.f32 %v7091_v25, %v285_v61  ;;  %v6442_v61 = vld [vmem:[%s11204_s1 + $0x40] sm:$0xff] }
  0xb7   : > { %v541_v1 = vpop.permute.xlu1 %540  ;;  %v6446_v62 = vld [vmem:[%s11204_s1 + $0x60] sm:$0xff] }
  0xb8   : > { %v308_v2 = vpack.c.bf16 %v296_v63, %v294_v59  ;;  %v309_v3 = vpack.c.bf16 %v297_v0, %v295_v60  ;;  %v564_v10 = vmul.f32 %v7138_v5, %v541_v1  ;;  %v565_v11 = vmul.f32 %v7141_v6, %v541_v1  ;;  %v6441_v59 = vld [vmem:[%s11204_s1 + $0x38] sm:$0xff]  ;;  %v6443_v63 = vld [vmem:[%s11204_s1 + $0x48] sm:$0xff] }
  0xb9   : > { %v6437_v60 = vld [vmem:[%s11204_s1 + $0x18] sm:$0xff]  ;;  %v7217_v0 = vperm.slane %v7080_v22, 4  ;;  %v7220_v1 = vperm.slane %v7085_v23, 4 }
  0xba   : > { %485 = vmatpush.bf16.msra.mxu2 %v308_v2  ;;  %514 = vmatpush.bf16.msra.mxu3 %v309_v3  ;;  %v577_v15 = vpack.c.bf16 %v564_v10, %v564_v10  ;;  %v578_v16 = vpack.c.bf16 %v565_v11, %v565_v11  ;;  %v7223_v2 = vperm.slane %v7080_v22, 5  ;;  %v7226_v3 = vperm.slane %v7085_v23, 5 }
  0xbb   : > { %11310 = vst [vmem:[#allocation11_spill] sm:$0xff] %v7217_v0 }
  0xbc   : > { %v539_v8 = vpop.permute.xlu0 %538  ;;  %617 = vmatpush.bf16.msrb.mxu0 %v577_v15  ;;  %646 = vmatpush.bf16.msrb.mxu1 %v578_v16  ;;  %11311 = vst [vmem:[#allocation12_spill] sm:$0xff] %v7220_v1  ;;  %v6447_v16 = vld [vmem:[%s11204_s1 + $0x68] sm:$0xff] }
  0xbd   : > { %5922 = vmatmul.msk.bf16.vlgmr.msra.gmra.mxu2 %vm11275_vm1, %v6434_v4  ;;  %5926 = vmatmul.msk.bf16.vlgmr.msra.gmra.mxu3 %vm11275_vm1, %v6434_v4  ;;  %v551_v12 = vsel %vm11246_vm3, %v548_v9, %v539_v8  ;;  %v557_v13 = vsel %vm11246_vm3, %v539_v8, %v548_v9  ;;  %11312 = vst [vmem:[#allocation13_spill] sm:$0xff] %v7223_v2  ;;  %v970_v4 = vpop.permute.xlu2 %969  ;;  %v841_v8 = vmul.f32 0.0, %v7220_v1 }
  0xbe   : > { %v562_v27 = vmul.f32 %v7138_v5, %v557_v13  ;;  %v563_v30 = vmul.f32 %v7141_v6, %v551_v12  ;;  %11313 = vst [vmem:[#allocation14_spill] sm:$0xff] %v7226_v3  ;;  %v989_v9 = vmul.f32 %v7223_v2, %v970_v4  ;;  %v990_v10 = vmul.f32 %v7226_v3, %v970_v4 }
  0xbf   : > { %v546_v14 = vpop.permute.xlu1 %545  ;;  %v854_v12 = vpack.c.bf16 %v841_v8, %v841_v8 }
  0xc0   : > { %5899 = vmatmul.msk.bf16.gmra.mxu0 %vm11275_vm1, %v6439_v7  ;;  %5903 = vmatmul.msk.bf16.gmra.mxu1 %vm11275_vm1, %v6439_v7  ;;  %v550_v21 = vsel %vm11246_vm3, %v546_v14, %v537_v57  ;;  %v556_v26 = vsel %vm11246_vm3, %v537_v57, %v546_v14  ;;  %v840_v7 = vmul.f32 0.0, %v7217_v0  ;;  %v1002_v13 = vpack.c.bf16 %v989_v9, %v989_v9 }
  0xc1   : > { %v560_v28 = vmul.f32 %v7138_v5, %v556_v26  ;;  %v561_v29 = vmul.f32 %v7141_v6, %v550_v21  ;;  %v1003_v14 = vpack.c.bf16 %v990_v10, %v990_v10  ;;  %v836_v21 = vmul.f32 %v7217_v0, %v7013_v20 }
  0xc2   : > { %v853_v11 = vpack.c.bf16 %v840_v7, %v840_v7  ;;  %v838_v26 = vmul.f32 %v7217_v0, %v7003_v18 }
  0xc3   : > { %v575_v33 = vpack.c.bf16 %v562_v27, %v560_v28  ;;  %v576_v34 = vpack.c.bf16 %v563_v30, %v561_v29  ;;  %v837_v27 = vmul.f32 %v7220_v1, %v7008_v19  ;;  %v839_v28 = vmul.f32 %v7220_v1, %v6998_v17 }
  0xc4   : > { %v690_v35 = vpop.permute.xlu0 %689  ;;  %v851_v29 = vpack.c.bf16 %v838_v26, %v836_v21 }
  0xc5   : > { %618 = vmatpush.bf16.msrb.mxu0 %v575_v33  ;;  %647 = vmatpush.bf16.msrb.mxu1 %v576_v34  ;;  %v713_v48 = vmul.f32 %v7171_v41, %v690_v35  ;;  %v714_v49 = vmul.f32 %v7174_v42, %v690_v35  ;;  %v852_v30 = vpack.c.bf16 %v839_v28, %v837_v27  ;;  %v6444_v33 = vld [vmem:[%s11204_s1 + $0x50] sm:$0xff]  ;;  %v966_v19 = vpop.permute.xlu2 %965 }
  0xc7   : > { %v686_v36 = vpop.permute.xlu1 %685  ;;  %v726_v54 = vpack.c.bf16 %v713_v48, %v713_v48  ;;  %v727_v55 = vpack.c.bf16 %v714_v49, %v714_v49  ;;  %v6450_v48 = vld [vmem:[%s11204_s1 + $0x80] sm:$0xff] }
  0xc9   : > { %766 = vmatpush.bf16.msrb.mxu2 %v726_v54  ;;  %795 = vmatpush.bf16.msrb.mxu3 %v727_v55  ;;  %v7282_v54 = vperm.slane %v7085_v23, 6 }
  0xca   : > { %893 = vmatpush.bf16.msra.mxu0 %v853_v11  ;;  %922 = vmatpush.bf16.msra.mxu1 %v854_v12 }
  0xcb   : > { %11315 = vst [vmem:[#allocation16_spill] sm:$0xff] %v7282_v54 }
  0xcc   : > { %v695_v39 = vpop.permute.xlu0 %694 }
  0xcd   : > { %5923 = vmatmul.msk.bf16.gmra.mxu2 %vm11275_vm1, %v6435_v37  ;;  %5927 = vmatmul.msk.bf16.gmra.mxu3 %vm11275_vm1, %v6435_v37  ;;  %v699_v43 = vsel %vm11244_vm4, %v695_v39, %v686_v36  ;;  %v705_v44 = vsel %vm11244_vm4, %v686_v36, %v695_v39  ;;  %v1111_v55 = vpop.permute.xlu2 %1110 }
  0xce   : > { %v709_v50 = vmul.f32 %v7171_v41, %v705_v44  ;;  %v710_v52 = vmul.f32 %v7174_v42, %v699_v43  ;;  %894 = vmatpush.bf16.msra.mxu0 %v851_v29  ;;  %923 = vmatpush.bf16.msra.mxu1 %v852_v30 }
  0xcf   : > { %v697_v45 = vpop.permute.xlu1 %696 }
  0xd0   : > { %5900 = vmatmul.msk.bf16.gmra.mxu0 %vm11275_vm1, %v6440_v38  ;;  %5904 = vmatmul.msk.bf16.gmra.mxu1 %vm11275_vm1, %v6440_v38  ;;  %v700_v46 = vsel %vm11244_vm4, %v697_v45, %v688_v40  ;;  %v706_v47 = vsel %vm11244_vm4, %v688_v40, %v697_v45  ;;  %v6448_v45 = vld [vmem:[%s11204_s1 + $0x70] sm:$0xff] }
  0xd1   : > { %v711_v51 = vmul.f32 %v7171_v41, %v706_v47  ;;  %v712_v53 = vmul.f32 %v7174_v42, %v700_v46  ;;  %v6445_v46 = vld [vmem:[%s11204_s1 + $0x58] sm:$0xff] }
  0xd2   : > { %v6449_v47 = vld [vmem:[%s11204_s1 + $0x78] sm:$0xff] }
  0xd3   : > { %v724_v56 = vpack.c.bf16 %v711_v51, %v709_v50  ;;  %v725_v57 = vpack.c.bf16 %v712_v53, %v710_v52  ;;  %v7279_v53 = vperm.slane %v7080_v22, 6 }
  0xd4   : > { %v962_v15 = vpop.permute.xlu0 %961 }
  0xd5   : > { %767 = vmatpush.bf16.msrb.mxu2 %v724_v56  ;;  %796 = vmatpush.bf16.msrb.mxu3 %v725_v57  ;;  %11314 = vst [vmem:[#allocation15_spill] sm:$0xff] %v7279_v53  ;;  %v1117_v8 = vpop.permute.xlu2 %1116 }
  0xd7   : > { %v964_v34 = vpop.permute.xlu1 %963 }
  0xd8   : > { %v972_v37 = vsel %vm11242_vm5, %v962_v15, %v964_v34  ;;  %v981_v38 = vsel %vm11242_vm5, %v964_v34, %v962_v15 }
  0xd9   : > { %1042 = vmatpush.bf16.msra.mxu2 %v1002_v13  ;;  %1071 = vmatpush.bf16.msra.mxu3 %v1003_v14  ;;  %v985_v39 = vmul.f32 %v7223_v2, %v972_v37  ;;  %v986_v40 = vmul.f32 %v7226_v3, %v981_v38  ;;  %v7316_v37 = vperm.slane %v7080_v22, 7  ;;  %v7319_v38 = vperm.slane %v7085_v23, 7 }
  0xdb   : > { %11316 = vst [vmem:[#allocation17_spill] sm:$0xff] %v7316_v37 }
  0xdc   : > { %v968_v18 = vpop.permute.xlu0 %967  ;;  %11317 = vst [vmem:[#allocation18_spill] sm:$0xff] %v7319_v38 }
  0xdd   : > { %5924 = vmatmul.msk.bf16.gmra.mxu2 %vm11275_vm1, %v6436_v58  ;;  %5928 = vmatmul.msk.bf16.gmra.mxu3 %vm11275_vm1, %v6436_v58  ;;  %v973_v17 = vsel %vm11242_vm5, %v966_v19, %v968_v18  ;;  %v982_v20 = vsel %vm11242_vm5, %v968_v18, %v966_v19 }
  0xde   : > { %v987_v35 = vmul.f32 %v7223_v2, %v973_v17  ;;  %v988_v36 = vmul.f32 %v7226_v3, %v982_v20 }
  0xdf   : > { %v1119_v56 = vpop.permute.xlu1 %1118 }
  0xe0   : > { %5901 = vmatmul.msk.bf16.gmra.mxu0 %vm11275_vm1, %v6441_v59  ;;  %5905 = vmatmul.msk.bf16.gmra.mxu1 %vm11275_vm1, %v6441_v59  ;;  %v1000_v43 = vpack.c.bf16 %v987_v35, %v985_v39  ;;  %v1001_v44 = vpack.c.bf16 %v988_v36, %v986_v40  ;;  %v1138_v57 = vmul.f32 %v7279_v53, %v1119_v56  ;;  %v6454_v59 = vld [vmem:[%s11204_s1 + $0xa0] sm:$0xff]  ;;  %v6455_v36 = vld [vmem:[%s11204_s1 + $0xa8] sm:$0xff] }
  0xe1   : > { %v1139_v58 = vmul.f32 %v7282_v54, %v1119_v56 }
  0xe2   : > { %1043 = vmatpush.bf16.msra.mxu2 %v1000_v43  ;;  %1072 = vmatpush.bf16.msra.mxu3 %v1001_v44 }
  0xe4   : > { %v1113_v7 = vpop.permute.xlu0 %1112 }
  0xe5   : > { %v1121_v9 = vsel %vm11243_vm6, %v1111_v55, %v1113_v7  ;;  %v1130_v10 = vsel %vm11243_vm6, %v1113_v7, %v1111_v55  ;;  %v1262_v55 = vpop.permute.xlu2 %1261 }
  0xe6   : > { %v1134_v14 = vmul.f32 %v7279_v53, %v1121_v9  ;;  %v1135_v15 = vmul.f32 %v7282_v54, %v1130_v10 }
  0xe7   : > { %v1115_v11 = vpop.permute.xlu1 %1114 }
  0xe8   : > { %v1131_v27 = vsel %vm11243_vm6, %v1117_v8, %v1115_v11 }
  0xe9   : > { %v1137_v29 = vmul.f32 %v7282_v54, %v1131_v27 }
  0xec   : > { %v1268_v39 = vpop.permute.xlu0 %1267 }
  0xed   : > { %5925 = vmatmul.msk.bf16.gmra.mxu2 %vm11275_vm1, %v6437_v60  ;;  %5929 = vmatmul.msk.bf16.gmra.mxu3 %vm11275_vm1, %v6437_v60  ;;  %v1151_v60 = vpack.c.bf16 %v1138_v57, %v1138_v57  ;;  %v1287_v43 = vmul.f32 %v7316_v37, %v1268_v39  ;;  %v1288_v44 = vmul.f32 %v7319_v38, %v1268_v39 }
  0xef   : > { %v1260_v40 = vpop.permute.xlu1 %1259  ;;  %v1300_v22 = vpack.c.bf16 %v1287_v43, %v1287_v43  ;;  %v6457_v43 = vld [vmem:[%s11204_s1 + $0xb8] sm:$0xff] }
  0xf0   : > { %5954 = vmatmul.msk.bf16.vlgmr.msrb.gmra.mxu0 %vm11275_vm1, %v6442_v61  ;;  %5958 = vmatmul.msk.bf16.vlgmr.msrb.gmra.mxu1 %vm11275_vm1, %v6442_v61  ;;  %v1152_v61 = vpack.c.bf16 %v1139_v58, %v1139_v58  ;;  %v1270_v56 = vsel %vm11240_vm7, %v1260_v40, %v1262_v55  ;;  %v1279_v57 = vsel %vm11240_vm7, %v1262_v55, %v1260_v40 }
  0xf1   : > { %1191 = vmatpush.bf16.msrb.mxu0 %v1151_v60 }
  0xf2   : > { %1220 = vmatpush.bf16.msrb.mxu1 %v1152_v61  ;;  %v1283_v61 = vmul.f32 %v7316_v37, %v1270_v56 }
  0xf7   : > { %v1266_v58 = vpop.permute.xlu1 %1265 }
  0xfd   : > { %5986 = vmatmul.msk.bf16.vlgmr.msrb.gmra.mxu2 %vm11275_vm1, %v6446_v62  ;;  %5990 = vmatmul.msk.bf16.vlgmr.msrb.gmra.mxu3 %vm11275_vm1, %v6446_v62  ;;  %v6451_v62 = vld [vmem:[%s11204_s1 + $0x88] sm:$0xff] }
  0xfe   : > { %1340 = vmatpush.bf16.msrb.mxu2 %v1300_v22 }
 0x100   : > { %5955 = vmatmul.msk.bf16.gmra.mxu0 %vm11275_vm1, %v6443_v63  ;;  %5959 = vmatmul.msk.bf16.gmra.mxu1 %vm11275_vm1, %v6443_v63 }
 0x10d   : > { %5987 = vmatmul.msk.bf16.gmra.mxu2 %vm11275_vm1, %v6447_v16  ;;  %5991 = vmatmul.msk.bf16.gmra.mxu3 %vm11275_vm1, %v6447_v16  ;;  %v1122_v16 = vsel %vm11243_vm6, %v1115_v11, %v1117_v8 }
 0x10e   : > { %v1136_v28 = vmul.f32 %v7279_v53, %v1122_v16  ;;  %v6453_v16 = vld [vmem:[%s11204_s1 + $0x98] sm:$0xff] }
 0x110   : > { %5956 = vmatmul.msk.bf16.gmra.mxu0 %vm11275_vm1, %v6444_v33  ;;  %5960 = vmatmul.msk.bf16.gmra.mxu1 %vm11275_vm1, %v6444_v33  ;;  %v1149_v30 = vpack.c.bf16 %v1136_v28, %v1134_v14  ;;  %v1150_v33 = vpack.c.bf16 %v1137_v29, %v1135_v15  ;;  %v6456_v15 = vld [vmem:[%s11204_s1 + $0xb0] sm:$0xff] }
 0x112   : > { %1192 = vmatpush.bf16.msrb.mxu0 %v1149_v30  ;;  %1221 = vmatpush.bf16.msrb.mxu1 %v1150_v33 }
 0x11d   : > { %5988 = vmatmul.msk.bf16.gmra.mxu2 %vm11275_vm1, %v6448_v45  ;;  %5992 = vmatmul.msk.bf16.gmra.mxu3 %vm11275_vm1, %v6448_v45  ;;  %v6452_v45 = vld [vmem:[%s11204_s1 + $0x90] sm:$0xff] }
 0x120   : > { %5957 = vmatmul.msk.bf16.gmra.mxu0 %vm11275_vm1, %v6445_v46  ;;  %5961 = vmatmul.msk.bf16.gmra.mxu1 %vm11275_vm1, %v6445_v46 }
 0x12d   : > { %v397_v49 = vpop.f32.mrf.mxu0  ;;  %v426_v50 = vpop.f32.mrf.mxu1  ;;  %5989 = vmatmul.msk.bf16.gmra.mxu2 %vm11275_vm1, %v6449_v47  ;;  %5993 = vmatmul.msk.bf16.gmra.mxu3 %vm11275_vm1, %v6449_v47 }
 0x130   : > { %6018 = vmatmul.msk.bf16.vlgmr.msra.gmra.mxu0 %vm11275_vm1, %v6450_v48  ;;  %6022 = vmatmul.msk.bf16.vlgmr.msra.gmra.mxu1 %vm11275_vm1, %v6450_v48  ;;  %v1301_v48 = vpack.c.bf16 %v1288_v44, %v1288_v44  ;;  %v6458_v44 = vld [vmem:[%s11204_s1 + $0xc0] sm:$0xff] }
 0x132   : > { %1369 = vmatpush.bf16.msrb.mxu3 %v1301_v48 }
 0x135   : > { %v399_v51 = vpop.f32.mrf.mxu0  ;;  %v428_v52 = vpop.f32.mrf.mxu1 }
 0x13d   : > { %v402_v63 = vpop.f32.mrf.mxu0  ;;  %v431_v4 = vpop.f32.mrf.mxu1  ;;  %6050 = vmatmul.msk.bf16.vlgmr.msra.gmra.mxu2 %vm11275_vm1, %v6454_v59  ;;  %6054 = vmatmul.msk.bf16.vlgmr.msra.gmra.mxu3 %vm11275_vm1, %v6454_v59 }
 0x140   : > { %v487_v12 = vpop.f32.mrf.mxu2  ;;  %v516_v13 = vpop.f32.mrf.mxu3  ;;  %6019 = vmatmul.msk.bf16.gmra.mxu0 %vm11275_vm1, %v6451_v62  ;;  %6023 = vmatmul.msk.bf16.gmra.mxu1 %vm11275_vm1, %v6451_v62  ;;  %v1284_v62 = vmul.f32 %v7319_v38, %v1279_v57 }
 0x141   : > { %v7301_v21 = vadd.f32 %v487_v12, %v397_v49  ;;  %v7303_v26 = vadd.f32 %v516_v13, %v426_v50 }
 0x145   : > { %v404_v18 = vpop.f32.mrf.mxu0  ;;  %v433_v19 = vpop.f32.mrf.mxu1 }
 0x148   : > { %v489_v17 = vpop.f32.mrf.mxu2  ;;  %v518_v20 = vpop.f32.mrf.mxu3 }
 0x149   : > { %v7308_v34 = vadd.f32 %v489_v17, %v399_v51  ;;  %v7310_v35 = vadd.f32 %v518_v20, %v428_v52  ;;  %v1264_v52 = vpop.permute.xlu0 %1263 }
 0x14a   : > { %v1271_v59 = vsel %vm11240_vm7, %v1264_v52, %v1266_v58  ;;  %v1280_v60 = vsel %vm11240_vm7, %v1266_v58, %v1264_v52 }
 0x14d   : > { %v407_v46 = vpop.f32.mrf.mxu0  ;;  %v436_v47 = vpop.f32.mrf.mxu1  ;;  %6051 = vmatmul.msk.bf16.gmra.mxu2 %vm11275_vm1, %v6455_v36  ;;  %6055 = vmatmul.msk.bf16.gmra.mxu3 %vm11275_vm1, %v6455_v36 }
 0x150   : > { %v492_v23 = vpop.f32.mrf.mxu2  ;;  %v521_v49 = vpop.f32.mrf.mxu3  ;;  %6020 = vmatmul.msk.bf16.gmra.mxu0 %vm11275_vm1, %v6452_v45  ;;  %6024 = vmatmul.msk.bf16.gmra.mxu1 %vm11275_vm1, %v6452_v45 }
 0x151   : > { %v7330_v50 = vadd.f32 %v492_v23, %v402_v63  ;;  %v7332_v51 = vadd.f32 %v521_v49, %v431_v4  ;;  %v1285_v63 = vmul.f32 %v7316_v37, %v1271_v59  ;;  %v1286_v4 = vmul.f32 %v7319_v38, %v1280_v60  ;;  %v6508_v59 = vld [vmem:[%s11206_s3 + $0x18] ss:$0 sm:$0xff]  ;;  %v1417_v60 = vpop.permute.xlu2 %1416 }
 0x153   : > { %v1298_v11 = vpack.c.bf16 %v1285_v63, %v1283_v61  ;;  %v1299_v12 = vpack.c.bf16 %v1286_v4, %v1284_v62  ;;  %v1437_v4 = vmul.f32 %v6508_v59, %v1417_v60 }
 0x155   : > { %v409_v7 = vpop.f32.mrf.mxu0  ;;  %v438_v8 = vpop.f32.mrf.mxu1  ;;  %1341 = vmatpush.bf16.msrb.mxu2 %v1298_v11  ;;  %1370 = vmatpush.bf16.msrb.mxu3 %v1299_v12 }
 0x158   : > { %v494_v9 = vpop.f32.mrf.mxu2  ;;  %v523_v10 = vpop.f32.mrf.mxu3 }
 0x159   : > { %v7342_v13 = vadd.f32 %v494_v9, %v404_v18  ;;  %v7344_v14 = vadd.f32 %v523_v10, %v433_v19  ;;  %v1450_v9 = vpack.c.bf16 %v1437_v4, %v1437_v4  ;;  %v6459_v10 = vld [vmem:[%s11204_s1 + $0xc8] sm:$0xff] }
 0x15b   : > { %1518 = vmatpush.bf16.msra.mxu1 %v1450_v9 }
 0x15d   : > { %v412_v27 = vpop.f32.mrf.mxu0  ;;  %v441_v28 = vpop.f32.mrf.mxu1  ;;  %6052 = vmatmul.msk.bf16.gmra.mxu2 %vm11275_vm1, %v6456_v15  ;;  %6056 = vmatmul.msk.bf16.gmra.mxu3 %vm11275_vm1, %v6456_v15 }
 0x160   : > { %v497_v29 = vpop.f32.mrf.mxu2  ;;  %v526_v30 = vpop.f32.mrf.mxu3  ;;  %6021 = vmatmul.msk.bf16.gmra.mxu0 %vm11275_vm1, %v6453_v16  ;;  %6025 = vmatmul.msk.bf16.gmra.mxu1 %vm11275_vm1, %v6453_v16 }
 0x161   : > { %v7356_v33 = vadd.f32 %v497_v29, %v407_v46  ;;  %v7358_v18 = vadd.f32 %v526_v30, %v436_v47 }
 0x165   : > { %v414_v19 = vpop.f32.mrf.mxu0  ;;  %v443_v17 = vpop.f32.mrf.mxu1 }
 0x168   : > { %v499_v20 = vpop.f32.mrf.mxu2  ;;  %v528_v36 = vpop.f32.mrf.mxu3 }
 0x169   : > { %v7360_v39 = vadd.f32 %v499_v20, %v409_v7  ;;  %v7362_v40 = vadd.f32 %v528_v36, %v438_v8 }
 0x16d   : > { %v620_v45 = vpop.f32.mrf.mxu0  ;;  %v649_v46 = vpop.f32.mrf.mxu1  ;;  %6053 = vmatmul.msk.bf16.gmra.mxu2 %vm11275_vm1, %v6457_v43  ;;  %6057 = vmatmul.msk.bf16.gmra.mxu3 %vm11275_vm1, %v6457_v43 }
 0x16e   : > { %v669_v47 = vadd.f32 %v620_v45, %v7301_v21  ;;  %v670_v22 = vadd.f32 %v649_v46, %v7303_v26  ;;  %v1409_v21 = vpop.permute.xlu0 %1408  ;;  %v6507_v26 = vld [vmem:[%s11206_s3 + $0x10] ss:$0 sm:$0xff] }
 0x16f   : > { %v1436_v63 = vmul.f32 %v6507_v26, %v1417_v60 }
 0x170   : > { %v502_v48 = vpop.f32.mrf.mxu2  ;;  %v531_v23 = vpop.f32.mrf.mxu3  ;;  %6082 = vmatmul.msk.bf16.vlgmr.msrb.gmra.mxu0 %vm11275_vm1, %v6458_v44  ;;  %6086 = vmatmul.msk.bf16.vlgmr.msrb.gmra.mxu1 %vm11275_vm1, %v6458_v44 }
 0x171   : > { %v7376_v49 = vadd.f32 %v502_v48, %v412_v27  ;;  %v7378_v52 = vadd.f32 %v531_v23, %v441_v28  ;;  %v1449_v8 = vpack.c.bf16 %v1436_v63, %v1436_v63  ;;  %v1413_v28 = vpop.permute.xlu2 %1412 }
 0x173   : > { %1489 = vmatpush.bf16.msra.mxu0 %v1449_v8 }
 0x175   : > { %v622_v55 = vpop.f32.mrf.mxu0  ;;  %v651_v56 = vpop.f32.mrf.mxu1 }
 0x176   : > { %v7381_v57 = vadd.f32 %v622_v55, %v7308_v34  ;;  %v7384_v58 = vadd.f32 %v651_v56, %v7310_v35  ;;  %v6462_v35 = vld [vmem:[%s11204_s1 + $0xe0] sm:$0xff]  ;;  %v1415_v27 = vpop.permute.xlu0 %1414 }
 0x177   : > { %v1420_v29 = vsel %vm11241_vm8, %v1413_v28, %v1415_v27  ;;  %v1429_v30 = vsel %vm11241_vm8, %v1415_v27, %v1413_v28  ;;  %v6464_v28 = vld [vmem:[%s11204_s1 + $0xf0] sm:$0xff] }
 0x178   : > { %v504_v61 = vpop.f32.mrf.mxu2  ;;  %v533_v62 = vpop.f32.mrf.mxu3  ;;  %v1434_v36 = vmul.f32 %v6507_v26, %v1420_v29  ;;  %v1435_v43 = vmul.f32 %v6508_v59, %v1429_v30 }
 0x179   : > { %v7392_v7 = vadd.f32 %v504_v61, %v414_v19  ;;  %v7394_v34 = vadd.f32 %v533_v62, %v443_v17  ;;  %v1411_v19 = vpop.permute.xlu1 %1410 }
 0x17a   : > { %v1428_v45 = vsel %vm11241_vm8, %v1411_v19, %v1409_v21 }
 0x17b   : > { %v1433_v48 = vmul.f32 %v6508_v59, %v1428_v45 }
 0x17d   : > { %v625_v11 = vpop.f32.mrf.mxu0  ;;  %v654_v12 = vpop.f32.mrf.mxu1  ;;  %6114 = vmatmul.msk.bf16.vlgmr.msrb.gmra.mxu2 %vm11275_vm1, %v6462_v35  ;;  %6118 = vmatmul.msk.bf16.vlgmr.msrb.gmra.mxu3 %vm11275_vm1, %v6462_v35  ;;  %v1448_v55 = vpack.c.bf16 %v1435_v43, %v1433_v48 }
 0x17e   : > { %v673_v15 = vadd.f32 %v625_v11, %v7330_v50  ;;  %v674_v16 = vadd.f32 %v654_v12, %v7332_v51  ;;  %v1419_v50 = vsel %vm11241_vm8, %v1409_v21, %v1411_v19  ;;  %v6463_v21 = vld [vmem:[%s11204_s1 + $0xe8] sm:$0xff] }
 0x17f   : > { %v1432_v46 = vmul.f32 %v6507_v26, %v1419_v50  ;;  %1519 = vmatpush.bf16.msra.mxu1 %v1448_v55  ;;  %v6460_v26 = vld [vmem:[%s11204_s1 + $0xd0] sm:$0xff] }
 0x180   : > { %v769_v17 = vpop.f32.mrf.mxu2  ;;  %v798_v20 = vpop.f32.mrf.mxu3  ;;  %6083 = vmatmul.msk.bf16.gmra.mxu0 %vm11275_vm1, %v6459_v10  ;;  %6087 = vmatmul.msk.bf16.gmra.mxu1 %vm11275_vm1, %v6459_v10  ;;  %v255_v55 = vld [vmem:[%s11205_s2 + $0x10] sm:$0xff] }
 0x181   : > { %v7411_v44 = vadd.f32 %v769_v17, %v669_v47  ;;  %v7413_v51 = vadd.f32 %v798_v20, %v670_v22  ;;  %v1447_v23 = vpack.c.bf16 %v1434_v36, %v1432_v46 }
 0x183   : > { %1490 = vmatpush.bf16.msra.mxu0 %v1447_v23 }
 0x185   : > { %v627_v56 = vpop.f32.mrf.mxu0  ;;  %v656_v60 = vpop.f32.mrf.mxu1 }
 0x186   : > { %v7417_v61 = vadd.f32 %v627_v56, %v7342_v13  ;;  %v7420_v62 = vadd.f32 %v656_v60, %v7344_v14 }
 0x188   : > { %v7422_v47 = vpop.f32.mrf.mxu2  ;;  %v7424_v22 = vpop.f32.mrf.mxu3 }
 0x18d   : > { %v630_v59 = vpop.f32.mrf.mxu0  ;;  %v659_v63 = vpop.f32.mrf.mxu1  ;;  %6115 = vmatmul.msk.bf16.gmra.mxu2 %vm11275_vm1, %v6463_v21  ;;  %6119 = vmatmul.msk.bf16.gmra.mxu3 %vm11275_vm1, %v6463_v21 }
 0x18e   : > { %v677_v13 = vadd.f32 %v630_v59, %v7356_v33  ;;  %v678_v14 = vadd.f32 %v659_v63, %v7358_v18 }
 0x190   : > { %v774_v4 = vpop.f32.mrf.mxu2  ;;  %v803_v35 = vpop.f32.mrf.mxu3  ;;  %6084 = vmatmul.msk.bf16.gmra.mxu0 %vm11275_vm1, %v6460_v26  ;;  %6088 = vmatmul.msk.bf16.gmra.mxu1 %vm11275_vm1, %v6460_v26  ;;  %v256_v26 = vld [vmem:[%s11205_s2 + $0x18] sm:$0xff] }
 0x191   : > { %v7438_v8 = vadd.f32 %v774_v4, %v673_v15  ;;  %v7440_v9 = vadd.f32 %v803_v35, %v674_v16  ;;  %v253_v15 = vld [vmem:[%s11205_s2] sm:$0xff]  ;;  %v6912_v16 = vmov 0  }
 0x192   : > { %6504 = vset.pattern.permute.xlu1 %v6912_v16  ;;  %6506 = vset.pattern.permute.xlu0 %v6912_v16 }
 0x193   : > { %1559 = vperm.xlu1 %6504, %v253_v15   ;;  %6505 = vset.pattern.permute.xlu2 %v6912_v16  ;;  %v6467_v15 = vld [vmem:[%s11204_s1 + $0x108] sm:$0xff] }
 0x194   : > { %1569 = vperm.xlu0 %6506, %v255_v55  }
 0x195   : > { %v632_v10 = vpop.f32.mrf.mxu0  ;;  %v661_v11 = vpop.f32.mrf.mxu1 }
 0x196   : > { %v7443_v12 = vadd.f32 %v632_v10, %v7360_v39  ;;  %v7446_v27 = vadd.f32 %v661_v11, %v7362_v40  ;;  %v6461_v39 = vld [vmem:[%s11204_s1 + $0xd8] sm:$0xff] }
 0x198   : > { %v7448_v33 = vpop.f32.mrf.mxu2  ;;  %v7450_v18 = vpop.f32.mrf.mxu3 }
 0x19b   : > { %1574 = vperm.xlu1 %6504, %v256_v26  }
 0x19d   : > { %v635_v40 = vpop.f32.mrf.mxu0  ;;  %v664_v29 = vpop.f32.mrf.mxu1  ;;  %6116 = vmatmul.msk.bf16.gmra.mxu2 %vm11275_vm1, %v6464_v28  ;;  %6120 = vmatmul.msk.bf16.gmra.mxu3 %vm11275_vm1, %v6464_v28  ;;  %v254_v28 = vld [vmem:[%s11205_s2 + $0x8] sm:$0xff] }
 0x19e   : > { %v681_v30 = vadd.f32 %v635_v40, %v7376_v49  ;;  %v682_v19 = vadd.f32 %v664_v29, %v7378_v52  ;;  %v6465_v52 = vld [vmem:[%s11204_s1 + $0xf8] sm:$0xff]  ;;  %1564 = vperm.xlu2 %6505, %v254_v28  }
 0x1a0   : > { %v779_v17 = vpop.f32.mrf.mxu2  ;;  %v808_v20 = vpop.f32.mrf.mxu3  ;;  %6085 = vmatmul.msk.bf16.gmra.mxu0 %vm11275_vm1, %v6461_v39  ;;  %6089 = vmatmul.msk.bf16.gmra.mxu1 %vm11275_vm1, %v6461_v39 }
 0x1a1   : > { %v826_v36 = vadd.f32 %v779_v17, %v677_v13  ;;  %v827_v43 = vadd.f32 %v808_v20, %v678_v14 }
 0x1a5   : > { %v637_v50 = vpop.f32.mrf.mxu0  ;;  %v666_v45 = vpop.f32.mrf.mxu1 }
 0x1a6   : > { %v7468_v46 = vadd.f32 %v637_v50, %v7392_v7  ;;  %v7471_v48 = vadd.f32 %v666_v45, %v7394_v34  ;;  %v6466_v7 = vld [vmem:[%s11204_s1 + $0x100] sm:$0xff] }
 0x1a8   : > { %v7473_v23 = vpop.f32.mrf.mxu2  ;;  %v7475_v49 = vpop.f32.mrf.mxu3 }
 0x1ad   : > { %v896_v56 = vpop.f32.mrf.mxu0  ;;  %v925_v34 = vpop.f32.mrf.mxu1  ;;  %6117 = vmatmul.msk.bf16.gmra.mxu2 %vm11275_vm1, %v6465_v52  ;;  %6121 = vmatmul.msk.bf16.gmra.mxu3 %vm11275_vm1, %v6465_v52 }
 0x1ae   : > { %v945_v60 = vadd.f32 %v896_v56, %v7411_v44  ;;  %v946_v21 = vadd.f32 %v925_v34, %v7413_v51  ;;  %v260_v44 = vld [vmem:[%s11205_s2 + $0x38] sm:$0xff]  ;;  %v258_v51 = vld [vmem:[%s11205_s2 + $0x28] sm:$0xff] }
 0x1af   : > { %1594 = vperm.xlu0 %6506, %v260_v44   ;;  %1584 = vperm.xlu1 %6504, %v258_v51   ;;  %v259_v44 = vld [vmem:[%s11205_s2 + $0x30] sm:$0xff] }
 0x1b0   : > { %v784_v59 = vpop.f32.mrf.mxu2  ;;  %v813_v63 = vpop.f32.mrf.mxu3  ;;  %6146 = vmatmul.msk.bf16.vlgmr.msra.gmra.mxu0 %vm11275_vm1, %v6466_v7  ;;  %6150 = vmatmul.msk.bf16.vlgmr.msra.gmra.mxu1 %vm11275_vm1, %v6466_v7 }
 0x1b1   : > { %v830_v13 = vadd.f32 %v784_v59, %v681_v30  ;;  %v831_v14 = vadd.f32 %v813_v63, %v682_v19 }
 0x1b5   : > { %v7495_v4 = vpop.f32.mrf.mxu0  ;;  %v7497_v35 = vpop.f32.mrf.mxu1 }
 0x1b8   : > { %v7505_v10 = vpop.f32.mrf.mxu2  ;;  %v7507_v11 = vpop.f32.mrf.mxu3 }
 0x1bd   : > { %v901_v16 = vpop.f32.mrf.mxu0  ;;  %v930_v39 = vpop.f32.mrf.mxu1 }
 0x1be   : > { %v949_v40 = vadd.f32 %v901_v16, %v7438_v8  ;;  %v950_v29 = vadd.f32 %v930_v39, %v7440_v9  ;;  %v257_v8 = vld [vmem:[%s11205_s2 + $0x20] sm:$0xff]  ;;  %v6468_v9 = vld [vmem:[%s11204_s1 + $0x110] sm:$0xff] }
 0x1bf   : > { %1579 = vperm.xlu2 %6505, %v257_v8  }
 0x1c0   : > { %v1045_v30 = vpop.f32.mrf.mxu2  ;;  %v1074_v19 = vpop.f32.mrf.mxu3  ;;  %6147 = vmatmul.msk.bf16.gmra.mxu0 %vm11275_vm1, %v6467_v15  ;;  %6151 = vmatmul.msk.bf16.gmra.mxu1 %vm11275_vm1, %v6467_v15 }
 0x1c1   : > { %v1094_v17 = vadd.f32 %v1045_v30, %v945_v60  ;;  %v1095_v20 = vadd.f32 %v1074_v19, %v946_v21 }
 0x1c5   : > { %v7519_v50 = vpop.f32.mrf.mxu0  ;;  %v7521_v45 = vpop.f32.mrf.mxu1 }
 0x1c7   : > { %1589 = vperm.xlu2 %6505, %v259_v44  }
 0x1c8   : > { %v7523_v52 = vpop.f32.mrf.mxu2  ;;  %v7525_v55 = vpop.f32.mrf.mxu3 }
 0x1cd   : > { %v906_v7 = vpop.f32.mrf.mxu0  ;;  %v935_v56 = vpop.f32.mrf.mxu1 }
 0x1ce   : > { %v953_v34 = vadd.f32 %v906_v7, %v826_v36  ;;  %v954_v60 = vadd.f32 %v935_v56, %v827_v43  ;;  %v6469_v43 = vld [vmem:[%s11204_s1 + $0x118] sm:$0xff] }
 0x1d0   : > { %v1050_v21 = vpop.f32.mrf.mxu2  ;;  %v1079_v26 = vpop.f32.mrf.mxu3  ;;  %6148 = vmatmul.msk.bf16.gmra.mxu0 %vm11275_vm1, %v6468_v9  ;;  %6152 = vmatmul.msk.bf16.gmra.mxu1 %vm11275_vm1, %v6468_v9 }
 0x1d1   : > { %v1098_v59 = vadd.f32 %v1050_v21, %v949_v40  ;;  %v1099_v63 = vadd.f32 %v1079_v26, %v950_v29 }
 0x1d5   : > { %v7538_v51 = vpop.f32.mrf.mxu0  ;;  %v7540_v28 = vpop.f32.mrf.mxu1 }
 0x1d8   : > { %v7542_v15 = vpop.f32.mrf.mxu2  ;;  %v7544_v36 = vpop.f32.mrf.mxu3 }
 0x1dd   : > { %v911_v16 = vpop.f32.mrf.mxu0  ;;  %v940_v39 = vpop.f32.mrf.mxu1 }
 0x1de   : > { %v7549_v40 = vadd.f32 %v911_v16, %v830_v13  ;;  %v7551_v29 = vadd.f32 %v940_v39, %v831_v14 }
 0x1e0   : > { %v1055_v30 = vpop.f32.mrf.mxu2  ;;  %v1084_v19 = vpop.f32.mrf.mxu3  ;;  %6149 = vmatmul.msk.bf16.gmra.mxu0 %vm11275_vm1, %v6469_v43  ;;  %6153 = vmatmul.msk.bf16.gmra.mxu1 %vm11275_vm1, %v6469_v43 }
 0x1e1   : > { %v1102_v8 = vadd.f32 %v1055_v30, %v953_v34  ;;  %v1103_v9 = vadd.f32 %v1084_v19, %v954_v60 }
 0x1e5   : > { %v7555_v7 = vpop.f32.mrf.mxu0  ;;  %v7557_v56 = vpop.f32.mrf.mxu1 }
 0x1e8   : > { %v7559_v21 = vpop.f32.mrf.mxu2  ;;  %v7561_v26 = vpop.f32.mrf.mxu3 }
 0x1ed   : > { %v1194_v13 = vpop.f32.mrf.mxu0  ;;  %v1223_v44 = vpop.f32.mrf.mxu1 }
 0x1ee   : > { %v1243_v14 = vadd.f32 %v1194_v13, %v1094_v17  ;;  %v1244_v16 = vadd.f32 %v1223_v44, %v1095_v20 }
 0x1f0   : > { %v7563_v39 = vpop.f32.mrf.mxu2  ;;  %v7565_v38 = vpop.f32.mrf.mxu3 }
 0x1f5   : > { %v1196_v37 = vpop.f32.mrf.mxu0  ;;  %v1225_v43 = vpop.f32.mrf.mxu1 }
 0x1f8   : > { %v7567_v30 = vpop.f32.mrf.mxu2  ;;  %v7569_v19 = vpop.f32.mrf.mxu3 }
 0x1f9   : > { %11318 = vst [vmem:[#allocation19_spill] sm:$0xff] %v7569_v19 }
 0x1fd   : > { %v1199_v34 = vpop.f32.mrf.mxu0  ;;  %v1228_v60 = vpop.f32.mrf.mxu1 }
 0x1fe   : > { %v1247_v3 = vadd.f32 %v1199_v34, %v1098_v59  ;;  %v1248_v2 = vadd.f32 %v1228_v60, %v1099_v63 }
 0x200   : > { %v1343_v17 = vpop.f32.mrf.mxu2  ;;  %v1372_v20 = vpop.f32.mrf.mxu3 }
 0x201   : > { %v1393_v32 = vadd.f32 %v1372_v20, %v1244_v16 }
 0x205   : > { %v7571_v54 = vpop.f32.mrf.mxu0  ;;  %v7573_v53 = vpop.f32.mrf.mxu1 }
 0x206   : > { %v7597_v31 = vpop.permute.xlu1 %1559 }
 0x208   : > { %v1345_v25 = vpop.f32.mrf.mxu2  ;;  %v1374_v24 = vpop.f32.mrf.mxu3 }
 0x20d   : > { %v1204_v13 = vpop.f32.mrf.mxu0  ;;  %v1233_v44 = vpop.f32.mrf.mxu1 }
 0x20e   : > { %v7575_v42 = vadd.f32 %v1204_v13, %v1102_v8  ;;  %v7577_v41 = vadd.f32 %v1233_v44, %v1103_v9  ;;  %v820_v13 = vadd.f32 %v7422_v47, %v7381_v57  ;;  %v1392_v44 = vadd.f32 %v1343_v17, %v1243_v14 }
 0x210   : > { %11319 = vst [vmem:[#allocation20_spill] sm:$0xff] %v7575_v42  ;;  %v1348_v59 = vpop.f32.mrf.mxu2  ;;  %v1377_v63 = vpop.f32.mrf.mxu3 }
 0x211   : > { %11320 = vst [vmem:[#allocation21_spill] sm:$0xff] %v7577_v41 }
 0x215   : > { %v7579_v1 = vpop.f32.mrf.mxu0  ;;  %v7581_v0 = vpop.f32.mrf.mxu1 }
 0x216   : > { %11321 = vst [vmem:[#allocation22_spill] sm:$0xff] %v7579_v1 }
 0x217   : > { %11322 = vst [vmem:[#allocation23_spill] sm:$0xff] %v7581_v0 }
 0x218   : > { %v7591_v8 = vpop.f32.mrf.mxu2  ;;  %v7593_v9 = vpop.f32.mrf.mxu3 }
 0x21d   : > { %v7583_v34 = vpop.f32.mrf.mxu0  ;;  %v7585_v60 = vpop.f32.mrf.mxu1 }
 0x21e   : > { %11323 = vst [vmem:[#allocation24_spill] sm:$0xff] %v7583_v34  ;;  %v947_v34 = vadd.f32 %v7495_v4, %v820_v13 }
 0x21f   : > { %11324 = vst [vmem:[#allocation25_spill] sm:$0xff] %v7585_v60 }
 0x220   : > { %v7603_v1 = vpop.f32.mrf.mxu2  ;;  %v7605_v19 = vpop.f32.mrf.mxu3 }
 0x225   : > { %v7587_v6 = vpop.f32.mrf.mxu0  ;;  %v7589_v5 = vpop.f32.mrf.mxu1 }
 0x226   : > { %11325 = vst [vmem:[#allocation26_spill] sm:$0xff] %v7587_v6  ;;  %v1096_v6 = vadd.f32 %v7523_v52, %v947_v34 }
 0x227   : > { %11326 = vst [vmem:[#allocation27_spill] sm:$0xff] %v7589_v5  ;;  %v821_v5 = vadd.f32 %v7424_v22, %v7384_v58 }
 0x228   : > { %v1245_v16 = vadd.f32 %v1196_v37, %v1096_v6  ;;  %v7614_v13 = vpop.f32.mrf.mxu2 }
 0x229   : > { %v948_v14 = vadd.f32 %v7497_v35, %v821_v5  ;;  %v7616_v5 = vpop.f32.mrf.mxu3 }
 0x22d   : > { %v1492_v41 = vpop.f32.mrf.mxu0  ;;  %v1521_v42 = vpop.f32.mrf.mxu1 }
 0x22e   : > { %v1541_v60 = vadd.f32 %v1492_v41, %v1392_v44  ;;  %v1542_v0 = vadd.f32 %v1521_v42, %v1393_v32  ;;  %v1097_v32 = vadd.f32 %v7525_v55, %v948_v14  ;;  %v1394_v41 = vadd.f32 %v1345_v25, %v1245_v16  ;;  %v7611_v42 = vpop.permute.xlu2 %1564 }
 0x22f   : > { %v824_v25 = vadd.f32 %v7448_v33, %v7417_v61  ;;  %v825_v55 = vadd.f32 %v7450_v18, %v7420_v62 }
 0x230   : > { %v1597_v57 = vadd.f32 %v7597_v31, %v1541_v60  ;;  %v1598_v47 = vadd.f32 %v7597_v31, %v1542_v0  ;;  %v1246_v52 = vadd.f32 %v1225_v43, %v1097_v32  ;;  %v1396_v43 = vadd.f32 %v1348_v59, %v1247_v3 }
 0x231   : > { %v951_v14 = vadd.f32 %v7519_v50, %v824_v25  ;;  %v952_v16 = vadd.f32 %v7521_v45, %v825_v55  ;;  %v828_v50 = vadd.f32 %v7473_v23, %v7443_v12  ;;  %v829_v45 = vadd.f32 %v7475_v49, %v7446_v27 }
 0x232   : > { %v6154_v17 = vmul.f32 -1.442695, %v1597_v57  ;;  %v6155_v4 = vmul.f32 -1.442695, %v1598_v47  ;;  %v1395_v34 = vadd.f32 %v1374_v24, %v1246_v52  ;;  %v1397_v24 = vadd.f32 %v1377_v63, %v1248_v2  ;;  %v7624_v57 = vpop.permute.xlu0 %1569 }
 0x233   : > { %v1100_v62 = vadd.f32 %v7542_v15, %v951_v14  ;;  %v1101_v2 = vadd.f32 %v7544_v36, %v952_v16  ;;  %v832_v59 = vadd.f32 %v7505_v10, %v7468_v46  ;;  %v956_v52 = vadd.f32 %v7540_v28, %v829_v45  ;;  %v1358_v46 = vpop.f32.mrf.mxu2  ;;  %v7651_v10 = vpop.f32.mrf.mxu3  ;;  %v11332_v14 = vld [vmem:[#allocation25_spill] sm:$0xff]  ;;  %v11336_v45 = vld [vmem:[#allocation27_spill] sm:$0xff] }
 0x234   : > { %6509 = vpow2.f32 %v6154_v17 }
 0x235   : > { %6511 = vpow2.f32 %v6155_v4  ;;  %v1494_v58 = vpop.f32.mrf.mxu0  ;;  %v1523_v22 = vpop.f32.mrf.mxu1  ;;  %v1249_v15 = vadd.f32 %v7571_v54, %v1100_v62  ;;  %v1250_v63 = vadd.f32 %v7573_v53, %v1101_v2  ;;  %v959_v54 = vadd.f32 %v7555_v7, %v832_v59  ;;  %v11335_v2 = vld [vmem:[#allocation26_spill] sm:$0xff] }
 0x236   : > { %v1543_v20 = vadd.f32 %v1494_v58, %v1394_v41  ;;  %v1544_v6 = vadd.f32 %v1523_v22, %v1395_v34  ;;  %v833_v58 = vadd.f32 %v7507_v11, %v7471_v48  ;;  %v955_v22 = vadd.f32 %v7538_v51, %v828_v50 }
 0x237   : > { %v1398_v27 = vadd.f32 %v7591_v8, %v1249_v15  ;;  %v1399_v49 = vadd.f32 %v7593_v9, %v1250_v63  ;;  %v1105_v51 = vadd.f32 %v7561_v26, %v956_v52  ;;  %v1106_v8 = vadd.f32 %v7563_v39, %v7549_v40  ;;  %v11328_v26 = vld [vmem:[#allocation19_spill] sm:$0xff] }
 0x238   : > { %v1599_v60 = vadd.f32 %v7611_v42, %v1543_v20  ;;  %v1600_v32 = vadd.f32 %v7611_v42, %v1544_v6  ;;  %v960_v48 = vadd.f32 %v7557_v56, %v833_v58  ;;  %v1104_v11 = vadd.f32 %v7559_v21, %v955_v22  ;;  %v7668_v21 = vpop.permute.xlu1 %1574  ;;  %v11330_v39 = vld [vmem:[#allocation23_spill] sm:$0xff] }
 0x239   : > { %v1108_v7 = vadd.f32 %v7567_v30, %v959_v54  ;;  %11327 = vst [vmem:[#allocation28_spill] sm:$0xff] %v7668_v21  ;;  %v1254_v55 = vadd.f32 %v11330_v39, %v1105_v51 }
 0x23a   : > { %v6510_v0 = vpop.eup %6509  ;;  %v6156_v37 = vmul.f32 -1.442695, %v1599_v60  ;;  %v6157_v36 = vmul.f32 -1.442695, %v1600_v32  ;;  %v1109_v6 = vadd.f32 %v11328_v26, %v960_v48 }
 0x23b   : > { %v6512_v35 = vpop.eup %6511  ;;  %v7622_v44 = vadd.f32 1.0, %v6510_v0  ;;  %v1107_v0 = vadd.f32 %v7565_v38, %v7551_v29  ;;  %v1403_v63 = vadd.f32 %v7616_v5, %v1254_v55  ;;  %v1360_v52 = vpop.f32.mrf.mxu2 }
 0x23c   : > { %v7626_v47 = vadd.f32 1.0, %v6512_v35  ;;  %6513 = vpow2.f32 %v6156_v37  ;;  %v11329_v37 = vld [vmem:[#allocation22_spill] sm:$0xff]  ;;  %v1258_v59 = vadd.f32 %v11336_v45, %v1109_v6  ;;  %v7699_v5 = vpop.permute.xlu2 %1579 }
 0x23d   : > { %v1497_v17 = vpop.f32.mrf.mxu0  ;;  %v1526_v4 = vpop.f32.mrf.mxu1  ;;  %6515 = vrcp.f32 %v7622_v44  ;;  %v1253_v35 = vadd.f32 %v11329_v37, %v1104_v11  ;;  %v1256_v16 = vadd.f32 %v11332_v14, %v1107_v0  ;;  %11337 = vst [vmem:[#allocation19_spill] sm:$0xff] %v7699_v5  ;;  %v1672_v54 = vand.u32 2147483648, %v7622_v44 }
 0x23e   : > { %v1545_v61 = vadd.f32 %v1497_v17, %v1396_v43  ;;  %v1546_v33 = vadd.f32 %v1526_v4, %v1397_v24  ;;  %6517 = vrcp.f32 %v7626_v47  ;;  %v11331_v43 = vld [vmem:[#allocation24_spill] sm:$0xff]  ;;  %v1685_v48 = vand.u32 2147483647, %v7626_v47 }
 0x23f   : > { %v1255_v24 = vadd.f32 %v11331_v43, %v1106_v8  ;;  %v11333_v17 = vld [vmem:[#allocation20_spill] sm:$0xff]  ;;  %v1402_v15 = vadd.f32 %v7614_v13, %v1253_v35  ;;  %v7711_v8 = vadd.f32 %v7651_v10, %v1256_v16  ;;  %vm1666_vm9 = vweird.f32 %v7622_v44 }
 0x240   : > { %v1601_v3 = vadd.f32 %v7624_v57, %v1545_v61  ;;  %v1602_v18 = vadd.f32 %v7624_v57, %v1546_v33  ;;  %v1400_v4 = vadd.f32 %v7603_v1, %v11333_v17  ;;  %v11334_v33 = vld [vmem:[#allocation21_spill] sm:$0xff]  ;;  %v1673_v10 = vor.u32 1.1754944e-38, %v1672_v54 }
 0x241   : > { %v1401_v62 = vadd.f32 %v7605_v19, %v11334_v33  ;;  %vm1681_vm10 = vweird.f32 %v7626_v47  ;;  %vm7733_vm13 = vcmp.eq.f32.partialorder %v1685_v48, 8.507059e+37 }
 0x242   : > { %v6158_v41 = vmul.f32 -1.442695, %v1601_v3  ;;  %v6159_v12 = vmul.f32 -1.442695, %v1602_v18  ;;  %v6514_v23 = vpop.eup %6513  ;;  %v1257_v3 = vadd.f32 %v11335_v2, %v1108_v7 }
 0x243   : > { %v7653_v53 = vpop.eup %6515  ;;  %v7666_v56 = vadd.f32 1.0, %v6514_v23 }
 0x244   : > { %6519 = vpow2.f32 %v6158_v41  ;;  %v7659_v34 = vpop.eup %6517  ;;  %v1662_v38 = vmul.f32 %v7653_v53, %v7622_v44  ;;  %vm1667_vm11 = vweird.f32 %v7653_v53 }
 0x245   : > { %v1499_v28 = vpop.f32.mrf.mxu0  ;;  %v1528_v20 = vpop.f32.mrf.mxu1  ;;  %6521 = vpow2.f32 %v6157_v36  ;;  %v1677_v29 = vmul.f32 %v7659_v34, %v7626_v47  ;;  %v7692_v36 = vadd.f32 %v1358_v46, %v1255_v24  ;;  %v1670_v46 = vand.u32 2147483647, %v7622_v44  ;;  %vm7758_vm15 = vmor %vm1666_vm9, %vm1667_vm11 }
 0x246   : > { %v1547_v9 = vadd.f32 %v1499_v28, %v1398_v27  ;;  %v1548_v60 = vadd.f32 %v1528_v20, %v1399_v49  ;;  %6523 = vpow2.f32 %v6159_v12  ;;  %v1663_v58 = vsub.f32 1.0, %v1662_v38  ;;  %v1389_v12 = vpop.f32.mrf.mxu3 }
 0x247   : > { %6525 = vrcp.f32 %v7666_v56  ;;  %v1678_v22 = vsub.f32 1.0, %v1677_v29  ;;  %v1687_v28 = vand.u32 2147483648, %v7626_v47  ;;  %vm7727_vm12 = vcmp.eq.f32.partialorder %v1670_v46, 8.507059e+37 }
 0x248   : > { %v1603_v25 = vadd.f32 %v7668_v21, %v1547_v9  ;;  %v1604_v40 = vadd.f32 %v7668_v21, %v1548_v60  ;;  %v7713_v9 = vadd.f32 %v1360_v52, %v1257_v3  ;;  %v7715_v60 = vadd.f32 %v1389_v12, %v1258_v59 }
 0x249   : > { %v1664_v0 = vmul.f32 %v7653_v53, %v1663_v58  ;;  %v1679_v37 = vmul.f32 %v7659_v34, %v1678_v22  ;;  %v1688_v24 = vor.u32 1.1754944e-38, %v1687_v28  ;;  %vm1682_vm14 = vweird.f32 %v7659_v34 }
 0x24a   : > { %v6520_v30 = vpop.eup %6519  ;;  %v6160_v32 = vmul.f32 -1.442695, %v1603_v25  ;;  %v6161_v61 = vmul.f32 -1.442695, %v1604_v40  ;;  %v1700_v14 = vand.u32 2147483647, %v7666_v56  ;;  %vm7774_vm9 = vmor %vm1681_vm10, %vm1682_vm14  ;;  %vm1696_vm11 = vweird.f32 %v7666_v56 }
 0x24b   : > { %v7687_v18 = vadd.f32 1.0, %v6520_v30  ;;  %v6522_v50 = vpop.eup %6521  ;;  %v1665_v30 = vadd.f32 %v7653_v53, %v1664_v0  ;;  %v1702_v16 = vand.u32 2147483648, %v7666_v56 }
 0x24c   : > { %6527 = vpow2.f32 %v6160_v32  ;;  %v6524_v1 = vpop.eup %6523  ;;  %v7697_v13 = vadd.f32 1.0, %v6522_v50 }
 0x24d   : > { %6529 = vrcp.f32 %v7687_v18  ;;  %v1502_v19 = vpop.f32.mrf.mxu0  ;;  %v1531_v41 = vpop.f32.mrf.mxu1  ;;  %v7695_v23 = vadd.f32 1.0, %v6524_v1  ;;  %v7778_v58 = vor.u32 1.1754944e-38, %v1702_v16  ;;  %vm1726_vm10 = vweird.f32 %v7687_v18 }
 0x24e   : > { %6531 = vpow2.f32 %v6161_v61  ;;  %v1549_v27 = vadd.f32 %v1502_v19, %v1400_v4  ;;  %v1550_v49 = vadd.f32 %v1531_v41, %v1401_v62  ;;  %v7708_v20 = vpop.eup %6525  ;;  %v1680_v61 = vadd.f32 %v7659_v34, %v1679_v37  ;;  %v7747_v62 = vpop.permute.xlu1 %1584 }
 0x24f   : > { %6533 = vrcp.f32 %v7695_v23  ;;  %11342 = vst [vmem:[#allocation22_spill] sm:$0xff] %v7747_v62  ;;  %v1692_v2 = vmul.f32 %v7708_v20, %v7666_v56  ;;  %v1715_v3 = vand.u32 2147483647, %v7697_v13  ;;  %v1669_v19 = vsel %vm7758_vm15, %v7653_v53, %v1665_v30 }
 0x250   : > { %v1605_v11 = vadd.f32 %v7699_v5, %v1549_v27  ;;  %v1606_v51 = vadd.f32 %v7699_v5, %v1550_v49  ;;  %6535 = vrcp.f32 %v7697_v13  ;;  %v1732_v41 = vand.u32 2147483648, %v7687_v18 }
 0x251   : > { %v1717_v22 = vand.u32 2147483648, %v7697_v13  ;;  %v1730_v49 = vand.u32 2147483647, %v7687_v18  ;;  %v1684_v53 = vsel %vm7774_vm9, %v7659_v34, %v1680_v61  ;;  %v1693_v54 = vsub.f32 1.0, %v1692_v2 }
 0x252   : > { %v6528_v7 = vpop.eup %6527  ;;  %v6162_v26 = vmul.f32 -1.442695, %v1605_v11  ;;  %v6163_v6 = vmul.f32 -1.442695, %v1606_v51  ;;  %vm1697_vm14 = vweird.f32 %v7708_v20  ;;  %v7797_v28 = vsel %vm7727_vm12, %v1673_v10, %v1669_v19 }
 0x253   : > { %v7720_v35 = vpop.eup %6529  ;;  %v7723_v25 = vadd.f32 1.0, %v6528_v7  ;;  %v1733_v0 = vor.u32 1.1754944e-38, %v1732_v41  ;;  %v7801_v7 = vsel %vm7733_vm13, %v1688_v24, %v1684_v53  ;;  %vm7805_vm15 = vcmp.eq.f32.partialorder %v1730_v49, 8.507059e+37 }
 0x254   : > { %v6532_v40 = vpop.eup %6531  ;;  %6537 = vpow2.f32 %v6162_v26  ;;  %v1722_v55 = vmul.f32 %v7720_v35, %v7687_v18  ;;  %v1745_v37 = vand.u32 2147483647, %v7695_v23  ;;  %vm1741_vm12 = vweird.f32 %v7695_v23 }
 0x255   : > { %v1504_v38 = vpop.f32.mrf.mxu0  ;;  %v1533_v29 = vpop.f32.mrf.mxu1  ;;  %6539 = vpow2.f32 %v6163_v6  ;;  %v7745_v33 = vadd.f32 1.0, %v6532_v40  ;;  %v1747_v40 = vand.u32 2147483648, %v7695_v23  ;;  %v1694_v43 = vmul.f32 %v7708_v20, %v1693_v54  ;;  %v7872_v54 = vld [vmem:[%s6995_s7 + $0x28] sm:$0xff] }
 0x256   : > { %v7741_v17 = vpop.eup %6533  ;;  %v1551_v4 = vadd.f32 %v1504_v38, %v1402_v15  ;;  %v1552_v32 = vadd.f32 %v1533_v29, %v1403_v63  ;;  %6541 = vrcp.f32 %v7723_v25  ;;  %v1723_v15 = vsub.f32 1.0, %v1722_v55  ;;  %v7817_v38 = vpop.permute.xlu2 %1589  ;;  %1926 = vrot.lane.b32.xlu2 %v7872_v54, %s6904_s5 }
 0x257   : > { %v1737_v63 = vmul.f32 %v7741_v17, %v7695_v23  ;;  %v7764_v1 = vpop.eup %6535  ;;  %6543 = vrcp.f32 %v7745_v33  ;;  %11349 = vst [vmem:[#allocation23_spill] sm:$0xff] %v7817_v38  ;;  %vm1727_vm13 = vweird.f32 %v7720_v35  ;;  %v1777_v16 = vand.u32 2147483648, %v7745_v33 }
 0x258   : > { %v1607_v50 = vadd.f32 %v7747_v62, %v1551_v4  ;;  %v1608_v45 = vadd.f32 %v7747_v62, %v1552_v32  ;;  %v1724_v11 = vmul.f32 %v7720_v35, %v1723_v15  ;;  %v7829_v32 = vmul.f32 %v7764_v1, %v7697_v13  ;;  %vm7843_vm8 = vmor %vm1726_vm10, %vm1727_vm13 }
 0x259   : > { %v1738_v46 = vsub.f32 1.0, %v1737_v63  ;;  %vm1742_vm9 = vweird.f32 %v7741_v17  ;;  %vm7833_vm7 = vcmp.eq.f32.partialorder %v1745_v37, 8.507059e+37  ;;  %v7849_v19 = vadd.f32 %v7708_v20, %v1694_v43  ;;  %vm7866_vm10 = vmor %vm1696_vm11, %vm1697_vm14  ;;  %v7916_v63 = vpop.permute.xlu0 %1594  ;;  %v8056_v37 = vld [vmem:[%s6995_s7 + $0x38] sm:$0xff] }
 0x25a   : > { %v6538_v52 = vpop.eup %6537  ;;  %v6164_v12 = vmul.f32 -1.442695, %v1607_v50  ;;  %v6165_v27 = vmul.f32 -1.442695, %v1608_v45  ;;  %v1725_v29 = vadd.f32 %v7720_v35, %v1724_v11  ;;  %v1748_v45 = vor.u32 1.1754944e-38, %v1747_v40  ;;  %vm7885_vm11 = vmor %vm1741_vm12, %vm1742_vm9  ;;  %11358 = vst [vmem:[#allocation24_spill] sm:$0xff] %v7916_v63 }
 0x25b   : > { %v7786_v47 = vadd.f32 1.0, %v6538_v52  ;;  %v6540_v48 = vpop.eup %6539  ;;  %v1739_v55 = vmul.f32 %v7741_v17, %v1738_v46  ;;  %v7859_v49 = vor.u32 1.1754944e-38, %v1777_v16  ;;  %v1760_v46 = vand.u32 2147483647, %v7723_v25 }
 0x25c   : > { %6545 = vpow2.f32 %v6164_v12  ;;  %v7792_v51 = vpop.eup %6541  ;;  %v7803_v26 = vadd.f32 1.0, %v6540_v48  ;;  %v1729_v12 = vsel %vm7843_vm8, %v7720_v35, %v1725_v29  ;;  %vm1756_vm8 = vweird.f32 %v7723_v25 }
 0x25d   : > { %6547 = vrcp.f32 %v7786_v47  ;;  %v1507_v34 = vpop.f32.mrf.mxu0  ;;  %v1536_v10 = vpop.f32.mrf.mxu1  ;;  %v1752_v24 = vmul.f32 %v7792_v51, %v7723_v25  ;;  %v1699_v23 = vsel %vm7866_vm10, %v7708_v20, %v7849_v19  ;;  %v1708_v29 = vsub.f32 1.0, %v7829_v32 }
 0x25e   : > { %6549 = vpow2.f32 %v6165_v27  ;;  %v1553_v39 = vadd.f32 %v1507_v34, %v7692_v36  ;;  %v7822_v30 = vpop.eup %6543  ;;  %v1762_v36 = vand.u32 2147483648, %v7723_v25  ;;  %v1554_v2 = vadd.f32 %v1536_v10, %v7711_v8 }
 0x25f   : > { %6551 = vrcp.f32 %v7803_v26  ;;  %v1740_v8 = vadd.f32 %v7741_v17, %v1739_v55  ;;  %v1753_v44 = vsub.f32 1.0, %v1752_v24  ;;  %v1767_v48 = vmul.f32 %v7822_v30, %v7745_v33 }
 0x260   : > { %v1609_v4 = vadd.f32 %v7817_v38, %v1553_v39  ;;  %v1610_v18 = vadd.f32 %v7817_v38, %v1554_v2  ;;  %v7857_v27 = vor.u32 1.1754944e-38, %v1762_v36  ;;  %v1734_v10 = vsel %vm7805_vm15, %v1733_v0, %v1729_v12 }
 0x261   : > { %v1744_v55 = vsel %vm7885_vm11, %v7741_v17, %v1740_v8  ;;  %v1754_v43 = vmul.f32 %v7792_v51, %v1753_v44  ;;  %vm1786_vm14 = vweird.f32 %v7786_v47  ;;  %v1790_v0 = vand.u32 2147483647, %v7786_v47 }
 0x262   : > { %v6546_v61 = vpop.eup %6545  ;;  %6553 = vtanh.f32 %v1609_v4  ;;  %v1768_v16 = vsub.f32 1.0, %v1767_v48  ;;  %vm1771_vm15 = vweird.f32 %v7745_v33  ;;  %v1845_v4 = vmul.f32 0.0, %v1734_v10 }
 0x263   : > { %v7837_v59 = vpop.eup %6547  ;;  %v7839_v15 = vadd.f32 1.0, %v6546_v61  ;;  %v1749_v2 = vsel %vm7833_vm7, %v1748_v45, %v1744_v55  ;;  %vm1712_vm12 = vweird.f32 %v7764_v1  ;;  %vm7922_vm9 = vcmp.eq.f32.partialorder %v1760_v46, 8.507059e+37 }
 0x264   : > { %v6550_v41 = vpop.eup %6549  ;;  %v1782_v52 = vmul.f32 %v7837_v59, %v7786_v47  ;;  %vm1787_vm13 = vweird.f32 %v7837_v59  ;;  %vm7931_vm7 = vcmp.eq.f32.partialorder %v1700_v14, 8.507059e+37  ;;  %vm1757_vm11 = vweird.f32 %v7792_v51 }
 0x265   : > { %6555 = vrcp.f32 %v7839_v15  ;;  %v7874_v35 = vpop.eup %6551  ;;  %v7879_v34 = vadd.f32 1.0, %v6550_v41  ;;  %v1509_v40 = vpop.f32.mrf.mxu0  ;;  %vm1711_vm5 = vweird.f32 %v7697_v13  ;;  %vm7938_vm6 = vcmp.eq.f32.partialorder %v1790_v0, 8.507059e+37  ;;  %vm7951_vm2 = vmor %vm1786_vm14, %vm1787_vm13 }
 0x266   : > { %v1783_v11 = vsub.f32 1.0, %v1782_v52  ;;  %6557 = vtanh.f32 %v1610_v18  ;;  %v1797_v39 = vmul.f32 %v7874_v35, %v7803_v26  ;;  %v1555_v17 = vadd.f32 %v1509_v40, %v7713_v9  ;;  %vm7968_vm14 = vmor %vm1756_vm8, %vm1757_vm11 }
 0x267   : > { %6559 = vrcp.f32 %v7879_v34  ;;  %v1792_v9 = vand.u32 2147483648, %v7786_v47  ;;  %v1755_v18 = vadd.f32 %v7792_v51, %v1754_v43  ;;  %vm1801_vm4 = vweird.f32 %v7803_v26 }
 0x268   : > { %v1784_v24 = vmul.f32 %v7837_v59, %v1783_v11  ;;  %v6554_v36 = vpop.eup %6553  ;;  %v1798_v6 = vsub.f32 1.0, %v1797_v39  ;;  %v1611_v52 = vadd.f32 %v7916_v63, %v1555_v17  ;;  %v1846_v48 = vmul.f32 0.0, %v1749_v2 }
 0x269   : > { %v1849_v61 = vmul.f32 %v6554_v36, %v7797_v28  ;;  %v1538_v28 = vpop.f32.mrf.mxu1  ;;  %v1769_v14 = vmul.f32 %v7822_v30, %v1768_v16  ;;  %vm1802_vm3 = vweird.f32 %v7874_v35  ;;  %v1805_v10 = vand.u32 2147483647, %v7803_v26 }
 0x26a   : > { %v1785_v8 = vadd.f32 %v7837_v59, %v1784_v24  ;;  %v1799_v41 = vmul.f32 %v7874_v35, %v1798_v6  ;;  %v1556_v39 = vadd.f32 %v1538_v28, %v7715_v60  ;;  %v1807_v43 = vand.u32 2147483648, %v7803_v26 }
 0x26b   : > { %v7914_v32 = vpop.eup %6555  ;;  %v7926_v45 = vadd.f32 %v1849_v61, %v1845_v4  ;;  %v1759_v24 = vsel %vm7968_vm14, %v7792_v51, %v1755_v18  ;;  %v1709_v0 = vmul.f32 %v7764_v1, %v1708_v29  ;;  %v1793_v6 = vor.u32 1.1754944e-38, %v1792_v9 }
 0x26c   : > { %v6558_v50 = vpop.eup %6557  ;;  %v1812_v40 = vmul.f32 %v7914_v32, %v7839_v15  ;;  %v1789_v60 = vsel %vm7951_vm2, %v7837_v59, %v1785_v8  ;;  %v1612_v25 = vadd.f32 %v7916_v63, %v1556_v39  ;;  %vm7986_vm2 = vmor %vm1801_vm4, %vm1802_vm3  ;;  %v1770_v51 = vadd.f32 %v7822_v30, %v1769_v14 }
 0x26d   : > { %11361 = vst [vmem:[#allocation25_spill] sm:$0xff] %v7926_v45  ;;  %v1850_v11 = vmul.f32 %v6558_v50, %v7801_v7  ;;  %v7944_v56 = vpop.eup %6559  ;;  %6561 = vtanh.f32 %v7926_v45  ;;  %v1800_v7 = vadd.f32 %v7874_v35, %v1799_v41  ;;  %vm1772_vm8 = vweird.f32 %v7822_v30  ;;  %vm8025_vm4 = vmor %vm1711_vm5, %vm1712_vm12 }
 0x26e   : > { %6563 = vtanh.f32 %v1611_v52  ;;  %v1827_v36 = vmul.f32 %v7944_v56, %v7879_v34  ;;  %v1813_v17 = vsub.f32 1.0, %v1812_v40  ;;  %v1710_v4 = vadd.f32 %v7764_v1, %v1709_v0  ;;  %vm7998_vm13 = vmor %vm1771_vm15, %vm1772_vm8  ;;  %v8079_v0 = vld [vmem:[%s6995_s7 + $0x20] sm:$0xff] }
 0x26f   : > { %v7962_v55 = vadd.f32 %v1850_v11, %v1846_v48  ;;  %v1804_v16 = vsel %vm7986_vm2, %v7874_v35, %v1800_v7  ;;  %v1775_v26 = vand.u32 2147483647, %v7745_v33  ;;  %v1794_v2 = vsel %vm7938_vm6, %v1793_v6, %v1789_v60 }
 0x270   : > { %v1808_v8 = vor.u32 1.1754944e-38, %v1807_v43  ;;  %v1764_v35 = vsel %vm7922_vm9, %v7857_v27, %v1759_v24  ;;  %v1774_v9 = vsel %vm7998_vm13, %v7822_v30, %v1770_v51  ;;  %vm1806_vm3 = vcmp.eq.f32.partialorder %v1805_v10, 8.507059e+37 }
 0x271   : > { %11368 = vst [vmem:[#allocation20_spill] sm:$0xff] %v7962_v55  ;;  %6565 = vtanh.f32 %v7962_v55  ;;  %v1828_v41 = vsub.f32 1.0, %v1827_v36  ;;  %v1704_v33 = vsel %vm7931_vm7, %v7778_v58, %v1699_v23  ;;  %v1814_v50 = vmul.f32 %v7914_v32, %v1813_v17 }
 0x272   : > { %6567 = vtanh.f32 %v1612_v25  ;;  %v1809_v44 = vsel %vm1806_vm3, %v1808_v8, %v1804_v16  ;;  %v1714_v20 = vsel %vm8025_vm4, %v7764_v1, %v1710_v4  ;;  %vm1776_vm6 = vcmp.eq.f32.partialorder %v1775_v26, 8.507059e+37 }
 0x273   : > { %v6562_v61 = vpop.eup %6561  ;;  %v1847_v53 = vmul.f32 0.0, %v1764_v35  ;;  %v1718_v23 = vor.u32 1.1754944e-38, %v1717_v22  ;;  %v1779_v52 = vsel %vm1776_vm6, %v7859_v49, %v1774_v9  ;;  %vm1716_vm5 = vcmp.eq.f32.partialorder %v1715_v3, 8.507059e+37  ;;  %v11379_v9 = vld [vmem:[#allocation5_spill] sm:$0xff] }
 0x274   : > { %v8011_v28 = vmul.f32 %v6562_v61, %v1794_v2  ;;  %v6564_v30 = vpop.eup %6563  ;;  %v1829_v1 = vmul.f32 %v7944_v56, %v1828_v41  ;;  %v1815_v11 = vadd.f32 %v7914_v32, %v1814_v50  ;;  %vm1817_vm10 = vweird.f32 %v7914_v32 }
 0x275   : > { %v1851_v58 = vmul.f32 %v6564_v30, %v1704_v33  ;;  %v1719_v48 = vsel %vm1716_vm5, %v1718_v23, %v1714_v20  ;;  %v1848_v22 = vmul.f32 0.0, %v1779_v52  ;;  %v1822_v14 = vand.u32 2147483648, %v7839_v15  ;;  %v11380_v33 = vld [vmem:[#allocation6_spill] sm:$0xff] }
 0x276   : > { %1942 = vrot.lane.b32.xlu0 %v8011_v28, %s6904_s5  ;;  %vm1816_vm15 = vweird.f32 %v7839_v15  ;;  %v1820_v13 = vand.u32 2147483647, %v7839_v15  ;;  %v1830_v40 = vadd.f32 %v7944_v56, %v1829_v1  ;;  %vm1832_vm9 = vweird.f32 %v7944_v56 }
 0x277   : > { %v6566_v19 = vpop.eup %6565  ;;  %v8043_v46 = vadd.f32 %v1851_v58, %v1847_v53  ;;  %vm1818_vm12 = vmor %vm1816_vm15, %vm1817_vm10  ;;  %v1837_v7 = vand.u32 2147483648, %v7879_v34  ;;  %v1823_v10 = vor.u32 1.1754944e-38, %v1822_v14  ;;  %vm1831_vm7 = vweird.f32 %v7879_v34 }
 0x278   : > { %v8038_v12 = vmul.f32 %v6566_v19, %v1809_v44  ;;  %v6568_v18 = vpop.eup %6567  ;;  %v1819_v39 = vsel %vm1818_vm12, %v7914_v32, %v1815_v11  ;;  %v1835_v15 = vand.u32 2147483647, %v7879_v34  ;;  %vm1821_vm11 = vcmp.eq.f32.partialorder %v1820_v13, 8.507059e+37  ;;  %vm1833_vm14 = vmor %vm1831_vm7, %vm1832_vm9 }
 0x279   : > { %11377 = vst [vmem:[#allocation21_spill] sm:$0xff] %v8043_v46  ;;  %v1852_v49 = vmul.f32 %v6568_v18, %v1719_v48  ;;  %6569 = vtanh.f32 %v8043_v46  ;;  %v1824_v60 = vsel %vm1821_vm11, %v1823_v10, %v1819_v39  ;;  %v1834_v32 = vsel %vm1833_vm14, %v7944_v56, %v1830_v40  ;;  %v8082_v56 = vld [vmem:[%s6995_s7 + $0x30] sm:$0xff]  ;;  %v6765_v10 = vld [vmem:[%s11204_s1 + $0x20] sm:$0xff] }
 0x27a   : > { %1930 = vrot.lane.b32.xlu1 %v8038_v12, %s6904_s5  ;;  %v1838_v43 = vor.u32 1.1754944e-38, %v1837_v7  ;;  %vm1836_vm2 = vcmp.eq.f32.partialorder %v1835_v15, 8.507059e+37  ;;  %vm11381_vm8 = vcmask 121856   ;;  %vm11391_vm12 = vcmask 138240  }
 0x27b   : > { %v8053_v3 = vadd.f32 %v1852_v49, %v1848_v22  ;;  %vm11382_vm13 = vmmov %vm11381_vm8 }
 0x27c   : > { %v1839_v25 = vsel %vm1836_vm2, %v1838_v43, %v1834_v32  ;;  %vm11383_vm3 = vmmov %vm11381_vm8 }
 0x27d   : > { %11378 = vst [vmem:[#allocation26_spill] sm:$0xff] %v8053_v3  ;;  %6571 = vtanh.f32 %v8053_v3  ;;  %vm11384_vm4 = vmmov %vm11383_vm3 }
 0x27e   : > { %1928 = vrot.lane.b32.xlu0 %v8056_v37, %s6904_s5  ;;  %vm11385_vm6 = vmmov %vm11383_vm3 }
 0x27f   : > { %v6570_v47 = vpop.eup %6569  ;;  %vm11386_vm5 = vmmov %vm11383_vm3 }
 0x280   : > { %v8068_v24 = vmul.f32 %v6570_v47, %v1824_v60  ;;  %vm11389_vm10 = vmmov %vm11383_vm3 }
 0x281   : > { %vm11390_vm15 = vmmov %vm11383_vm3 }
 0x282   : > { %1944 = vrot.lane.b32.xlu1 %v8068_v24, %s6904_s5  ;;  %vm11392_vm9 = vmmov %vm11391_vm12 }
 0x283   : > { %v6572_v36 = vpop.eup %6571  ;;  %vm11395_vm7 = vmmov %vm11392_vm9 }
 0x284   : > { %v8072_v34 = vmul.f32 %v6572_v36, %v1839_v25  ;;  %vm11396_vm11 = vmmov %vm11395_vm7 }
 0x285   : > { %vm11399_vm14 = vmmov %vm11395_vm7 }
 0x286   : > { %1932 = vrot.lane.b32.xlu2 %v8072_v34, %s6904_s5  ;;  %2094 = vrot.lane.b32.xlu0 %v8038_v12, %s6906_s9  ;;  %vm11400_vm2 = vmmov %vm11395_vm7 }
 0x28a   : > { %1938 = vrot.lane.b32.xlu1 %v8079_v0, %s6904_s5 }
 0x28e   : > { %1940 = vrot.lane.b32.xlu2 %v8082_v56, %s6904_s5  ;;  %1894 = vrot.lane.b32.xlu0 %v8011_v28, %s6905_s8 }
 0x292   : > { %1878 = vrot.lane.b32.xlu1 %v8038_v12, %s6905_s8 }
 0x296   : > { %2106 = vrot.lane.b32.xlu2 %v8011_v28, %s6906_s9  ;;  %2092 = vrot.lane.b32.xlu0 %v8056_v37, %s6906_s9 }
 0x29a   : > { %2102 = vrot.lane.b32.xlu1 %v8079_v0, %s6906_s9 }
 0x29e   : > { %2090 = vrot.lane.b32.xlu2 %v7872_v54, %s6906_s9  ;;  %1874 = vrot.lane.b32.xlu0 %v7872_v54, %s6905_s8 }
 0x2a2   : > { %2096 = vrot.lane.b32.xlu1 %v8072_v34, %s6906_s9 }
 0x2a6   : > { %2104 = vrot.lane.b32.xlu2 %v8082_v56, %s6906_s9  ;;  %2108 = vrot.lane.b32.xlu0 %v8068_v24, %s6906_s9 }
 0x2aa   : > { %1896 = vrot.lane.b32.xlu1 %v8068_v24, %s6905_s8 }
 0x2ae   : > { %1880 = vrot.lane.b32.xlu2 %v8072_v34, %s6905_s8  ;;  %1892 = vrot.lane.b32.xlu0 %v8082_v56, %s6905_s8 }
 0x2b0   : > { %v1927_v6 = vpop.permute.xlu2 %1926 }
 0x2b2   : > { %1876 = vrot.lane.b32.xlu1 %v8056_v37, %s6905_s8 }
 0x2b6   : > { %1890 = vrot.lane.b32.xlu2 %v8079_v0, %s6905_s8  ;;  %2228 = vrot.lane.b32.xlu0 %v8011_v28, %s6907_s10 }
 0x2ba   : > { %2216 = vrot.lane.b32.xlu1 %v8038_v12, %s6907_s10 }
 0x2be   : > { %2212 = vrot.lane.b32.xlu2 %v7872_v54, %s6907_s10  ;;  %2214 = vrot.lane.b32.xlu0 %v8056_v37, %s6907_s10 }
 0x2c2   : > { %2230 = vrot.lane.b32.xlu1 %v8068_v24, %s6907_s10 }
 0x2c6   : > { %2218 = vrot.lane.b32.xlu2 %v8072_v34, %s6907_s10  ;;  %2550 = vrot.lane.b32.xlu0 %v8011_v28, %s6909_s12 }
 0x2ca   : > { %2224 = vrot.lane.b32.xlu1 %v8079_v0, %s6907_s10 }
 0x2ce   : > { %2226 = vrot.lane.b32.xlu2 %v8082_v56, %s6907_s10  ;;  %2544 = vrot.lane.b32.xlu0 %v7872_v54, %s6909_s12 }
 0x2d2   : > { %2552 = vrot.lane.b32.xlu1 %v8038_v12, %s6909_s12 }
 0x2d6   : > { %2430 = vrot.lane.b32.xlu2 %v8038_v12, %s6908_s11  ;;  %2420 = vrot.lane.b32.xlu0 %v8079_v0, %s6908_s11 }
 0x2da   : > { %2428 = vrot.lane.b32.xlu1 %v8011_v28, %s6908_s11 }
 0x2de   : > { %2542 = vrot.lane.b32.xlu2 %v8079_v0, %s6909_s12  ;;  %2556 = vrot.lane.b32.xlu0 %v8072_v34, %s6909_s12 }
 0x2e0   : > { %v1933_v59 = vpop.permute.xlu2 %1932 }
 0x2e2   : > { %2546 = vrot.lane.b32.xlu1 %v8082_v56, %s6909_s12 }
 0x2e6   : > { %2548 = vrot.lane.b32.xlu2 %v8056_v37, %s6909_s12  ;;  %2432 = vrot.lane.b32.xlu0 %v8068_v24, %s6908_s11 }
 0x2e8   : > { %v1941_v17 = vpop.permute.xlu2 %1940  ;;  %v1943_v51 = vpop.permute.xlu0 %1942 }
 0x2ea   : > { %2434 = vrot.lane.b32.xlu1 %v8072_v34, %s6908_s11 }
 0x2ec   : > { %v1931_v16 = vpop.permute.xlu1 %1930 }
 0x2ed   : > { %v1948_v26 = vsel %vm325_vm0, %v1943_v51, %v1931_v16  ;;  %v1960_v61 = vsel %vm325_vm0, %v1931_v16, %v1943_v51  ;;  %v6766_v51 = vld [vmem:[%s11204_s1 + $0x28] sm:$0xff] }
 0x2ee   : > { %2554 = vrot.lane.b32.xlu2 %v8068_v24, %s6909_s12  ;;  %2426 = vrot.lane.b32.xlu0 %v8056_v37, %s6908_s11  ;;  %v1966_v41 = vmul.f32 %v1960_v61, %v11379_v9  ;;  %v1967_v27 = vmul.f32 %v1948_v26, %v11380_v33  ;;  %v11388_v61 = vld [vmem:[#allocation8_spill] sm:$0xff] }
 0x2f0   : > { %v2107_v4 = vpop.permute.xlu2 %2106  ;;  %v1929_v29 = vpop.permute.xlu0 %1928 }
 0x2f1   : > { %v1947_v58 = vsel %vm325_vm0, %v1941_v17, %v1929_v29  ;;  %v1959_v23 = vsel %vm325_vm0, %v1929_v29, %v1941_v17 }
 0x2f2   : > { %2422 = vrot.lane.b32.xlu1 %v7872_v54, %s6908_s11  ;;  %v1964_v52 = vmul.f32 %v1959_v23, %v11379_v9  ;;  %v1965_v18 = vmul.f32 %v1947_v58, %v11380_v33 }
 0x2f4   : > { %v1945_v2 = vpop.permute.xlu1 %1944 }
 0x2f5   : > { %v1949_v8 = vsel %vm325_vm0, %v1945_v2, %v1933_v59  ;;  %v1961_v35 = vsel %vm325_vm0, %v1933_v59, %v1945_v2 }
 0x2f6   : > { %2424 = vrot.lane.b32.xlu2 %v8082_v56, %s6908_s11  ;;  %2674 = vrot.lane.b32.xlu0 %v8038_v12, %s6910_s13  ;;  %v1968_v30 = vmul.f32 %v1961_v35, %v11379_v9  ;;  %v1969_v44 = vmul.f32 %v1949_v8, %v11380_v33 }
 0x2f8   : > { %v2091_v50 = vpop.permute.xlu2 %2090  ;;  %v2095_v20 = vpop.permute.xlu0 %2094  ;;  %v1972_v19 = vpack.c.bf16 %v1968_v30, %v1966_v41  ;;  %v1973_v53 = vpack.c.bf16 %v1969_v44, %v1967_v27 }
 0x2f9   : > { %v2112_v36 = vsel %vm11381_vm8, %v2107_v4, %v2095_v20  ;;  %v2124_v25 = vsel %vm11382_vm13, %v2095_v20, %v2107_v4  ;;  %v11387_v4 = vld [vmem:[#allocation7_spill] sm:$0xff]  ;;  %vm11401_vm8 = vmmov %vm11400_vm2 }
 0x2fa   : > { %2794 = vrot.lane.b32.xlu1 %v8011_v28, %s6911_s23  ;;  %1980 = vmatpush.bf16.msra.mxu2 %v1972_v19  ;;  %v2130_v26 = vmul.f32 %v2124_v25, %v11387_v4  ;;  %v2131_v2 = vmul.f32 %v2112_v36, %v11388_v61  ;;  %vm11402_vm13 = vmmov %vm11400_vm2 }
 0x2fb   : > { %2009 = vmatpush.bf16.msra.mxu3 %v1973_v53 }
 0x2fc   : > { %v1939_v1 = vpop.permute.xlu1 %1938 }
 0x2fd   : > { %v1946_v48 = vsel %vm325_vm0, %v1939_v1, %v1927_v6  ;;  %v1958_v11 = vsel %vm325_vm0, %v1927_v6, %v1939_v1 }
 0x2fe   : > { %2796 = vrot.lane.b32.xlu2 %v8038_v12, %s6911_s23  ;;  %2786 = vrot.lane.b32.xlu0 %v8079_v0, %s6911_s23  ;;  %v1962_v22 = vmul.f32 %v1958_v11, %v11379_v9  ;;  %v1963_v49 = vmul.f32 %v1946_v48, %v11380_v33  ;;  %v11393_v11 = vld [vmem:[#allocation11_spill] sm:$0xff] }
 0x300   : > { %v2105_v14 = vpop.permute.xlu2 %2104  ;;  %v1895_v13 = vpop.permute.xlu0 %1894  ;;  %v1970_v40 = vpack.c.bf16 %v1964_v52, %v1962_v22  ;;  %v1971_v39 = vpack.c.bf16 %v1965_v18, %v1963_v49  ;;  %v2338_v22 = vmul.f32 %v8011_v28, %v11393_v11  ;;  %v2340_v49 = vmul.f32 %v8068_v24, %v11393_v11 }
 0x302   : > { %2788 = vrot.lane.b32.xlu1 %v7872_v54, %s6911_s23  ;;  %1981 = vmatpush.bf16.msra.mxu2 %v1970_v40 }
 0x303   : > { %2010 = vmatpush.bf16.msra.mxu3 %v1971_v39 }
 0x304   : > { %v1879_v7 = vpop.permute.xlu1 %1878 }
 0x305   : > { %6170 = vmatmul.msk.bf16.vlgmr.msra.gmra.mxu2 %vm11275_vm1, %v6765_v10  ;;  %v1900_v58 = vsel %vm11391_vm12, %v1895_v13, %v1879_v7  ;;  %v1912_v23 = vsel %vm11392_vm9, %v1879_v7, %v1895_v13  ;;  %v11397_v7 = vld [vmem:[#allocation3_spill] sm:$0xff] }
 0x306   : > { %2672 = vrot.lane.b32.xlu2 %v8011_v28, %s6910_s13  ;;  %6174 = vmatmul.msk.bf16.vlgmr.msra.gmra.mxu3 %vm11275_vm1, %v6765_v10 }
 0x307   : > { %2792 = vrot.lane.b32.xlu0 %v8056_v37, %s6911_s23 }
 0x308   : > { %v1881_v15 = vpop.permute.xlu2 %1880  ;;  %v2093_v47 = vpop.permute.xlu0 %2092 }
 0x309   : > { %v2123_v59 = vsel %vm11383_vm3, %v2093_v47, %v2105_v14  ;;  %v2111_v16 = vsel %vm11385_vm6, %v2105_v14, %v2093_v47  ;;  %v11394_v14 = vld [vmem:[#allocation12_spill] sm:$0xff]  ;;  %v1918_v47 = vmul.f32 %v1912_v23, %v11397_v7  ;;  %vm11403_vm3 = vcmask 7168  }
 0x30a   : > { %2664 = vrot.lane.b32.xlu1 %v8079_v0, %s6910_s13  ;;  %v2128_v41 = vmul.f32 %v2123_v59, %v11387_v4  ;;  %v2341_v40 = vmul.f32 %v8072_v34, %v11394_v14  ;;  %vm11405_vm6 = vmmov %vm11403_vm3 }
 0x30b   : > { %vm11411_vm12 = vmmov %vm11403_vm3 }
 0x30c   : > { %v2103_v60 = vpop.permute.xlu1 %2102  ;;  %vm11412_vm9 = vmmov %vm11403_vm3 }
 0x30d   : > { %v2122_v17 = vsel %vm11384_vm4, %v2091_v50, %v2103_v60  ;;  %v2110_v29 = vsel %vm11386_vm5, %v2103_v60, %v2091_v50  ;;  %v2129_v50 = vmul.f32 %v2111_v16, %v11388_v61  ;;  %v11398_v60 = vld [vmem:[#allocation4_spill] sm:$0xff]  ;;  %vm11404_vm4 = vmmov %vm11403_vm3 }
 0x30e   : > { %2790 = vrot.lane.b32.xlu2 %v8082_v56, %s6911_s23  ;;  %v2126_v27 = vmul.f32 %v2122_v17, %v11387_v4  ;;  %v2127_v20 = vmul.f32 %v2110_v29, %v11388_v61  ;;  %v1919_v36 = vmul.f32 %v1900_v58, %v11398_v60  ;;  %v2344_v17 = vpack.c.bf16 %v2340_v49, %v2338_v22  ;;  %vm11406_vm5 = vmmov %vm11403_vm3  ;;  %v6769_v49 = vld [vmem:[%s11204_s1 + $0x38] sm:$0xff] }
 0x30f   : > { %2798 = vrot.lane.b32.xlu0 %v8068_v24, %s6911_s23 }
 0x310   : > { %v1891_v32 = vpop.permute.xlu2 %1890  ;;  %v1875_v43 = vpop.permute.xlu0 %1874  ;;  %v2134_v48 = vpack.c.bf16 %v2128_v41, %v2126_v27  ;;  %v2135_v13 = vpack.c.bf16 %v2129_v50, %v2127_v20 }
 0x311   : > { %v1910_v16 = vsel %vm11400_vm2, %v1875_v43, %v1891_v32 }
 0x312   : > { %2800 = vrot.lane.b32.xlu1 %v8072_v34, %s6911_s23 }
 0x314   : > { %v2097_v6 = vpop.permute.xlu1 %2096 }
 0x315   : > { %6171 = vmatmul.msk.bf16.gmra.mxu2 %vm11275_vm1, %v6766_v51 }
 0x316   : > { %2678 = vrot.lane.b32.xlu2 %v8072_v34, %s6910_s13  ;;  %6175 = vmatmul.msk.bf16.gmra.mxu3 %vm11275_vm1, %v6766_v51  ;;  %v1898_v51 = vsel %vm11399_vm14, %v1891_v32, %v1875_v43  ;;  %v6767_v32 = vld [vmem:[%s11204_s1 + $0x30] sm:$0xff] }
 0x317   : > { %2668 = vrot.lane.b32.xlu0 %v8082_v56, %s6910_s13 }
 0x318   : > { %v8226_v8 = vpop.permute.xlu2 %2212  ;;  %v2109_v35 = vpop.permute.xlu0 %2108 }
 0x319   : > { %v2113_v30 = vsel %vm11389_vm10, %v2109_v35, %v2097_v6  ;;  %v2125_v44 = vsel %vm11390_vm15, %v2097_v6, %v2109_v35  ;;  %v2339_v6 = vmul.f32 %v8038_v12, %v11394_v14  ;;  %vm11409_vm10 = vmmov %vm11403_vm3 }
 0x31a   : > { %v2132_v19 = vmul.f32 %v2125_v44, %v11387_v4  ;;  %v2133_v53 = vmul.f32 %v2113_v30, %v11388_v61  ;;  %2676 = vrot.lane.b32.xlu1 %v8068_v24, %s6910_s13  ;;  %vm11410_vm15 = vmmov %vm11403_vm3 }
 0x31b   : > { %v2345_v29 = vpack.c.bf16 %v2341_v40, %v2339_v6  ;;  %v11407_v40 = vld [vmem:[#allocation9_spill] sm:$0xff]  ;;  %v2337_v6 = vmul.f32 %v8056_v37, %v11394_v14 }
 0x31c   : > { %v2136_v52 = vpack.c.bf16 %v2132_v19, %v2130_v26  ;;  %v2137_v18 = vpack.c.bf16 %v2133_v53, %v2131_v2  ;;  %v1897_v1 = vpop.permute.xlu1 %1896  ;;  %v1914_v26 = vmul.f32 %v1910_v16, %v11397_v7  ;;  %v1915_v2 = vmul.f32 %v1898_v51, %v11398_v60  ;;  %v6768_v53 = vld [vmem:[%s11204_s1] sm:$0xff] }
 0x31d   : > { %v1901_v39 = vsel %vm11395_vm7, %v1897_v1, %v1881_v15  ;;  %v1913_v10 = vsel %vm11396_vm11, %v1881_v15, %v1897_v1  ;;  %vm11413_vm7 = vcmask 924672  }
 0x31e   : > { %2144 = vmatpush.bf16.msrb.mxu2 %v2136_v52  ;;  %2173 = vmatpush.bf16.msrb.mxu3 %v2137_v18  ;;  %v1920_v25 = vmul.f32 %v1913_v10, %v11397_v7  ;;  %v1921_v28 = vmul.f32 %v1901_v39, %v11398_v60  ;;  %v11408_v10 = vld [vmem:[#allocation10_spill] sm:$0xff]  ;;  %vm11414_vm11 = vmmov %vm11413_vm7 }
 0x31f   : > { %2666 = vrot.lane.b32.xlu2 %v7872_v54, %s6910_s13  ;;  %vm11415_vm14 = vmmov %vm11413_vm7 }
 0x320   : > { %v2219_v24 = vpop.permute.xlu2 %2218  ;;  %v1893_v34 = vpop.permute.xlu0 %1892  ;;  %v1924_v15 = vpack.c.bf16 %v1920_v25, %v1918_v47  ;;  %v1925_v59 = vpack.c.bf16 %v1921_v28, %v1919_v36  ;;  %v2334_v28 = vmul.f32 %v8079_v0, %v11393_v11  ;;  %vm11416_vm2 = vmmov %vm11413_vm7 }
 0x322   : > { %2145 = vmatpush.bf16.msrb.mxu2 %v2134_v48  ;;  %2174 = vmatpush.bf16.msrb.mxu3 %v2135_v13 }
 0x323   : > { %2038 = vmatpush.bf16.msrb.mxu0 %v1924_v15  ;;  %2067 = vmatpush.bf16.msrb.mxu1 %v1925_v59 }
 0x324   : > { %v1877_v35 = vpop.permute.xlu1 %1876  ;;  %2670 = vrot.lane.b32.xlu1 %v8056_v37, %s6910_s13 }
 0x325   : > { %v1899_v12 = vsel %vm11401_vm8, %v1893_v34, %v1877_v35  ;;  %v1911_v41 = vsel %vm11402_vm13, %v1877_v35, %v1893_v34  ;;  %6172 = vmatmul.msk.bf16.gmra.mxu2 %vm11275_vm1, %v6767_v32  ;;  %v2335_v34 = vmul.f32 %v7872_v54, %v11394_v14  ;;  %v6770_v35 = vld [vmem:[%s11204_s1 + $0x8] sm:$0xff]  ;;  %vm11419_vm8 = vcmask 1039360  }
 0x326   : > { %2352 = vmatpush.bf16.msra.mxu2 %v2344_v17  ;;  %2381 = vmatpush.bf16.msra.mxu3 %v2345_v29  ;;  %v1916_v43 = vmul.f32 %v1911_v41, %v11397_v7  ;;  %v1917_v27 = vmul.f32 %v1899_v12, %v11398_v60  ;;  %vm11420_vm13 = vmmov %vm11419_vm8 }
 0x327   : > { %6176 = vmatmul.msk.bf16.gmra.mxu3 %vm11275_vm1, %v6767_v32  ;;  %v2343_v29 = vpack.c.bf16 %v2337_v6, %v2335_v34 }
 0x328   : > { %v2227_v30 = vpop.permute.xlu2 %2226  ;;  %v2229_v44 = vpop.permute.xlu0 %2228  ;;  %v1922_v50 = vpack.c.bf16 %v1916_v43, %v1914_v26  ;;  %v1923_v20 = vpack.c.bf16 %v1917_v27, %v1915_v2 }
 0x32a   : > { %2039 = vmatpush.bf16.msrb.mxu0 %v1922_v50  ;;  %2068 = vmatpush.bf16.msrb.mxu1 %v1923_v20 }
 0x32b   : > { %2382 = vmatpush.bf16.msra.mxu3 %v2343_v29  ;;  %v6774_v29 = vld [vmem:[%s11204_s1 + $0x18] sm:$0xff] }
 0x32c   : > { %v2217_v19 = vpop.permute.xlu1 %2216 }
 0x32d   : > { %6178 = vmatmul.msk.bf16.vlgmr.msrb.gmra.mxu0 %vm11275_vm1, %v6768_v53  ;;  %6182 = vmatmul.msk.bf16.vlgmr.msrb.gmra.mxu1 %vm11275_vm1, %v6768_v53  ;;  %v2234_v52 = vsel %vm11403_vm3, %v2229_v44, %v2217_v19  ;;  %v2246_v18 = vsel %vm11404_vm4, %v2217_v19, %v2229_v44  ;;  %v6772_v19 = vld [vmem:[%s11204_s1 + $0x10] sm:$0xff]  ;;  %vm11421_vm3 = vmmov %vm11419_vm8 }
 0x32e   : > { %v2252_v39 = vmul.f32 %v2246_v18, %v11407_v40  ;;  %v2253_v13 = vmul.f32 %v2234_v52, %v11408_v10  ;;  %vm11422_vm4 = vmmov %vm11421_vm3 }
 0x330   : > { %v2215_v58 = vpop.permute.xlu0 %2214  ;;  %v8276_v23 = vpop.permute.xlu2 %2430 }
 0x331   : > { %v2233_v17 = vsel %vm11409_vm10, %v2227_v30, %v2215_v58  ;;  %v2245_v51 = vsel %vm11410_vm15, %v2215_v58, %v2227_v30  ;;  %vm11427_vm10 = vmmov %vm11416_vm2 }
 0x332   : > { %v2251_v54 = vmul.f32 %v2233_v17, %v11408_v10  ;;  %vm11428_vm15 = vmmov %vm11416_vm2 }
 0x334   : > { %v2231_v1 = vpop.permute.xlu1 %2230 }
 0x335   : > { %v2235_v48 = vsel %vm11405_vm6, %v2231_v1, %v2219_v24  ;;  %v2247_v22 = vsel %vm11406_vm5, %v2219_v24, %v2231_v1  ;;  %6173 = vmatmul.msk.bf16.gmra.mxu2 %vm11275_vm1, %v6769_v49  ;;  %v2336_v24 = vmul.f32 %v8082_v56, %v11393_v11  ;;  %v2250_v56 = vmul.f32 %v2245_v51, %v11407_v40  ;;  %vm11425_vm6 = vmmov %vm11416_vm2 }
 0x336   : > { %v2254_v47 = vmul.f32 %v2247_v22, %v11407_v40  ;;  %v2255_v36 = vmul.f32 %v2235_v48, %v11408_v10  ;;  %v11417_v22 = vld [vmem:[#allocation15_spill] sm:$0xff]  ;;  %vm11426_vm5 = vmmov %vm11416_vm2 }
 0x337   : > { %6177 = vmatmul.msk.bf16.gmra.mxu3 %vm11275_vm1, %v6769_v49  ;;  %v2342_v16 = vpack.c.bf16 %v2336_v24, %v2334_v28 }
 0x338   : > { %v2551_v25 = vpop.permute.xlu0 %2550  ;;  %v2258_v15 = vpack.c.bf16 %v2254_v47, %v2252_v39  ;;  %v2259_v59 = vpack.c.bf16 %v2255_v36, %v2253_v13  ;;  %v8301_v0 = vpop.permute.xlu2 %2542  ;;  %v11418_v39 = vld [vmem:[#allocation16_spill] sm:$0xff] }
 0x339   : > { %2353 = vmatpush.bf16.msra.mxu2 %v2342_v16 }
 0x33a   : > { %2266 = vmatpush.bf16.msra.mxu0 %v2258_v15  ;;  %2295 = vmatpush.bf16.msra.mxu1 %v2259_v59 }
 0x33c   : > { %v2225_v26 = vpop.permute.xlu1 %2224 }
 0x33d   : > { %v2232_v37 = vsel %vm11411_vm12, %v2225_v26, %v8226_v8  ;;  %v2244_v2 = vsel %vm11412_vm9, %v8226_v8, %v2225_v26  ;;  %6179 = vmatmul.msk.bf16.gmra.mxu0 %vm11275_vm1, %v6770_v35  ;;  %6183 = vmatmul.msk.bf16.gmra.mxu1 %vm11275_vm1, %v6770_v35  ;;  %v6771_v8 = vld [vmem:[%s11204_s1 + $0x40] sm:$0xff]  ;;  %v11424_v26 = vld [vmem:[#allocation14_spill] sm:$0xff]  ;;  %vm11429_vm12 = vmmov %vm11421_vm3 }
 0x33e   : > { %v2248_v12 = vmul.f32 %v2244_v2, %v11407_v40  ;;  %v2249_v41 = vmul.f32 %v2232_v37, %v11408_v10  ;;  %vm11430_vm9 = vmmov %vm11421_vm3 }
 0x340   : > { %v2545_v32 = vpop.permute.xlu0 %2544  ;;  %v2256_v43 = vpack.c.bf16 %v2250_v56, %v2248_v12  ;;  %v2257_v27 = vpack.c.bf16 %v2251_v54, %v2249_v41  ;;  %v2549_v44 = vpop.permute.xlu2 %2548  ;;  %v11423_v56 = vld [vmem:[#allocation13_spill] sm:$0xff] }
 0x342   : > { %2267 = vmatpush.bf16.msra.mxu0 %v2256_v43  ;;  %2296 = vmatpush.bf16.msra.mxu1 %v2257_v27  ;;  %v2558_v43 = vsel %vm11425_vm6, %v8301_v0, %v2545_v32  ;;  %v2574_v27 = vsel %vm11426_vm5, %v2545_v32, %v8301_v0  ;;  %v6775_v0 = vld [vmem:[%s11204_s1 + $0x50] sm:$0xff]  ;;  %vm11439_vm6 = vcmask 916480  }
 0x343   : > { %vm11440_vm5 = vmmov %vm11439_vm6 }
 0x344   : > { %v2553_v30 = vpop.permute.xlu1 %2552 }
 0x345   : > { %6186 = vmatmul.msk.bf16.vlgmr.msrb.gmra.mxu2 %vm11275_vm1, %v6771_v8  ;;  %v2560_v53 = vsel %vm11413_vm7, %v2551_v25, %v2553_v30  ;;  %v2576_v58 = vsel %vm11414_vm11, %v2553_v30, %v2551_v25  ;;  %v6773_v25 = vld [vmem:[%s11204_s1 + $0x48] sm:$0xff]  ;;  %vm11431_vm7 = vmmov %vm11421_vm3 }
 0x346   : > { %v2582_v49 = vmul.f32 %v2560_v53, %v11417_v22  ;;  %v2583_v13 = vmul.f32 %v2576_v58, %v11418_v39  ;;  %v2578_v53 = vmul.f32 %v2558_v43, %v11417_v22  ;;  %v2579_v58 = vmul.f32 %v2574_v27, %v11418_v39  ;;  %vm11432_vm11 = vmmov %vm11421_vm3 }
 0x347   : > { %6190 = vmatmul.msk.bf16.vlgmr.msrb.gmra.mxu3 %vm11275_vm1, %v6771_v8 }
 0x348   : > { %v2421_v50 = vpop.permute.xlu0 %2420  ;;  %v2555_v52 = vpop.permute.xlu2 %2554 }
 0x34c   : > { %v2429_v20 = vpop.permute.xlu1 %2428 }
 0x34d   : > { %6180 = vmatmul.msk.bf16.gmra.mxu0 %vm11275_vm1, %v6772_v19  ;;  %6184 = vmatmul.msk.bf16.gmra.mxu1 %vm11275_vm1, %v6772_v19  ;;  %v2438_v15 = vsel %vm11419_vm8, %v2429_v20, %v8276_v23  ;;  %v2454_v59 = vsel %vm11420_vm13, %v8276_v23, %v2429_v20 }
 0x34e   : > { %v2460_v54 = vmul.f32 %v2438_v15, %v11423_v56  ;;  %v2461_v37 = vmul.f32 %v2454_v59, %v11424_v26 }
 0x350   : > { %v2557_v18 = vpop.permute.xlu0 %2556  ;;  %v2425_v20 = vpop.permute.xlu2 %2424 }
 0x351   : > { %v2561_v1 = vsel %vm11415_vm14, %v2555_v52, %v2557_v18  ;;  %v2577_v48 = vsel %vm11416_vm2, %v2557_v18, %v2555_v52  ;;  %vm11433_vm14 = vcmask 908288  }
 0x352   : > { %v2584_v47 = vmul.f32 %v2561_v1, %v11417_v22  ;;  %v2585_v36 = vmul.f32 %v2577_v48, %v11418_v39  ;;  %vm11434_vm2 = vmmov %vm11433_vm14 }
 0x353   : > { %vm11435_vm8 = vmmov %vm11434_vm2 }
 0x354   : > { %v2588_v28 = vpack.c.bf16 %v2584_v47, %v2582_v49  ;;  %v2589_v24 = vpack.c.bf16 %v2585_v36, %v2583_v13  ;;  %v2547_v34 = vpop.permute.xlu1 %2546  ;;  %vm11436_vm13 = vmmov %vm11434_vm2 }
 0x355   : > { %6187 = vmatmul.msk.bf16.gmra.mxu2 %vm11275_vm1, %v6773_v25  ;;  %v2559_v30 = vsel %vm11427_vm10, %v2547_v34, %v2549_v44  ;;  %v2575_v8 = vsel %vm11428_vm15, %v2549_v44, %v2547_v34  ;;  %vm11441_vm10 = vmmov %vm11440_vm5 }
 0x356   : > { %2625 = vmatpush.bf16.msrb.mxu3 %v2589_v24  ;;  %2596 = vmatpush.bf16.msrb.mxu2 %v2588_v28  ;;  %v2580_v52 = vmul.f32 %v2559_v30, %v11417_v22  ;;  %v2581_v18 = vmul.f32 %v2575_v8, %v11418_v39  ;;  %vm11442_vm15 = vmmov %vm11440_vm5 }
 0x357   : > { %6191 = vmatmul.msk.bf16.gmra.mxu3 %vm11275_vm1, %v6773_v25 }
 0x358   : > { %v2433_v6 = vpop.permute.xlu0 %2432  ;;  %v2586_v1 = vpack.c.bf16 %v2580_v52, %v2578_v53  ;;  %v2587_v48 = vpack.c.bf16 %v2581_v18, %v2579_v58  ;;  %v8415_v53 = vld [vmem:[%s11206_s3 + $0x10] ss:$0 sm:$0xff]  ;;  %v8421_v52 = vld [vmem:[%s11206_s3 + $0x18] ss:$0 sm:$0xff] }
 0x35a   : > { %2597 = vmatpush.bf16.msrb.mxu2 %v2586_v1  ;;  %2626 = vmatpush.bf16.msrb.mxu3 %v2587_v48 }
 0x35c   : > { %v2435_v17 = vpop.permute.xlu1 %2434 }
 0x35d   : > { %v2439_v51 = vsel %vm11421_vm3, %v2433_v6, %v2435_v17  ;;  %v2455_v16 = vsel %vm11422_vm4, %v2435_v17, %v2433_v6  ;;  %6181 = vmatmul.msk.bf16.gmra.mxu0 %vm11275_vm1, %v6774_v29  ;;  %6185 = vmatmul.msk.bf16.gmra.mxu1 %vm11275_vm1, %v6774_v29  ;;  %v6776_v6 = vld [vmem:[%s11204_s1 + $0x60] sm:$0xff]  ;;  %vm11437_vm3 = vmmov %vm11434_vm2 }
 0x35e   : > { %v2462_v2 = vmul.f32 %v2439_v51, %v11423_v56  ;;  %v2463_v23 = vmul.f32 %v2455_v16, %v11424_v26  ;;  %vm11438_vm4 = vmmov %vm11434_vm2 }
 0x360   : > { %v2427_v35 = vpop.permute.xlu0 %2426  ;;  %v2466_v12 = vpack.c.bf16 %v2462_v2, %v2460_v54  ;;  %v2467_v41 = vpack.c.bf16 %v2463_v23, %v2461_v37  ;;  %v6777_v54 = vld [vmem:[%s11204_s1 + $0x58] sm:$0xff] }
 0x361   : > { %v2437_v44 = vsel %vm11429_vm12, %v2425_v20, %v2427_v35  ;;  %v2453_v49 = vsel %vm11430_vm9, %v2427_v35, %v2425_v20  ;;  %v6778_v35 = vld [vmem:[%s11204_s1 + $0x68] sm:$0xff]  ;;  %vm11445_vm12 = vmmov %vm11434_vm2 }
 0x362   : > { %2474 = vmatpush.bf16.msrb.mxu0 %v2466_v12  ;;  %2503 = vmatpush.bf16.msrb.mxu1 %v2467_v41  ;;  %v2458_v36 = vmul.f32 %v2437_v44, %v11423_v56  ;;  %v2459_v24 = vmul.f32 %v2453_v49, %v11424_v26  ;;  %vm11446_vm9 = vmmov %vm11434_vm2 }
 0x364   : > { %v2423_v19 = vpop.permute.xlu1 %2422 }
 0x365   : > { %6188 = vmatmul.msk.bf16.gmra.mxu2 %vm11275_vm1, %v6775_v0  ;;  %v2436_v13 = vsel %vm11431_vm7, %v2421_v50, %v2423_v19  ;;  %v2452_v47 = vsel %vm11432_vm11, %v2423_v19, %v2421_v50  ;;  %v2797_v50 = vpop.permute.xlu2 %2796  ;;  %v6779_v19 = vld [vmem:[%s11204_s1 + $0x80] sm:$0xff]  ;;  %vm11447_vm7 = vmmov %vm11440_vm5 }
 0x366   : > { %v2456_v34 = vmul.f32 %v2436_v13, %v11423_v56  ;;  %v2457_v25 = vmul.f32 %v2452_v47, %v11424_v26  ;;  %vm11448_vm11 = vmmov %vm11440_vm5 }
 0x367   : > { %6192 = vmatmul.msk.bf16.gmra.mxu3 %vm11275_vm1, %v6775_v0 }
 0x368   : > { %v2675_v32 = vpop.permute.xlu0 %2674  ;;  %v2464_v59 = vpack.c.bf16 %v2458_v36, %v2456_v34  ;;  %v2465_v17 = vpack.c.bf16 %v2459_v24, %v2457_v25 }
 0x36a   : > { %2475 = vmatpush.bf16.msrb.mxu0 %v2464_v59  ;;  %2504 = vmatpush.bf16.msrb.mxu1 %v2465_v17  ;;  %v11444_v59 = vld [vmem:[#allocation18_spill] sm:$0xff] }
 0x36c   : > { %v2795_v28 = vpop.permute.xlu1 %2794 }
 0x36d   : > { %6194 = vmatmul.msk.bf16.vlgmr.msra.gmra.mxu0 %vm11275_vm1, %v6776_v6  ;;  %6198 = vmatmul.msk.bf16.vlgmr.msra.gmra.mxu1 %vm11275_vm1, %v6776_v6  ;;  %v2673_v37 = vpop.permute.xlu2 %2672  ;;  %v2804_v43 = vsel %vm11435_vm8, %v2795_v28, %v2797_v50  ;;  %v2820_v27 = vsel %vm11436_vm13, %v2797_v50, %v2795_v28  ;;  %v6782_v6 = vld [vmem:[%s11204_s1 + $0x70] sm:$0xff] }
 0x36e   : > { %v2826_v58 = vmul.f32 %v8415_v53, %v2804_v43  ;;  %v2827_v18 = vmul.f32 %v8421_v52, %v2820_v27  ;;  %v2682_v47 = vsel %vm11439_vm6, %v2673_v37, %v2675_v32  ;;  %v2698_v36 = vsel %vm11440_vm5, %v2675_v32, %v2673_v37  ;;  %v11443_v50 = vld [vmem:[#allocation17_spill] sm:$0xff]  ;;  %v6783_v43 = vld [vmem:[%s11204_s1 + $0x88] sm:$0xff] }
 0x36f   : > { %v2705_v17 = vmul.f32 %v2698_v36, %v11444_v59  ;;  %v6786_v36 = vld [vmem:[%s11204_s1 + $0xa0] sm:$0xff] }
 0x370   : > { %v2787_v15 = vpop.permute.xlu0 %2786 }
 0x374   : > { %v2789_v51 = vpop.permute.xlu1 %2788 }
 0x375   : > { %v8383_v16 = vsel %vm11433_vm14, %v2787_v15, %v2789_v51  ;;  %v8386_v29 = vsel %vm11434_vm2, %v2789_v51, %v2787_v15  ;;  %6189 = vmatmul.msk.bf16.gmra.mxu2 %vm11275_vm1, %v6777_v54  ;;  %v8402_v12 = vpop.permute.xlu2 %2790  ;;  %v2704_v15 = vmul.f32 %v2682_v47, %v11443_v50  ;;  %vm11449_vm14 = vmmov %vm11440_vm5 }
 0x376   : > { %vm11450_vm2 = vmmov %vm11440_vm5 }
 0x377   : > { %6193 = vmatmul.msk.bf16.gmra.mxu3 %vm11275_vm1, %v6777_v54 }
 0x379   : > { %v8393_v2 = vpop.permute.xlu0 %2792 }
 0x37c   : > { %v8395_v23 = vpop.permute.xlu1 %2664 }
 0x37d   : > { %6195 = vmatmul.msk.bf16.gmra.mxu0 %vm11275_vm1, %v6778_v35  ;;  %6199 = vmatmul.msk.bf16.gmra.mxu1 %vm11275_vm1, %v6778_v35  ;;  %v2679_v28 = vpop.permute.xlu2 %2678 }
 0x381   : > { %v2799_v41 = vpop.permute.xlu0 %2798 }
 0x384   : > { %v2801_v30 = vpop.permute.xlu1 %2800 }
 0x385   : > { %v2805_v8 = vsel %vm11437_vm3, %v2799_v41, %v2801_v30  ;;  %v2821_v20 = vsel %vm11438_vm4, %v2801_v30, %v2799_v41  ;;  %6202 = vmatmul.msk.bf16.vlgmr.msra.gmra.mxu2 %vm11275_vm1, %v6779_v19 }
 0x386   : > { %v2828_v0 = vmul.f32 %v8415_v53, %v2805_v8  ;;  %v2829_v44 = vmul.f32 %v8421_v52, %v2821_v20  ;;  %v6784_v8 = vld [vmem:[%s11204_s1 + $0x78] sm:$0xff] }
 0x387   : > { %6206 = vmatmul.msk.bf16.vlgmr.msra.gmra.mxu3 %vm11275_vm1, %v6779_v19 }
 0x388   : > { %v2832_v1 = vpack.c.bf16 %v2828_v0, %v2826_v58  ;;  %v2833_v48 = vpack.c.bf16 %v2829_v44, %v2827_v18  ;;  %v1983_v49 = vpop.f32.mrf.mxu2  ;;  %v6785_v58 = vld [vmem:[%s11204_s1 + $0x90] sm:$0xff] }
 0x389   : > { %v2012_v13 = vpop.f32.mrf.mxu3 }
 0x38a   : > { %2840 = vmatpush.bf16.msra.mxu2 %v2832_v1  ;;  %2869 = vmatpush.bf16.msra.mxu3 %v2833_v48 }
 0x38c   : > { %v2677_v24 = vpop.permute.xlu1 %2676 }
 0x38d   : > { %v2683_v34 = vsel %vm11441_vm10, %v2677_v24, %v2679_v28  ;;  %v2699_v25 = vsel %vm11442_vm15, %v2679_v28, %v2677_v24  ;;  %6196 = vmatmul.msk.bf16.gmra.mxu0 %vm11275_vm1, %v6782_v6  ;;  %6200 = vmatmul.msk.bf16.gmra.mxu1 %vm11275_vm1, %v6782_v6 }
 0x38e   : > { %v2706_v32 = vmul.f32 %v2683_v34, %v11443_v50  ;;  %v2707_v51 = vmul.f32 %v2699_v25, %v11444_v59 }
 0x390   : > { %v2710_v54 = vpack.c.bf16 %v2706_v32, %v2704_v15  ;;  %v2711_v37 = vpack.c.bf16 %v2707_v51, %v2705_v17  ;;  %v1985_v35 = vpop.f32.mrf.mxu2 }
 0x391   : > { %v2014_v41 = vpop.f32.mrf.mxu3 }
 0x392   : > { %2718 = vmatpush.bf16.msra.mxu0 %v2710_v54  ;;  %2747 = vmatpush.bf16.msra.mxu1 %v2711_v37 }
 0x395   : > { %6203 = vmatmul.msk.bf16.gmra.mxu2 %vm11275_vm1, %v6783_v43 }
 0x397   : > { %6207 = vmatmul.msk.bf16.gmra.mxu3 %vm11275_vm1, %v6783_v43  ;;  %v2819_v43 = vsel %vm11446_vm9, %v8393_v2, %v8402_v12 }
 0x398   : > { %v1988_v27 = vpop.f32.mrf.mxu2 }
 0x399   : > { %v2017_v30 = vpop.f32.mrf.mxu3 }
 0x39d   : > { %6197 = vmatmul.msk.bf16.gmra.mxu0 %vm11275_vm1, %v6784_v8  ;;  %6201 = vmatmul.msk.bf16.gmra.mxu1 %vm11275_vm1, %v6784_v8 }
 0x3a0   : > { %v1990_v20 = vpop.f32.mrf.mxu2 }
 0x3a1   : > { %v2019_v19 = vpop.f32.mrf.mxu3 }
 0x3a5   : > { %6204 = vmatmul.msk.bf16.gmra.mxu2 %vm11275_vm1, %v6785_v58 }
 0x3a7   : > { %6208 = vmatmul.msk.bf16.gmra.mxu3 %vm11275_vm1, %v6785_v58  ;;  %v2823_v58 = vmul.f32 %v8421_v52, %v8386_v29  ;;  %v6789_v29 = vld [vmem:[%s11204_s1 + $0xc0] sm:$0xff] }
 0x3a8   : > { %v8455_v18 = vpop.f32.mrf.mxu2 }
 0x3aa   : > { %v8457_v0 = vpop.f32.mrf.mxu3  ;;  %v2041_v44 = vpop.f32.mrf.mxu0 }
 0x3ab   : > { %v2070_v1 = vpop.f32.mrf.mxu1  ;;  %v2042_v48 = vadd.f32 %v2041_v44, %v1983_v49  ;;  %v6787_v49 = vld [vmem:[%s11204_s1 + $0x98] sm:$0xff] }
 0x3ac   : > { %v2071_v47 = vadd.f32 %v2070_v1, %v2012_v13  ;;  %v2825_v1 = vmul.f32 %v8421_v52, %v2819_v43 }
 0x3ad   : > { %6210 = vmatmul.msk.bf16.vlgmr.msrb.gmra.mxu0 %vm11275_vm1, %v6786_v36  ;;  %6214 = vmatmul.msk.bf16.vlgmr.msrb.gmra.mxu1 %vm11275_vm1, %v6786_v36 }
 0x3b0   : > { %v8464_v28 = vpop.f32.mrf.mxu2 }
 0x3b2   : > { %v8466_v24 = vpop.f32.mrf.mxu3  ;;  %v2043_v34 = vpop.f32.mrf.mxu0 }
 0x3b3   : > { %v2072_v25 = vpop.f32.mrf.mxu1  ;;  %v2044_v6 = vadd.f32 %v2043_v34, %v1985_v35  ;;  %v6788_v35 = vld [vmem:[%s11204_s1 + $0xa8] sm:$0xff] }
 0x3b4   : > { %v2073_v15 = vadd.f32 %v2072_v25, %v2014_v41  ;;  %v2803_v41 = vsel %vm11445_vm12, %v8402_v12, %v8393_v2  ;;  %v2669_v2 = vpop.permute.xlu0 %2668 }
 0x3b5   : > { %6205 = vmatmul.msk.bf16.gmra.mxu2 %vm11275_vm1, %v6787_v49  ;;  %v2824_v44 = vmul.f32 %v8415_v53, %v2803_v41 }
 0x3b7   : > { %6209 = vmatmul.msk.bf16.gmra.mxu3 %vm11275_vm1, %v6787_v49 }
 0x3b8   : > { %v8473_v13 = vpop.f32.mrf.mxu2 }
 0x3ba   : > { %v8475_v17 = vpop.f32.mrf.mxu3  ;;  %v2046_v32 = vpop.f32.mrf.mxu0 }
 0x3bb   : > { %v2075_v51 = vpop.f32.mrf.mxu1  ;;  %v2047_v54 = vadd.f32 %v2046_v32, %v1988_v27  ;;  %v2667_v32 = vpop.permute.xlu2 %2666 }
 0x3bc   : > { %v8477_v37 = vadd.f32 %v2075_v51, %v2017_v30  ;;  %v2822_v30 = vmul.f32 %v8415_v53, %v8383_v16  ;;  %v2680_v12 = vsel %vm11447_vm7, %v8395_v23, %v2667_v32  ;;  %v2696_v51 = vsel %vm11448_vm11, %v2667_v32, %v8395_v23  ;;  %v2671_v16 = vpop.permute.xlu1 %2670 }
 0x3bd   : > { %6211 = vmatmul.msk.bf16.gmra.mxu0 %vm11275_vm1, %v6788_v35  ;;  %6215 = vmatmul.msk.bf16.gmra.mxu1 %vm11275_vm1, %v6788_v35  ;;  %v2681_v53 = vsel %vm11449_vm14, %v2669_v2, %v2671_v16  ;;  %v2697_v52 = vsel %vm11450_vm2, %v2671_v16, %v2669_v2  ;;  %v2700_v35 = vmul.f32 %v2680_v12, %v11443_v50 }
 0x3be   : > { %v2701_v41 = vmul.f32 %v2696_v51, %v11444_v59  ;;  %v2702_v23 = vmul.f32 %v2681_v53, %v11443_v50  ;;  %v2703_v43 = vmul.f32 %v2697_v52, %v11444_v59  ;;  %v6791_v53 = vld [vmem:[%s11204_s1 + $0xc8] sm:$0xff] }
 0x3c0   : > { %v8490_v8 = vpop.f32.mrf.mxu2 }
 0x3c2   : > { %v8492_v27 = vpop.f32.mrf.mxu3  ;;  %v2048_v36 = vpop.f32.mrf.mxu0 }
 0x3c3   : > { %v2077_v34 = vpop.f32.mrf.mxu1  ;;  %v2049_v25 = vadd.f32 %v2048_v36, %v1990_v20  ;;  %v2830_v20 = vpack.c.bf16 %v2824_v44, %v2822_v30  ;;  %v2709_v44 = vpack.c.bf16 %v2703_v43, %v2701_v41 }
 0x3c4   : > { %v2078_v49 = vadd.f32 %v2077_v34, %v2019_v19  ;;  %v2831_v19 = vpack.c.bf16 %v2825_v1, %v2823_v58  ;;  %v2708_v58 = vpack.c.bf16 %v2702_v23, %v2700_v35  ;;  %v6790_v1 = vld [vmem:[%s11204_s1 + $0xb0] sm:$0xff] }
 0x3c5   : > { %6218 = vmatmul.msk.bf16.vlgmr.msrb.gmra.mxu2 %vm11275_vm1, %v6789_v29  ;;  %2748 = vmatpush.bf16.msra.mxu1 %v2709_v44 }
 0x3c6   : > { %2841 = vmatpush.bf16.msra.mxu2 %v2830_v20  ;;  %2870 = vmatpush.bf16.msra.mxu3 %v2831_v19 }
 0x3c7   : > { %6222 = vmatmul.msk.bf16.vlgmr.msrb.gmra.mxu3 %vm11275_vm1, %v6789_v29  ;;  %2719 = vmatpush.bf16.msra.mxu0 %v2708_v58 }
 0x3c8   : > { %v2147_v36 = vpop.f32.mrf.mxu2 }
 0x3c9   : > { %v2196_v34 = vadd.f32 %v2147_v36, %v2042_v48 }
 0x3ca   : > { %v2176_v32 = vpop.f32.mrf.mxu3  ;;  %v2051_v22 = vpop.f32.mrf.mxu0 }
 0x3cb   : > { %v2197_v39 = vadd.f32 %v2176_v32, %v2071_v47  ;;  %v2080_v2 = vpop.f32.mrf.mxu1  ;;  %v2052_v16 = vadd.f32 %v2051_v22, %v8455_v18 }
 0x3cc   : > { %v2081_v30 = vadd.f32 %v2080_v2, %v8457_v0  ;;  %v6793_v2 = vld [vmem:[%s11204_s1 + $0xd0] sm:$0xff] }
 0x3cd   : > { %6212 = vmatmul.msk.bf16.gmra.mxu0 %vm11275_vm1, %v6790_v1  ;;  %6216 = vmatmul.msk.bf16.gmra.mxu1 %vm11275_vm1, %v6790_v1 }
 0x3d0   : > { %v2149_v48 = vpop.f32.mrf.mxu2 }
 0x3d1   : > { %v8522_v47 = vadd.f32 %v2149_v48, %v2044_v6 }
 0x3d2   : > { %v2178_v12 = vpop.f32.mrf.mxu3  ;;  %v2053_v22 = vpop.f32.mrf.mxu0 }
 0x3d3   : > { %v8524_v51 = vadd.f32 %v2178_v12, %v2073_v15  ;;  %v2082_v18 = vpop.f32.mrf.mxu1  ;;  %v2054_v0 = vadd.f32 %v2053_v22, %v8464_v28 }
 0x3d4   : > { %v2083_v29 = vadd.f32 %v2082_v18, %v8466_v24  ;;  %v6792_v24 = vld [vmem:[%s11204_s1 + $0xb8] sm:$0xff] }
 0x3d5   : > { %6219 = vmatmul.msk.bf16.gmra.mxu2 %vm11275_vm1, %v6791_v53 }
 0x3d7   : > { %6223 = vmatmul.msk.bf16.gmra.mxu3 %vm11275_vm1, %v6791_v53 }
 0x3d8   : > { %v2152_v52 = vpop.f32.mrf.mxu2 }
 0x3d9   : > { %v2200_v6 = vadd.f32 %v2152_v52, %v2047_v54 }
 0x3da   : > { %v2181_v20 = vpop.f32.mrf.mxu3  ;;  %v2056_v19 = vpop.f32.mrf.mxu0 }
 0x3db   : > { %v2201_v15 = vadd.f32 %v2181_v20, %v8477_v37  ;;  %v2085_v35 = vpop.f32.mrf.mxu1  ;;  %v2057_v41 = vadd.f32 %v2056_v19, %v8473_v13 }
 0x3dc   : > { %v2086_v28 = vadd.f32 %v2085_v35, %v8475_v17 }
 0x3dd   : > { %6213 = vmatmul.msk.bf16.gmra.mxu0 %vm11275_vm1, %v6792_v24  ;;  %6217 = vmatmul.msk.bf16.gmra.mxu1 %vm11275_vm1, %v6792_v24 }
 0x3e0   : > { %v2154_v23 = vpop.f32.mrf.mxu2 }
 0x3e1   : > { %v8541_v43 = vadd.f32 %v2154_v23, %v2049_v25 }
 0x3e2   : > { %v2183_v54 = vpop.f32.mrf.mxu3  ;;  %v2058_v37 = vpop.f32.mrf.mxu0 }
 0x3e3   : > { %v8543_v36 = vadd.f32 %v2183_v54, %v2078_v49  ;;  %v2087_v32 = vpop.f32.mrf.mxu1  ;;  %v2059_v13 = vadd.f32 %v2058_v37, %v8490_v8  ;;  %v6794_v8 = vld [vmem:[%s11204_s1 + $0xe0] sm:$0xff]  ;;  %v6796_v54 = vld [vmem:[%s11204_s1 + $0xe8] sm:$0xff] }
 0x3e4   : > { %v2088_v17 = vadd.f32 %v2087_v32, %v8492_v27 }
 0x3e5   : > { %6220 = vmatmul.msk.bf16.gmra.mxu2 %vm11275_vm1, %v6793_v2 }
 0x3e7   : > { %6224 = vmatmul.msk.bf16.gmra.mxu3 %vm11275_vm1, %v6793_v2 }
 0x3e8   : > { %v2157_v58 = vpop.f32.mrf.mxu2 }
 0x3e9   : > { %v2204_v25 = vadd.f32 %v2157_v58, %v2052_v16 }
 0x3ea   : > { %v2186_v44 = vpop.f32.mrf.mxu3  ;;  %v2269_v49 = vpop.f32.mrf.mxu0 }
 0x3eb   : > { %v2205_v1 = vadd.f32 %v2186_v44, %v2081_v30  ;;  %v2298_v48 = vpop.f32.mrf.mxu1  ;;  %v2318_v12 = vadd.f32 %v2269_v49, %v2196_v34 }
 0x3ec   : > { %v2319_v22 = vadd.f32 %v2298_v48, %v2197_v39  ;;  %v6795_v39 = vld [vmem:[%s11204_s1 + $0xd8] sm:$0xff] }
 0x3ed   : > { %6226 = vmatmul.msk.bf16.vlgmr.msra.gmra.mxu0 %vm11275_vm1, %v6794_v8  ;;  %6230 = vmatmul.msk.bf16.vlgmr.msra.gmra.mxu1 %vm11275_vm1, %v6794_v8 }
 0x3f0   : > { %v2159_v27 = vpop.f32.mrf.mxu2 }
 0x3f1   : > { %v8557_v18 = vadd.f32 %v2159_v27, %v2054_v0 }
 0x3f2   : > { %v2188_v53 = vpop.f32.mrf.mxu3  ;;  %v8561_v16 = vpop.f32.mrf.mxu0 }
 0x3f3   : > { %v8559_v52 = vadd.f32 %v2188_v53, %v2083_v29  ;;  %v8563_v30 = vpop.f32.mrf.mxu1  ;;  %v6798_v53 = vld [vmem:[%s11204_s1 + $0xf0] sm:$0xff] }
 0x3f5   : > { %6221 = vmatmul.msk.bf16.gmra.mxu2 %vm11275_vm1, %v6795_v39 }
 0x3f7   : > { %6225 = vmatmul.msk.bf16.gmra.mxu3 %vm11275_vm1, %v6795_v39 }
 0x3f8   : > { %v2162_v34 = vpop.f32.mrf.mxu2 }
 0x3f9   : > { %v2208_v20 = vadd.f32 %v2162_v34, %v2057_v41 }
 0x3fa   : > { %v2191_v19 = vpop.f32.mrf.mxu3  ;;  %v2274_v35 = vpop.f32.mrf.mxu0 }
 0x3fb   : > { %v2209_v0 = vadd.f32 %v2191_v19, %v2086_v28  ;;  %v2303_v24 = vpop.f32.mrf.mxu1  ;;  %v2322_v29 = vadd.f32 %v2274_v35, %v2200_v6  ;;  %v6797_v6 = vld [vmem:[%s11204_s1 + $0x100] sm:$0xff] }
 0x3fc   : > { %v2323_v23 = vadd.f32 %v2303_v24, %v2201_v15 }
 0x3fd   : > { %6227 = vmatmul.msk.bf16.gmra.mxu0 %vm11275_vm1, %v6796_v54  ;;  %6231 = vmatmul.msk.bf16.gmra.mxu1 %vm11275_vm1, %v6796_v54 }
 0x400   : > { %v2164_v37 = vpop.f32.mrf.mxu2 }
 0x401   : > { %v8575_v32 = vadd.f32 %v2164_v37, %v2059_v13 }
 0x402   : > { %v2193_v2 = vpop.f32.mrf.mxu3  ;;  %v8579_v41 = vpop.f32.mrf.mxu0 }
 0x403   : > { %v8577_v58 = vadd.f32 %v2193_v2, %v2088_v17  ;;  %v8581_v28 = vpop.f32.mrf.mxu1 }
 0x405   : > { %6234 = vmatmul.msk.bf16.vlgmr.msra.gmra.mxu2 %vm11275_vm1, %v6797_v6 }
 0x407   : > { %6238 = vmatmul.msk.bf16.vlgmr.msra.gmra.mxu3 %vm11275_vm1, %v6797_v6 }
 0x408   : > { %v2355_v15 = vpop.f32.mrf.mxu2 }
 0x409   : > { %v2404_v44 = vadd.f32 %v2355_v15, %v2318_v12  ;;  %v6800_v15 = vld [vmem:[%s11204_s1 + $0xf8] sm:$0xff] }
 0x40a   : > { %v2384_v49 = vpop.f32.mrf.mxu3  ;;  %v2279_v48 = vpop.f32.mrf.mxu0 }
 0x40b   : > { %v2405_v13 = vadd.f32 %v2384_v49, %v2319_v22  ;;  %v2308_v8 = vpop.f32.mrf.mxu1  ;;  %v2326_v17 = vadd.f32 %v2279_v48, %v2204_v25  ;;  %v6799_v25 = vld [vmem:[%s11204_s1 + $0x108] sm:$0xff] }
 0x40c   : > { %v2327_v27 = vadd.f32 %v2308_v8, %v2205_v1 }
 0x40d   : > { %6228 = vmatmul.msk.bf16.gmra.mxu0 %vm11275_vm1, %v6798_v53  ;;  %6232 = vmatmul.msk.bf16.gmra.mxu1 %vm11275_vm1, %v6798_v53 }
 0x410   : > { %v8593_v39 = vpop.f32.mrf.mxu2 }
 0x412   : > { %v8595_v34 = vpop.f32.mrf.mxu3  ;;  %v8597_v19 = vpop.f32.mrf.mxu0 }
 0x413   : > { %v8599_v12 = vpop.f32.mrf.mxu1 }
 0x415   : > { %6235 = vmatmul.msk.bf16.gmra.mxu2 %vm11275_vm1, %v6799_v25 }
 0x417   : > { %6239 = vmatmul.msk.bf16.gmra.mxu3 %vm11275_vm1, %v6799_v25 }
 0x418   : > { %v2360_v1 = vpop.f32.mrf.mxu2 }
 0x419   : > { %v2408_v22 = vadd.f32 %v2360_v1, %v2322_v29 }
 0x41a   : > { %v2389_v35 = vpop.f32.mrf.mxu3  ;;  %v2284_v54 = vpop.f32.mrf.mxu0 }
 0x41b   : > { %v2409_v24 = vadd.f32 %v2389_v35, %v2323_v23  ;;  %v2313_v37 = vpop.f32.mrf.mxu1  ;;  %v2330_v2 = vadd.f32 %v2284_v54, %v2208_v20  ;;  %v6801_v20 = vld [vmem:[%s11204_s1 + $0x110] sm:$0xff] }
 0x41c   : > { %v2331_v6 = vadd.f32 %v2313_v37, %v2209_v0 }
 0x41d   : > { %6229 = vmatmul.msk.bf16.gmra.mxu0 %vm11275_vm1, %v6800_v15  ;;  %6233 = vmatmul.msk.bf16.gmra.mxu1 %vm11275_vm1, %v6800_v15 }
 0x420   : > { %v8611_v49 = vpop.f32.mrf.mxu2 }
 0x422   : > { %v8613_v48 = vpop.f32.mrf.mxu3  ;;  %v8615_v8 = vpop.f32.mrf.mxu0 }
 0x423   : > { %v8617_v29 = vpop.f32.mrf.mxu1 }
 0x425   : > { %6236 = vmatmul.msk.bf16.gmra.mxu2 %vm11275_vm1, %v6801_v20 }
 0x427   : > { %6240 = vmatmul.msk.bf16.gmra.mxu3 %vm11275_vm1, %v6801_v20  ;;  %v6802_v20 = vld [vmem:[%s11204_s1 + $0x118] sm:$0xff] }
 0x428   : > { %v2365_v0 = vpop.f32.mrf.mxu2 }
 0x429   : > { %v2412_v23 = vadd.f32 %v2365_v0, %v2326_v17 }
 0x42a   : > { %v2394_v53 = vpop.f32.mrf.mxu3  ;;  %v2477_v1 = vpop.f32.mrf.mxu0 }
 0x42b   : > { %v2413_v25 = vadd.f32 %v2394_v53, %v2327_v27  ;;  %v2506_v35 = vpop.f32.mrf.mxu1  ;;  %v2526_v54 = vadd.f32 %v2477_v1, %v2404_v44 }
 0x42c   : > { %v2527_v37 = vadd.f32 %v2506_v35, %v2405_v13 }
 0x430   : > { %v8624_v15 = vpop.f32.mrf.mxu2 }
 0x432   : > { %v8626_v59 = vpop.f32.mrf.mxu3  ;;  %v8628_v50 = vpop.f32.mrf.mxu0 }
 0x433   : > { %v8630_v26 = vpop.f32.mrf.mxu1 }
 0x435   : > { %6237 = vmatmul.msk.bf16.gmra.mxu2 %vm11275_vm1, %v6802_v20 }
 0x437   : > { %6241 = vmatmul.msk.bf16.gmra.mxu3 %vm11275_vm1, %v6802_v20 }
 0x438   : > { %v2370_v17 = vpop.f32.mrf.mxu2 }
 0x439   : > { %v8637_v27 = vadd.f32 %v2370_v17, %v2330_v2 }
 0x43a   : > { %v2399_v44 = vpop.f32.mrf.mxu3  ;;  %v2482_v0 = vpop.f32.mrf.mxu0 }
 0x43b   : > { %v8639_v13 = vadd.f32 %v2399_v44, %v2331_v6  ;;  %v2511_v53 = vpop.f32.mrf.mxu1  ;;  %v2530_v1 = vadd.f32 %v2482_v0, %v2408_v22 }
 0x43c   : > { %v2531_v35 = vadd.f32 %v2511_v53, %v2409_v24 }
 0x43d   : > { %11451 = vst [vmem:[#allocation27_spill] sm:$0xff] %v8639_v13 }
 0x440   : > { %v8641_v56 = vpop.f32.mrf.mxu2 }
 0x442   : > { %v8643_v10 = vpop.f32.mrf.mxu3  ;;  %v8645_v40 = vpop.f32.mrf.mxu0 }
 0x443   : > { %v8647_v14 = vpop.f32.mrf.mxu1 }
 0x448   : > { %v2599_v11 = vpop.f32.mrf.mxu2 }
 0x449   : > { %v2648_v20 = vadd.f32 %v2599_v11, %v2526_v54 }
 0x44a   : > { %v2628_v61 = vpop.f32.mrf.mxu3  ;;  %v2487_v17 = vpop.f32.mrf.mxu0 }
 0x44b   : > { %v2649_v2 = vadd.f32 %v2628_v61, %v2527_v37  ;;  %v2516_v4 = vpop.f32.mrf.mxu1  ;;  %v2534_v6 = vadd.f32 %v2487_v17, %v2412_v23 }
 0x44c   : > { %v2535_v44 = vadd.f32 %v2516_v4, %v2413_v25 }
 0x450   : > { %v2601_v60 = vpop.f32.mrf.mxu2 }
 0x452   : > { %v2630_v7 = vpop.f32.mrf.mxu3  ;;  %v8649_v22 = vpop.f32.mrf.mxu0 }
 0x453   : > { %v8651_v24 = vpop.f32.mrf.mxu1 }
 0x458   : > { %v2604_v0 = vpop.f32.mrf.mxu2 }
 0x459   : > { %v2652_v53 = vadd.f32 %v2604_v0, %v2530_v1 }
 0x45a   : > { %v2633_v33 = vpop.f32.mrf.mxu3  ;;  %v8653_v3 = vpop.f32.mrf.mxu0 }
 0x45b   : > { %v2653_v9 = vadd.f32 %v2633_v33, %v2531_v35  ;;  %11452 = vst [vmem:[#allocation29_spill] sm:$0xff] %v8653_v3  ;;  %v8655_v46 = vpop.f32.mrf.mxu1 }
 0x45c   : > { %11453 = vst [vmem:[#allocation30_spill] sm:$0xff] %v8655_v46 }
 0x460   : > { %v8657_v11 = vpop.f32.mrf.mxu2 }
 0x462   : > { %v8659_v61 = vpop.f32.mrf.mxu3  ;;  %v8661_v23 = vpop.f32.mrf.mxu0 }
 0x463   : > { %11454 = vst [vmem:[#allocation31_spill] sm:$0xff] %v8661_v23  ;;  %v8663_v4 = vpop.f32.mrf.mxu1 }
 0x464   : > { %11455 = vst [vmem:[#allocation32_spill] sm:$0xff] %v8663_v4 }
 0x468   : > { %v2609_v25 = vpop.f32.mrf.mxu2 }
 0x469   : > { %v8665_v54 = vadd.f32 %v2609_v25, %v2534_v6 }
 0x46a   : > { %v2638_v37 = vpop.f32.mrf.mxu3  ;;  %v2721_v1 = vpop.f32.mrf.mxu0 }
 0x46b   : > { %11456 = vst [vmem:[#allocation33_spill] sm:$0xff] %v8665_v54  ;;  %v8667_v17 = vadd.f32 %v2638_v37, %v2535_v44  ;;  %v2750_v33 = vpop.f32.mrf.mxu1  ;;  %v2320_v37 = vadd.f32 %v8561_v16, %v8522_v47  ;;  %v2321_v54 = vadd.f32 %v8563_v30, %v8524_v51 }
 0x46d   : > { %11457 = vst [vmem:[#allocation34_spill] sm:$0xff] %v8667_v17  ;;  %v2770_v17 = vadd.f32 %v2721_v1, %v2648_v20 }
 0x470   : > { %v8669_v35 = vpop.f32.mrf.mxu2 }
 0x471   : > { %11458 = vst [vmem:[#allocation35_spill] sm:$0xff] %v8669_v35 }
 0x472   : > { %v8671_v0 = vpop.f32.mrf.mxu3  ;;  %v2723_v55 = vpop.f32.mrf.mxu0 }
 0x473   : > { %11459 = vst [vmem:[#allocation36_spill] sm:$0xff] %v8671_v0  ;;  %v2752_v45 = vpop.f32.mrf.mxu1 }
 0x478   : > { %v8673_v63 = vpop.f32.mrf.mxu2 }
 0x479   : > { %11460 = vst [vmem:[#allocation37_spill] sm:$0xff] %v8673_v63  ;;  %v2771_v63 = vadd.f32 %v2750_v33, %v2649_v2 }
 0x47a   : > { %v8675_v38 = vpop.f32.mrf.mxu3  ;;  %v2726_v62 = vpop.f32.mrf.mxu0 }
 0x47b   : > { %11461 = vst [vmem:[#allocation38_spill] sm:$0xff] %v8675_v38  ;;  %v2755_v5 = vpop.f32.mrf.mxu1  ;;  %v2406_v38 = vadd.f32 %v8593_v39, %v2320_v37 }
 0x47d   : > { %v2528_v46 = vadd.f32 %v8628_v50, %v2406_v38 }
 0x47f   : > { %v2650_v16 = vadd.f32 %v2601_v60, %v2528_v46 }
 0x480   : > { %v8677_v4 = vpop.f32.mrf.mxu2 }
 0x481   : > { %11462 = vst [vmem:[#allocation39_spill] sm:$0xff] %v8677_v4  ;;  %v2407_v4 = vadd.f32 %v8595_v34, %v2321_v54  ;;  %v2772_v2 = vadd.f32 %v2723_v55, %v2650_v16  ;;  %v2324_v55 = vadd.f32 %v8579_v41, %v8541_v43 }
 0x482   : > { %v8679_v6 = vpop.f32.mrf.mxu3  ;;  %v8681_v44 = vpop.f32.mrf.mxu0 }
 0x483   : > { %11463 = vst [vmem:[#allocation40_spill] sm:$0xff] %v8679_v6  ;;  %v8683_v25 = vpop.f32.mrf.mxu1  ;;  %v2529_v3 = vadd.f32 %v8630_v26, %v2407_v4 }
 0x485   : > { %v2651_v51 = vadd.f32 %v2630_v7, %v2529_v3  ;;  %v2774_v7 = vadd.f32 %v2726_v62, %v2652_v53 }
 0x487   : > { %v2773_v34 = vadd.f32 %v2752_v45, %v2651_v51  ;;  %v2775_v45 = vadd.f32 %v2755_v5, %v2653_v9  ;;  %v2329_v51 = vadd.f32 %v8599_v12, %v8559_v52 }
 0x488   : > { %v2843_v0 = vpop.f32.mrf.mxu2 }
 0x489   : > { %v2892_v35 = vadd.f32 %v2843_v0, %v2770_v17  ;;  %v2410_v0 = vadd.f32 %v8611_v49, %v2324_v55 }
 0x48a   : > { %v2872_v23 = vpop.f32.mrf.mxu3  ;;  %v8695_v30 = vpop.f32.mrf.mxu0 }
 0x48b   : > { %v2893_v6 = vadd.f32 %v2872_v23, %v2771_v63  ;;  %v2908_v13 = vadd.f32 %v2892_v35, %v7597_v31  ;;  %v8697_v17 = vpop.f32.mrf.mxu1 }
 0x48d   : > { %v2909_v47 = vadd.f32 %v2893_v6, %v7597_v31  ;;  %v6242_v20 = vmul.f32 -1.442695, %v2908_v13  ;;  %v2325_v13 = vadd.f32 %v8581_v28, %v8543_v36  ;;  %v2532_v36 = vadd.f32 %v8645_v40, %v2410_v0 }
 0x48f   : > { %6573 = vpow2.f32 %v6242_v20  ;;  %v6243_v39 = vmul.f32 -1.442695, %v2909_v47  ;;  %v2411_v43 = vadd.f32 %v8613_v48, %v2325_v13  ;;  %v2654_v49 = vadd.f32 %v8657_v11, %v2532_v36  ;;  %v11468_v13 = vld [vmem:[#allocation32_spill] sm:$0xff] }
 0x490   : > { %v2845_v63 = vpop.f32.mrf.mxu2  ;;  %v2328_v48 = vadd.f32 %v8597_v19, %v8557_v18  ;;  %v2333_v11 = vadd.f32 %v8617_v29, %v8577_v58 }
 0x491   : > { %v2894_v23 = vadd.f32 %v2845_v63, %v2772_v2  ;;  %6575 = vpow2.f32 %v6243_v39  ;;  %v2533_v9 = vadd.f32 %v8647_v14, %v2411_v43  ;;  %v2332_v14 = vadd.f32 %v8615_v8, %v8575_v32 }
 0x492   : > { %v2874_v38 = vpop.f32.mrf.mxu3  ;;  %v8707_v1 = vpop.f32.mrf.mxu0  ;;  %v2776_v2 = vadd.f32 %v8681_v44, %v2654_v49 }
 0x493   : > { %v2895_v50 = vadd.f32 %v2874_v38, %v2773_v34  ;;  %v2910_v26 = vadd.f32 %v2894_v23, %v7611_v42  ;;  %v8710_v6 = vpop.f32.mrf.mxu1  ;;  %v2655_v20 = vadd.f32 %v8659_v61, %v2533_v9  ;;  %v2414_v34 = vadd.f32 %v8624_v15, %v2328_v48 }
 0x494   : > { %v2415_v61 = vadd.f32 %v8626_v59, %v2329_v51  ;;  %v2418_v44 = vadd.f32 %v8641_v56, %v2332_v14  ;;  %v2419_v15 = vadd.f32 %v8643_v10, %v2333_v11  ;;  %v11467_v56 = vld [vmem:[#allocation31_spill] sm:$0xff]  ;;  %v11475_v51 = vld [vmem:[#allocation34_spill] sm:$0xff]  ;;  %v11476_v11 = vld [vmem:[#allocation40_spill] sm:$0xff] }
 0x495   : > { %v2911_v4 = vadd.f32 %v2895_v50, %v7611_v42  ;;  %v6574_v46 = vpop.eup %6573  ;;  %v6244_v60 = vmul.f32 -1.442695, %v2910_v26  ;;  %v2777_v18 = vadd.f32 %v8683_v25, %v2655_v20  ;;  %v2536_v25 = vadd.f32 %v8649_v22, %v2414_v34  ;;  %v11464_v50 = vld [vmem:[#allocation29_spill] sm:$0xff] }
 0x496   : > { %v8705_v54 = vadd.f32 1.0, %v6574_v46  ;;  %v2537_v23 = vadd.f32 %v8651_v24, %v2415_v61  ;;  %v2538_v26 = vadd.f32 %v11464_v50, %v8637_v27  ;;  %v11466_v46 = vld [vmem:[#allocation30_spill] sm:$0xff]  ;;  %v2541_v10 = vadd.f32 %v11468_v13, %v2419_v15  ;;  %v11477_v61 = vld [vmem:[#allocation19_spill] sm:$0xff] }
 0x497   : > { %v6245_v3 = vmul.f32 -1.442695, %v2911_v4  ;;  %6577 = vpow2.f32 %v6244_v60  ;;  %v6576_v35 = vpop.eup %6575  ;;  %v11465_v4 = vld [vmem:[#allocation27_spill] sm:$0xff]  ;;  %v2779_v14 = vadd.f32 %v8697_v17, %v11475_v51 }
 0x498   : > { %v2848_v33 = vpop.f32.mrf.mxu2  ;;  %v8717_v41 = vadd.f32 1.0, %v6576_v35  ;;  %v2539_v60 = vadd.f32 %v11466_v46, %v11465_v4  ;;  %v2663_v34 = vadd.f32 %v11476_v11, %v2541_v10  ;;  %vm2977_vm8 = vweird.f32 %v8705_v54 }
 0x499   : > { %v2896_v37 = vadd.f32 %v2848_v33, %v2774_v7  ;;  %6579 = vpow2.f32 %v6245_v3  ;;  %v2540_v3 = vadd.f32 %v11467_v56, %v2418_v44  ;;  %v11469_v33 = vld [vmem:[#allocation35_spill] sm:$0xff]  ;;  %v2981_v44 = vand.u32 2147483647, %v8705_v54 }
 0x49a   : > { %v2877_v47 = vpop.f32.mrf.mxu3  ;;  %6581 = vrcp.f32 %v8705_v54  ;;  %v2736_v58 = vpop.f32.mrf.mxu0  ;;  %v2658_v27 = vadd.f32 %v11469_v33, %v2536_v25  ;;  %v2998_v17 = vand.u32 2147483648, %v8717_v41  ;;  %vm2992_vm4 = vweird.f32 %v8717_v41 }
 0x49b   : > { %v2897_v62 = vadd.f32 %v2877_v47, %v2775_v45  ;;  %v2912_v5 = vadd.f32 %v2896_v37, %v7624_v57  ;;  %v2765_v59 = vpop.f32.mrf.mxu1  ;;  %v11470_v47 = vld [vmem:[#allocation36_spill] sm:$0xff]  ;;  %vm8801_vm13 = vcmp.eq.f32.partialorder %v2981_v44, 8.507059e+37 }
 0x49c   : > { %v2659_v43 = vadd.f32 %v11470_v47, %v2537_v23  ;;  %v2780_v15 = vadd.f32 %v8707_v1, %v2658_v27 }
 0x49d   : > { %v2913_v28 = vadd.f32 %v2897_v62, %v7624_v57  ;;  %v6246_v53 = vmul.f32 -1.442695, %v2912_v5  ;;  %v6578_v16 = vpop.eup %6577  ;;  %v11471_v62 = vld [vmem:[#allocation37_spill] sm:$0xff] }
 0x49e   : > { %v8735_v52 = vadd.f32 1.0, %v6578_v16  ;;  %v2660_v36 = vadd.f32 %v11471_v62, %v2538_v26  ;;  %v11472_v5 = vld [vmem:[#allocation33_spill] sm:$0xff]  ;;  %v2781_v25 = vadd.f32 %v8710_v6, %v2659_v43 }
 0x49f   : > { %v6247_v40 = vmul.f32 -1.442695, %v2913_v28  ;;  %6583 = vpow2.f32 %v6246_v53  ;;  %v6580_v39 = vpop.eup %6579  ;;  %v2778_v9 = vadd.f32 %v8695_v30, %v11472_v5  ;;  %v11473_v28 = vld [vmem:[#allocation38_spill] sm:$0xff]  ;;  %v11474_v53 = vld [vmem:[#allocation39_spill] sm:$0xff] }
 0x4a0   : > { %6585 = vrcp.f32 %v8717_v41  ;;  %v2850_v19 = vpop.f32.mrf.mxu2  ;;  %v8737_v8 = vpop.eup %6581  ;;  %v8740_v63 = vadd.f32 1.0, %v6580_v39  ;;  %v2661_v49 = vadd.f32 %v11473_v28, %v2539_v60  ;;  %v2662_v16 = vadd.f32 %v11474_v53, %v2540_v3 }
 0x4a1   : > { %6587 = vpow2.f32 %v6247_v40  ;;  %v2898_v32 = vadd.f32 %v2850_v19, %v2776_v2  ;;  %v2973_v22 = vmul.f32 %v8737_v8, %v8705_v54  ;;  %v8787_v23 = vadd.f32 %v2736_v58, %v2660_v36 }
 0x4a2   : > { %v2879_v12 = vpop.f32.mrf.mxu3  ;;  %6589 = vrcp.f32 %v8735_v52  ;;  %v2738_v50 = vpop.f32.mrf.mxu0  ;;  %v2996_v58 = vand.u32 2147483647, %v8717_v41  ;;  %vm2978_vm3 = vweird.f32 %v8737_v8  ;;  %v3011_v5 = vand.u32 2147483647, %v8735_v52 }
 0x4a3   : > { %v2899_v29 = vadd.f32 %v2879_v12, %v2777_v18  ;;  %v2914_v38 = vadd.f32 %v2898_v32, %v7668_v21  ;;  %6591 = vrcp.f32 %v8740_v63  ;;  %v2974_v40 = vsub.f32 1.0, %v2973_v22  ;;  %v2767_v4 = vpop.f32.mrf.mxu1  ;;  %vm8839_vm5 = vmor %vm2977_vm8, %vm2978_vm3 }
 0x4a4   : > { %v2983_v18 = vand.u32 2147483648, %v8705_v54  ;;  %v8805_v22 = vor.u32 1.1754944e-38, %v2998_v17  ;;  %v8810_v33 = vadd.f32 %v2767_v4, %v2663_v34  ;;  %vm8851_vm10 = vcmp.eq.f32.partialorder %v2996_v58, 8.507059e+37  ;;  %v11502_v54 = vld [vmem:[#allocation20_spill] sm:$0xff] }
 0x4a5   : > { %v2915_v55 = vadd.f32 %v2899_v29, %v7668_v21  ;;  %v6584_v7 = vpop.eup %6583  ;;  %v6248_v24 = vmul.f32 -1.442695, %v2914_v38  ;;  %v8789_v38 = vadd.f32 %v2765_v59, %v2661_v49  ;;  %v2975_v56 = vmul.f32 %v8737_v8, %v2974_v40 }
 0x4a6   : > { %v8756_v45 = vpop.eup %6585  ;;  %v8760_v35 = vadd.f32 1.0, %v6584_v7  ;;  %v2984_v6 = vor.u32 1.1754944e-38, %v2983_v18  ;;  %v8799_v7 = vadd.f32 %v2738_v50, %v2662_v16 }
 0x4a7   : > { %v6249_v0 = vmul.f32 -1.442695, %v2915_v55  ;;  %v6588_v37 = vpop.eup %6587  ;;  %6593 = vpow2.f32 %v6248_v24  ;;  %v2988_v30 = vmul.f32 %v8756_v45, %v8717_v41  ;;  %v2976_v43 = vadd.f32 %v8737_v8, %v2975_v56 }
 0x4a8   : > { %6595 = vrcp.f32 %v8760_v35  ;;  %v8769_v48 = vadd.f32 1.0, %v6588_v37  ;;  %v2853_v20 = vpop.f32.mrf.mxu2  ;;  %v8778_v19 = vpop.eup %6589  ;;  %vm2993_vm6 = vweird.f32 %v8756_v45  ;;  %v3043_v28 = vand.u32 2147483648, %v8760_v35 }
 0x4a9   : > { %6597 = vpow2.f32 %v6249_v0  ;;  %v2900_v2 = vadd.f32 %v2853_v20, %v2778_v9  ;;  %v8783_v29 = vpop.eup %6591  ;;  %v2989_v55 = vsub.f32 1.0, %v2988_v30  ;;  %v3013_v0 = vand.u32 2147483648, %v8735_v52  ;;  %v11482_v30 = vld [vmem:[#allocation22_spill] sm:$0xff]  ;;  %vm8887_vm9 = vmor %vm2992_vm4, %vm2993_vm6 }
 0x4aa   : > { %v2882_v39 = vpop.f32.mrf.mxu3  ;;  %6599 = vrcp.f32 %v8769_v48  ;;  %v8816_v37 = vmul.f32 %v8778_v19, %v8735_v52  ;;  %v8830_v9 = vmul.f32 %v8783_v29, %v8740_v63  ;;  %v3058_v20 = vand.u32 2147483648, %v8769_v48 }
 0x4ab   : > { %v2916_v32 = vadd.f32 %v2900_v2, %v11477_v61  ;;  %v2901_v12 = vadd.f32 %v2882_v39, %v2779_v14  ;;  %v2990_v16 = vmul.f32 %v8756_v45, %v2989_v55  ;;  %v8843_v14 = vor.u32 1.1754944e-38, %v3013_v0 }
 0x4ac   : > { %v3026_v2 = vand.u32 2147483647, %v8740_v63  ;;  %v3004_v11 = vsub.f32 1.0, %v8816_v37  ;;  %v3019_v50 = vsub.f32 1.0, %v8830_v9  ;;  %vm3037_vm15 = vweird.f32 %v8760_v35 }
 0x4ad   : > { %v6594_v26 = vpop.eup %6593  ;;  %v6250_v46 = vmul.f32 -1.442695, %v2916_v32  ;;  %v2917_v60 = vadd.f32 %v2901_v12, %v11477_v61  ;;  %v2980_v32 = vsel %vm8839_vm5, %v8737_v8, %v2976_v43  ;;  %v2991_v4 = vadd.f32 %v8756_v45, %v2990_v16 }
 0x4ae   : > { %v8794_v3 = vpop.eup %6595  ;;  %v8796_v1 = vadd.f32 1.0, %v6594_v26  ;;  %v8863_v26 = vor.u32 1.1754944e-38, %v3043_v28  ;;  %vm3052_vm12 = vweird.f32 %v8769_v48  ;;  %v8873_v55 = vsel %vm8801_vm13, %v2984_v6, %v2980_v32 }
 0x4af   : > { %v6598_v59 = vpop.eup %6597  ;;  %6601 = vpow2.f32 %v6250_v46  ;;  %v6251_v13 = vmul.f32 -1.442695, %v2917_v60  ;;  %v3033_v47 = vmul.f32 %v8794_v3, %v8760_v35  ;;  %v8867_v46 = vor.u32 1.1754944e-38, %v3058_v20 }
 0x4b0   : > { %v8807_v24 = vpop.eup %6599  ;;  %6603 = vrcp.f32 %v8796_v1  ;;  %v2855_v27 = vpop.f32.mrf.mxu2  ;;  %v8824_v36 = vadd.f32 1.0, %v6598_v59  ;;  %v3073_v60 = vand.u32 2147483648, %v8796_v1  ;;  %vm3038_vm7 = vweird.f32 %v8794_v3 }
 0x4b1   : > { %6605 = vpow2.f32 %v6251_v13  ;;  %v3048_v62 = vmul.f32 %v8807_v24, %v8769_v48  ;;  %v2902_v49 = vadd.f32 %v2855_v27, %v2780_v15  ;;  %v3034_v34 = vsub.f32 1.0, %v3033_v47  ;;  %vm8929_vm8 = vmor %vm3037_vm15, %vm3038_vm7 }
 0x4b2   : > { %v2884_v53 = vpop.f32.mrf.mxu3  ;;  %6607 = vrcp.f32 %v8824_v36  ;;  %v3088_v59 = vand.u32 2147483648, %v8824_v36  ;;  %v3041_v27 = vand.u32 2147483647, %v8760_v35  ;;  %vm3053_vm11 = vweird.f32 %v8807_v24 }
 0x4b3   : > { %v2903_v40 = vadd.f32 %v2884_v53, %v2781_v25  ;;  %v2918_v18 = vadd.f32 %v2902_v49, %v11482_v30  ;;  %v3049_v44 = vsub.f32 1.0, %v3048_v62  ;;  %v3035_v58 = vmul.f32 %v8794_v3, %v3034_v34  ;;  %vm8946_vm6 = vmor %vm3052_vm12, %vm3053_vm11 }
 0x4b4   : > { %v2995_v43 = vsel %vm8887_vm9, %v8756_v45, %v2991_v4  ;;  %v8899_v28 = vor.u32 1.1754944e-38, %v3073_v60  ;;  %v3056_v49 = vand.u32 2147483647, %v8769_v48  ;;  %v8903_v53 = vor.u32 1.1754944e-38, %v3088_v59 }
 0x4b5   : > { %v6602_v39 = vpop.eup %6601  ;;  %v2919_v15 = vadd.f32 %v2903_v40, %v11482_v30  ;;  %v6252_v8 = vmul.f32 -1.442695, %v2918_v18  ;;  %v3050_v0 = vmul.f32 %v8807_v24, %v3049_v44  ;;  %v3036_v16 = vadd.f32 %v8794_v3, %v3035_v58 }
 0x4b6   : > { %v8855_v12 = vpop.eup %6603  ;;  %v8858_v17 = vadd.f32 1.0, %v6602_v39  ;;  %vm8906_vm14 = vcmp.eq.f32.partialorder %v3041_v27, 8.507059e+37  ;;  %v11489_v39 = vld [vmem:[#allocation23_spill] sm:$0xff]  ;;  %vm3008_vm2 = vweird.f32 %v8778_v19  ;;  %vm3067_vm13 = vweird.f32 %v8796_v1 }
 0x4b7   : > { %v6606_v25 = vpop.eup %6605  ;;  %v3063_v37 = vmul.f32 %v8855_v12, %v8796_v1  ;;  %v6253_v47 = vmul.f32 -1.442695, %v2919_v15  ;;  %v3051_v18 = vadd.f32 %v8807_v24, %v3050_v0  ;;  %vm3068_vm3 = vweird.f32 %v8855_v12 }
 0x4b8   : > { %6609 = vrcp.f32 %v8858_v17  ;;  %v2858_v56 = vpop.f32.mrf.mxu2  ;;  %v8877_v13 = vadd.f32 1.0, %v6606_v25  ;;  %v8897_v62 = vpop.eup %6607  ;;  %v3103_v15 = vand.u32 2147483648, %v8858_v17  ;;  %vm8935_vm4 = vcmp.eq.f32.partialorder %v3056_v49, 8.507059e+37 }
 0x4b9   : > { %6611 = vpow2.f32 %v6252_v8  ;;  %v2904_v41 = vadd.f32 %v2858_v56, %v8787_v23  ;;  %v3064_v51 = vsub.f32 1.0, %v3063_v37  ;;  %v3000_v23 = vsel %vm8851_vm10, %v8805_v22, %v2995_v43 }
 0x4ba   : > { %6613 = vrcp.f32 %v8877_v13  ;;  %v2887_v10 = vpop.f32.mrf.mxu3  ;;  %v3078_v32 = vmul.f32 %v8897_v62, %v8824_v36  ;;  %v3005_v4 = vmul.f32 %v8778_v19, %v3004_v11  ;;  %v3040_v59 = vsel %vm8929_vm8, %v8794_v3, %v3036_v16  ;;  %v8957_v11 = vld [vmem:[%s6995_s7 + $0x48] sm:$0xff] }
 0x4bb   : > { %6615 = vpow2.f32 %v6253_v47  ;;  %v2905_v40 = vadd.f32 %v2887_v10, %v8789_v38  ;;  %v2920_v34 = vadd.f32 %v2904_v41, %v11489_v39  ;;  %vm3007_vm5 = vweird.f32 %v8735_v52  ;;  %3237 = vrot.lane.b32.xlu0 %v8957_v11, %s6904_s5 }
 0x4bc   : > { %v3065_v0 = vmul.f32 %v8855_v12, %v3064_v51  ;;  %v3055_v37 = vsel %vm8946_vm6, %v8807_v24, %v3051_v18  ;;  %v3079_v3 = vsub.f32 1.0, %v3078_v32  ;;  %vm3097_vm10 = vweird.f32 %v8858_v17  ;;  %vm9016_vm6 = vmor %vm3067_vm13, %vm3068_vm3 }
 0x4bd   : > { %v2921_v38 = vadd.f32 %v2905_v40, %v11489_v39  ;;  %6617 = vtanh.f32 %v2920_v34  ;;  %v3101_v6 = vand.u32 2147483647, %v8858_v17  ;;  %v8970_v10 = vor.u32 1.1754944e-38, %v3103_v15  ;;  %v11496_v40 = vld [vmem:[#allocation24_spill] sm:$0xff]  ;;  %v11501_v15 = vld [vmem:[#allocation25_spill] sm:$0xff]  ;;  %vm9033_vm13 = vmor %vm3007_vm5, %vm3008_vm2 }
 0x4be   : > { %v8911_v45 = vpop.eup %6609  ;;  %vm3112_vm15 = vweird.f32 %v8877_v13  ;;  %vm3083_vm12 = vweird.f32 %v8897_v62  ;;  %v3116_v49 = vand.u32 2147483647, %v8877_v13  ;;  %v3060_v16 = vsel %vm8935_vm4, %v8867_v46, %v3055_v37  ;;  %v11515_v34 = vld [vmem:[#allocation21_spill] sm:$0xff] }
 0x4bf   : > { %v3093_v44 = vmul.f32 %v8911_v45, %v8858_v17  ;;  %v6612_v25 = vpop.eup %6611  ;;  %6619 = vtanh.f32 %v2921_v38  ;;  %vm8988_vm9 = vcmp.eq.f32.partialorder %v3011_v5, 8.507059e+37  ;;  %v3118_v18 = vand.u32 2147483648, %v8877_v13 }
 0x4c0   : > { %v2860_v8 = vpop.f32.mrf.mxu2  ;;  %v8940_v60 = vpop.eup %6613  ;;  %v8950_v58 = vadd.f32 1.0, %v6612_v25  ;;  %v3066_v32 = vadd.f32 %v8855_v12, %v3065_v0  ;;  %vm3023_vm7 = vweird.f32 %v8783_v29  ;;  %vm3082_vm11 = vweird.f32 %v8824_v36 }
 0x4c1   : > { %v3094_v56 = vsub.f32 1.0, %v3093_v44  ;;  %v6616_v27 = vpop.eup %6615  ;;  %v3108_v48 = vmul.f32 %v8940_v60, %v8877_v13  ;;  %v2906_v47 = vadd.f32 %v2860_v8, %v8799_v7  ;;  %v3045_v7 = vsel %vm8906_vm14, %v8863_v26, %v3040_v59 }
 0x4c2   : > { %6621 = vrcp.f32 %v8950_v58  ;;  %v8974_v41 = vadd.f32 1.0, %v6616_v27  ;;  %v3080_v44 = vmul.f32 %v8897_v62, %v3079_v3  ;;  %vm8999_vm14 = vcmp.eq.f32.partialorder %v3101_v6, 8.507059e+37  ;;  %v2889_v59 = vpop.f32.mrf.mxu3 }
 0x4c3   : > { %v3109_v43 = vsub.f32 1.0, %v3108_v48  ;;  %v3095_v24 = vmul.f32 %v8911_v45, %v3094_v56  ;;  %v2922_v51 = vadd.f32 %v2906_v47, %v11496_v40  ;;  %v6618_v20 = vpop.eup %6617  ;;  %v3156_v38 = vmul.f32 %v3045_v7, %v11501_v15 }
 0x4c4   : > { %6623 = vrcp.f32 %v8974_v41  ;;  %v3160_v25 = vmul.f32 %v6618_v20, %v8873_v55  ;;  %v3006_v22 = vadd.f32 %v8778_v19, %v3005_v4  ;;  %vm3098_vm8 = vweird.f32 %v8911_v45 }
 0x4c5   : > { %v3110_v26 = vmul.f32 %v8940_v60, %v3109_v43  ;;  %v6620_v46 = vpop.eup %6619  ;;  %v3157_v8 = vmul.f32 %v3060_v16, %v11502_v54  ;;  %v3071_v56 = vand.u32 2147483647, %v8796_v1  ;;  %vm3022_vm4 = vweird.f32 %v8740_v63  ;;  %vm9051_vm2 = vmor %vm3097_vm10, %vm3098_vm8 }
 0x4c6   : > { %v3161_v35 = vmul.f32 %v6620_v46, %v3000_v23  ;;  %v3096_v4 = vadd.f32 %v8911_v45, %v3095_v24  ;;  %vm3113_vm1 = vweird.f32 %v8940_v60  ;;  %v9022_v23 = vadd.f32 %v3160_v25, %v3156_v38 }
 0x4c7   : > { %6625 = vtanh.f32 %v2922_v51  ;;  %v3111_v0 = vadd.f32 %v8940_v60, %v3110_v26  ;;  %v3070_v47 = vsel %vm9016_vm6, %v8855_v12, %v3066_v32  ;;  %v3119_v3 = vor.u32 1.1754944e-38, %v3118_v18  ;;  %vm9066_vm5 = vmor %vm3112_vm15, %vm3113_vm1 }
 0x4c8   : > { %v9010_v27 = vpop.eup %6621  ;;  %11505 = vst [vmem:[#allocation29_spill] sm:$0xff] %v9022_v23  ;;  %v9027_v37 = vadd.f32 %v3161_v35, %v3157_v8  ;;  %6627 = vtanh.f32 %v9022_v23  ;;  %v3010_v6 = vsel %vm9033_vm13, %v8778_v19, %v3006_v22  ;;  %v2907_v43 = vadd.f32 %v2889_v59, %v8810_v33  ;;  %vm9089_vm1 = vmor %vm3082_vm11, %vm3083_vm12 }
 0x4c9   : > { %v3123_v48 = vmul.f32 %v9010_v27, %v8950_v58  ;;  %vm3072_vm3 = vcmp.eq.f32.partialorder %v3071_v56, 8.507059e+37  ;;  %v3020_v19 = vmul.f32 %v8783_v29, %v3019_v50  ;;  %v3100_v33 = vsel %vm9051_vm2, %v8911_v45, %v3096_v4  ;;  %vm9102_vm12 = vmor %vm3022_vm4, %vm3023_vm7 }
 0x4ca   : > { %11506 = vst [vmem:[#allocation27_spill] sm:$0xff] %v9027_v37  ;;  %v9045_v7 = vpop.eup %6623  ;;  %6629 = vtanh.f32 %v9027_v37  ;;  %v3075_v16 = vsel %vm3072_vm3, %v8899_v28, %v3070_v47  ;;  %v2923_v9 = vadd.f32 %v2907_v43, %v11496_v40  ;;  %v3115_v50 = vsel %vm9066_vm5, %v8940_v60, %v3111_v0  ;;  %v9140_v47 = vld [vmem:[%s6995_s7 + $0x58] sm:$0xff] }
 0x4cb   : > { %v3124_v12 = vsub.f32 1.0, %v3123_v48  ;;  %v3138_v24 = vmul.f32 %v9045_v7, %v8974_v41  ;;  %v3015_v13 = vsel %vm8988_vm9, %v8843_v14, %v3010_v6  ;;  %v3021_v51 = vadd.f32 %v8783_v29, %v3020_v19 }
 0x4cc   : > { %v3028_v26 = vand.u32 2147483648, %v8740_v63  ;;  %v3081_v18 = vadd.f32 %v8897_v62, %v3080_v44  ;;  %v3086_v28 = vand.u32 2147483647, %v8824_v36  ;;  %6631 = vtanh.f32 %v2923_v9  ;;  %v11519_v63 = vld [vmem:[#allocation26_spill] sm:$0xff] }
 0x4cd   : > { %v3125_v45 = vmul.f32 %v9010_v27, %v3124_v12  ;;  %v6626_v20 = vpop.eup %6625  ;;  %v3105_v14 = vsel %vm8999_vm14, %v8970_v10, %v3100_v33  ;;  %vm3117_vm10 = vcmp.eq.f32.partialorder %v3116_v49, 8.507059e+37  ;;  %v3158_v32 = vmul.f32 %v3075_v16, %v11515_v34  ;;  %v9156_v16 = vld [vmem:[%s6995_s7 + $0x40] sm:$0xff] }
 0x4ce   : > { %v3162_v46 = vmul.f32 %v6626_v20, %v3015_v13  ;;  %v6628_v44 = vpop.eup %6627  ;;  %v3120_v15 = vsel %vm3117_vm10, %v3119_v3, %v3115_v50  ;;  %vm3128_vm15 = vweird.f32 %v9010_v27  ;;  %v3139_v38 = vsub.f32 1.0, %v3138_v24 }
 0x4cf   : > { %v3085_v10 = vsel %vm9089_vm1, %v8897_v62, %v3081_v18  ;;  %v9109_v5 = vmul.f32 %v6628_v44, %v3105_v14  ;;  %v3025_v22 = vsel %vm9102_vm12, %v8783_v29, %v3021_v51  ;;  %vm3087_vm9 = vcmp.eq.f32.partialorder %v3086_v28, 8.507059e+37 }
 0x4d0   : > { %v6630_v49 = vpop.eup %6629  ;;  %v9111_v25 = vadd.f32 %v3162_v46, %v3158_v32  ;;  %v3126_v54 = vadd.f32 %v9010_v27, %v3125_v45  ;;  %v3029_v35 = vor.u32 1.1754944e-38, %v3028_v26  ;;  %v3090_v56 = vsel %vm3087_vm9, %v8903_v53, %v3085_v10  ;;  %v11521_v46 = vld [vmem:[#allocation5_spill] sm:$0xff] }
 0x4d1   : > { %v9117_v8 = vmul.f32 %v6630_v49, %v3120_v15  ;;  %v3133_v59 = vand.u32 2147483648, %v8950_v58  ;;  %vm3027_vm7 = vcmp.eq.f32.partialorder %v3026_v2, 8.507059e+37  ;;  %3253 = vrot.lane.b32.xlu1 %v9109_v5, %s6904_s5  ;;  %vm3127_vm11 = vweird.f32 %v8950_v58  ;;  %v11522_v15 = vld [vmem:[#allocation6_spill] sm:$0xff] }
 0x4d2   : > { %11518 = vst [vmem:[#allocation30_spill] sm:$0xff] %v9111_v25  ;;  %6633 = vtanh.f32 %v9111_v25  ;;  %v6632_v29 = vpop.eup %6631  ;;  %v3131_v62 = vand.u32 2147483647, %v8950_v58  ;;  %v3140_v55 = vmul.f32 %v9045_v7, %v3139_v38  ;;  %v3030_v4 = vsel %vm3027_vm7, %v3029_v35, %v3025_v22  ;;  %vm3129_vm14 = vmor %vm3127_vm11, %vm3128_vm15 }
 0x4d3   : > { %3241 = vrot.lane.b32.xlu2 %v9117_v8, %s6904_s5  ;;  %v3159_v2 = vmul.f32 %v3090_v56, %v11519_v63  ;;  %v3163_v53 = vmul.f32 %v6632_v29, %v3030_v4  ;;  %v3130_v0 = vsel %vm3129_vm14, %v9010_v27, %v3126_v54  ;;  %v3134_v48 = vor.u32 1.1754944e-38, %v3133_v59 }
 0x4d4   : > { %vm3132_vm8 = vcmp.eq.f32.partialorder %v3131_v62, 8.507059e+37  ;;  %v3141_v58 = vadd.f32 %v9045_v7, %v3140_v55  ;;  %vm3143_vm4 = vweird.f32 %v9045_v7  ;;  %v3148_v43 = vand.u32 2147483648, %v8974_v41 }
 0x4d5   : > { %v9135_v1 = vadd.f32 %v3163_v53, %v3159_v2  ;;  %v3135_v6 = vsel %vm3132_vm8, %v3134_v48, %v3130_v0  ;;  %vm3142_vm6 = vweird.f32 %v8974_v41  ;;  %v3146_v27 = vand.u32 2147483647, %v8974_v41  ;;  %v9165_v41 = vld [vmem:[%s6995_s7 + $0x50] sm:$0xff] }
 0x4d6   : > { %vm3144_vm13 = vmor %vm3142_vm6, %vm3143_vm4  ;;  %v3149_v19 = vor.u32 1.1754944e-38, %v3148_v43  ;;  %vm11523_vm3 = vcmask 261120   ;;  %vm11525_vm1 = vcmask 138240  }
 0x4d7   : > { %11520 = vst [vmem:[#allocation31_spill] sm:$0xff] %v9135_v1  ;;  %6635 = vtanh.f32 %v9135_v1  ;;  %v3145_v12 = vsel %vm3144_vm13, %v9045_v7, %v3141_v58  ;;  %vm3147_vm2 = vcmp.eq.f32.partialorder %v3146_v27, 8.507059e+37  ;;  %vm11524_vm5 = vmmov %vm11523_vm3 }
 0x4d8   : > { %v6634_v3 = vpop.eup %6633  ;;  %v3150_v17 = vsel %vm3147_vm2, %v3149_v19, %v3145_v12  ;;  %vm11526_vm10 = vmmov %vm11525_vm1  ;;  %vm11539_vm2 = vcmask 121856  }
 0x4d9   : > { %v9146_v52 = vmul.f32 %v6634_v3, %v3135_v6  ;;  %3239 = vrot.lane.b32.xlu1 %v9140_v47, %s6904_s5  ;;  %v6803_v6 = vld [vmem:[%s11204_s1 + $0x20] sm:$0xff]  ;;  %vm11527_vm15 = vmmov %vm11525_vm1 }
 0x4da   : > { %vm11528_vm12 = vmmov %vm11525_vm1 }
 0x4db   : > { %3255 = vrot.lane.b32.xlu2 %v9146_v52, %s6904_s5  ;;  %vm11531_vm9 = vmmov %vm11525_vm1 }
 0x4dc   : > { %vm11532_vm7 = vmmov %vm11525_vm1 }
 0x4dd   : > { %v6636_v33 = vpop.eup %6635  ;;  %vm11533_vm11 = vmmov %vm11525_vm1 }
 0x4de   : > { %v9153_v24 = vmul.f32 %v6636_v33, %v3150_v17  ;;  %vm11534_vm14 = vmmov %vm11525_vm1 }
 0x4df   : > { %vm11535_vm8 = vmmov %vm11523_vm3 }
 0x4e0   : > { %3243 = vrot.lane.b32.xlu0 %v9153_v24, %s6904_s5  ;;  %vm11536_vm4 = vmmov %vm11523_vm3 }
 0x4e1   : > { %3189 = vrot.lane.b32.xlu1 %v9117_v8, %s6905_s8  ;;  %vm11537_vm6 = vmmov %vm11523_vm3 }
 0x4e2   : > { %vm11538_vm13 = vmmov %vm11523_vm3 }
 0x4e3   : > { %3249 = vrot.lane.b32.xlu2 %v9156_v16, %s6904_s5 }
 0x4e8   : > { %3251 = vrot.lane.b32.xlu0 %v9165_v41, %s6904_s5 }
 0x4e9   : > { %3201 = vrot.lane.b32.xlu1 %v9156_v16, %s6905_s8 }
 0x4eb   : > { %3185 = vrot.lane.b32.xlu2 %v8957_v11, %s6905_s8 }
 0x4f0   : > { %3205 = vrot.lane.b32.xlu0 %v9109_v5, %s6905_s8 }
 0x4f1   : > { %3401 = vrot.lane.b32.xlu1 %v8957_v11, %s6906_s9 }
 0x4f3   : > { %3203 = vrot.lane.b32.xlu2 %v9165_v41, %s6905_s8 }
 0x4f8   : > { %3187 = vrot.lane.b32.xlu0 %v9140_v47, %s6905_s8 }
 0x4f9   : > { %3207 = vrot.lane.b32.xlu1 %v9146_v52, %s6905_s8 }
 0x4fb   : > { %3191 = vrot.lane.b32.xlu2 %v9153_v24, %s6905_s8 }
 0x500   : > { %3405 = vrot.lane.b32.xlu0 %v9117_v8, %s6906_s9 }
 0x501   : > { %3407 = vrot.lane.b32.xlu1 %v9153_v24, %s6906_s9 }
 0x503   : > { %3417 = vrot.lane.b32.xlu2 %v9109_v5, %s6906_s9 }
 0x508   : > { %3419 = vrot.lane.b32.xlu0 %v9146_v52, %s6906_s9 }
 0x509   : > { %3415 = vrot.lane.b32.xlu1 %v9165_v41, %s6906_s9 }
 0x50b   : > { %3403 = vrot.lane.b32.xlu2 %v9140_v47, %s6906_s9 }
 0x510   : > { %3413 = vrot.lane.b32.xlu0 %v9156_v16, %s6906_s9 }
 0x511   : > { %3539 = vrot.lane.b32.xlu1 %v9109_v5, %s6907_s10 }
 0x513   : > { %3527 = vrot.lane.b32.xlu2 %v9117_v8, %s6907_s10 }
 0x518   : > { %3523 = vrot.lane.b32.xlu0 %v8957_v11, %s6907_s10 }
 0x519   : > { %3525 = vrot.lane.b32.xlu1 %v9140_v47, %s6907_s10 }
 0x51b   : > { %3541 = vrot.lane.b32.xlu2 %v9146_v52, %s6907_s10 }
 0x520   : > { %3529 = vrot.lane.b32.xlu0 %v9153_v24, %s6907_s10 }
 0x521   : > { %3739 = vrot.lane.b32.xlu1 %v9109_v5, %s6908_s11 }
 0x523   : > { %3535 = vrot.lane.b32.xlu2 %v9156_v16, %s6907_s10 }
 0x528   : > { %3537 = vrot.lane.b32.xlu0 %v9165_v41, %s6907_s10 }
 0x529   : > { %3735 = vrot.lane.b32.xlu1 %v9165_v41, %s6908_s11 }
 0x52b   : > { %3741 = vrot.lane.b32.xlu2 %v9117_v8, %s6908_s11 }
 0x52d   : > { %v3242_v7 = vpop.permute.xlu2 %3241  ;;  %v3238_v51 = vpop.permute.xlu0 %3237 }
 0x530   : > { %3733 = vrot.lane.b32.xlu0 %v8957_v11, %s6908_s11 }
 0x531   : > { %3863 = vrot.lane.b32.xlu1 %v9117_v8, %s6909_s12 }
 0x533   : > { %3731 = vrot.lane.b32.xlu2 %v9156_v16, %s6908_s11 }
 0x535   : > { %v3256_v9 = vpop.permute.xlu2 %3255 }
 0x538   : > { %3861 = vrot.lane.b32.xlu0 %v9109_v5, %s6909_s12 }
 0x539   : > { %3745 = vrot.lane.b32.xlu1 %v9153_v24, %s6908_s11 }
 0x53b   : > { %3737 = vrot.lane.b32.xlu2 %v9140_v47, %s6908_s11 }
 0x53d   : > { %v3250_v50 = vpop.permute.xlu2 %3249 }
 0x53e   : > { %v3257_v35 = vsel %vm325_vm0, %v3250_v50, %v3238_v51  ;;  %v3269_v56 = vsel %vm325_vm0, %v3238_v51, %v3250_v50 }
 0x53f   : > { %v3273_v4 = vmul.f32 %v3269_v56, %v11521_v46  ;;  %v3274_v63 = vmul.f32 %v3257_v35, %v11522_v15  ;;  %v6804_v56 = vld [vmem:[%s11204_s1 + $0x28] sm:$0xff] }
 0x540   : > { %3743 = vrot.lane.b32.xlu0 %v9146_v52, %s6908_s11 }
 0x541   : > { %3853 = vrot.lane.b32.xlu1 %v9156_v16, %s6909_s12 }
 0x543   : > { %3865 = vrot.lane.b32.xlu2 %v9146_v52, %s6909_s12  ;;  %v3254_v45 = vpop.permute.xlu1 %3253 }
 0x544   : > { %v3259_v18 = vsel %vm325_vm0, %v3254_v45, %v3242_v7  ;;  %v3271_v28 = vsel %vm325_vm0, %v3242_v7, %v3254_v45  ;;  %v11530_v45 = vld [vmem:[#allocation4_spill] sm:$0xff] }
 0x545   : > { %v3186_v13 = vpop.permute.xlu2 %3185  ;;  %v3277_v44 = vmul.f32 %v3271_v28, %v11521_v46  ;;  %v3278_v38 = vmul.f32 %v3259_v18, %v11522_v15 }
 0x548   : > { %3867 = vrot.lane.b32.xlu0 %v9153_v24, %s6909_s12 }
 0x549   : > { %3859 = vrot.lane.b32.xlu1 %v9140_v47, %s6909_s12 }
 0x54b   : > { %3855 = vrot.lane.b32.xlu2 %v8957_v11, %s6909_s12  ;;  %v3240_v20 = vpop.permute.xlu1 %3239 }
 0x54d   : > { %v3204_v26 = vpop.permute.xlu2 %3203 }
 0x550   : > { %3857 = vrot.lane.b32.xlu0 %v9165_v41, %s6909_s12 }
 0x551   : > { %3977 = vrot.lane.b32.xlu1 %v8957_v11, %s6910_s13 }
 0x552   : > { %v3244_v60 = vpop.permute.xlu0 %3243 }
 0x553   : > { %3983 = vrot.lane.b32.xlu2 %v9109_v5, %s6910_s13  ;;  %v3260_v14 = vsel %vm325_vm0, %v3256_v9, %v3244_v60  ;;  %v3272_v34 = vsel %vm325_vm0, %v3244_v60, %v3256_v9  ;;  %v3190_v32 = vpop.permute.xlu1 %3189  ;;  %v11529_v9 = vld [vmem:[#allocation3_spill] sm:$0xff] }
 0x554   : > { %v3279_v36 = vmul.f32 %v3272_v34, %v11521_v46  ;;  %v3280_v10 = vmul.f32 %v3260_v14, %v11522_v15 }
 0x555   : > { %v3192_v49 = vpop.permute.xlu2 %3191 }
 0x556   : > { %v3283_v22 = vpack.c.bf16 %v3279_v36, %v3277_v44  ;;  %v3284_v54 = vpack.c.bf16 %v3280_v10, %v3278_v38 }
 0x558   : > { %3985 = vrot.lane.b32.xlu0 %v9117_v8, %s6910_s13  ;;  %3291 = vmatpush.bf16.msrb.mxu0 %v3283_v22 }
 0x559   : > { %3320 = vmatpush.bf16.msrb.mxu1 %v3284_v54  ;;  %4105 = vrot.lane.b32.xlu1 %v9109_v5, %s6911_s23 }
 0x55a   : > { %v3252_v59 = vpop.permute.xlu0 %3251 }
 0x55b   : > { %3979 = vrot.lane.b32.xlu2 %v9165_v41, %s6910_s13  ;;  %v3258_v29 = vsel %vm325_vm0, %v3252_v59, %v3240_v20  ;;  %v3270_v62 = vsel %vm325_vm0, %v3240_v20, %v3252_v59  ;;  %v3202_v55 = vpop.permute.xlu1 %3201 }
 0x55c   : > { %v3275_v2 = vmul.f32 %v3270_v62, %v11521_v46  ;;  %v3276_v53 = vmul.f32 %v3258_v29, %v11522_v15  ;;  %v3209_v12 = vsel %vm11525_vm1, %v3202_v55, %v3186_v13  ;;  %v3221_v19 = vsel %vm11526_vm10, %v3186_v13, %v3202_v55  ;;  %v6805_v62 = vld [vmem:[%s11204_s1] sm:$0xff]  ;;  %vm11542_vm1 = vmmov %vm11539_vm2 }
 0x55d   : > { %v3418_v0 = vpop.permute.xlu2 %3417  ;;  %v3225_v50 = vmul.f32 %v3221_v19, %v11529_v9  ;;  %v3226_v51 = vmul.f32 %v3209_v12, %v11530_v45  ;;  %vm11545_vm10 = vmmov %vm11542_vm1 }
 0x55e   : > { %v3281_v48 = vpack.c.bf16 %v3275_v2, %v3273_v4  ;;  %v3282_v58 = vpack.c.bf16 %v3276_v53, %v3274_v63 }
 0x560   : > { %3975 = vrot.lane.b32.xlu0 %v9156_v16, %s6910_s13  ;;  %3292 = vmatpush.bf16.msrb.mxu0 %v3281_v48 }
 0x561   : > { %3321 = vmatpush.bf16.msrb.mxu1 %v3282_v58  ;;  %3987 = vrot.lane.b32.xlu1 %v9146_v52, %s6910_s13  ;;  %v11543_v58 = vld [vmem:[#allocation7_spill] sm:$0xff] }
 0x562   : > { %v3206_v3 = vpop.permute.xlu0 %3205 }
 0x563   : > { %4107 = vrot.lane.b32.xlu2 %v9117_v8, %s6911_s23  ;;  %6258 = vmatmul.msk.bf16.vlgmr.msrb.gmra.mxu0 %vm11523_vm3, %v6803_v6  ;;  %v9283_v43 = vpop.permute.xlu1 %3401  ;;  %v3211_v33 = vsel %vm11527_vm15, %v3206_v3, %v3190_v32  ;;  %v3223_v17 = vsel %vm11528_vm12, %v3190_v32, %v3206_v3  ;;  %vm11540_vm3 = vmmov %vm11539_vm2 }
 0x564   : > { %6262 = vmatmul.msk.bf16.vlgmr.msrb.gmra.mxu1 %vm11524_vm5, %v6803_v6  ;;  %v3229_v28 = vmul.f32 %v3223_v17, %v11529_v9  ;;  %v3230_v60 = vmul.f32 %v3211_v33, %v11530_v45  ;;  %vm11541_vm5 = vmmov %vm11539_vm2  ;;  %v11544_v6 = vld [vmem:[#allocation8_spill] sm:$0xff] }
 0x565   : > { %v3404_v27 = vpop.permute.xlu2 %3403  ;;  %vm11546_vm15 = vmmov %vm11542_vm1 }
 0x566   : > { %vm11547_vm12 = vmmov %vm11542_vm1 }
 0x568   : > { %3981 = vrot.lane.b32.xlu0 %v9140_v47, %s6910_s13 }
 0x569   : > { %4111 = vrot.lane.b32.xlu1 %v9153_v24, %s6911_s23 }
 0x56a   : > { %v3188_v7 = vpop.permute.xlu0 %3187 }
 0x56b   : > { %3989 = vrot.lane.b32.xlu2 %v9153_v24, %s6910_s13  ;;  %v3210_v13 = vsel %vm11531_vm9, %v3204_v26, %v3188_v7  ;;  %v3222_v20 = vsel %vm11532_vm7, %v3188_v7, %v3204_v26  ;;  %v3208_v18 = vpop.permute.xlu1 %3207  ;;  %vm11548_vm9 = vmmov %vm11542_vm1 }
 0x56c   : > { %v3212_v14 = vsel %vm11533_vm11, %v3208_v18, %v3192_v49  ;;  %v3224_v34 = vsel %vm11534_vm14, %v3192_v49, %v3208_v18  ;;  %v3227_v44 = vmul.f32 %v3222_v20, %v11529_v9  ;;  %v3228_v38 = vmul.f32 %v3210_v13, %v11530_v45  ;;  %vm11549_vm7 = vmmov %vm11536_vm4 }
 0x56d   : > { %v9304_v32 = vpop.permute.xlu2 %3527  ;;  %v3231_v36 = vmul.f32 %v3224_v34, %v11529_v9  ;;  %v3232_v10 = vmul.f32 %v3212_v14, %v11530_v45  ;;  %v6806_v14 = vld [vmem:[%s11204_s1 + $0x30] sm:$0xff]  ;;  %vm11552_vm11 = vmmov %vm11536_vm4 }
 0x56e   : > { %v3233_v54 = vpack.c.bf16 %v3227_v44, %v3225_v50  ;;  %v3234_v35 = vpack.c.bf16 %v3228_v38, %v3226_v51  ;;  %v11551_v44 = vld [vmem:[#allocation12_spill] sm:$0xff]  ;;  %vm11553_vm14 = vmmov %vm11536_vm4 }
 0x56f   : > { %v3235_v26 = vpack.c.bf16 %v3231_v36, %v3229_v28  ;;  %v3236_v22 = vpack.c.bf16 %v3232_v10, %v3230_v60  ;;  %v3652_v38 = vmul.f32 %v9153_v24, %v11551_v44 }
 0x570   : > { %4109 = vrot.lane.b32.xlu0 %v9146_v52, %s6911_s23 }
 0x571   : > { %3349 = vmatpush.bf16.msrb.mxu2 %v3235_v26  ;;  %3378 = vmatpush.bf16.msrb.mxu3 %v3236_v22 }
 0x572   : > { %v3406_v49 = vpop.permute.xlu0 %3405  ;;  %4101 = vrot.lane.b32.xlu1 %v9165_v41, %s6911_s23 }
 0x573   : > { %4097 = vrot.lane.b32.xlu2 %v9156_v16, %s6911_s23  ;;  %6259 = vmatmul.msk.bf16.gmra.mxu0 %vm11535_vm8, %v6804_v56  ;;  %v3408_v59 = vpop.permute.xlu1 %3407  ;;  %v3423_v55 = vsel %vm11539_vm2, %v3418_v0, %v3406_v49  ;;  %v3435_v4 = vsel %vm11540_vm3, %v3406_v49, %v3418_v0  ;;  %vm11554_vm8 = vmmov %vm11536_vm4 }
 0x574   : > { %6263 = vmatmul.msk.bf16.gmra.mxu1 %vm11536_vm4, %v6804_v56  ;;  %v3441_v3 = vmul.f32 %v3435_v4, %v11543_v58  ;;  %v3442_v12 = vmul.f32 %v3423_v55, %v11544_v6  ;;  %vm11555_vm4 = vcmask 7168   ;;  %vm11559_vm3 = vmmov %vm11549_vm7 }
 0x575   : > { %v3542_v29 = vpop.permute.xlu2 %3541  ;;  %3350 = vmatpush.bf16.msrb.mxu2 %v3233_v54  ;;  %3379 = vmatpush.bf16.msrb.mxu3 %v3234_v35  ;;  %v3650_v54 = vmul.f32 %v9117_v8, %v11551_v44  ;;  %vm11558_vm2 = vmmov %vm11555_vm4 }
 0x577   : > { %v3656_v56 = vpack.c.bf16 %v3652_v38, %v3650_v54 }
 0x578   : > { %6266 = vmatmul.msk.bf16.vlgmr.msrb.gmra.mxu2 %vm11537_vm6, %v6805_v62  ;;  %6270 = vmatmul.msk.bf16.vlgmr.msrb.gmra.mxu3 %vm11538_vm13, %v6805_v62  ;;  %vm11556_vm6 = vmmov %vm11555_vm4 }
 0x579   : > { %4099 = vrot.lane.b32.xlu0 %v8957_v11, %s6911_s23  ;;  %vm11557_vm13 = vmmov %vm11555_vm4 }
 0x57a   : > { %v3420_v63 = vpop.permute.xlu0 %3419 }
 0x57b   : > { %4103 = vrot.lane.b32.xlu2 %v9140_v47, %s6911_s23  ;;  %v3424_v2 = vsel %vm11541_vm5, %v3420_v63, %v3408_v59  ;;  %v3436_v53 = vsel %vm11542_vm1, %v3408_v59, %v3420_v63  ;;  %v3416_v48 = vpop.permute.xlu1 %3415  ;;  %v6807_v59 = vld [vmem:[%s11204_s1 + $0x8] sm:$0xff]  ;;  %vm11562_vm5 = vmmov %vm11559_vm3 }
 0x57c   : > { %v3443_v19 = vmul.f32 %v3436_v53, %v11543_v58  ;;  %v3444_v0 = vmul.f32 %v3424_v2, %v11544_v6  ;;  %v3422_v50 = vsel %vm11545_vm10, %v3416_v48, %v3404_v27  ;;  %v3434_v51 = vsel %vm11546_vm15, %v3404_v27, %v3416_v48  ;;  %v11550_v27 = vld [vmem:[#allocation11_spill] sm:$0xff]  ;;  %v6808_v53 = vld [vmem:[%s11204_s1 + $0x38] sm:$0xff]  ;;  %vm11563_vm1 = vmmov %vm11558_vm2 }
 0x57d   : > { %v3536_v33 = vpop.permute.xlu2 %3535  ;;  %v3439_v20 = vmul.f32 %v3434_v51, %v11543_v58  ;;  %v3440_v18 = vmul.f32 %v3422_v50, %v11544_v6  ;;  %v3651_v34 = vmul.f32 %v9146_v52, %v11550_v27  ;;  %v3649_v22 = vmul.f32 %v9109_v5, %v11550_v27  ;;  %vm11564_vm10 = vmmov %vm11563_vm1 }
 0x57e   : > { %v3447_v17 = vpack.c.bf16 %v3443_v19, %v3441_v3  ;;  %v3448_v7 = vpack.c.bf16 %v3444_v0, %v3442_v12  ;;  %v11560_v3 = vld [vmem:[#allocation9_spill] sm:$0xff]  ;;  %v11561_v19 = vld [vmem:[#allocation10_spill] sm:$0xff]  ;;  %vm11565_vm15 = vmmov %vm11559_vm3  ;;  %v3647_v54 = vmul.f32 %v9165_v41, %v11550_v27 }
 0x57f   : > { %v3655_v49 = vpack.c.bf16 %v3651_v34, %v3649_v22  ;;  %v3645_v22 = vmul.f32 %v9156_v16, %v11550_v27  ;;  %v6810_v16 = vld [vmem:[%s11204_s1 + $0x40] sm:$0xff] }
 0x580   : > { %3455 = vmatpush.bf16.msra.mxu0 %v3447_v17  ;;  %3484 = vmatpush.bf16.msra.mxu1 %v3448_v7 }
 0x582   : > { %v3414_v13 = vpop.permute.xlu0 %3413 }
 0x583   : > { %v3421_v28 = vsel %vm11547_vm12, %v3414_v13, %v9283_v43  ;;  %v3433_v60 = vsel %vm11548_vm9, %v9283_v43, %v3414_v13  ;;  %6260 = vmatmul.msk.bf16.gmra.mxu0 %vm11549_vm7, %v6806_v14  ;;  %v3540_v36 = vpop.permute.xlu1 %3539  ;;  %vm11566_vm12 = vmmov %vm11559_vm3 }
 0x584   : > { %v3437_v10 = vmul.f32 %v3433_v60, %v11543_v58  ;;  %v3438_v26 = vmul.f32 %v3421_v28, %v11544_v6  ;;  %6264 = vmatmul.msk.bf16.gmra.mxu1 %vm11552_vm11, %v6806_v14  ;;  %v3545_v8 = vsel %vm11555_vm4, %v3540_v36, %v9304_v32  ;;  %v3557_v55 = vsel %vm11556_vm6, %v9304_v32, %v3540_v36  ;;  %v6809_v60 = vld [vmem:[%s11204_s1 + $0x10] sm:$0xff]  ;;  %vm11567_vm9 = vmmov %vm11563_vm1 }
 0x585   : > { %v9357_v43 = vpop.permute.xlu2 %3741  ;;  %v3563_v12 = vmul.f32 %v3557_v55, %v11560_v3  ;;  %v3564_v0 = vmul.f32 %v3545_v8, %v11561_v19  ;;  %vm11568_vm7 = vmmov %vm11563_vm1  ;;  %vm11573_vm6 = vcmask 1039360  }
 0x586   : > { %v3445_v35 = vpack.c.bf16 %v3439_v20, %v3437_v10  ;;  %v3446_v52 = vpack.c.bf16 %v3440_v18, %v3438_v26  ;;  %vm11569_vm11 = vmmov %vm11559_vm3 }
 0x587   : > { %vm11572_vm4 = vmmov %vm11559_vm3 }
 0x588   : > { %3456 = vmatpush.bf16.msra.mxu0 %v3445_v35  ;;  %3485 = vmatpush.bf16.msra.mxu1 %v3446_v52  ;;  %v3646_v35 = vmul.f32 %v8957_v11, %v11551_v44  ;;  %v3648_v52 = vmul.f32 %v9140_v47, %v11551_v44  ;;  %v6811_v47 = vld [vmem:[%s11204_s1 + $0x18] sm:$0xff] }
 0x589   : > { %6267 = vmatmul.msk.bf16.gmra.mxu2 %vm11553_vm14, %v6807_v59  ;;  %6271 = vmatmul.msk.bf16.gmra.mxu3 %vm11554_vm8, %v6807_v59  ;;  %vm11570_vm14 = vmmov %vm11559_vm3 }
 0x58a   : > { %v3524_v24 = vpop.permute.xlu0 %3523  ;;  %vm11571_vm8 = vmmov %vm11559_vm3 }
 0x58b   : > { %v3526_v5 = vpop.permute.xlu1 %3525  ;;  %v3555_v51 = vsel %vm11564_vm10, %v3524_v24, %v3536_v33 }
 0x58c   : > { %3663 = vmatpush.bf16.msrb.mxu0 %v3655_v49  ;;  %3692 = vmatpush.bf16.msrb.mxu1 %v3656_v56  ;;  %v3559_v20 = vmul.f32 %v3555_v51, %v11560_v3  ;;  %v3653_v49 = vpack.c.bf16 %v3647_v54, %v3645_v22  ;;  %v11589_v22 = vld [vmem:[#allocation15_spill] sm:$0xff] }
 0x58d   : > { %v9368_v62 = vpop.permute.xlu2 %3731 }
 0x590   : > { %3664 = vmatpush.bf16.msrb.mxu0 %v3653_v49 }
 0x592   : > { %v3530_v4 = vpop.permute.xlu0 %3529 }
 0x593   : > { %v3546_v63 = vsel %vm11557_vm13, %v3542_v29, %v3530_v4  ;;  %v3558_v2 = vsel %vm11558_vm2, %v3530_v4, %v3542_v29  ;;  %6261 = vmatmul.msk.bf16.gmra.mxu0 %vm11559_vm3, %v6808_v53  ;;  %v3740_v48 = vpop.permute.xlu1 %3739  ;;  %v3543_v29 = vsel %vm11563_vm1, %v3536_v33, %v3524_v24  ;;  %v3654_v24 = vpack.c.bf16 %v3648_v52, %v3646_v35  ;;  %vm11574_vm13 = vmmov %vm11573_vm6  ;;  %v11590_v35 = vld [vmem:[#allocation16_spill] sm:$0xff] }
 0x594   : > { %v3565_v17 = vmul.f32 %v3558_v2, %v11560_v3  ;;  %v3566_v32 = vmul.f32 %v3546_v63, %v11561_v19  ;;  %6265 = vmatmul.msk.bf16.gmra.mxu1 %vm11562_vm5, %v6808_v53  ;;  %v3560_v18 = vmul.f32 %v3543_v29, %v11561_v19  ;;  %v3749_v55 = vsel %vm11573_vm6, %v3740_v48, %v9357_v43  ;;  %v11575_v63 = vld [vmem:[#allocation13_spill] sm:$0xff]  ;;  %vm11577_vm2 = vmmov %vm11573_vm6 }
 0x595   : > { %v3738_v13 = vpop.permute.xlu2 %3737  ;;  %3693 = vmatpush.bf16.msrb.mxu1 %v3654_v24  ;;  %v3765_v4 = vsel %vm11574_vm13, %v9357_v43, %v3740_v48  ;;  %v3771_v2 = vmul.f32 %v3749_v55, %v11575_v63  ;;  %vm11578_vm3 = vmmov %vm11577_vm2 }
 0x596   : > { %v3569_v7 = vpack.c.bf16 %v3565_v17, %v3563_v12  ;;  %v3570_v50 = vpack.c.bf16 %v3566_v32, %v3564_v0  ;;  %v11576_v12 = vld [vmem:[#allocation14_spill] sm:$0xff]  ;;  %vm11579_vm5 = vmmov %vm11577_vm2 }
 0x597   : > { %v3772_v0 = vmul.f32 %v3765_v4, %v11576_v12  ;;  %vm11580_vm1 = vmmov %vm11572_vm4 }
 0x598   : > { %3577 = vmatpush.bf16.msra.mxu2 %v3569_v7  ;;  %3606 = vmatpush.bf16.msra.mxu3 %v3570_v50  ;;  %v6812_v50 = vld [vmem:[%s11204_s1 + $0x48] sm:$0xff]  ;;  %vm11581_vm10 = vmmov %vm11577_vm2 }
 0x599   : > { %6268 = vmatmul.msk.bf16.gmra.mxu2 %vm11565_vm15, %v6809_v60  ;;  %6272 = vmatmul.msk.bf16.gmra.mxu3 %vm11566_vm12, %v6809_v60  ;;  %vm11582_vm15 = vmmov %vm11577_vm2 }
 0x59a   : > { %v3538_v28 = vpop.permute.xlu0 %3537  ;;  %vm11583_vm12 = vmmov %vm11580_vm1 }
 0x59b   : > { %v3544_v14 = vsel %vm11567_vm9, %v3538_v28, %v3526_v5  ;;  %v3556_v33 = vsel %vm11568_vm7, %v3526_v5, %v3538_v28  ;;  %v3736_v34 = vpop.permute.xlu1 %3735  ;;  %vm11584_vm9 = vmmov %vm11577_vm2  ;;  %vm11585_vm7 = vcmask 924672  }
 0x59c   : > { %v3561_v38 = vmul.f32 %v3556_v33, %v11560_v3  ;;  %v3562_v36 = vmul.f32 %v3544_v14, %v11561_v19  ;;  %v3748_v17 = vsel %vm11577_vm2, %v3736_v34, %v3738_v13  ;;  %v3764_v48 = vsel %vm11582_vm15, %v3738_v13, %v3736_v34  ;;  %vm11598_vm15 = vmmov %vm11580_vm1 }
 0x59d   : > { %v3866_v56 = vpop.permute.xlu2 %3865 }
 0x59e   : > { %v3567_v10 = vpack.c.bf16 %v3561_v38, %v3559_v20  ;;  %v3568_v26 = vpack.c.bf16 %v3562_v36, %v3560_v18  ;;  %v3769_v38 = vmul.f32 %v3748_v17, %v11575_v63  ;;  %v3770_v36 = vmul.f32 %v3764_v48, %v11576_v12 }
 0x5a0   : > { %3578 = vmatpush.bf16.msra.mxu2 %v3567_v10  ;;  %3607 = vmatpush.bf16.msra.mxu3 %v3568_v26 }
 0x5a2   : > { %v3734_v59 = vpop.permute.xlu0 %3733 }
 0x5a3   : > { %6274 = vmatmul.msk.bf16.vlgmr.msra.gmra.mxu0 %vm11569_vm11, %v6810_v16  ;;  %v3864_v41 = vpop.permute.xlu1 %3863  ;;  %v3747_v43 = vsel %vm11581_vm10, %v9368_v62, %v3734_v59  ;;  %v3763_v18 = vsel %vm11584_vm9, %v3734_v59, %v9368_v62  ;;  %vm11586_vm11 = vmmov %vm11585_vm7  ;;  %v6813_v62 = vld [vmem:[%s11204_s1 + $0x60] sm:$0xff]  ;;  %vm11600_vm9 = vcmask 916480  }
 0x5a4   : > { %6278 = vmatmul.msk.bf16.vlgmr.msra.gmra.mxu1 %vm11570_vm14, %v6810_v16  ;;  %v3767_v33 = vmul.f32 %v3747_v43, %v11575_v63  ;;  %v3768_v13 = vmul.f32 %v3763_v18, %v11576_v12  ;;  %vm11587_vm14 = vmmov %vm11580_vm1 }
 0x5a5   : > { %v3856_v5 = vpop.permute.xlu2 %3855  ;;  %vm11597_vm10 = vmmov %vm11580_vm1 }
 0x5a9   : > { %6269 = vmatmul.msk.bf16.gmra.mxu2 %vm11571_vm8, %v6811_v47  ;;  %6273 = vmatmul.msk.bf16.gmra.mxu3 %vm11572_vm4, %v6811_v47  ;;  %vm11588_vm8 = vmmov %vm11580_vm1  ;;  %v3776_v47 = vpack.c.bf16 %v3770_v36, %v3768_v13 }
 0x5aa   : > { %v3862_v11 = vpop.permute.xlu0 %3861  ;;  %vm11591_vm4 = vmmov %vm11585_vm7 }
 0x5ab   : > { %v3746_v8 = vpop.permute.xlu1 %3745  ;;  %v3871_v34 = vsel %vm11585_vm7, %v3862_v11, %v3864_v41  ;;  %v3887_v10 = vsel %vm11586_vm11, %v3864_v41, %v3862_v11  ;;  %vm11592_vm6 = vmmov %vm11591_vm4  ;;  %v3775_v11 = vpack.c.bf16 %v3769_v38, %v3767_v33 }
 0x5ac   : > { %v3893_v54 = vmul.f32 %v3871_v34, %v11589_v22  ;;  %v3894_v52 = vmul.f32 %v3887_v10, %v11590_v35  ;;  %vm11593_vm13 = vmmov %vm11591_vm4 }
 0x5ad   : > { %v3984_v28 = vpop.permute.xlu2 %3983  ;;  %vm11594_vm2 = vmmov %vm11591_vm4 }
 0x5ae   : > { %vm11601_vm7 = vmmov %vm11600_vm9 }
 0x5af   : > { %vm11602_vm11 = vmmov %vm11601_vm7 }
 0x5b2   : > { %v3744_v53 = vpop.permute.xlu0 %3743 }
 0x5b3   : > { %v3750_v32 = vsel %vm11578_vm3, %v3744_v53, %v3746_v8  ;;  %v3766_v7 = vsel %vm11579_vm5, %v3746_v8, %v3744_v53  ;;  %6275 = vmatmul.msk.bf16.gmra.mxu0 %vm11580_vm1, %v6812_v50  ;;  %v3854_v29 = vpop.permute.xlu1 %3853  ;;  %vm11595_vm3 = vmmov %vm11594_vm2 }
 0x5b4   : > { %v3773_v51 = vmul.f32 %v3750_v32, %v11575_v63  ;;  %v3774_v20 = vmul.f32 %v3766_v7, %v11576_v12  ;;  %6279 = vmatmul.msk.bf16.gmra.mxu1 %vm11583_vm12, %v6812_v50  ;;  %v3869_v4 = vsel %vm11593_vm13, %v3854_v29, %v3856_v5  ;;  %vm11596_vm5 = vmmov %vm11594_vm2  ;;  %v6814_v50 = vld [vmem:[%s11204_s1 + $0x50] sm:$0xff] }
 0x5b5   : > { %v9456_v53 = vpop.permute.xlu2 %3979  ;;  %vm11599_vm12 = vmmov %vm11580_vm1 }
 0x5b6   : > { %v3777_v60 = vpack.c.bf16 %v3773_v51, %v3771_v2  ;;  %v3778_v14 = vpack.c.bf16 %v3774_v20, %v3772_v0  ;;  %v3885_v2 = vsel %vm11594_vm2, %v3856_v5, %v3854_v29  ;;  %vm11610_vm2 = vmmov %vm11580_vm1 }
 0x5b7   : > { %v3890_v0 = vmul.f32 %v3885_v2, %v11590_v35 }
 0x5b8   : > { %3785 = vmatpush.bf16.msrb.mxu2 %v3777_v60  ;;  %3814 = vmatpush.bf16.msrb.mxu3 %v3778_v14  ;;  %v6815_v60 = vld [vmem:[%s11204_s1 + $0x68] sm:$0xff] }
 0x5b9   : > { %6282 = vmatmul.msk.bf16.vlgmr.msra.gmra.mxu2 %vm11587_vm14, %v6813_v62  ;;  %6286 = vmatmul.msk.bf16.vlgmr.msra.gmra.mxu3 %vm11588_vm8, %v6813_v62  ;;  %vm11603_vm14 = vmmov %vm11601_vm7 }
 0x5ba   : > { %v3868_v26 = vpop.permute.xlu0 %3867  ;;  %vm11604_vm8 = vmmov %vm11580_vm1 }
 0x5bb   : > { %v3872_v49 = vsel %vm11591_vm4, %v3866_v56, %v3868_v26  ;;  %v3888_v24 = vsel %vm11592_vm6, %v3868_v26, %v3866_v56  ;;  %v3860_v59 = vpop.permute.xlu1 %3859  ;;  %v3889_v56 = vmul.f32 %v3869_v4, %v11589_v22  ;;  %v6816_v26 = vld [vmem:[%s11204_s1 + $0x58] sm:$0xff]  ;;  %vm11605_vm4 = vmmov %vm11580_vm1 }
 0x5bc   : > { %v3895_v16 = vmul.f32 %v3872_v49, %v11589_v22  ;;  %v3896_v41 = vmul.f32 %v3888_v24, %v11590_v35  ;;  %3786 = vmatpush.bf16.msrb.mxu2 %v3775_v11  ;;  %3815 = vmatpush.bf16.msrb.mxu3 %v3776_v47  ;;  %vm11606_vm6 = vmmov %vm11601_vm7  ;;  %v11609_v24 = vld [vmem:[#allocation18_spill] sm:$0xff] }
 0x5bd   : > { %v4108_v20 = vpop.permute.xlu2 %4107  ;;  %vm11607_vm13 = vmmov %vm11606_vm6 }
 0x5be   : > { %v3899_v8 = vpack.c.bf16 %v3895_v16, %v3893_v54  ;;  %v3900_v55 = vpack.c.bf16 %v3896_v41, %v3894_v52  ;;  %v11608_v52 = vld [vmem:[#allocation17_spill] sm:$0xff] }
 0x5c0   : > { %3907 = vmatpush.bf16.msra.mxu0 %v3899_v8  ;;  %3936 = vmatpush.bf16.msra.mxu1 %v3900_v55  ;;  %v6817_v55 = vld [vmem:[%s11204_s1 + $0x70] sm:$0xff] }
 0x5c2   : > { %v3858_v17 = vpop.permute.xlu0 %3857 }
 0x5c3   : > { %v3870_v32 = vsel %vm11595_vm3, %v3858_v17, %v3860_v59  ;;  %v3886_v7 = vsel %vm11596_vm5, %v3860_v59, %v3858_v17  ;;  %6276 = vmatmul.msk.bf16.gmra.mxu0 %vm11580_vm1, %v6814_v50  ;;  %v3978_v5 = vpop.permute.xlu1 %3977  ;;  %vm11611_vm3 = vmmov %vm11580_vm1  ;;  %vm11612_vm5 = vcmask 908288  }
 0x5c4   : > { %v3891_v29 = vmul.f32 %v3870_v32, %v11589_v22  ;;  %v3892_v43 = vmul.f32 %v3886_v7, %v11590_v35  ;;  %6280 = vmatmul.msk.bf16.gmra.mxu1 %vm11597_vm10, %v6814_v50  ;;  %vm11613_vm1 = vmmov %vm11612_vm5 }
 0x5c5   : > { %v3990_v13 = vpop.permute.xlu2 %3989  ;;  %vm11614_vm10 = vmmov %vm11613_vm1 }
 0x5c6   : > { %v3897_v48 = vpack.c.bf16 %v3891_v29, %v3889_v56  ;;  %v3898_v51 = vpack.c.bf16 %v3892_v43, %v3890_v0  ;;  %v9511_v29 = vld [vmem:[%s11206_s3 + $0x10] ss:$0 sm:$0xff] }
 0x5c8   : > { %3908 = vmatpush.bf16.msra.mxu0 %v3897_v48  ;;  %3937 = vmatpush.bf16.msra.mxu1 %v3898_v51  ;;  %v9517_v48 = vld [vmem:[%s11206_s3 + $0x18] ss:$0 sm:$0xff] }
 0x5c9   : > { %6283 = vmatmul.msk.bf16.gmra.mxu2 %vm11598_vm15, %v6815_v60  ;;  %6287 = vmatmul.msk.bf16.gmra.mxu3 %vm11599_vm12, %v6815_v60  ;;  %vm11615_vm15 = vmmov %vm11613_vm1 }
 0x5ca   : > { %v3986_v18 = vpop.permute.xlu0 %3985  ;;  %vm11616_vm12 = vmmov %vm11610_vm2 }
 0x5cb   : > { %v4106_v14 = vpop.permute.xlu1 %4105  ;;  %v3993_v33 = vsel %vm11600_vm9, %v3984_v28, %v3986_v18  ;;  %v4009_v38 = vsel %vm11601_vm7, %v3986_v18, %v3984_v28  ;;  %vm11617_vm9 = vmmov %vm11610_vm2 }
 0x5cc   : > { %v4015_v49 = vmul.f32 %v3993_v33, %v11608_v52  ;;  %v4016_v59 = vmul.f32 %v4009_v38, %v11609_v24  ;;  %v4115_v56 = vsel %vm11612_vm5, %v4106_v14, %v4108_v20  ;;  %v4131_v0 = vsel %vm11613_vm1, %v4108_v20, %v4106_v14  ;;  %vm11618_vm7 = vmmov %vm11610_vm2 }
 0x5cd   : > { %v4137_v43 = vmul.f32 %v9511_v29, %v4115_v56  ;;  %v4138_v51 = vmul.f32 %v9517_v48, %v4131_v0  ;;  %vm11626_vm5 = vmmov %vm11610_vm2  ;;  %vm11627_vm1 = vcmask 916480  }
 0x5d2   : > { %v3976_v36 = vpop.permute.xlu0 %3975 }
 0x5d3   : > { %v9477_v34 = vsel %vm11602_vm11, %v3976_v36, %v3978_v5  ;;  %v9480_v10 = vsel %vm11603_vm14, %v3978_v5, %v3976_v36  ;;  %6277 = vmatmul.msk.bf16.gmra.mxu0 %vm11604_vm8, %v6816_v26  ;;  %v3988_v62 = vpop.permute.xlu1 %3987  ;;  %v6818_v5 = vld [vmem:[%s11204_s1 + $0x80] sm:$0xff]  ;;  %v6821_v36 = vld [vmem:[%s11204_s1 + $0x78] sm:$0xff]  ;;  %vm11619_vm11 = vmmov %vm11610_vm2 }
 0x5d4   : > { %6281 = vmatmul.msk.bf16.gmra.mxu1 %vm11605_vm4, %v6816_v26  ;;  %v3994_v54 = vsel %vm11606_vm6, %v3988_v62, %v3990_v13  ;;  %v4010_v28 = vsel %vm11607_vm13, %v3990_v13, %v3988_v62  ;;  %v6822_v62 = vld [vmem:[%s11204_s1 + $0x88] sm:$0xff]  ;;  %vm11620_vm14 = vmmov %vm11610_vm2 }
 0x5d5   : > { %v4017_v16 = vmul.f32 %v3994_v54, %v11608_v52  ;;  %v4018_v41 = vmul.f32 %v4010_v28, %v11609_v24  ;;  %vm11621_vm8 = vmmov %vm11610_vm2 }
 0x5d6   : > { %vm11622_vm4 = vmmov %vm11610_vm2 }
 0x5d7   : > { %v4021_v11 = vpack.c.bf16 %v4017_v16, %v4015_v49  ;;  %v4022_v47 = vpack.c.bf16 %v4018_v41, %v4016_v59  ;;  %v6823_v49 = vld [vmem:[%s11204_s1 + $0xa0] sm:$0xff]  ;;  %vm11623_vm6 = vmmov %vm11610_vm2 }
 0x5d8   : > { %vm11624_vm13 = vmmov %vm11610_vm2 }
 0x5d9   : > { %4029 = vmatpush.bf16.msra.mxu2 %v4021_v11  ;;  %4058 = vmatpush.bf16.msra.mxu3 %v4022_v47 }
 0x5da   : > { %v9493_v8 = vpop.permute.xlu0 %3981  ;;  %6284 = vmatmul.msk.bf16.gmra.mxu2 %vm11610_vm2, %v6817_v55  ;;  %6288 = vmatmul.msk.bf16.gmra.mxu3 %vm11611_vm3, %v6817_v55  ;;  %vm11625_vm3 = vmmov %vm11610_vm2 }
 0x5db   : > { %v4112_v2 = vpop.permute.xlu1 %4111 }
 0x5e0   : > { %v3294_v4 = vpop.f32.mrf.mxu0 }
 0x5e1   : > { %v3323_v17 = vpop.f32.mrf.mxu1 }
 0x5e2   : > { %v4110_v32 = vpop.permute.xlu0 %4109 }
 0x5e3   : > { %v4116_v7 = vsel %vm11614_vm10, %v4110_v32, %v4112_v2  ;;  %v4132_v50 = vsel %vm11615_vm15, %v4112_v2, %v4110_v32  ;;  %6290 = vmatmul.msk.bf16.vlgmr.msrb.gmra.mxu0 %vm11616_vm12, %v6818_v5  ;;  %v6824_v2 = vld [vmem:[%s11204_s1 + $0x90] sm:$0xff]  ;;  %vm11628_vm10 = vmmov %vm11627_vm1 }
 0x5e4   : > { %v4139_v20 = vmul.f32 %v9511_v29, %v4116_v7  ;;  %v4140_v18 = vmul.f32 %v9517_v48, %v4132_v50  ;;  %6294 = vmatmul.msk.bf16.vlgmr.msrb.gmra.mxu1 %vm11617_vm9, %v6818_v5  ;;  %vm11629_vm15 = vmmov %vm11610_vm2 }
 0x5e5   : > { %vm11630_vm12 = vmmov %vm11610_vm2 }
 0x5e6   : > { %v4143_v60 = vpack.c.bf16 %v4139_v20, %v4137_v43  ;;  %v4144_v14 = vpack.c.bf16 %v4140_v18, %v4138_v51  ;;  %vm11631_vm9 = vmmov %vm11610_vm2 }
 0x5e8   : > { %v3296_v33 = vpop.f32.mrf.mxu0  ;;  %4151 = vmatpush.bf16.msrb.mxu0 %v4143_v60  ;;  %4180 = vmatpush.bf16.msrb.mxu1 %v4144_v14  ;;  %v3992_v14 = vsel %vm11627_vm1, %v9456_v53, %v9493_v8 }
 0x5e9   : > { %v3325_v38 = vpop.f32.mrf.mxu1 }
 0x5ea   : > { %6285 = vmatmul.msk.bf16.gmra.mxu2 %vm11618_vm7, %v6821_v36  ;;  %6289 = vmatmul.msk.bf16.gmra.mxu3 %vm11619_vm11, %v6821_v36  ;;  %v4011_v36 = vmul.f32 %v9477_v34, %v11608_v52  ;;  %vm11632_vm7 = vmmov %vm11610_vm2 }
 0x5eb   : > { %vm11633_vm11 = vmmov %vm11610_vm2 }
 0x5f0   : > { %v3299_v13 = vpop.f32.mrf.mxu0 }
 0x5f1   : > { %v3328_v26 = vpop.f32.mrf.mxu1 }
 0x5f3   : > { %6291 = vmatmul.msk.bf16.gmra.mxu0 %vm11620_vm14, %v6822_v62  ;;  %vm11634_vm14 = vmmov %vm11610_vm2 }
 0x5f4   : > { %6295 = vmatmul.msk.bf16.gmra.mxu1 %vm11621_vm8, %v6822_v62  ;;  %vm11635_vm8 = vmmov %vm11610_vm2 }
 0x5f8   : > { %v3301_v54 = vpop.f32.mrf.mxu0 }
 0x5f9   : > { %v3330_v28 = vpop.f32.mrf.mxu1 }
 0x5fa   : > { %6298 = vmatmul.msk.bf16.vlgmr.msrb.gmra.mxu2 %vm11622_vm4, %v6823_v49  ;;  %6302 = vmatmul.msk.bf16.vlgmr.msrb.gmra.mxu3 %vm11623_vm6, %v6823_v49  ;;  %v4013_v49 = vmul.f32 %v3992_v14, %v11608_v52  ;;  %vm11636_vm4 = vmmov %vm11610_vm2 }
 0x5fb   : > { %v3352_v59 = vpop.f32.mrf.mxu2  ;;  %v3381_v16 = vpop.f32.mrf.mxu3  ;;  %vm11637_vm6 = vmmov %vm11610_vm2 }
 0x5fc   : > { %v3353_v41 = vadd.f32 %v3352_v59, %v3294_v4  ;;  %v3382_v11 = vadd.f32 %v3381_v16, %v3323_v17  ;;  %v6825_v4 = vld [vmem:[%s11204_s1 + $0xa8] sm:$0xff]  ;;  %v4019_v34 = vpack.c.bf16 %v4013_v49, %v4011_v36 }
 0x5fe   : > { %4030 = vmatpush.bf16.msra.mxu2 %v4019_v34 }
 0x600   : > { %v3304_v47 = vpop.f32.mrf.mxu0 }
 0x601   : > { %v3333_v55 = vpop.f32.mrf.mxu1 }
 0x603   : > { %6292 = vmatmul.msk.bf16.gmra.mxu0 %vm11624_vm13, %v6824_v2  ;;  %v3354_v56 = vpop.f32.mrf.mxu2  ;;  %v3383_v0 = vpop.f32.mrf.mxu3  ;;  %vm11638_vm13 = vcmask 908288  }
 0x604   : > { %6296 = vmatmul.msk.bf16.gmra.mxu1 %vm11610_vm2, %v6824_v2  ;;  %v3355_v32 = vadd.f32 %v3354_v56, %v3296_v33  ;;  %v3384_v7 = vadd.f32 %v3383_v0, %v3325_v38  ;;  %v4008_v33 = vsel %vm11628_vm10, %v9493_v8, %v9456_v53  ;;  %v6826_v38 = vld [vmem:[%s11204_s1 + $0x98] sm:$0xff]  ;;  %v6827_v56 = vld [vmem:[%s11204_s1 + $0xb0] sm:$0xff]  ;;  %vm11639_vm2 = vmmov %vm11638_vm13 }
 0x605   : > { %v4014_v53 = vmul.f32 %v4008_v33, %v11609_v24  ;;  %vm11641_vm1 = vmmov %vm11639_vm2 }
 0x606   : > { %vm11642_vm10 = vmmov %vm11625_vm3 }
 0x608   : > { %v3306_v50 = vpop.f32.mrf.mxu0 }
 0x609   : > { %v3335_v5 = vpop.f32.mrf.mxu1 }
 0x60a   : > { %6299 = vmatmul.msk.bf16.gmra.mxu2 %vm11625_vm3, %v6825_v4  ;;  %6303 = vmatmul.msk.bf16.gmra.mxu3 %vm11626_vm5, %v6825_v4  ;;  %vm11640_vm5 = vmmov %vm11639_vm2 }
 0x60c   : > { %v3357_v17 = vpop.f32.mrf.mxu2  ;;  %v3386_v43 = vpop.f32.mrf.mxu3 }
 0x60d   : > { %v3358_v51 = vadd.f32 %v3357_v17, %v3299_v13  ;;  %v3387_v20 = vadd.f32 %v3386_v43, %v3328_v26  ;;  %v4012_v13 = vmul.f32 %v9480_v10, %v11609_v24 }
 0x60f   : > { %v4020_v10 = vpack.c.bf16 %v4014_v53, %v4012_v13 }
 0x610   : > { %v3309_v18 = vpop.f32.mrf.mxu0 }
 0x611   : > { %v3338_v60 = vpop.f32.mrf.mxu1  ;;  %4059 = vmatpush.bf16.msra.mxu3 %v4020_v10 }
 0x613   : > { %6293 = vmatmul.msk.bf16.gmra.mxu0 %vm11629_vm15, %v6826_v38  ;;  %vm11643_vm15 = vmmov %vm11625_vm3 }
 0x614   : > { %6297 = vmatmul.msk.bf16.gmra.mxu1 %vm11630_vm12, %v6826_v38  ;;  %v3359_v26 = vpop.f32.mrf.mxu2  ;;  %v3388_v62 = vpop.f32.mrf.mxu3  ;;  %v6828_v38 = vld [vmem:[%s11204_s1 + $0xc0] sm:$0xff]  ;;  %vm11644_vm12 = vmmov %vm11625_vm3 }
 0x615   : > { %v3360_v8 = vadd.f32 %v3359_v26, %v3301_v54  ;;  %v3389_v59 = vadd.f32 %v3388_v62, %v3330_v28 }
 0x618   : > { %v3311_v16 = vpop.f32.mrf.mxu0 }
 0x619   : > { %v3340_v2 = vpop.f32.mrf.mxu1 }
 0x61a   : > { %6300 = vmatmul.msk.bf16.gmra.mxu2 %vm11631_vm9, %v6827_v56  ;;  %6304 = vmatmul.msk.bf16.gmra.mxu3 %vm11632_vm7, %v6827_v56  ;;  %vm11645_vm9 = vmmov %vm11625_vm3 }
 0x61b   : > { %vm11646_vm7 = vmmov %vm11625_vm3 }
 0x61c   : > { %v3362_v0 = vpop.f32.mrf.mxu2  ;;  %v3391_v4 = vpop.f32.mrf.mxu3 }
 0x61d   : > { %v9570_v17 = vadd.f32 %v3362_v0, %v3304_v47  ;;  %v9572_v54 = vadd.f32 %v3391_v4, %v3333_v55 }
 0x620   : > { %v3458_v28 = vpop.f32.mrf.mxu0 }
 0x621   : > { %v3507_v43 = vadd.f32 %v3458_v28, %v3353_v41  ;;  %v3487_v14 = vpop.f32.mrf.mxu1  ;;  %v6829_v41 = vld [vmem:[%s11204_s1 + $0xb8] sm:$0xff]  ;;  %v4100_v28 = vpop.permute.xlu0 %4099 }
 0x622   : > { %v3508_v33 = vadd.f32 %v3487_v14, %v3382_v11  ;;  %v4098_v11 = vpop.permute.xlu2 %4097  ;;  %v6830_v14 = vld [vmem:[%s11204_s1 + $0xc8] sm:$0xff] }
 0x623   : > { %6306 = vmatmul.msk.bf16.vlgmr.msra.gmra.mxu0 %vm11633_vm11, %v6828_v38  ;;  %vm11647_vm11 = vmmov %vm11625_vm3 }
 0x624   : > { %6310 = vmatmul.msk.bf16.vlgmr.msra.gmra.mxu1 %vm11634_vm14, %v6828_v38  ;;  %v3364_v36 = vpop.f32.mrf.mxu2  ;;  %v3393_v13 = vpop.f32.mrf.mxu3  ;;  %v4113_v38 = vsel %vm11638_vm13, %v4098_v11, %v4100_v28  ;;  %vm11648_vm14 = vmmov %vm11625_vm3 }
 0x625   : > { %v3365_v26 = vadd.f32 %v3364_v36, %v3306_v50  ;;  %v3394_v62 = vadd.f32 %v3393_v13, %v3335_v5  ;;  %v4129_v36 = vsel %vm11639_vm2, %v4100_v28, %v4098_v11  ;;  %vm11652_vm13 = vmmov %vm11625_vm3 }
 0x626   : > { %vm11653_vm2 = vmmov %vm11625_vm3 }
 0x628   : > { %v3460_v47 = vpop.f32.mrf.mxu0 }
 0x629   : > { %v9579_v49 = vadd.f32 %v3460_v47, %v3355_v32  ;;  %v3489_v55 = vpop.f32.mrf.mxu1  ;;  %v4133_v47 = vmul.f32 %v9511_v29, %v4113_v38 }
 0x62a   : > { %v9581_v53 = vadd.f32 %v3489_v55, %v3384_v7  ;;  %6301 = vmatmul.msk.bf16.gmra.mxu2 %vm11635_vm8, %v6829_v41  ;;  %6305 = vmatmul.msk.bf16.gmra.mxu3 %vm11636_vm4, %v6829_v41  ;;  %v4102_v7 = vpop.permute.xlu1 %4101  ;;  %v4104_v13 = vpop.permute.xlu2 %4103  ;;  %v4134_v55 = vmul.f32 %v9517_v48, %v4129_v36  ;;  %vm11649_vm8 = vmmov %vm11625_vm3 }
 0x62b   : > { %vm11650_vm4 = vmmov %vm11625_vm3 }
 0x62c   : > { %v3367_v56 = vpop.f32.mrf.mxu2  ;;  %v3396_v34 = vpop.f32.mrf.mxu3 }
 0x62d   : > { %v3368_v10 = vadd.f32 %v3367_v56, %v3309_v18  ;;  %v3397_v50 = vadd.f32 %v3396_v34, %v3338_v60  ;;  %v4114_v18 = vsel %vm11640_vm5, %v4102_v7, %v4104_v13  ;;  %vm11655_vm5 = vmmov %vm11653_vm2 }
 0x62e   : > { %v4135_v34 = vmul.f32 %v9511_v29, %v4114_v18 }
 0x630   : > { %v3463_v5 = vpop.f32.mrf.mxu0 }
 0x631   : > { %v3511_v0 = vadd.f32 %v3463_v5, %v3358_v51  ;;  %v3492_v32 = vpop.f32.mrf.mxu1  ;;  %v4130_v51 = vsel %vm11641_vm1, %v4104_v13, %v4102_v7  ;;  %v6831_v7 = vld [vmem:[%s11204_s1 + $0xe0] sm:$0xff]  ;;  %vm11656_vm1 = vmmov %vm11653_vm2 }
 0x632   : > { %v3512_v4 = vadd.f32 %v3492_v32, %v3387_v20  ;;  %v4136_v5 = vmul.f32 %v9517_v48, %v4130_v51  ;;  %v6832_v51 = vld [vmem:[%s11204_s1 + $0xd0] sm:$0xff] }
 0x633   : > { %6307 = vmatmul.msk.bf16.gmra.mxu0 %vm11637_vm6, %v6830_v14  ;;  %vm11651_vm6 = vmmov %vm11625_vm3 }
 0x634   : > { %6311 = vmatmul.msk.bf16.gmra.mxu1 %vm11625_vm3, %v6830_v14  ;;  %v3369_v20 = vpop.f32.mrf.mxu2  ;;  %v3398_v60 = vpop.f32.mrf.mxu3  ;;  %vm11654_vm3 = vmmov %vm11653_vm2 }
 0x635   : > { %v3370_v41 = vadd.f32 %v3369_v20, %v3311_v16  ;;  %v3399_v56 = vadd.f32 %v3398_v60, %v3340_v2  ;;  %v4141_v16 = vpack.c.bf16 %v4135_v34, %v4133_v47  ;;  %v4142_v2 = vpack.c.bf16 %v4136_v5, %v4134_v55 }
 0x637   : > { %4152 = vmatpush.bf16.msrb.mxu0 %v4141_v16  ;;  %4181 = vmatpush.bf16.msrb.mxu1 %v4142_v2 }
 0x638   : > { %v3465_v11 = vpop.f32.mrf.mxu0 }
 0x639   : > { %v9601_v32 = vadd.f32 %v3465_v11, %v3360_v8  ;;  %v3494_v28 = vpop.f32.mrf.mxu1 }
 0x63a   : > { %v9603_v14 = vadd.f32 %v3494_v28, %v3389_v59  ;;  %6314 = vmatmul.msk.bf16.vlgmr.msra.gmra.mxu2 %vm11642_vm10, %v6831_v7  ;;  %6318 = vmatmul.msk.bf16.vlgmr.msra.gmra.mxu3 %vm11643_vm15, %v6831_v7  ;;  %vm11657_vm10 = vmmov %vm11656_vm1 }
 0x63b   : > { %vm11658_vm15 = vmmov %vm11656_vm1 }
 0x63c   : > { %v3580_v29 = vpop.f32.mrf.mxu2  ;;  %v3609_v48 = vpop.f32.mrf.mxu3 }
 0x63d   : > { %v3629_v38 = vadd.f32 %v3580_v29, %v3507_v43  ;;  %v3630_v8 = vadd.f32 %v3609_v48, %v3508_v33 }
 0x640   : > { %v3468_v36 = vpop.f32.mrf.mxu0 }
 0x641   : > { %v3515_v59 = vadd.f32 %v3468_v36, %v9570_v17  ;;  %v3497_v13 = vpop.f32.mrf.mxu1 }
 0x642   : > { %v3516_v18 = vadd.f32 %v3497_v13, %v9572_v54  ;;  %v6833_v54 = vld [vmem:[%s11204_s1 + $0xe8] sm:$0xff] }
 0x643   : > { %6308 = vmatmul.msk.bf16.gmra.mxu0 %vm11644_vm12, %v6832_v51  ;;  %vm11659_vm12 = vmmov %vm11656_vm1 }
 0x644   : > { %6312 = vmatmul.msk.bf16.gmra.mxu1 %vm11645_vm9, %v6832_v51  ;;  %v9617_v20 = vpop.f32.mrf.mxu2  ;;  %v9619_v60 = vpop.f32.mrf.mxu3  ;;  %vm11661_vm9 = vmmov %vm11656_vm1 }
 0x648   : > { %v3470_v43 = vpop.f32.mrf.mxu0 }
 0x649   : > { %v9621_v33 = vadd.f32 %v3470_v43, %v3365_v26  ;;  %v3499_v47 = vpop.f32.mrf.mxu1 }
 0x64a   : > { %v9623_v17 = vadd.f32 %v3499_v47, %v3394_v62  ;;  %6315 = vmatmul.msk.bf16.gmra.mxu2 %vm11646_vm7, %v6833_v54  ;;  %6319 = vmatmul.msk.bf16.gmra.mxu3 %vm11647_vm11, %v6833_v54  ;;  %v6834_v62 = vld [vmem:[%s11204_s1 + $0xd8] sm:$0xff]  ;;  %vm11662_vm7 = vmmov %vm11656_vm1 }
 0x64c   : > { %v3585_v55 = vpop.f32.mrf.mxu2  ;;  %v3614_v34 = vpop.f32.mrf.mxu3 }
 0x64d   : > { %v3633_v5 = vadd.f32 %v3585_v55, %v3511_v0  ;;  %v3634_v11 = vadd.f32 %v3614_v34, %v3512_v4 }
 0x650   : > { %v3473_v28 = vpop.f32.mrf.mxu0 }
 0x651   : > { %v3519_v7 = vadd.f32 %v3473_v28, %v3368_v10  ;;  %v3502_v16 = vpop.f32.mrf.mxu1  ;;  %v6835_v10 = vld [vmem:[%s11204_s1 + $0xf0] sm:$0xff] }
 0x652   : > { %v3520_v26 = vadd.f32 %v3502_v16, %v3397_v50 }
 0x653   : > { %6309 = vmatmul.msk.bf16.gmra.mxu0 %vm11648_vm14, %v6834_v62 }
 0x654   : > { %6313 = vmatmul.msk.bf16.gmra.mxu1 %vm11649_vm8, %v6834_v62  ;;  %v9635_v2 = vpop.f32.mrf.mxu2  ;;  %v9637_v29 = vpop.f32.mrf.mxu3 }
 0x658   : > { %v3475_v48 = vpop.f32.mrf.mxu0 }
 0x659   : > { %v9639_v36 = vadd.f32 %v3475_v48, %v3370_v41  ;;  %v3504_v0 = vpop.f32.mrf.mxu1 }
 0x65a   : > { %v9641_v4 = vadd.f32 %v3504_v0, %v3399_v56  ;;  %6316 = vmatmul.msk.bf16.gmra.mxu2 %vm11650_vm4, %v6835_v10  ;;  %6320 = vmatmul.msk.bf16.gmra.mxu3 %vm11651_vm6, %v6835_v10  ;;  %v6836_v56 = vld [vmem:[%s11204_s1 + $0x100] sm:$0xff] }
 0x65d   : > { %v3590_v50 = vpop.f32.mrf.mxu2  ;;  %v3619_v13 = vpop.f32.mrf.mxu3 }
 0x65e   : > { %v3637_v51 = vadd.f32 %v3590_v50, %v3515_v59  ;;  %v3638_v43 = vadd.f32 %v3619_v13, %v3516_v18 }
 0x660   : > { %v3666_v47 = vpop.f32.mrf.mxu0 }
 0x661   : > { %v3715_v54 = vadd.f32 %v3666_v47, %v3629_v38  ;;  %v3695_v55 = vpop.f32.mrf.mxu1  ;;  %v6837_v38 = vld [vmem:[%s11204_s1 + $0xf8] sm:$0xff]  ;;  %v6838_v47 = vld [vmem:[%s11204_s1 + $0x108] sm:$0xff] }
 0x662   : > { %v3716_v41 = vadd.f32 %v3695_v55, %v3630_v8 }
 0x663   : > { %6322 = vmatmul.msk.bf16.vlgmr.msrb.gmra.mxu0 %vm11652_vm13, %v6836_v56 }
 0x664   : > { %6326 = vmatmul.msk.bf16.vlgmr.msrb.gmra.mxu1 %vm11653_vm2, %v6836_v56 }
 0x665   : > { %v9653_v34 = vpop.f32.mrf.mxu2  ;;  %v9655_v28 = vpop.f32.mrf.mxu3 }
 0x668   : > { %v9657_v16 = vpop.f32.mrf.mxu0 }
 0x669   : > { %v9659_v59 = vpop.f32.mrf.mxu1 }
 0x66a   : > { %6317 = vmatmul.msk.bf16.gmra.mxu2 %vm11654_vm3, %v6837_v38  ;;  %6321 = vmatmul.msk.bf16.gmra.mxu3 %vm11655_vm5, %v6837_v38 }
 0x66d   : > { %v3595_v8 = vpop.f32.mrf.mxu2  ;;  %v3624_v18 = vpop.f32.mrf.mxu3 }
 0x66e   : > { %v3641_v62 = vadd.f32 %v3595_v8, %v3519_v7  ;;  %v3642_v48 = vadd.f32 %v3624_v18, %v3520_v26 }
 0x670   : > { %v3671_v0 = vpop.f32.mrf.mxu0 }
 0x671   : > { %v3719_v10 = vadd.f32 %v3671_v0, %v3633_v5  ;;  %v3700_v50 = vpop.f32.mrf.mxu1 }
 0x672   : > { %v3720_v13 = vadd.f32 %v3700_v50, %v3634_v11 }
 0x673   : > { %6323 = vmatmul.msk.bf16.gmra.mxu0 %vm11656_vm1, %v6838_v47 }
 0x674   : > { %6327 = vmatmul.msk.bf16.gmra.mxu1 %vm11657_vm10, %v6838_v47  ;;  %v6839_v47 = vld [vmem:[%s11204_s1 + $0x110] sm:$0xff] }
 0x675   : > { %v9671_v55 = vpop.f32.mrf.mxu2  ;;  %v9673_v56 = vpop.f32.mrf.mxu3 }
 0x678   : > { %v9675_v38 = vpop.f32.mrf.mxu0 }
 0x679   : > { %v9677_v7 = vpop.f32.mrf.mxu1 }
 0x67d   : > { %v3788_v26 = vpop.f32.mrf.mxu2  ;;  %v3817_v5 = vpop.f32.mrf.mxu3 }
 0x67e   : > { %v3837_v8 = vadd.f32 %v3788_v26, %v3715_v54  ;;  %v3838_v11 = vadd.f32 %v3817_v5, %v3716_v41 }
 0x680   : > { %v3676_v18 = vpop.f32.mrf.mxu0 }
 0x681   : > { %v3723_v0 = vadd.f32 %v3676_v18, %v3637_v51  ;;  %v3705_v50 = vpop.f32.mrf.mxu1 }
 0x682   : > { %v3724_v24 = vadd.f32 %v3705_v50, %v3638_v43 }
 0x683   : > { %6324 = vmatmul.msk.bf16.gmra.mxu0 %vm11658_vm15, %v6839_v47 }
 0x684   : > { %6328 = vmatmul.msk.bf16.gmra.mxu1 %vm11659_vm12, %v6839_v47  ;;  %v6840_v47 = vld [vmem:[%s11204_s1 + $0x118] sm:$0xff] }
 0x685   : > { %v9684_v52 = vpop.f32.mrf.mxu2  ;;  %v9686_v35 = vpop.f32.mrf.mxu3 }
 0x688   : > { %v9688_v22 = vpop.f32.mrf.mxu0 }
 0x689   : > { %v9690_v54 = vpop.f32.mrf.mxu1 }
 0x68d   : > { %v3793_v41 = vpop.f32.mrf.mxu2  ;;  %v3822_v51 = vpop.f32.mrf.mxu3 }
 0x68e   : > { %v3841_v26 = vadd.f32 %v3793_v41, %v3719_v10  ;;  %v3842_v43 = vadd.f32 %v3822_v51, %v3720_v13 }
 0x690   : > { %v3681_v5 = vpop.f32.mrf.mxu0 }
 0x691   : > { %v9692_v18 = vadd.f32 %v3681_v5, %v3641_v62  ;;  %v3710_v50 = vpop.f32.mrf.mxu1 }
 0x692   : > { %v9694_v12 = vadd.f32 %v3710_v50, %v3642_v48 }
 0x693   : > { %6325 = vmatmul.msk.bf16.gmra.mxu0 %vm11661_vm9, %v6840_v47 }
 0x694   : > { %11660 = vst [vmem:[#allocation32_spill] sm:$0xff] %v9694_v12  ;;  %6329 = vmatmul.msk.bf16.gmra.mxu1 %vm11662_vm7, %v6840_v47 }
 0x695   : > { %v9701_v63 = vpop.f32.mrf.mxu2  ;;  %v9703_v19 = vpop.f32.mrf.mxu3 }
 0x698   : > { %v9705_v10 = vpop.f32.mrf.mxu0 }
 0x699   : > { %v9707_v13 = vpop.f32.mrf.mxu1 }
 0x69d   : > { %v3798_v62 = vpop.f32.mrf.mxu2  ;;  %v3827_v41 = vpop.f32.mrf.mxu3 }
 0x69e   : > { %v3845_v48 = vadd.f32 %v3798_v62, %v3723_v0  ;;  %v3846_v51 = vadd.f32 %v3827_v41, %v3724_v24 }
 0x6a0   : > { %v3910_v5 = vpop.f32.mrf.mxu0 }
 0x6a1   : > { %v3959_v50 = vadd.f32 %v3910_v5, %v3837_v8  ;;  %v3939_v3 = vpop.f32.mrf.mxu1 }
 0x6a2   : > { %v3960_v45 = vadd.f32 %v3939_v3, %v3838_v11 }
 0x6a5   : > { %v9709_v9 = vpop.f32.mrf.mxu2  ;;  %v9711_v44 = vpop.f32.mrf.mxu3 }
 0x6a8   : > { %v3912_v47 = vpop.f32.mrf.mxu0 }
 0x6a9   : > { %v3941_v27 = vpop.f32.mrf.mxu1 }
 0x6ad   : > { %v9713_v6 = vpop.f32.mrf.mxu2  ;;  %v9715_v58 = vpop.f32.mrf.mxu3 }
 0x6ae   : > { %11663 = vst [vmem:[#allocation35_spill] sm:$0xff] %v9715_v58 }
 0x6b0   : > { %v3915_v15 = vpop.f32.mrf.mxu0 }
 0x6b1   : > { %v3963_v46 = vadd.f32 %v3915_v15, %v3841_v26  ;;  %v3944_v1 = vpop.f32.mrf.mxu1 }
 0x6b2   : > { %v3964_v25 = vadd.f32 %v3944_v1, %v3842_v43 }
 0x6b5   : > { %v9717_v0 = vpop.f32.mrf.mxu2  ;;  %v9719_v24 = vpop.f32.mrf.mxu3 }
 0x6b6   : > { %11664 = vst [vmem:[#allocation36_spill] sm:$0xff] %v9717_v0 }
 0x6b7   : > { %11665 = vst [vmem:[#allocation37_spill] sm:$0xff] %v9719_v24 }
 0x6b8   : > { %v9721_v8 = vpop.f32.mrf.mxu0 }
 0x6b9   : > { %v9723_v3 = vpop.f32.mrf.mxu1 }
 0x6bd   : > { %v4032_v11 = vpop.f32.mrf.mxu2  ;;  %v4061_v62 = vpop.f32.mrf.mxu3 }
 0x6c0   : > { %v3920_v41 = vpop.f32.mrf.mxu0 }
 0x6c1   : > { %v9725_v5 = vadd.f32 %v3920_v41, %v3845_v48  ;;  %v3949_v37 = vpop.f32.mrf.mxu1  ;;  %v4081_v41 = vadd.f32 %v4032_v11, %v3959_v50 }
 0x6c2   : > { %v9727_v23 = vadd.f32 %v3949_v37, %v3846_v51  ;;  %v3631_v51 = vadd.f32 %v9617_v20, %v9579_v49 }
 0x6c3   : > { %11666 = vst [vmem:[#allocation33_spill] sm:$0xff] %v9725_v5  ;;  %v4082_v5 = vadd.f32 %v4061_v62, %v3960_v45 }
 0x6c4   : > { %11667 = vst [vmem:[#allocation38_spill] sm:$0xff] %v9727_v23  ;;  %v3632_v23 = vadd.f32 %v9619_v60, %v9581_v53 }
 0x6c5   : > { %v4034_v40 = vpop.f32.mrf.mxu2  ;;  %v4063_v15 = vpop.f32.mrf.mxu3 }
 0x6c8   : > { %v9729_v26 = vpop.f32.mrf.mxu0 }
 0x6c9   : > { %11668 = vst [vmem:[#allocation39_spill] sm:$0xff] %v9729_v26  ;;  %v9731_v1 = vpop.f32.mrf.mxu1 }
 0x6ca   : > { %11669 = vst [vmem:[#allocation34_spill] sm:$0xff] %v9731_v1 }
 0x6cd   : > { %v4037_v39 = vpop.f32.mrf.mxu2  ;;  %v4066_v61 = vpop.f32.mrf.mxu3 }
 0x6d0   : > { %v9733_v43 = vpop.f32.mrf.mxu0 }
 0x6d1   : > { %11670 = vst [vmem:[#allocation40_spill] sm:$0xff] %v9733_v43  ;;  %v9735_v30 = vpop.f32.mrf.mxu1 }
 0x6d2   : > { %11671 = vst [vmem:[#allocation25_spill] sm:$0xff] %v9735_v30  ;;  %v3717_v30 = vadd.f32 %v9657_v16, %v3631_v51 }
 0x6d4   : > { %v3839_v21 = vadd.f32 %v9684_v52, %v3717_v30 }
 0x6d5   : > { %v9741_v48 = vpop.f32.mrf.mxu2  ;;  %v9743_v37 = vpop.f32.mrf.mxu3 }
 0x6d6   : > { %v3961_v53 = vadd.f32 %v3912_v47, %v3839_v21  ;;  %v3636_v47 = vadd.f32 %v9637_v29, %v9603_v14 }
 0x6d8   : > { %v9737_v24 = vpop.f32.mrf.mxu0  ;;  %v4083_v50 = vadd.f32 %v4034_v40, %v3961_v53  ;;  %v3635_v40 = vadd.f32 %v9635_v2, %v9601_v32  ;;  %v3722_v53 = vadd.f32 %v9677_v7, %v3636_v47  ;;  %v3639_v7 = vadd.f32 %v9653_v34, %v9621_v33 }
 0x6d9   : > { %11672 = vst [vmem:[#allocation20_spill] sm:$0xff] %v9737_v24  ;;  %v9739_v0 = vpop.f32.mrf.mxu1  ;;  %v3718_v24 = vadd.f32 %v9659_v59, %v3632_v23 }
 0x6da   : > { %11673 = vst [vmem:[#allocation21_spill] sm:$0xff] %v9739_v0  ;;  %v3721_v51 = vadd.f32 %v9675_v38, %v3635_v40  ;;  %v3844_v14 = vadd.f32 %v9703_v19, %v3722_v53  ;;  %v3643_v19 = vadd.f32 %v9671_v55, %v9639_v36  ;;  %v11678_v40 = vld [vmem:[#allocation37_spill] sm:$0xff] }
 0x6db   : > { %v3840_v12 = vadd.f32 %v9686_v35, %v3718_v24 }
 0x6dd   : > { %v9755_v20 = vpop.f32.mrf.mxu2  ;;  %v9757_v60 = vpop.f32.mrf.mxu3  ;;  %v3962_v16 = vadd.f32 %v3941_v27, %v3840_v12  ;;  %v4085_v27 = vadd.f32 %v4037_v39, %v3963_v46  ;;  %v3843_v39 = vadd.f32 %v9701_v63, %v3721_v51  ;;  %v3640_v63 = vadd.f32 %v9655_v28, %v9623_v17  ;;  %v11681_v51 = vld [vmem:[#allocation40_spill] sm:$0xff] }
 0x6df   : > { %v4084_v23 = vadd.f32 %v4063_v15, %v3962_v16  ;;  %v4086_v15 = vadd.f32 %v4066_v61, %v3964_v25  ;;  %v3965_v2 = vadd.f32 %v9721_v8, %v3843_v39  ;;  %v3726_v33 = vadd.f32 %v9690_v54, %v3640_v63  ;;  %v11682_v39 = vld [vmem:[#allocation25_spill] sm:$0xff]  ;;  %v11686_v63 = vld [vmem:[#allocation38_spill] sm:$0xff] }
 0x6e0   : > { %v4154_v43 = vpop.f32.mrf.mxu0 }
 0x6e1   : > { %v4203_v1 = vadd.f32 %v4154_v43, %v4081_v41  ;;  %v4183_v26 = vpop.f32.mrf.mxu1 }
 0x6e2   : > { %v4204_v0 = vadd.f32 %v4183_v26, %v4082_v5 }
 0x6e3   : > { %v4219_v58 = vadd.f32 %v4203_v1, %v7597_v31 }
 0x6e4   : > { %v4220_v49 = vadd.f32 %v4204_v0, %v7597_v31 }
 0x6e5   : > { %v6330_v45 = vmul.f32 -1.442695, %v4219_v58  ;;  %v9761_v58 = vpop.f32.mrf.mxu2  ;;  %v9765_v12 = vpop.f32.mrf.mxu3 }
 0x6e6   : > { %v6331_v11 = vmul.f32 -1.442695, %v4220_v49 }
 0x6e7   : > { %6637 = vpow2.f32 %v6330_v45  ;;  %v3966_v45 = vadd.f32 %v9723_v3, %v3844_v14  ;;  %v3729_v3 = vadd.f32 %v9705_v10, %v3643_v19  ;;  %v3849_v10 = vadd.f32 %v9713_v6, %v9692_v18  ;;  %v11683_v14 = vld [vmem:[#allocation20_spill] sm:$0xff] }
 0x6e8   : > { %v4156_v59 = vpop.f32.mrf.mxu0  ;;  %6639 = vpow2.f32 %v6331_v11  ;;  %v4087_v11 = vadd.f32 %v9741_v48, %v3965_v2  ;;  %v11684_v2 = vld [vmem:[#allocation33_spill] sm:$0xff] }
 0x6e9   : > { %v4205_v62 = vadd.f32 %v4156_v59, %v4083_v50  ;;  %v4185_v30 = vpop.f32.mrf.mxu1  ;;  %v3644_v50 = vadd.f32 %v9673_v56, %v9641_v4  ;;  %v4088_v34 = vadd.f32 %v9743_v37, %v3966_v45  ;;  %v4090_v45 = vadd.f32 %v9757_v60, %v11686_v63 }
 0x6ea   : > { %v4206_v52 = vadd.f32 %v4185_v30, %v4084_v23  ;;  %v3725_v23 = vadd.f32 %v9688_v22, %v3639_v7  ;;  %v11674_v30 = vld [vmem:[#allocation32_spill] sm:$0xff] }
 0x6eb   : > { %v4221_v35 = vadd.f32 %v4205_v62, %v7611_v42  ;;  %v3730_v22 = vadd.f32 %v9707_v13, %v3644_v50  ;;  %v3848_v62 = vadd.f32 %v9711_v44, %v3726_v33  ;;  %v11679_v13 = vld [vmem:[#allocation39_spill] sm:$0xff] }
 0x6ec   : > { %v4222_v0 = vadd.f32 %v4206_v52, %v7611_v42  ;;  %v3847_v54 = vadd.f32 %v9709_v9, %v3725_v23  ;;  %v11675_v52 = vld [vmem:[#allocation35_spill] sm:$0xff] }
 0x6ed   : > { %v6638_v24 = vpop.eup %6637  ;;  %v6332_v5 = vmul.f32 -1.442695, %v4221_v35  ;;  %v4047_v17 = vpop.f32.mrf.mxu2  ;;  %v3850_v35 = vadd.f32 %v11675_v52, %v11674_v30 }
 0x6ee   : > { %v6333_v21 = vmul.f32 -1.442695, %v4222_v0  ;;  %v9769_v26 = vadd.f32 1.0, %v6638_v24  ;;  %v6640_v43 = vpop.eup %6639  ;;  %v4076_v4 = vpop.f32.mrf.mxu3  ;;  %v11676_v0 = vld [vmem:[#allocation28_spill] sm:$0xff]  ;;  %v3969_v47 = vadd.f32 %v11679_v13, %v3847_v54 }
 0x6ef   : > { %6641 = vpow2.f32 %v6332_v5  ;;  %v9777_v61 = vadd.f32 1.0, %v6640_v43  ;;  %v11677_v5 = vld [vmem:[#allocation36_spill] sm:$0xff] }
 0x6f0   : > { %v4159_v1 = vpop.f32.mrf.mxu0  ;;  %6643 = vpow2.f32 %v6333_v21  ;;  %v3851_v21 = vadd.f32 %v11677_v5, %v3729_v3  ;;  %v4294_v60 = vand.u32 2147483648, %v9769_v26  ;;  %v4292_v54 = vand.u32 2147483647, %v9769_v26 }
 0x6f1   : > { %v4207_v41 = vadd.f32 %v4159_v1, %v4085_v27  ;;  %v4188_v49 = vpop.f32.mrf.mxu1  ;;  %6645 = vrcp.f32 %v9769_v26  ;;  %v3852_v27 = vadd.f32 %v11678_v40, %v3730_v22  ;;  %v11680_v1 = vld [vmem:[#allocation34_spill] sm:$0xff]  ;;  %vm4288_vm11 = vweird.f32 %v9769_v26 }
 0x6f2   : > { %v4208_v32 = vadd.f32 %v4188_v49, %v4086_v15  ;;  %v3970_v43 = vadd.f32 %v11680_v1, %v3848_v62  ;;  %vm9863_vm14 = vcmp.eq.f32.partialorder %v4292_v54, 8.507059e+37  ;;  %vm4303_vm8 = vweird.f32 %v9777_v61 }
 0x6f3   : > { %v4223_v46 = vadd.f32 %v4207_v41, %v7624_v57  ;;  %v3971_v41 = vadd.f32 %v11681_v51, %v3849_v10  ;;  %v4307_v10 = vand.u32 2147483647, %v9777_v61 }
 0x6f4   : > { %v4224_v25 = vadd.f32 %v4208_v32, %v7624_v57  ;;  %v4092_v33 = vadd.f32 %v9765_v12, %v3970_v43 }
 0x6f5   : > { %v6334_v29 = vmul.f32 -1.442695, %v4223_v46  ;;  %v6642_v38 = vpop.eup %6641  ;;  %v3972_v46 = vadd.f32 %v11682_v39, %v3850_v35  ;;  %vm9894_vm13 = vcmp.eq.f32.partialorder %v4307_v10, 8.507059e+37 }
 0x6f6   : > { %v6335_v16 = vmul.f32 -1.442695, %v4224_v25  ;;  %v6644_v8 = vpop.eup %6643  ;;  %v9796_v36 = vadd.f32 1.0, %v6642_v38  ;;  %v3973_v25 = vadd.f32 %v11683_v14, %v3851_v21  ;;  %v11685_v38 = vld [vmem:[#allocation21_spill] sm:$0xff]  ;;  %v4078_v3 = vpop.f32.mrf.mxu3 }
 0x6f7   : > { %6647 = vpow2.f32 %v6334_v29  ;;  %v9798_v48 = vpop.eup %6645  ;;  %v9802_v59 = vadd.f32 1.0, %v6644_v8  ;;  %v4089_v29 = vadd.f32 %v9755_v20, %v11684_v2  ;;  %v3974_v7 = vadd.f32 %v11685_v38, %v3852_v27  ;;  %v11701_v38 = vld [vmem:[#allocation23_spill] sm:$0xff] }
 0x6f8   : > { %6649 = vrcp.f32 %v9777_v61  ;;  %v4161_v28 = vpop.f32.mrf.mxu0  ;;  %v4284_v44 = vmul.f32 %v9798_v48, %v9769_v26  ;;  %v4091_v20 = vadd.f32 %v9761_v58, %v3969_v47  ;;  %v9847_v58 = vadd.f32 %v4047_v17, %v3971_v41 }
 0x6f9   : > { %6651 = vpow2.f32 %v6335_v16  ;;  %v4209_v55 = vadd.f32 %v4161_v28, %v4087_v11  ;;  %v4190_v56 = vpop.f32.mrf.mxu1  ;;  %v4049_v28 = vpop.f32.mrf.mxu2  ;;  %v9849_v12 = vadd.f32 %v4076_v4, %v3972_v46  ;;  %v9861_v17 = vadd.f32 %v4078_v3, %v3974_v7 }
 0x6fa   : > { %v4210_v37 = vadd.f32 %v4190_v56, %v4088_v34  ;;  %6653 = vrcp.f32 %v9796_v36  ;;  %v4285_v50 = vsub.f32 1.0, %v4284_v44  ;;  %v9859_v27 = vadd.f32 %v4049_v28, %v3973_v25 }
 0x6fb   : > { %v4225_v24 = vadd.f32 %v4209_v55, %v11676_v0  ;;  %6655 = vrcp.f32 %v9802_v59  ;;  %v11687_v55 = vld [vmem:[#allocation19_spill] sm:$0xff]  ;;  %v4295_v4 = vor.u32 1.1754944e-38, %v4294_v60  ;;  %v4324_v1 = vand.u32 2147483648, %v9796_v36  ;;  %v11694_v60 = vld [vmem:[#allocation22_spill] sm:$0xff] }
 0x6fc   : > { %v4226_v9 = vadd.f32 %v4210_v37, %v11676_v0  ;;  %v4309_v37 = vand.u32 2147483648, %v9777_v61  ;;  %v4286_v5 = vmul.f32 %v9798_v48, %v4285_v50  ;;  %vm4289_vm4 = vweird.f32 %v9798_v48 }
 0x6fd   : > { %v6648_v15 = vpop.eup %6647  ;;  %v6336_v6 = vmul.f32 -1.442695, %v4225_v24  ;;  %v4322_v14 = vand.u32 2147483647, %v9796_v36  ;;  %v9898_v7 = vor.u32 1.1754944e-38, %v4324_v1  ;;  %vm9909_vm2 = vmor %vm4288_vm11, %vm4289_vm4  ;;  %vm4318_vm11 = vweird.f32 %v9796_v36 }
 0x6fe   : > { %v9818_v18 = vpop.eup %6649  ;;  %v9822_v49 = vadd.f32 1.0, %v6648_v15  ;;  %v6337_v53 = vmul.f32 -1.442695, %v4226_v9  ;;  %v9868_v15 = vor.u32 1.1754944e-38, %v4309_v37  ;;  %v4337_v63 = vand.u32 2147483647, %v9802_v59 }
 0x6ff   : > { %v6652_v32 = vpop.eup %6651  ;;  %6657 = vpow2.f32 %v6336_v6  ;;  %v4299_v11 = vmul.f32 %v9818_v18, %v9777_v61  ;;  %vm4304_vm6 = vweird.f32 %v9818_v18 }
 0x700   : > { %6659 = vrcp.f32 %v9822_v49  ;;  %v9832_v16 = vadd.f32 1.0, %v6652_v32  ;;  %v4164_v19 = vpop.f32.mrf.mxu0  ;;  %v9840_v34 = vpop.eup %6653  ;;  %v4354_v6 = vand.u32 2147483648, %v9822_v49  ;;  %vm4348_vm3 = vweird.f32 %v9822_v49  ;;  %vm9940_vm1 = vmor %vm4303_vm8, %vm4304_vm6 }
 0x701   : > { %6661 = vpow2.f32 %v6337_v53  ;;  %v4211_v8 = vadd.f32 %v4164_v19, %v4089_v29  ;;  %v4193_v23 = vpop.f32.mrf.mxu1  ;;  %v9845_v62 = vpop.eup %6655  ;;  %v4300_v52 = vsub.f32 1.0, %v4299_v11  ;;  %v9875_v44 = vmul.f32 %v9840_v34, %v9796_v36 }
 0x702   : > { %6663 = vrcp.f32 %v9832_v16  ;;  %v4212_v22 = vadd.f32 %v4193_v23, %v4090_v45  ;;  %v4287_v53 = vadd.f32 %v9798_v48, %v4286_v5  ;;  %v9892_v25 = vmul.f32 %v9845_v62, %v9802_v59 }
 0x703   : > { %v4227_v56 = vadd.f32 %v4211_v8, %v11687_v55  ;;  %v4301_v32 = vmul.f32 %v9818_v18, %v4300_v52  ;;  %v4315_v45 = vsub.f32 1.0, %v9875_v44  ;;  %v9902_v19 = vor.u32 1.1754944e-38, %v4354_v6  ;;  %v11709_v8 = vld [vmem:[#allocation29_spill] sm:$0xff] }
 0x704   : > { %v4228_v24 = vadd.f32 %v4212_v22, %v11687_v55  ;;  %v4369_v50 = vand.u32 2147483648, %v9832_v16  ;;  %v4291_v3 = vsel %vm9909_vm2, %v9798_v48, %v4287_v53  ;;  %v4330_v10 = vsub.f32 1.0, %v9892_v25 }
 0x705   : > { %v6658_v30 = vpop.eup %6657  ;;  %v6338_v35 = vmul.f32 -1.442695, %v4227_v56  ;;  %v4302_v56 = vadd.f32 %v9818_v18, %v4301_v32  ;;  %v4352_v48 = vand.u32 2147483647, %v9822_v49  ;;  %vm4363_vm5 = vweird.f32 %v9832_v16 }
 0x706   : > { %v9855_v21 = vpop.eup %6659  ;;  %v9857_v40 = vadd.f32 1.0, %v6658_v30  ;;  %v6339_v47 = vmul.f32 -1.442695, %v4228_v24  ;;  %v9934_v5 = vsel %vm9863_vm14, %v4295_v4, %v4291_v3  ;;  %vm4319_vm9 = vweird.f32 %v9840_v34 }
 0x707   : > { %v6662_v13 = vpop.eup %6661  ;;  %6665 = vpow2.f32 %v6338_v35  ;;  %v4344_v41 = vmul.f32 %v9855_v21, %v9822_v49  ;;  %v9929_v35 = vor.u32 1.1754944e-38, %v4369_v50  ;;  %v4306_v4 = vsel %vm9940_vm1, %v9818_v18, %v4302_v56 }
 0x708   : > { %v9871_v43 = vpop.eup %6663  ;;  %6667 = vrcp.f32 %v9857_v40  ;;  %v4166_v51 = vpop.f32.mrf.mxu0  ;;  %v9886_v46 = vadd.f32 1.0, %v6662_v13  ;;  %v4384_v30 = vand.u32 2147483648, %v9857_v40  ;;  %vm4349_vm10 = vweird.f32 %v9855_v21 }
 0x709   : > { %6669 = vpow2.f32 %v6339_v47  ;;  %v4359_v39 = vmul.f32 %v9871_v43, %v9832_v16  ;;  %v4213_v2 = vadd.f32 %v4166_v51, %v4091_v20  ;;  %v4195_v29 = vpop.f32.mrf.mxu1  ;;  %v4345_v20 = vsub.f32 1.0, %v4344_v41  ;;  %vm10000_vm14 = vmor %vm4348_vm3, %vm4349_vm10 }
 0x70a   : > { %v4214_v11 = vadd.f32 %v4195_v29, %v4092_v33  ;;  %6671 = vrcp.f32 %v9886_v46  ;;  %v4367_v47 = vand.u32 2147483647, %v9832_v16  ;;  %v4399_v44 = vand.u32 2147483648, %v9886_v46  ;;  %vm10072_vm10 = vmor %vm4318_vm11, %vm4319_vm9 }
 0x70b   : > { %v4229_v28 = vadd.f32 %v4213_v2, %v11694_v60  ;;  %v4360_v33 = vsub.f32 1.0, %v4359_v39  ;;  %v4346_v1 = vmul.f32 %v9855_v21, %v4345_v20  ;;  %vm4364_vm15 = vweird.f32 %v9871_v43 }
 0x70c   : > { %v4230_v54 = vadd.f32 %v4214_v11, %v11694_v60  ;;  %v9957_v41 = vor.u32 1.1754944e-38, %v4384_v30  ;;  %vm9960_vm12 = vcmp.eq.f32.partialorder %v4352_v48, 8.507059e+37  ;;  %v9970_v25 = vsel %vm9894_vm13, %v9868_v15, %v4306_v4  ;;  %vm10016_vm6 = vmor %vm4363_vm5, %vm4364_vm15 }
 0x70d   : > { %v6666_v23 = vpop.eup %6665  ;;  %v6340_v52 = vmul.f32 -1.442695, %v4229_v28  ;;  %v4361_v9 = vmul.f32 %v9871_v43, %v4360_v33  ;;  %v4316_v2 = vmul.f32 %v9840_v34, %v4315_v45  ;;  %v9974_v29 = vor.u32 1.1754944e-38, %v4399_v44 }
 0x70e   : > { %v9918_v22 = vpop.eup %6667  ;;  %v9921_v26 = vadd.f32 1.0, %v6666_v23  ;;  %v6341_v51 = vmul.f32 -1.442695, %v4230_v54  ;;  %v4347_v50 = vadd.f32 %v9855_v21, %v4346_v1  ;;  %vm9978_vm7 = vcmp.eq.f32.partialorder %v4367_v47, 8.507059e+37  ;;  %v10026_v47 = vld [vmem:[%s6995_s7 + $0x68] sm:$0xff]  ;;  %v11714_v54 = vld [vmem:[#allocation27_spill] sm:$0xff] }
 0x70f   : > { %v6670_v37 = vpop.eup %6669  ;;  %v4374_v61 = vmul.f32 %v9918_v22, %v9857_v40  ;;  %v4362_v20 = vadd.f32 %v9871_v43, %v4361_v9  ;;  %v4382_v45 = vand.u32 2147483647, %v9857_v40  ;;  %v9994_v56 = vmul.f32 %v9845_v62, %v4330_v10  ;;  %4548 = vrot.lane.b32.xlu1 %v10026_v47, %s6904_s5 }
 0x710   : > { %6673 = vrcp.f32 %v9921_v26  ;;  %v4169_v24 = vpop.f32.mrf.mxu0  ;;  %v9947_v6 = vadd.f32 1.0, %v6670_v37  ;;  %v9964_v32 = vpop.eup %6671  ;;  %vm4378_vm8 = vweird.f32 %v9857_v40  ;;  %vm4379_vm4 = vweird.f32 %v9918_v22 }
 0x711   : > { %6675 = vpow2.f32 %v6340_v52  ;;  %v4198_v18 = vpop.f32.mrf.mxu1  ;;  %v4215_v39 = vadd.f32 %v4169_v24, %v9847_v58  ;;  %v4375_v23 = vsub.f32 1.0, %v4374_v61  ;;  %v4389_v28 = vmul.f32 %v9964_v32, %v9886_v46 }
 0x712   : > { %6677 = vrcp.f32 %v9947_v6  ;;  %v4216_v11 = vadd.f32 %v4198_v18, %v9849_v12  ;;  %v4414_v37 = vand.u32 2147483648, %v9921_v26  ;;  %v10008_v10 = vadd.f32 %v9840_v34, %v4316_v2 }
 0x713   : > { %6679 = vpow2.f32 %v6341_v51  ;;  %v4231_v15 = vadd.f32 %v4215_v39, %v11701_v38  ;;  %v4351_v13 = vsel %vm10000_vm14, %v9855_v21, %v4347_v50  ;;  %v4376_v44 = vmul.f32 %v9918_v22, %v4375_v23  ;;  %v11708_v50 = vld [vmem:[#allocation24_spill] sm:$0xff] }
 0x714   : > { %v4232_v3 = vadd.f32 %v4216_v11, %v11701_v38  ;;  %v4366_v4 = vsel %vm10016_vm6, %v9871_v43, %v4362_v20  ;;  %v4390_v61 = vsub.f32 1.0, %v4389_v28  ;;  %vm4408_vm13 = vweird.f32 %v9921_v26 }
 0x715   : > { %6681 = vtanh.f32 %v4231_v15  ;;  %v4412_v21 = vand.u32 2147483647, %v9921_v26  ;;  %vm10042_vm2 = vcmp.eq.f32.partialorder %v4322_v14, 8.507059e+37  ;;  %vm4394_vm3 = vweird.f32 %v9964_v32 }
 0x716   : > { %v9982_v58 = vpop.eup %6673  ;;  %6683 = vtanh.f32 %v4232_v3  ;;  %v4356_v18 = vsel %vm9960_vm12, %v9902_v19, %v4351_v13  ;;  %v10053_v2 = vor.u32 1.1754944e-38, %v4414_v37  ;;  %v4371_v14 = vsel %vm9978_vm7, %v9929_v35, %v4366_v4  ;;  %vm10094_vm7 = vmor %vm4378_vm8, %vm4379_vm4 }
 0x717   : > { %v4404_v12 = vmul.f32 %v9982_v58, %v9921_v26  ;;  %v6676_v33 = vpop.eup %6675  ;;  %vm4393_vm5 = vweird.f32 %v9886_v46  ;;  %vm4423_vm1 = vweird.f32 %v9947_v6  ;;  %v4377_v19 = vadd.f32 %v9918_v22, %v4376_v44 }
 0x718   : > { %v4171_v30 = vpop.f32.mrf.mxu0  ;;  %v10010_v52 = vpop.eup %6677  ;;  %v10020_v24 = vadd.f32 1.0, %v6676_v33  ;;  %v4391_v20 = vmul.f32 %v9964_v32, %v4390_v61  ;;  %v4429_v28 = vand.u32 2147483648, %v9947_v6  ;;  %v4467_v35 = vmul.f32 %v4356_v18, %v11709_v8 }
 0x719   : > { %v4405_v48 = vsub.f32 1.0, %v4404_v12  ;;  %v6680_v1 = vpop.eup %6679  ;;  %v4419_v16 = vmul.f32 %v10010_v52, %v9947_v6  ;;  %v4217_v9 = vadd.f32 %v4171_v30, %v9859_v27  ;;  %vm4409_vm15 = vweird.f32 %v9982_v58  ;;  %v4200_v36 = vpop.f32.mrf.mxu1 }
 0x71a   : > { %6685 = vrcp.f32 %v10020_v24  ;;  %v10047_v27 = vadd.f32 1.0, %v6680_v1  ;;  %vm10077_vm12 = vcmp.eq.f32.partialorder %v4412_v21, 8.507059e+37  ;;  %v4468_v37 = vmul.f32 %v4371_v14, %v11714_v54  ;;  %vm10119_vm14 = vmor %vm4408_vm13, %vm4409_vm15 }
 0x71b   : > { %v4420_v43 = vsub.f32 1.0, %v4419_v16  ;;  %v4406_v39 = vmul.f32 %v9982_v58, %v4405_v48  ;;  %v4233_v11 = vadd.f32 %v4217_v9, %v11708_v50  ;;  %v6682_v23 = vpop.eup %6681  ;;  %vm4333_vm9 = vweird.f32 %v9802_v59  ;;  %vm10155_vm13 = vmor %vm4393_vm5, %vm4394_vm3 }
 0x71c   : > { %6687 = vrcp.f32 %v10047_v27  ;;  %v6684_v53 = vpop.eup %6683  ;;  %v4471_v12 = vmul.f32 %v6682_v23, %v9934_v5  ;;  %v4321_v5 = vsel %vm10072_vm10, %v9840_v34, %v10008_v10  ;;  %vm4424_vm11 = vweird.f32 %v10010_v52 }
 0x71d   : > { %v4421_v15 = vmul.f32 %v10010_v52, %v4420_v43  ;;  %v4472_v30 = vmul.f32 %v6684_v53, %v9970_v25  ;;  %v4407_v25 = vadd.f32 %v9982_v58, %v4406_v39  ;;  %6689 = vtanh.f32 %v4233_v11  ;;  %vm10136_vm4 = vmor %vm4423_vm1, %vm4424_vm11 }
 0x71e   : > { %v10100_v13 = vadd.f32 %v4471_v12, %v4467_v35  ;;  %v4381_v44 = vsel %vm10094_vm7, %v9918_v22, %v4377_v19  ;;  %v4427_v16 = vand.u32 2147483647, %v9947_v6  ;;  %v4430_v4 = vor.u32 1.1754944e-38, %v4429_v28 }
 0x71f   : > { %v4422_v34 = vadd.f32 %v10010_v52, %v4421_v15  ;;  %v10105_v1 = vadd.f32 %v4472_v30, %v4468_v37  ;;  %v4218_v9 = vadd.f32 %v4200_v36, %v9861_v17  ;;  %v4326_v22 = vsel %vm10042_vm2, %v9898_v7, %v4321_v5 }
 0x720   : > { %v10088_v49 = vpop.eup %6685  ;;  %6691 = vtanh.f32 %v10100_v13  ;;  %vm4383_vm8 = vcmp.eq.f32.partialorder %v4382_v45, 8.507059e+37  ;;  %v4411_v17 = vsel %vm10119_vm14, %v9982_v58, %v4407_v25  ;;  %v4332_v58 = vadd.f32 %v9845_v62, %v9994_v56  ;;  %v11723_v56 = vld [vmem:[#allocation30_spill] sm:$0xff] }
 0x721   : > { %v4434_v10 = vmul.f32 %v10088_v49, %v10020_v24  ;;  %6693 = vtanh.f32 %v10105_v1  ;;  %v4386_v7 = vsel %vm4383_vm8, %v9957_v41, %v4381_v44  ;;  %v4234_v40 = vadd.f32 %v4218_v9, %v11708_v50 }
 0x722   : > { %v10113_v61 = vpop.eup %6687  ;;  %v4426_v45 = vsel %vm10136_vm4, %v10010_v52, %v4422_v34  ;;  %vm4334_vm6 = vweird.f32 %v9845_v62  ;;  %v4392_v6 = vadd.f32 %v9964_v32, %v4391_v20  ;;  %v4339_v52 = vand.u32 2147483648, %v9802_v59  ;;  %v11726_v59 = vld [vmem:[#allocation31_spill] sm:$0xff] }
 0x723   : > { %v4435_v43 = vsub.f32 1.0, %v4434_v10  ;;  %v4449_v18 = vmul.f32 %v10113_v61, %v10047_v27  ;;  %v6690_v51 = vpop.eup %6689  ;;  %v4397_v14 = vand.u32 2147483647, %v9886_v46  ;;  %6695 = vtanh.f32 %v4234_v40  ;;  %vm10174_vm5 = vmor %vm4333_vm9, %vm4334_vm6  ;;  %v10209_v10 = vld [vmem:[%s6995_s7 + $0x78] sm:$0xff] }
 0x724   : > { %vm4428_vm2 = vcmp.eq.f32.partialorder %v4427_v16, 8.507059e+37  ;;  %v4469_v11 = vmul.f32 %v4386_v7, %v11723_v56  ;;  %v4473_v23 = vmul.f32 %v6690_v51, %v4326_v22  ;;  %v4396_v15 = vsel %vm10155_vm13, %v9964_v32, %v4392_v6 }
 0x725   : > { %v4436_v39 = vmul.f32 %v10088_v49, %v4435_v43  ;;  %v4416_v53 = vsel %vm10077_vm12, %v10053_v2, %v4411_v17  ;;  %v4431_v20 = vsel %vm4428_vm2, %v4430_v4, %v4426_v45  ;;  %vm4439_vm3 = vweird.f32 %v10088_v49 }
 0x726   : > { %v6692_v19 = vpop.eup %6691  ;;  %v4450_v28 = vsub.f32 1.0, %v4449_v18  ;;  %v10180_v32 = vadd.f32 %v4473_v23, %v4469_v11  ;;  %v4336_v2 = vsel %vm10174_vm5, %v9845_v62, %v4332_v58  ;;  %vm4398_vm1 = vcmp.eq.f32.partialorder %v4397_v14, 8.507059e+37  ;;  %v10225_v18 = vld [vmem:[%s6995_s7 + $0x60] sm:$0xff] }
 0x727   : > { %v6694_v8 = vpop.eup %6693  ;;  %v10178_v35 = vmul.f32 %v6692_v19, %v4416_v53  ;;  %v4437_v12 = vadd.f32 %v10088_v49, %v4436_v39  ;;  %v4340_v33 = vor.u32 1.1754944e-38, %v4339_v52  ;;  %v4401_v54 = vsel %vm4398_vm1, %v9974_v29, %v4396_v15  ;;  %v11727_v15 = vld [vmem:[#allocation5_spill] sm:$0xff]  ;;  %v11728_v53 = vld [vmem:[#allocation6_spill] sm:$0xff] }
 0x728   : > { %v10186_v3 = vmul.f32 %v6694_v8, %v4431_v20  ;;  %v4444_v37 = vand.u32 2147483648, %v10020_v24  ;;  %6697 = vtanh.f32 %v10180_v32  ;;  %vm4338_vm10 = vcmp.eq.f32.partialorder %v4337_v63, 8.507059e+37 }
 0x729   : > { %4564 = vrot.lane.b32.xlu2 %v10178_v35, %s6904_s5  ;;  %v6696_v62 = vpop.eup %6695  ;;  %vm4438_vm15 = vweird.f32 %v10020_v24  ;;  %v4442_v30 = vand.u32 2147483647, %v10020_v24  ;;  %v4451_v5 = vmul.f32 %v10113_v61, %v4450_v28  ;;  %v4341_v36 = vsel %vm4338_vm10, %v4340_v33, %v4336_v2 }
 0x72a   : > { %4552 = vrot.lane.b32.xlu0 %v10186_v3, %s6904_s5  ;;  %vm4440_vm12 = vmor %vm4438_vm15, %vm4439_vm3  ;;  %v4470_v63 = vmul.f32 %v4401_v54, %v11726_v59  ;;  %v4474_v29 = vmul.f32 %v6696_v62, %v4341_v36  ;;  %v4445_v25 = vor.u32 1.1754944e-38, %v4444_v37  ;;  %vm4454_vm7 = vweird.f32 %v10113_v61 }
 0x72b   : > { %v4441_v48 = vsel %vm4440_vm12, %v10088_v49, %v4437_v12  ;;  %vm4443_vm9 = vcmp.eq.f32.partialorder %v4442_v30, 8.507059e+37  ;;  %v4452_v24 = vadd.f32 %v10113_v61, %v4451_v5  ;;  %v4459_v4 = vand.u32 2147483648, %v10047_v27 }
 0x72c   : > { %v10204_v34 = vadd.f32 %v4474_v29, %v4470_v63  ;;  %v4446_v16 = vsel %vm4443_vm9, %v4445_v25, %v4441_v48  ;;  %vm4453_vm11 = vweird.f32 %v10047_v27  ;;  %v4457_v49 = vand.u32 2147483647, %v10047_v27  ;;  %v10234_v27 = vld [vmem:[%s6995_s7 + $0x70] sm:$0xff] }
 0x72d   : > { %vm4455_vm14 = vmor %vm4453_vm11, %vm4454_vm7  ;;  %v4460_v43 = vor.u32 1.1754944e-38, %v4459_v4  ;;  %vm11731_vm6 = vcmask 121856   ;;  %vm11745_vm7 = vcmask 138240  }
 0x72e   : > { %v6698_v44 = vpop.eup %6697  ;;  %6699 = vtanh.f32 %v10204_v34  ;;  %v4456_v21 = vsel %vm4455_vm14, %v10113_v61, %v4452_v24  ;;  %vm4458_vm8 = vcmp.eq.f32.partialorder %v4457_v49, 8.507059e+37  ;;  %vm11732_vm13 = vmmov %vm11731_vm6 }
 0x72f   : > { %v10215_v9 = vmul.f32 %v6698_v44, %v4446_v16  ;;  %v4461_v17 = vsel %vm4458_vm8, %v4460_v43, %v4456_v21  ;;  %v6841_v16 = vld [vmem:[%s11204_s1 + $0x20] sm:$0xff]  ;;  %vm11733_vm2 = vmmov %vm11731_vm6 }
 0x730   : > { %vm11734_vm3 = vmmov %vm11733_vm2 }
 0x731   : > { %4550 = vrot.lane.b32.xlu2 %v10209_v10, %s6904_s5  ;;  %vm11737_vm5 = vmmov %vm11733_vm2 }
 0x732   : > { %4566 = vrot.lane.b32.xlu0 %v10215_v9, %s6904_s5  ;;  %vm11738_vm1 = vmmov %vm11733_vm2 }
 0x733   : > { %vm11740_vm10 = vmmov %vm11738_vm1 }
 0x734   : > { %v6700_v22 = vpop.eup %6699  ;;  %vm11741_vm15 = vmmov %vm11738_vm1 }
 0x735   : > { %v10222_v26 = vmul.f32 %v6700_v22, %v4461_v17  ;;  %vm11746_vm11 = vmmov %vm11745_vm7 }
 0x736   : > { %vm11747_vm14 = vmmov %vm11745_vm7 }
 0x737   : > { %4554 = vrot.lane.b32.xlu1 %v10222_v26, %s6904_s5  ;;  %vm11748_vm8 = vmmov %vm11745_vm7 }
 0x739   : > { %4716 = vrot.lane.b32.xlu2 %v10186_v3, %s6906_s9 }
 0x73a   : > { %4560 = vrot.lane.b32.xlu0 %v10225_v18, %s6904_s5 }
 0x73f   : > { %4562 = vrot.lane.b32.xlu1 %v10234_v27, %s6904_s5 }
 0x741   : > { %4516 = vrot.lane.b32.xlu2 %v10178_v35, %s6905_s8 }
 0x742   : > { %4500 = vrot.lane.b32.xlu0 %v10186_v3, %s6905_s8 }
 0x747   : > { %4728 = vrot.lane.b32.xlu1 %v10178_v35, %s6906_s9 }
 0x749   : > { %4714 = vrot.lane.b32.xlu2 %v10209_v10, %s6906_s9 }
 0x74a   : > { %4724 = vrot.lane.b32.xlu0 %v10225_v18, %s6906_s9 }
 0x74f   : > { %4712 = vrot.lane.b32.xlu1 %v10026_v47, %s6906_s9 }
 0x751   : > { %4496 = vrot.lane.b32.xlu2 %v10026_v47, %s6905_s8 }
 0x752   : > { %4718 = vrot.lane.b32.xlu0 %v10222_v26, %s6906_s9 }
 0x757   : > { %4726 = vrot.lane.b32.xlu1 %v10234_v27, %s6906_s9 }
 0x759   : > { %4730 = vrot.lane.b32.xlu2 %v10215_v9, %s6906_s9 }
 0x75a   : > { %4518 = vrot.lane.b32.xlu0 %v10215_v9, %s6905_s8 }
 0x75f   : > { %4502 = vrot.lane.b32.xlu1 %v10222_v26, %s6905_s8 }
 0x761   : > { %4514 = vrot.lane.b32.xlu2 %v10234_v27, %s6905_s8 }
 0x762   : > { %4498 = vrot.lane.b32.xlu0 %v10209_v10, %s6905_s8 }
 0x767   : > { %4512 = vrot.lane.b32.xlu1 %v10225_v18, %s6905_s8 }
 0x769   : > { %4850 = vrot.lane.b32.xlu2 %v10178_v35, %s6907_s10 }
 0x76a   : > { %4838 = vrot.lane.b32.xlu0 %v10186_v3, %s6907_s10 }
 0x76f   : > { %4834 = vrot.lane.b32.xlu1 %v10026_v47, %s6907_s10 }
 0x771   : > { %4836 = vrot.lane.b32.xlu2 %v10209_v10, %s6907_s10 }
 0x772   : > { %4852 = vrot.lane.b32.xlu0 %v10215_v9, %s6907_s10 }
 0x777   : > { %4840 = vrot.lane.b32.xlu1 %v10222_v26, %s6907_s10 }
 0x779   : > { %5172 = vrot.lane.b32.xlu2 %v10178_v35, %s6909_s12 }
 0x77a   : > { %4846 = vrot.lane.b32.xlu0 %v10225_v18, %s6907_s10 }
 0x77f   : > { %4848 = vrot.lane.b32.xlu1 %v10234_v27, %s6907_s10 }
 0x781   : > { %5166 = vrot.lane.b32.xlu2 %v10026_v47, %s6909_s12  ;;  %v4549_v6 = vpop.permute.xlu1 %4548 }
 0x782   : > { %5174 = vrot.lane.b32.xlu0 %v10186_v3, %s6909_s12 }
 0x783   : > { %v4565_v61 = vpop.permute.xlu2 %4564 }
 0x787   : > { %5052 = vrot.lane.b32.xlu1 %v10186_v3, %s6908_s11 }
 0x789   : > { %5042 = vrot.lane.b32.xlu2 %v10225_v18, %s6908_s11 }
 0x78a   : > { %5050 = vrot.lane.b32.xlu0 %v10178_v35, %s6908_s11 }
 0x78b   : > { %v4551_v7 = vpop.permute.xlu2 %4550 }
 0x78f   : > { %5164 = vrot.lane.b32.xlu1 %v10225_v18, %s6909_s12 }
 0x791   : > { %5178 = vrot.lane.b32.xlu2 %v10222_v26, %s6909_s12 }
 0x792   : > { %5168 = vrot.lane.b32.xlu0 %v10234_v27, %s6909_s12 }
 0x793   : > { %v10302_v40 = vpop.permute.xlu2 %4716 }
 0x797   : > { %5170 = vrot.lane.b32.xlu1 %v10209_v10, %s6909_s12 }
 0x799   : > { %5054 = vrot.lane.b32.xlu2 %v10215_v9, %s6908_s11 }
 0x79a   : > { %5056 = vrot.lane.b32.xlu0 %v10222_v26, %s6908_s11 }
 0x79b   : > { %v10310_v45 = vpop.permute.xlu2 %4516 }
 0x79c   : > { %v4553_v58 = vpop.permute.xlu0 %4552 }
 0x79d   : > { %v4570_v39 = vsel %vm325_vm0, %v4565_v61, %v4553_v58  ;;  %v4582_v52 = vsel %vm325_vm0, %v4553_v58, %v4565_v61  ;;  %v11735_v58 = vld [vmem:[#allocation7_spill] sm:$0xff] }
 0x79e   : > { %v4588_v19 = vmul.f32 %v4582_v52, %v11727_v15  ;;  %v4589_v20 = vmul.f32 %v4570_v39, %v11728_v53 }
 0x79f   : > { %5176 = vrot.lane.b32.xlu1 %v10215_v9, %s6909_s12 }
 0x7a1   : > { %5048 = vrot.lane.b32.xlu2 %v10209_v10, %s6908_s11 }
 0x7a2   : > { %5044 = vrot.lane.b32.xlu0 %v10026_v47, %s6908_s11 }
 0x7a3   : > { %v10318_v51 = vpop.permute.xlu2 %4714 }
 0x7a4   : > { %v4567_v41 = vpop.permute.xlu0 %4566 }
 0x7a7   : > { %5046 = vrot.lane.b32.xlu1 %v10234_v27, %s6908_s11 }
 0x7a9   : > { %5296 = vrot.lane.b32.xlu2 %v10186_v3, %s6910_s13  ;;  %v4555_v14 = vpop.permute.xlu1 %4554 }
 0x7aa   : > { %5416 = vrot.lane.b32.xlu0 %v10178_v35, %s6911_s23  ;;  %v4571_v56 = vsel %vm325_vm0, %v4567_v41, %v4555_v14  ;;  %v4583_v11 = vsel %vm325_vm0, %v4555_v14, %v4567_v41  ;;  %v11736_v41 = vld [vmem:[#allocation8_spill] sm:$0xff] }
 0x7ab   : > { %v10330_v23 = vpop.permute.xlu2 %4496  ;;  %v4590_v28 = vmul.f32 %v4583_v11, %v11727_v15  ;;  %v4591_v46 = vmul.f32 %v4571_v56, %v11728_v53 }
 0x7ac   : > { %v4561_v8 = vpop.permute.xlu0 %4560 }
 0x7ad   : > { %v4594_v2 = vpack.c.bf16 %v4590_v28, %v4588_v19  ;;  %v4595_v12 = vpack.c.bf16 %v4591_v46, %v4589_v20  ;;  %v4568_v33 = vsel %vm325_vm0, %v4561_v8, %v4549_v6  ;;  %v4580_v54 = vsel %vm325_vm0, %v4549_v6, %v4561_v8  ;;  %v11739_v46 = vld [vmem:[#allocation11_spill] sm:$0xff] }
 0x7ae   : > { %v4584_v62 = vmul.f32 %v4580_v54, %v11727_v15  ;;  %v4585_v30 = vmul.f32 %v4568_v33, %v11728_v53  ;;  %v4962_v8 = vmul.f32 %v10215_v9, %v11739_v46  ;;  %v6842_v33 = vld [vmem:[%s11204_s1 + $0x28] sm:$0xff] }
 0x7af   : > { %5418 = vrot.lane.b32.xlu1 %v10186_v3, %s6911_s23  ;;  %4602 = vmatpush.bf16.msrb.mxu2 %v4594_v2  ;;  %v11743_v54 = vld [vmem:[#allocation12_spill] sm:$0xff] }
 0x7b0   : > { %4631 = vmatpush.bf16.msrb.mxu3 %v4595_v12 }
 0x7b1   : > { %5408 = vrot.lane.b32.xlu2 %v10225_v18, %s6911_s23  ;;  %v4563_v37 = vpop.permute.xlu1 %4562 }
 0x7b2   : > { %5410 = vrot.lane.b32.xlu0 %v10026_v47, %s6911_s23  ;;  %v4569_v5 = vsel %vm325_vm0, %v4563_v37, %v4551_v7  ;;  %v4581_v36 = vsel %vm325_vm0, %v4551_v7, %v4563_v37  ;;  %vm11729_vm0 = vcmask 261120   ;;  %v4963_v37 = vmul.f32 %v10222_v26, %v11743_v54 }
 0x7b3   : > { %v4731_v59 = vpop.permute.xlu2 %4730  ;;  %v4586_v63 = vmul.f32 %v4581_v36, %v11727_v15  ;;  %v4587_v29 = vmul.f32 %v4569_v5, %v11728_v53  ;;  %vm11730_vm4 = vmmov %vm11729_vm0  ;;  %v4961_v5 = vmul.f32 %v10186_v3, %v11743_v54 }
 0x7b4   : > { %v4501_v48 = vpop.permute.xlu0 %4500  ;;  %vm11742_vm12 = vmmov %vm11729_vm0 }
 0x7b5   : > { %v4592_v25 = vpack.c.bf16 %v4586_v63, %v4584_v62  ;;  %v4593_v24 = vpack.c.bf16 %v4587_v29, %v4585_v30  ;;  %vm11744_vm9 = vmmov %vm11729_vm0  ;;  %v4967_v29 = vpack.c.bf16 %v4963_v37, %v4961_v5 }
 0x7b7   : > { %5294 = vrot.lane.b32.xlu1 %v10178_v35, %s6910_s13  ;;  %4603 = vmatpush.bf16.msrb.mxu2 %v4592_v25 }
 0x7b8   : > { %4632 = vmatpush.bf16.msrb.mxu3 %v4593_v24  ;;  %v4534_v24 = vsel %vm11746_vm11, %v4501_v48, %v10310_v45 }
 0x7b9   : > { %5414 = vrot.lane.b32.xlu2 %v10209_v10, %s6911_s23  ;;  %v4729_v44 = vpop.permute.xlu1 %4728 }
 0x7ba   : > { %5286 = vrot.lane.b32.xlu0 %v10225_v18, %s6910_s13  ;;  %6346 = vmatmul.msk.bf16.vlgmr.msrb.gmra.mxu2 %vm11729_vm0, %v6841_v16  ;;  %v4734_v43 = vsel %vm11731_vm6, %v4729_v44, %v10302_v40  ;;  %v4746_v22 = vsel %vm11732_vm13, %v10302_v40, %v4729_v44  ;;  %vm11751_vm0 = vmmov %vm11745_vm7 }
 0x7bb   : > { %6350 = vmatmul.msk.bf16.vlgmr.msrb.gmra.mxu3 %vm11730_vm4, %v6841_v16  ;;  %v10361_v4 = vpop.permute.xlu2 %4514  ;;  %v4752_v6 = vmul.f32 %v4746_v22, %v11735_v58  ;;  %v4753_v39 = vmul.f32 %v4734_v43, %v11736_v41  ;;  %v11749_v16 = vld [vmem:[#allocation3_spill] sm:$0xff]  ;;  %vm11752_vm4 = vmmov %vm11751_vm0 }
 0x7bc   : > { %v4725_v49 = vpop.permute.xlu0 %4724  ;;  %vm11753_vm6 = vmmov %vm11751_vm0 }
 0x7bd   : > { %vm11754_vm13 = vmmov %vm11751_vm0 }
 0x7bf   : > { %5412 = vrot.lane.b32.xlu1 %v10234_v27, %s6911_s23 }
 0x7c1   : > { %5420 = vrot.lane.b32.xlu2 %v10215_v9, %s6911_s23  ;;  %v4713_v21 = vpop.permute.xlu1 %4712 }
 0x7c2   : > { %5422 = vrot.lane.b32.xlu0 %v10222_v26, %s6911_s23  ;;  %v4732_v11 = vsel %vm11737_vm5, %v4725_v49, %v4713_v21  ;;  %v4744_v15 = vsel %vm11738_vm1, %v4713_v21, %v4725_v49  ;;  %v4540_v49 = vmul.f32 %v4534_v24, %v11749_v16  ;;  %v11750_v21 = vld [vmem:[#allocation4_spill] sm:$0xff] }
 0x7c3   : > { %v10377_v52 = vpop.permute.xlu2 %4850  ;;  %v4748_v53 = vmul.f32 %v4744_v15, %v11735_v58  ;;  %v4749_v20 = vmul.f32 %v4732_v11, %v11736_v41  ;;  %v6843_v15 = vld [vmem:[%s11204_s1 + $0x30] sm:$0xff] }
 0x7c4   : > { %v4719_v17 = vpop.permute.xlu0 %4718 }
 0x7c5   : > { %v4735_v61 = vsel %vm11733_vm2, %v4731_v59, %v4719_v17  ;;  %v4747_v7 = vsel %vm11734_vm3, %v4719_v17, %v4731_v59  ;;  %vm11755_vm2 = vmmov %vm11744_vm9 }
 0x7c6   : > { %v4754_v14 = vmul.f32 %v4747_v7, %v11735_v58  ;;  %v4755_v56 = vmul.f32 %v4735_v61, %v11736_v41  ;;  %vm11756_vm3 = vmmov %vm11755_vm2 }
 0x7c7   : > { %5300 = vrot.lane.b32.xlu1 %v10222_v26, %s6910_s13  ;;  %v4522_v26 = vsel %vm11745_vm7, %v10310_v45, %v4501_v48  ;;  %vm11757_vm5 = vmmov %vm11755_vm2 }
 0x7c8   : > { %v4758_v40 = vpack.c.bf16 %v4754_v14, %v4752_v6  ;;  %v4759_v19 = vpack.c.bf16 %v4755_v56, %v4753_v39  ;;  %v4541_v43 = vmul.f32 %v4522_v26, %v11750_v21  ;;  %vm11758_vm1 = vmmov %vm11755_vm2 }
 0x7c9   : > { %5290 = vrot.lane.b32.xlu2 %v10234_v27, %s6910_s13  ;;  %v4727_v28 = vpop.permute.xlu1 %4726  ;;  %vm11763_vm7 = vmmov %vm11758_vm1 }
 0x7ca   : > { %5298 = vrot.lane.b32.xlu0 %v10215_v9, %s6910_s13  ;;  %4766 = vmatpush.bf16.msra.mxu2 %v4758_v40  ;;  %v4733_v2 = vsel %vm11740_vm10, %v4727_v28, %v10318_v51  ;;  %v4745_v12 = vsel %vm11741_vm15, %v10318_v51, %v4727_v28  ;;  %v4960_v51 = vmul.f32 %v10178_v35, %v11739_v46  ;;  %vm11759_vm10 = vcmask 7168   ;;  %vm11766_vm11 = vmmov %vm11758_vm1 }
 0x7cb   : > { %6347 = vmatmul.msk.bf16.gmra.mxu2 %vm11742_vm12, %v6842_v33  ;;  %4795 = vmatpush.bf16.msra.mxu3 %v4759_v19  ;;  %v4750_v62 = vmul.f32 %v4745_v12, %v11735_v58  ;;  %v4751_v9 = vmul.f32 %v4733_v2, %v11736_v41  ;;  %v10410_v25 = vpop.permute.xlu2 %4836  ;;  %vm11760_vm15 = vmmov %vm11759_vm10 }
 0x7cc   : > { %6351 = vmatmul.msk.bf16.gmra.mxu3 %vm11744_vm9, %v6842_v33  ;;  %v4519_v30 = vpop.permute.xlu0 %4518  ;;  %v4966_v63 = vpack.c.bf16 %v4962_v8, %v4960_v51  ;;  %vm11761_vm12 = vmmov %vm11759_vm10  ;;  %v11764_v51 = vld [vmem:[#allocation9_spill] sm:$0xff] }
 0x7cd   : > { %v4756_v36 = vpack.c.bf16 %v4750_v62, %v4748_v53  ;;  %v4757_v59 = vpack.c.bf16 %v4751_v9, %v4749_v20  ;;  %vm11762_vm9 = vmmov %vm11759_vm10 }
 0x7cf   : > { %4767 = vmatpush.bf16.msra.mxu2 %v4756_v36  ;;  %4796 = vmatpush.bf16.msra.mxu3 %v4757_v59  ;;  %v11765_v36 = vld [vmem:[#allocation10_spill] sm:$0xff] }
 0x7d0   : > { %5288 = vrot.lane.b32.xlu1 %v10026_v47, %s6910_s13 }
 0x7d1   : > { %v4503_v35 = vpop.permute.xlu1 %4502 }
 0x7d2   : > { %5292 = vrot.lane.b32.xlu0 %v10209_v10, %s6910_s13  ;;  %v4523_v3 = vsel %vm11747_vm14, %v4519_v30, %v4503_v35  ;;  %v4535_v44 = vsel %vm11748_vm8, %v4503_v35, %v4519_v30  ;;  %v6845_v30 = vld [vmem:[%s11204_s1 + $0x38] sm:$0xff]  ;;  %vm11767_vm14 = vmmov %vm11762_vm9 }
 0x7d3   : > { %4974 = vmatpush.bf16.msrb.mxu2 %v4966_v63  ;;  %5003 = vmatpush.bf16.msrb.mxu3 %v4967_v29  ;;  %v4542_v22 = vmul.f32 %v4535_v44, %v11749_v16  ;;  %v4543_v45 = vmul.f32 %v4523_v3, %v11750_v21  ;;  %v10430_v41 = vpop.permute.xlu2 %5172  ;;  %vm11768_vm8 = vmmov %vm11762_vm9 }
 0x7d4   : > { %v4499_v48 = vpop.permute.xlu0 %4498 }
 0x7d5   : > { %v4546_v17 = vpack.c.bf16 %v4542_v22, %v4540_v49  ;;  %v4547_v61 = vpack.c.bf16 %v4543_v45, %v4541_v43  ;;  %v4521_v7 = vsel %vm11751_vm0, %v10361_v4, %v4499_v48  ;;  %v4533_v58 = vsel %vm11752_vm4, %v4499_v48, %v10361_v4  ;;  %vm11769_vm0 = vmmov %vm11768_vm8  ;;  %v6846_v45 = vld [vmem:[%s11204_s1 + $0x8] sm:$0xff] }
 0x7d6   : > { %v4538_v39 = vmul.f32 %v4533_v58, %v11749_v16  ;;  %v4539_v14 = vmul.f32 %v4521_v7, %v11750_v21  ;;  %vm11770_vm4 = vmmov %vm11769_vm0 }
 0x7d7   : > { %4660 = vmatpush.bf16.msra.mxu0 %v4546_v17  ;;  %4689 = vmatpush.bf16.msra.mxu1 %v4547_v61 }
 0x7d9   : > { %v4513_v6 = vpop.permute.xlu1 %4512 }
 0x7da   : > { %v4520_v56 = vsel %vm11753_vm6, %v4513_v6, %v10330_v23  ;;  %v4532_v11 = vsel %vm11754_vm13, %v10330_v23, %v4513_v6  ;;  %v6844_v23 = vld [vmem:[%s11204_s1] sm:$0xff]  ;;  %vm11771_vm6 = vmmov %vm11758_vm1  ;;  %v4956_v6 = vmul.f32 %v10225_v18, %v11739_v46 }
 0x7db   : > { %6348 = vmatmul.msk.bf16.gmra.mxu2 %vm11755_vm2, %v6843_v15  ;;  %v4536_v4 = vmul.f32 %v4532_v11, %v11749_v16  ;;  %v4537_v40 = vmul.f32 %v4520_v56, %v11750_v21  ;;  %v10450_v8 = vpop.permute.xlu2 %5166  ;;  %vm11772_vm13 = vmmov %vm11758_vm1 }
 0x7dc   : > { %6352 = vmatmul.msk.bf16.gmra.mxu3 %vm11756_vm3, %v6843_v15  ;;  %v4839_v19 = vpop.permute.xlu0 %4838  ;;  %vm11773_vm2 = vmmov %vm11758_vm1 }
 0x7dd   : > { %v4544_v53 = vpack.c.bf16 %v4538_v39, %v4536_v4  ;;  %v4545_v20 = vpack.c.bf16 %v4539_v14, %v4537_v40  ;;  %v4856_v12 = vsel %vm11759_vm10, %v10377_v52, %v4839_v19  ;;  %v4868_v33 = vsel %vm11760_vm15, %v4839_v19, %v10377_v52  ;;  %v6847_v40 = vld [vmem:[%s11204_s1 + $0x40] sm:$0xff]  ;;  %vm11774_vm3 = vmmov %vm11758_vm1 }
 0x7de   : > { %v4874_v5 = vmul.f32 %v4868_v33, %v11764_v51  ;;  %v4875_v59 = vmul.f32 %v4856_v12, %v11765_v36  ;;  %v4957_v39 = vmul.f32 %v10026_v47, %v11743_v54  ;;  %v4959_v14 = vmul.f32 %v10209_v10, %v11743_v54  ;;  %v6848_v10 = vld [vmem:[%s11204_s1 + $0x10] sm:$0xff] }
 0x7df   : > { %4661 = vmatpush.bf16.msra.mxu0 %v4544_v53  ;;  %4690 = vmatpush.bf16.msra.mxu1 %v4545_v20  ;;  %vm11776_vm10 = vcmask 1039360   ;;  %v6849_v20 = vld [vmem:[%s11204_s1 + $0x48] sm:$0xff]  ;;  %v11782_v33 = vld [vmem:[#allocation13_spill] sm:$0xff] }
 0x7e0   : > { %v4965_v15 = vpack.c.bf16 %v4959_v14, %v4957_v39  ;;  %vm11777_vm15 = vmmov %vm11776_vm10 }
 0x7e1   : > { %v4835_v28 = vpop.permute.xlu1 %4834 }
 0x7e2   : > { %6354 = vmatmul.msk.bf16.vlgmr.msra.gmra.mxu0 %vm11757_vm5, %v6844_v23  ;;  %6358 = vmatmul.msk.bf16.vlgmr.msra.gmra.mxu1 %vm11758_vm1, %v6844_v23  ;;  %vm11775_vm5 = vmmov %vm11758_vm1 }
 0x7e3   : > { %v10467_v26 = vpop.permute.xlu2 %5042  ;;  %5004 = vmatpush.bf16.msrb.mxu3 %v4965_v15 }
 0x7e4   : > { %v4853_v2 = vpop.permute.xlu0 %4852 }
 0x7e9   : > { %v4841_v37 = vpop.permute.xlu1 %4840 }
 0x7ea   : > { %v4857_v62 = vsel %vm11761_vm12, %v4853_v2, %v4841_v37  ;;  %v4869_v9 = vsel %vm11762_vm9, %v4841_v37, %v4853_v2  ;;  %vm11778_vm12 = vmmov %vm11758_vm1 }
 0x7eb   : > { %6349 = vmatmul.msk.bf16.gmra.mxu2 %vm11763_vm7, %v6845_v30  ;;  %v4876_v63 = vmul.f32 %v4869_v9, %v11764_v51  ;;  %v4877_v29 = vmul.f32 %v4857_v62, %v11765_v36  ;;  %v5179_v56 = vpop.permute.xlu2 %5178  ;;  %vm11779_vm9 = vmmov %vm11758_vm1  ;;  %v11783_v62 = vld [vmem:[#allocation14_spill] sm:$0xff] }
 0x7ec   : > { %6353 = vmatmul.msk.bf16.gmra.mxu3 %vm11766_vm11, %v6845_v30  ;;  %v4847_v52 = vpop.permute.xlu0 %4846  ;;  %vm11780_vm7 = vmmov %vm11776_vm10 }
 0x7ed   : > { %v4880_v24 = vpack.c.bf16 %v4876_v63, %v4874_v5  ;;  %v4881_v35 = vpack.c.bf16 %v4877_v29, %v4875_v59  ;;  %v4854_v3 = vsel %vm11767_vm14, %v4847_v52, %v4835_v28  ;;  %v4866_v44 = vsel %vm11768_vm8, %v4835_v28, %v4847_v52  ;;  %vm11781_vm11 = vmmov %vm11780_vm7 }
 0x7ee   : > { %v4870_v49 = vmul.f32 %v4866_v44, %v11764_v51  ;;  %v4871_v21 = vmul.f32 %v4854_v3, %v11765_v36  ;;  %vm11784_vm14 = vcmask 924672   ;;  %v11790_v3 = vld [vmem:[#allocation15_spill] sm:$0xff] }
 0x7ef   : > { %4888 = vmatpush.bf16.msrb.mxu0 %v4880_v24  ;;  %4917 = vmatpush.bf16.msrb.mxu1 %v4881_v35  ;;  %vm11785_vm8 = vmmov %vm11784_vm14  ;;  %v6850_v35 = vld [vmem:[%s11204_s1 + $0x18] sm:$0xff] }
 0x7f1   : > { %v4849_v16 = vpop.permute.xlu1 %4848 }
 0x7f2   : > { %v4855_v43 = vsel %vm11769_vm0, %v4849_v16, %v10410_v25  ;;  %v4867_v22 = vsel %vm11770_vm4, %v10410_v25, %v4849_v16  ;;  %6355 = vmatmul.msk.bf16.gmra.mxu0 %vm11771_vm6, %v6846_v45  ;;  %6359 = vmatmul.msk.bf16.gmra.mxu1 %vm11772_vm13, %v6846_v45  ;;  %v4958_v25 = vmul.f32 %v10234_v27, %v11739_v46  ;;  %vm11786_vm0 = vmmov %vm11785_vm8  ;;  %v11791_v16 = vld [vmem:[#allocation16_spill] sm:$0xff] }
 0x7f3   : > { %v4872_v48 = vmul.f32 %v4867_v22, %v11764_v51  ;;  %v4873_v17 = vmul.f32 %v4855_v43, %v11765_v36  ;;  %v5055_v47 = vpop.permute.xlu2 %5054  ;;  %vm11787_vm4 = vmmov %vm11786_vm0 }
 0x7f4   : > { %v5175_v61 = vpop.permute.xlu0 %5174  ;;  %v4964_v11 = vpack.c.bf16 %v4958_v25, %v4956_v6  ;;  %vm11788_vm6 = vmmov %vm11758_vm1 }
 0x7f5   : > { %v4878_v7 = vpack.c.bf16 %v4872_v48, %v4870_v49  ;;  %v4879_v58 = vpack.c.bf16 %v4873_v17, %v4871_v21  ;;  %v5182_v59 = vsel %vm11784_vm14, %v10430_v41, %v5175_v61  ;;  %v5198_v63 = vsel %vm11785_vm8, %v5175_v61, %v10430_v41  ;;  %vm11789_vm13 = vmmov %vm11758_vm1 }
 0x7f6   : > { %4975 = vmatpush.bf16.msrb.mxu2 %v4964_v11  ;;  %v5204_v44 = vmul.f32 %v5182_v59, %v11790_v3  ;;  %v5205_v49 = vmul.f32 %v5198_v63, %v11791_v16  ;;  %v6851_v11 = vld [vmem:[%s11204_s1 + $0x50] sm:$0xff]  ;;  %vm11801_vm14 = vmmov %vm11788_vm6  ;;  %v6854_v63 = vld [vmem:[%s11204_s1 + $0x68] sm:$0xff] }
 0x7f7   : > { %4889 = vmatpush.bf16.msrb.mxu0 %v4878_v7  ;;  %4918 = vmatpush.bf16.msrb.mxu1 %v4879_v58  ;;  %vm11802_vm8 = vmmov %vm11788_vm6 }
 0x7f9   : > { %v5053_v4 = vpop.permute.xlu1 %5052 }
 0x7fb   : > { %6362 = vmatmul.msk.bf16.vlgmr.msra.gmra.mxu2 %vm11773_vm2, %v6847_v40  ;;  %v5049_v28 = vpop.permute.xlu2 %5048  ;;  %vm11792_vm2 = vmmov %vm11786_vm0 }
 0x7fc   : > { %6366 = vmatmul.msk.bf16.vlgmr.msra.gmra.mxu3 %vm11774_vm3, %v6847_v40  ;;  %v5051_v18 = vpop.permute.xlu0 %5050  ;;  %vm11793_vm3 = vmmov %vm11786_vm0 }
 0x7fd   : > { %v5060_v19 = vsel %vm11776_vm10, %v5051_v18, %v5053_v4  ;;  %v5076_v53 = vsel %vm11777_vm15, %v5053_v4, %v5051_v18  ;;  %vm11796_vm10 = vmmov %vm11788_vm6 }
 0x7fe   : > { %v5082_v37 = vmul.f32 %v5060_v19, %v11782_v33  ;;  %v5083_v9 = vmul.f32 %v5076_v53, %v11783_v62  ;;  %vm11797_vm15 = vmmov %vm11788_vm6 }
 0x801   : > { %v5165_v27 = vpop.permute.xlu1 %5164 }
 0x802   : > { %6356 = vmatmul.msk.bf16.gmra.mxu0 %vm11775_vm5, %v6848_v10  ;;  %6360 = vmatmul.msk.bf16.gmra.mxu1 %vm11758_vm1, %v6848_v10  ;;  %v5180_v17 = vsel %vm11792_vm2, %v5165_v27, %v10450_v8  ;;  %v5196_v61 = vsel %vm11793_vm3, %v10450_v8, %v5165_v27  ;;  %vm11794_vm5 = vmmov %vm11786_vm0 }
 0x803   : > { %v10530_v22 = vpop.permute.xlu2 %5296  ;;  %vm11795_vm1 = vmmov %vm11786_vm0  ;;  %v5200_v25 = vmul.f32 %v5180_v17, %v11790_v3  ;;  %v5201_v39 = vmul.f32 %v5196_v61, %v11791_v16 }
 0x804   : > { %v5169_v46 = vpop.permute.xlu0 %5168 }
 0x809   : > { %v5171_v54 = vpop.permute.xlu1 %5170 }
 0x80a   : > { %v5181_v7 = vsel %vm11794_vm5, %v5169_v46, %v5171_v54  ;;  %v5197_v58 = vsel %vm11795_vm1, %v5171_v54, %v5169_v46  ;;  %vm11809_vm1 = vmmov %vm11788_vm6 }
 0x80b   : > { %6363 = vmatmul.msk.bf16.gmra.mxu2 %vm11778_vm12, %v6849_v20  ;;  %v5202_v14 = vmul.f32 %v5181_v7, %v11790_v3  ;;  %vm11798_vm12 = vmmov %vm11780_vm7  ;;  %v5409_v18 = vpop.permute.xlu2 %5408  ;;  %v6857_v7 = vld [vmem:[%s11204_s1 + $0x80] sm:$0xff] }
 0x80c   : > { %6367 = vmatmul.msk.bf16.gmra.mxu3 %vm11779_vm9, %v6849_v20  ;;  %v5057_v23 = vpop.permute.xlu0 %5056  ;;  %vm11799_vm9 = vmmov %vm11780_vm7 }
 0x80d   : > { %v5061_v2 = vsel %vm11780_vm7, %v5055_v47, %v5057_v23  ;;  %v5077_v12 = vsel %vm11781_vm11, %v5057_v23, %v5055_v47  ;;  %v5208_v4 = vpack.c.bf16 %v5202_v14, %v5200_v25  ;;  %vm11800_vm11 = vmmov %vm11780_vm7  ;;  %v6852_v23 = vld [vmem:[%s11204_s1 + $0x60] sm:$0xff]  ;;  %v11820_v14 = vld [vmem:[#allocation17_spill] sm:$0xff] }
 0x80e   : > { %v5084_v30 = vmul.f32 %v5061_v2, %v11782_v33  ;;  %v5085_v51 = vmul.f32 %v5077_v12, %v11783_v62 }
 0x810   : > { %v5088_v5 = vpack.c.bf16 %v5084_v30, %v5082_v37  ;;  %v5089_v36 = vpack.c.bf16 %v5085_v51, %v5083_v9  ;;  %v6853_v9 = vld [vmem:[%s11204_s1 + $0x58] sm:$0xff] }
 0x811   : > { %v5177_v29 = vpop.permute.xlu1 %5176 }
 0x812   : > { %5096 = vmatpush.bf16.msra.mxu0 %v5088_v5  ;;  %5125 = vmatpush.bf16.msra.mxu1 %v5089_v36  ;;  %v5183_v52 = vsel %vm11786_vm0, %v5177_v29, %v5179_v56  ;;  %v5199_v24 = vsel %vm11787_vm4, %v5179_v56, %v5177_v29  ;;  %v5203_v56 = vmul.f32 %v5197_v58, %v11791_v16  ;;  %vm11803_vm0 = vcmask 908288  }
 0x813   : > { %6357 = vmatmul.msk.bf16.gmra.mxu0 %vm11788_vm6, %v6850_v35  ;;  %6361 = vmatmul.msk.bf16.gmra.mxu1 %vm11789_vm13, %v6850_v35  ;;  %v5206_v41 = vmul.f32 %v5183_v52, %v11790_v3  ;;  %v5207_v21 = vmul.f32 %v5199_v24, %v11791_v16  ;;  %vm11804_vm4 = vmmov %vm11803_vm0  ;;  %v5415_v37 = vpop.permute.xlu2 %5414 }
 0x814   : > { %v5045_v43 = vpop.permute.xlu0 %5044  ;;  %v5209_v40 = vpack.c.bf16 %v5203_v56, %v5201_v39  ;;  %vm11805_vm13 = vmmov %vm11788_vm6 }
 0x815   : > { %v5210_v45 = vpack.c.bf16 %v5206_v41, %v5204_v44  ;;  %v5211_v48 = vpack.c.bf16 %v5207_v21, %v5205_v49  ;;  %v5058_v15 = vsel %vm11798_vm12, %v10467_v26, %v5045_v43  ;;  %v5074_v10 = vsel %vm11800_vm11, %v5045_v43, %v10467_v26  ;;  %vm11806_vm2 = vmmov %vm11803_vm0  ;;  %v10593_v44 = vld [vmem:[%s11206_s3 + $0x10] ss:$0 sm:$0xff]  ;;  %v10600_v41 = vld [vmem:[%s11206_s3 + $0x18] ss:$0 sm:$0xff] }
 0x816   : > { %v5078_v46 = vmul.f32 %v5058_v15, %v11782_v33  ;;  %v5079_v20 = vmul.f32 %v5074_v10, %v11783_v62  ;;  %vm11807_vm3 = vmmov %vm11803_vm0 }
 0x817   : > { %5218 = vmatpush.bf16.msra.mxu2 %v5210_v45  ;;  %5247 = vmatpush.bf16.msra.mxu3 %v5211_v48  ;;  %vm11808_vm5 = vmmov %vm11803_vm0 }
 0x818   : > { %vm11812_vm12 = vmmov %vm11803_vm0 }
 0x819   : > { %v5047_v6 = vpop.permute.xlu1 %5046 }
 0x81a   : > { %v5059_v47 = vsel %vm11799_vm9, %v5047_v6, %v5049_v28  ;;  %v5075_v27 = vsel %vm11780_vm7, %v5049_v28, %v5047_v6  ;;  %vm11813_vm9 = vmmov %vm11803_vm0  ;;  %vm11814_vm7 = vcmask 916480  }
 0x81b   : > { %6364 = vmatmul.msk.bf16.gmra.mxu2 %vm11796_vm10, %v6851_v11  ;;  %5248 = vmatpush.bf16.msra.mxu3 %v5209_v40  ;;  %v5080_v19 = vmul.f32 %v5059_v47, %v11782_v33  ;;  %v5081_v53 = vmul.f32 %v5075_v27, %v11783_v62  ;;  %vm11810_vm10 = vmmov %vm11809_vm1  ;;  %v5421_v29 = vpop.permute.xlu2 %5420  ;;  %v6858_v27 = vld [vmem:[%s11204_s1 + $0x70] sm:$0xff] }
 0x81c   : > { %6368 = vmatmul.msk.bf16.gmra.mxu3 %vm11797_vm15, %v6851_v11  ;;  %v5417_v8 = vpop.permute.xlu0 %5416  ;;  %5219 = vmatpush.bf16.msra.mxu2 %v5208_v4  ;;  %vm11811_vm15 = vmmov %vm11803_vm0  ;;  %v11821_v11 = vld [vmem:[#allocation18_spill] sm:$0xff] }
 0x81d   : > { %v5086_v12 = vpack.c.bf16 %v5080_v19, %v5078_v46  ;;  %v5087_v33 = vpack.c.bf16 %v5081_v53, %v5079_v20  ;;  %vm11815_vm11 = vmmov %vm11814_vm7  ;;  %v6860_v20 = vld [vmem:[%s11204_s1 + $0x78] sm:$0xff] }
 0x81f   : > { %5097 = vmatpush.bf16.msra.mxu0 %v5086_v12  ;;  %5126 = vmatpush.bf16.msra.mxu1 %v5087_v33  ;;  %v6861_v12 = vld [vmem:[%s11204_s1 + $0x90] sm:$0xff] }
 0x821   : > { %v5419_v54 = vpop.permute.xlu1 %5418 }
 0x822   : > { %v5426_v5 = vsel %vm11806_vm2, %v5417_v8, %v5419_v54  ;;  %v5442_v52 = vsel %vm11811_vm15, %v5419_v54, %v5417_v8  ;;  %v6859_v54 = vld [vmem:[%s11204_s1 + $0x88] sm:$0xff]  ;;  %vm11824_vm2 = vmmov %vm11809_vm1 }
 0x823   : > { %6370 = vmatmul.msk.bf16.vlgmr.msrb.gmra.mxu0 %vm11801_vm14, %v6852_v23  ;;  %6374 = vmatmul.msk.bf16.vlgmr.msrb.gmra.mxu1 %vm11802_vm8, %v6852_v23  ;;  %v5448_v16 = vmul.f32 %v10593_v44, %v5426_v5  ;;  %v5449_v43 = vmul.f32 %v10600_v41, %v5442_v52  ;;  %vm11816_vm14 = vmmov %vm11809_vm1 }
 0x824   : > { %v5411_v26 = vpop.permute.xlu0 %5410  ;;  %vm11817_vm8 = vmmov %vm11809_vm1 }
 0x825   : > { %v10563_v28 = vsel %vm11803_vm0, %v5409_v18, %v5411_v26  ;;  %v10566_v2 = vsel %vm11804_vm4, %v5411_v26, %v5409_v18  ;;  %vm11818_vm0 = vmmov %vm11814_vm7 }
 0x826   : > { %vm11819_vm4 = vmmov %vm11818_vm0 }
 0x827   : > { %vm11828_vm15 = vmmov %vm11809_vm1 }
 0x829   : > { %v5295_v62 = vpop.permute.xlu1 %5294 }
 0x82a   : > { %v5304_v17 = vsel %vm11814_vm7, %v5295_v62, %v10530_v22  ;;  %v5320_v61 = vsel %vm11815_vm11, %v10530_v22, %v5295_v62  ;;  %vm11831_vm7 = vmmov %vm11809_vm1 }
 0x82b   : > { %6365 = vmatmul.msk.bf16.gmra.mxu2 %vm11788_vm6, %v6853_v9  ;;  %v5326_v56 = vmul.f32 %v5304_v17, %v11820_v14  ;;  %v5327_v22 = vmul.f32 %v5320_v61, %v11821_v11  ;;  %vm11822_vm6 = vmmov %vm11809_vm1 }
 0x82c   : > { %6369 = vmatmul.msk.bf16.gmra.mxu3 %vm11805_vm13, %v6853_v9  ;;  %v10573_v30 = vpop.permute.xlu0 %5286  ;;  %vm11823_vm13 = vmmov %vm11809_vm1 }
 0x82d   : > { %vm11832_vm11 = vmmov %vm11809_vm1 }
 0x831   : > { %v5413_v51 = vpop.permute.xlu1 %5412 }
 0x832   : > { %v10577_v36 = vsel %vm11807_vm3, %v5413_v51, %v5415_v37  ;;  %v10580_v59 = vsel %vm11808_vm5, %v5415_v37, %v5413_v51  ;;  %vm11825_vm3 = vmmov %vm11809_vm1 }
 0x833   : > { %6371 = vmatmul.msk.bf16.gmra.mxu0 %vm11809_vm1, %v6854_v63  ;;  %6375 = vmatmul.msk.bf16.gmra.mxu1 %vm11810_vm10, %v6854_v63  ;;  %vm11826_vm5 = vmmov %vm11809_vm1  ;;  %v6862_v63 = vld [vmem:[%s11204_s1 + $0xa0] sm:$0xff] }
 0x834   : > { %v5423_v24 = vpop.permute.xlu0 %5422  ;;  %vm11827_vm10 = vmmov %vm11809_vm1 }
 0x835   : > { %v5427_v35 = vsel %vm11812_vm12, %v5421_v29, %v5423_v24  ;;  %v5443_v3 = vsel %vm11813_vm9, %v5423_v24, %v5421_v29  ;;  %vm11829_vm12 = vmmov %vm11809_vm1 }
 0x836   : > { %v5450_v49 = vmul.f32 %v10593_v44, %v5427_v35  ;;  %v5451_v21 = vmul.f32 %v10600_v41, %v5443_v3  ;;  %vm11830_vm9 = vmmov %vm11809_vm1 }
 0x838   : > { %v5454_v45 = vpack.c.bf16 %v5450_v49, %v5448_v16  ;;  %v5455_v48 = vpack.c.bf16 %v5451_v21, %v5449_v43  ;;  %v6863_v49 = vld [vmem:[%s11204_s1 + $0x98] sm:$0xff] }
 0x839   : > { %v5301_v58 = vpop.permute.xlu1 %5300 }
 0x83b   : > { %6378 = vmatmul.msk.bf16.vlgmr.msrb.gmra.mxu2 %vm11816_vm14, %v6857_v7  ;;  %vm11833_vm14 = vmmov %vm11809_vm1 }
 0x83c   : > { %6382 = vmatmul.msk.bf16.vlgmr.msrb.gmra.mxu3 %vm11817_vm8, %v6857_v7  ;;  %5462 = vmatpush.bf16.msrb.mxu2 %v5454_v45  ;;  %v5299_v6 = vpop.permute.xlu0 %5298  ;;  %v6864_v7 = vld [vmem:[%s11204_s1 + $0xa8] sm:$0xff]  ;;  %vm11834_vm8 = vmmov %vm11809_vm1 }
 0x83d   : > { %5491 = vmatpush.bf16.msrb.mxu3 %v5455_v48  ;;  %v5305_v25 = vsel %vm11818_vm0, %v5299_v6, %v5301_v58  ;;  %v5321_v39 = vsel %vm11819_vm4, %v5301_v58, %v5299_v6  ;;  %v4605_v8 = vpop.f32.mrf.mxu2  ;;  %vm11835_vm4 = vmmov %vm11818_vm0 }
 0x83e   : > { %v5328_v15 = vmul.f32 %v5305_v25, %v11820_v14  ;;  %v5329_v4 = vmul.f32 %v5321_v39, %v11821_v11  ;;  %v4634_v40 = vpop.f32.mrf.mxu3  ;;  %v5444_v25 = vmul.f32 %v10593_v44, %v10563_v28  ;;  %v5445_v39 = vmul.f32 %v10600_v41, %v10566_v2  ;;  %v6865_v2 = vld [vmem:[%s11204_s1 + $0xc0] sm:$0xff] }
 0x840   : > { %v5332_v18 = vpack.c.bf16 %v5328_v15, %v5326_v56  ;;  %v5333_v47 = vpack.c.bf16 %v5329_v4, %v5327_v22  ;;  %v5446_v56 = vmul.f32 %v10593_v44, %v10577_v36  ;;  %v5447_v22 = vmul.f32 %v10600_v41, %v10580_v59 }
 0x842   : > { %5340 = vmatpush.bf16.msrb.mxu0 %v5332_v18  ;;  %5369 = vmatpush.bf16.msrb.mxu1 %v5333_v47  ;;  %v5289_v18 = vpop.permute.xlu1 %5288  ;;  %v5291_v47 = vpop.permute.xlu2 %5290  ;;  %v5452_v44 = vpack.c.bf16 %v5446_v56, %v5444_v25  ;;  %v5453_v41 = vpack.c.bf16 %v5447_v22, %v5445_v39 }
 0x843   : > { %6372 = vmatmul.msk.bf16.gmra.mxu0 %vm11822_vm6, %v6858_v27  ;;  %6376 = vmatmul.msk.bf16.gmra.mxu1 %vm11823_vm13, %v6858_v27  ;;  %v5302_v27 = vsel %vm11818_vm0, %v10573_v30, %v5289_v18  ;;  %v5318_v28 = vsel %vm11835_vm4, %v5289_v18, %v10573_v30  ;;  %vm11836_vm6 = vmmov %vm11809_vm1 }
 0x844   : > { %vm11837_vm13 = vmmov %vm11818_vm0  ;;  %5463 = vmatpush.bf16.msrb.mxu2 %v5452_v44  ;;  %5492 = vmatpush.bf16.msrb.mxu3 %v5453_v41 }
 0x845   : > { %v4607_v10 = vpop.f32.mrf.mxu2 }
 0x846   : > { %v4636_v46 = vpop.f32.mrf.mxu3 }
 0x84b   : > { %6379 = vmatmul.msk.bf16.gmra.mxu2 %vm11824_vm2, %v6859_v54  ;;  %vm11838_vm2 = vmmov %vm11818_vm0 }
 0x84c   : > { %6383 = vmatmul.msk.bf16.gmra.mxu3 %vm11825_vm3, %v6859_v54  ;;  %vm11839_vm3 = vmmov %vm11809_vm1  ;;  %v5323_v54 = vmul.f32 %v5318_v28, %v11821_v11 }
 0x84d   : > { %vm11849_vm0 = vmmov %vm11809_vm1 }
 0x84e   : > { %v4610_v19 = vpop.f32.mrf.mxu2  ;;  %vm11850_vm4 = vmmov %vm11849_vm0 }
 0x84f   : > { %v4639_v53 = vpop.f32.mrf.mxu3 }
 0x853   : > { %6373 = vmatmul.msk.bf16.gmra.mxu0 %vm11826_vm5, %v6860_v20  ;;  %6377 = vmatmul.msk.bf16.gmra.mxu1 %vm11809_vm1, %v6860_v20  ;;  %vm11840_vm5 = vmmov %vm11809_vm1 }
 0x856   : > { %v4612_v23 = vpop.f32.mrf.mxu2 }
 0x857   : > { %v4641_v26 = vpop.f32.mrf.mxu3 }
 0x85b   : > { %6380 = vmatmul.msk.bf16.gmra.mxu2 %vm11827_vm10, %v6861_v12  ;;  %vm11841_vm10 = vmmov %vm11809_vm1 }
 0x85c   : > { %6384 = vmatmul.msk.bf16.gmra.mxu3 %vm11828_vm15, %v6861_v12  ;;  %vm11842_vm15 = vmmov %vm11809_vm1 }
 0x85e   : > { %v4615_v33 = vpop.f32.mrf.mxu2 }
 0x85f   : > { %v4644_v37 = vpop.f32.mrf.mxu3  ;;  %v4663_v62 = vpop.f32.mrf.mxu0 }
 0x860   : > { %v4692_v9 = vpop.f32.mrf.mxu1  ;;  %v4664_v51 = vadd.f32 %v4663_v62, %v4605_v8 }
 0x861   : > { %v4693_v5 = vadd.f32 %v4692_v9, %v4634_v40 }
 0x863   : > { %6386 = vmatmul.msk.bf16.vlgmr.msra.gmra.mxu0 %vm11829_vm12, %v6862_v63  ;;  %6390 = vmatmul.msk.bf16.vlgmr.msra.gmra.mxu1 %vm11830_vm9, %v6862_v63  ;;  %vm11843_vm12 = vmmov %vm11809_vm1 }
 0x864   : > { %vm11844_vm9 = vmmov %vm11809_vm1 }
 0x866   : > { %v10644_v29 = vpop.f32.mrf.mxu2 }
 0x867   : > { %v10646_v52 = vpop.f32.mrf.mxu3  ;;  %v4665_v24 = vpop.f32.mrf.mxu0 }
 0x868   : > { %v4694_v35 = vpop.f32.mrf.mxu1  ;;  %v4666_v3 = vadd.f32 %v4665_v24, %v4607_v10  ;;  %v5293_v10 = vpop.permute.xlu0 %5292 }
 0x869   : > { %v4695_v16 = vadd.f32 %v4694_v35, %v4636_v46  ;;  %v5303_v36 = vsel %vm11837_vm13, %v5291_v47, %v5293_v10  ;;  %v5319_v59 = vsel %vm11838_vm2, %v5293_v10, %v5291_v47  ;;  %v5322_v46 = vmul.f32 %v5302_v27, %v11820_v14  ;;  %vm11852_vm13 = vmmov %vm11849_vm0 }
 0x86a   : > { %v5324_v30 = vmul.f32 %v5303_v36, %v11820_v14  ;;  %vm11853_vm2 = vmmov %vm11849_vm0 }
 0x86b   : > { %6381 = vmatmul.msk.bf16.gmra.mxu2 %vm11831_vm7, %v6863_v49  ;;  %vm11845_vm7 = vmmov %vm11809_vm1 }
 0x86c   : > { %6385 = vmatmul.msk.bf16.gmra.mxu3 %vm11832_vm11, %v6863_v49  ;;  %v5330_v24 = vpack.c.bf16 %v5324_v30, %v5322_v46  ;;  %v6866_v49 = vld [vmem:[%s11204_s1 + $0xb0] sm:$0xff]  ;;  %vm11846_vm11 = vmmov %vm11809_vm1 }
 0x86e   : > { %v10653_v21 = vpop.f32.mrf.mxu2  ;;  %5341 = vmatpush.bf16.msrb.mxu0 %v5330_v24 }
 0x86f   : > { %v10655_v43 = vpop.f32.mrf.mxu3  ;;  %v4668_v45 = vpop.f32.mrf.mxu0 }
 0x870   : > { %v4697_v48 = vpop.f32.mrf.mxu1  ;;  %v4669_v17 = vadd.f32 %v4668_v45, %v4610_v19  ;;  %v5325_v19 = vmul.f32 %v5319_v59, %v11821_v11 }
 0x871   : > { %v4698_v61 = vadd.f32 %v4697_v48, %v4639_v53 }
 0x872   : > { %v5331_v35 = vpack.c.bf16 %v5325_v19, %v5323_v54 }
 0x873   : > { %6387 = vmatmul.msk.bf16.gmra.mxu0 %vm11833_vm14, %v6864_v7  ;;  %6391 = vmatmul.msk.bf16.gmra.mxu1 %vm11834_vm8, %v6864_v7  ;;  %v6867_v7 = vld [vmem:[%s11204_s1 + $0xc8] sm:$0xff]  ;;  %vm11847_vm14 = vmmov %vm11809_vm1 }
 0x874   : > { %5370 = vmatpush.bf16.msrb.mxu1 %v5331_v35  ;;  %vm11848_vm8 = vmmov %vm11809_vm1 }
 0x876   : > { %v10662_v58 = vpop.f32.mrf.mxu2 }
 0x877   : > { %v10664_v6 = vpop.f32.mrf.mxu3  ;;  %v4670_v8 = vpop.f32.mrf.mxu0 }
 0x878   : > { %v4699_v15 = vpop.f32.mrf.mxu1  ;;  %v4671_v4 = vadd.f32 %v4670_v8, %v4612_v23 }
 0x879   : > { %v4700_v40 = vadd.f32 %v4699_v15, %v4641_v26 }
 0x87b   : > { %6394 = vmatmul.msk.bf16.vlgmr.msra.gmra.mxu2 %vm11836_vm6, %v6865_v2  ;;  %vm11851_vm6 = vmmov %vm11849_vm0 }
 0x87c   : > { %6398 = vmatmul.msk.bf16.vlgmr.msra.gmra.mxu3 %vm11839_vm3, %v6865_v2  ;;  %vm11854_vm3 = vmmov %vm11849_vm0 }
 0x87e   : > { %v4769_v53 = vpop.f32.mrf.mxu2 }
 0x87f   : > { %v4818_v20 = vadd.f32 %v4769_v53, %v4664_v51  ;;  %v4798_v23 = vpop.f32.mrf.mxu3  ;;  %v4673_v12 = vpop.f32.mrf.mxu0 }
 0x880   : > { %v4819_v26 = vadd.f32 %v4798_v23, %v4693_v5  ;;  %v4702_v62 = vpop.f32.mrf.mxu1  ;;  %v4674_v9 = vadd.f32 %v4673_v12, %v4615_v33 }
 0x881   : > { %v4703_v63 = vadd.f32 %v4702_v62, %v4644_v37 }
 0x883   : > { %6388 = vmatmul.msk.bf16.gmra.mxu0 %vm11840_vm5, %v6866_v49  ;;  %6392 = vmatmul.msk.bf16.gmra.mxu1 %vm11809_vm1, %v6866_v49  ;;  %vm11855_vm5 = vmmov %vm11849_vm0 }
 0x884   : > { %vm11856_vm1 = vmmov %vm11849_vm0 }
 0x886   : > { %v4771_v14 = vpop.f32.mrf.mxu2 }
 0x887   : > { %v4820_v11 = vadd.f32 %v4771_v14, %v4666_v3  ;;  %v4800_v51 = vpop.f32.mrf.mxu3  ;;  %v4675_v45 = vpop.f32.mrf.mxu0 }
 0x888   : > { %v4821_v5 = vadd.f32 %v4800_v51, %v4695_v16  ;;  %v4704_v48 = vpop.f32.mrf.mxu1  ;;  %v4676_v33 = vadd.f32 %v4675_v45, %v10644_v29 }
 0x889   : > { %v4705_v37 = vadd.f32 %v4704_v48, %v10646_v52  ;;  %v6868_v52 = vld [vmem:[%s11204_s1 + $0xb8] sm:$0xff] }
 0x88b   : > { %6395 = vmatmul.msk.bf16.gmra.mxu2 %vm11841_vm10, %v6867_v7  ;;  %vm11857_vm10 = vmmov %vm11849_vm0 }
 0x88c   : > { %6399 = vmatmul.msk.bf16.gmra.mxu3 %vm11842_vm15, %v6867_v7  ;;  %vm11858_vm15 = vmmov %vm11849_vm0 }
 0x88e   : > { %v4774_v25 = vpop.f32.mrf.mxu2 }
 0x88f   : > { %v4822_v39 = vadd.f32 %v4774_v25, %v4669_v17  ;;  %v4803_v56 = vpop.f32.mrf.mxu3 }
 0x890   : > { %v4823_v3 = vadd.f32 %v4803_v56, %v4698_v61  ;;  %v4678_v22 = vpop.f32.mrf.mxu0  ;;  %v4707_v16 = vpop.f32.mrf.mxu1 }
 0x891   : > { %v4679_v8 = vadd.f32 %v4678_v22, %v10653_v21  ;;  %v4708_v29 = vadd.f32 %v4707_v16, %v10655_v43  ;;  %v6869_v43 = vld [vmem:[%s11204_s1 + $0xd0] sm:$0xff] }
 0x893   : > { %6389 = vmatmul.msk.bf16.gmra.mxu0 %vm11843_vm12, %v6868_v52  ;;  %6393 = vmatmul.msk.bf16.gmra.mxu1 %vm11844_vm9, %v6868_v52  ;;  %vm11859_vm12 = vmmov %vm11849_vm0 }
 0x894   : > { %vm11860_vm9 = vmmov %vm11849_vm0 }
 0x896   : > { %v4776_v15 = vpop.f32.mrf.mxu2 }
 0x897   : > { %v4824_v18 = vadd.f32 %v4776_v15, %v4671_v4  ;;  %v4805_v47 = vpop.f32.mrf.mxu3 }
 0x898   : > { %v4825_v17 = vadd.f32 %v4805_v47, %v4700_v40  ;;  %v4680_v27 = vpop.f32.mrf.mxu0  ;;  %v4709_v61 = vpop.f32.mrf.mxu1 }
 0x899   : > { %v4681_v28 = vadd.f32 %v4680_v27, %v10662_v58  ;;  %v4710_v21 = vadd.f32 %v4709_v61, %v10664_v6  ;;  %v6870_v58 = vld [vmem:[%s11204_s1 + $0xe0] sm:$0xff] }
 0x89b   : > { %6396 = vmatmul.msk.bf16.gmra.mxu2 %vm11845_vm7, %v6869_v43  ;;  %vm11861_vm7 = vmmov %vm11849_vm0 }
 0x89c   : > { %6400 = vmatmul.msk.bf16.gmra.mxu3 %vm11846_vm11, %v6869_v43  ;;  %vm11862_vm11 = vmmov %vm11849_vm0 }
 0x89e   : > { %v4779_v10 = vpop.f32.mrf.mxu2 }
 0x89f   : > { %v4826_v2 = vadd.f32 %v4779_v10, %v4674_v9  ;;  %v4808_v36 = vpop.f32.mrf.mxu3 }
 0x8a0   : > { %v4827_v4 = vadd.f32 %v4808_v36, %v4703_v63  ;;  %v4891_v59 = vpop.f32.mrf.mxu0  ;;  %v4920_v40 = vpop.f32.mrf.mxu1 }
 0x8a1   : > { %v4940_v44 = vadd.f32 %v4891_v59, %v4818_v20  ;;  %v4941_v41 = vadd.f32 %v4920_v40, %v4819_v26  ;;  %v6871_v20 = vld [vmem:[%s11204_s1 + $0xd8] sm:$0xff] }
 0x8a3   : > { %6402 = vmatmul.msk.bf16.vlgmr.msrb.gmra.mxu0 %vm11847_vm14, %v6870_v58  ;;  %6406 = vmatmul.msk.bf16.vlgmr.msrb.gmra.mxu1 %vm11848_vm8, %v6870_v58  ;;  %vm11863_vm14 = vmmov %vm11849_vm0 }
 0x8a4   : > { %vm11864_vm8 = vmmov %vm11849_vm0 }
 0x8a6   : > { %v4781_v6 = vpop.f32.mrf.mxu2 }
 0x8a7   : > { %v4828_v46 = vadd.f32 %v4781_v6, %v4676_v33  ;;  %v4810_v54 = vpop.f32.mrf.mxu3 }
 0x8a8   : > { %v4829_v30 = vadd.f32 %v4810_v54, %v4705_v37  ;;  %v4893_v19 = vpop.f32.mrf.mxu0  ;;  %v4922_v53 = vpop.f32.mrf.mxu1 }
 0x8a9   : > { %v4942_v23 = vadd.f32 %v4893_v19, %v4820_v11  ;;  %v4943_v12 = vadd.f32 %v4922_v53, %v4821_v5  ;;  %v6872_v11 = vld [vmem:[%s11204_s1 + $0xe8] sm:$0xff] }
 0x8ab   : > { %6397 = vmatmul.msk.bf16.gmra.mxu2 %vm11849_vm0, %v6871_v20 }
 0x8ac   : > { %6401 = vmatmul.msk.bf16.gmra.mxu3 %vm11850_vm4, %v6871_v20 }
 0x8ae   : > { %v4784_v26 = vpop.f32.mrf.mxu2 }
 0x8af   : > { %v4830_v62 = vadd.f32 %v4784_v26, %v4679_v8  ;;  %v4813_v9 = vpop.f32.mrf.mxu3 }
 0x8b0   : > { %v4831_v63 = vadd.f32 %v4813_v9, %v4708_v29  ;;  %v4896_v24 = vpop.f32.mrf.mxu0  ;;  %v4925_v35 = vpop.f32.mrf.mxu1 }
 0x8b1   : > { %v4944_v49 = vadd.f32 %v4896_v24, %v4822_v39  ;;  %v4945_v14 = vadd.f32 %v4925_v35, %v4823_v3  ;;  %v6873_v39 = vld [vmem:[%s11204_s1 + $0x100] sm:$0xff] }
 0x8b3   : > { %6403 = vmatmul.msk.bf16.gmra.mxu0 %vm11851_vm6, %v6872_v11  ;;  %6407 = vmatmul.msk.bf16.gmra.mxu1 %vm11852_vm13, %v6872_v11 }
 0x8b6   : > { %v4786_v51 = vpop.f32.mrf.mxu2 }
 0x8b7   : > { %v4832_v5 = vadd.f32 %v4786_v51, %v4681_v28  ;;  %v4815_v45 = vpop.f32.mrf.mxu3 }
 0x8b8   : > { %v4833_v48 = vadd.f32 %v4815_v45, %v4710_v21  ;;  %v4898_v33 = vpop.f32.mrf.mxu0  ;;  %v4927_v37 = vpop.f32.mrf.mxu1 }
 0x8b9   : > { %v4946_v7 = vadd.f32 %v4898_v33, %v4824_v18  ;;  %v4947_v25 = vadd.f32 %v4927_v37, %v4825_v17  ;;  %v6874_v18 = vld [vmem:[%s11204_s1 + $0xf0] sm:$0xff] }
 0x8bb   : > { %6410 = vmatmul.msk.bf16.vlgmr.msrb.gmra.mxu2 %vm11853_vm2, %v6873_v39 }
 0x8bc   : > { %6414 = vmatmul.msk.bf16.vlgmr.msrb.gmra.mxu3 %vm11854_vm3, %v6873_v39 }
 0x8be   : > { %v4977_v56 = vpop.f32.mrf.mxu2 }
 0x8bf   : > { %v5026_v3 = vadd.f32 %v4977_v56, %v4940_v44  ;;  %v5006_v22 = vpop.f32.mrf.mxu3  ;;  %v6878_v56 = vld [vmem:[%s11204_s1 + $0x118] sm:$0xff] }
 0x8c0   : > { %v5027_v16 = vadd.f32 %v5006_v22, %v4941_v41  ;;  %v4901_v8 = vpop.f32.mrf.mxu0  ;;  %v4930_v29 = vpop.f32.mrf.mxu1 }
 0x8c1   : > { %v4948_v52 = vadd.f32 %v4901_v8, %v4826_v2  ;;  %v4949_v15 = vadd.f32 %v4930_v29, %v4827_v4  ;;  %v6875_v2 = vld [vmem:[%s11204_s1 + $0x108] sm:$0xff] }
 0x8c3   : > { %6404 = vmatmul.msk.bf16.gmra.mxu0 %vm11855_vm5, %v6874_v18  ;;  %6408 = vmatmul.msk.bf16.gmra.mxu1 %vm11856_vm1, %v6874_v18 }
 0x8c6   : > { %v4979_v47 = vpop.f32.mrf.mxu2 }
 0x8c7   : > { %v5028_v17 = vadd.f32 %v4979_v47, %v4942_v23  ;;  %v5008_v27 = vpop.f32.mrf.mxu3 }
 0x8c8   : > { %v5029_v61 = vadd.f32 %v5008_v27, %v4943_v12  ;;  %v4903_v28 = vpop.f32.mrf.mxu0  ;;  %v4932_v21 = vpop.f32.mrf.mxu1 }
 0x8c9   : > { %v4950_v43 = vadd.f32 %v4903_v28, %v4828_v46  ;;  %v4951_v10 = vadd.f32 %v4932_v21, %v4829_v30  ;;  %v6876_v46 = vld [vmem:[%s11204_s1 + $0xf8] sm:$0xff] }
 0x8cb   : > { %6411 = vmatmul.msk.bf16.gmra.mxu2 %vm11857_vm10, %v6875_v2 }
 0x8cc   : > { %6415 = vmatmul.msk.bf16.gmra.mxu3 %vm11858_vm15, %v6875_v2 }
 0x8ce   : > { %v4982_v36 = vpop.f32.mrf.mxu2 }
 0x8cf   : > { %v5030_v4 = vadd.f32 %v4982_v36, %v4944_v49  ;;  %v5011_v59 = vpop.f32.mrf.mxu3 }
 0x8d0   : > { %v5031_v40 = vadd.f32 %v5011_v59, %v4945_v14  ;;  %v4906_v44 = vpop.f32.mrf.mxu0  ;;  %v4935_v41 = vpop.f32.mrf.mxu1 }
 0x8d1   : > { %v4952_v58 = vadd.f32 %v4906_v44, %v4830_v62  ;;  %v4953_v6 = vadd.f32 %v4935_v41, %v4831_v63  ;;  %v6877_v62 = vld [vmem:[%s11204_s1 + $0x110] sm:$0xff] }
 0x8d3   : > { %6405 = vmatmul.msk.bf16.gmra.mxu0 %vm11859_vm12, %v6876_v46  ;;  %6409 = vmatmul.msk.bf16.gmra.mxu1 %vm11860_vm9, %v6876_v46 }
 0x8d6   : > { %v4984_v54 = vpop.f32.mrf.mxu2 }
 0x8d7   : > { %v5032_v30 = vadd.f32 %v4984_v54, %v4946_v7  ;;  %v5013_v19 = vpop.f32.mrf.mxu3 }
 0x8d8   : > { %v5033_v53 = vadd.f32 %v5013_v19, %v4947_v25  ;;  %v4908_v23 = vpop.f32.mrf.mxu0  ;;  %v4937_v12 = vpop.f32.mrf.mxu1 }
 0x8d9   : > { %v4954_v20 = vadd.f32 %v4908_v23, %v4832_v5  ;;  %v4955_v26 = vadd.f32 %v4937_v12, %v4833_v48 }
 0x8db   : > { %6412 = vmatmul.msk.bf16.gmra.mxu2 %vm11861_vm7, %v6877_v62 }
 0x8dc   : > { %6416 = vmatmul.msk.bf16.gmra.mxu3 %vm11862_vm11, %v6877_v62 }
 0x8de   : > { %v4987_v9 = vpop.f32.mrf.mxu2 }
 0x8df   : > { %v5034_v63 = vadd.f32 %v4987_v9, %v4948_v52  ;;  %v5016_v24 = vpop.f32.mrf.mxu3 }
 0x8e0   : > { %v5035_v35 = vadd.f32 %v5016_v24, %v4949_v15  ;;  %v5099_v49 = vpop.f32.mrf.mxu0  ;;  %v5128_v14 = vpop.f32.mrf.mxu1 }
 0x8e1   : > { %v5148_v11 = vadd.f32 %v5099_v49, %v5026_v3  ;;  %v5149_v51 = vadd.f32 %v5128_v14, %v5027_v16 }
 0x8e6   : > { %v4989_v45 = vpop.f32.mrf.mxu2 }
 0x8e7   : > { %v5036_v33 = vadd.f32 %v4989_v45, %v4950_v43  ;;  %v5018_v5 = vpop.f32.mrf.mxu3 }
 0x8e8   : > { %v5037_v48 = vadd.f32 %v5018_v5, %v4951_v10  ;;  %v5101_v37 = vpop.f32.mrf.mxu0  ;;  %v5130_v7 = vpop.f32.mrf.mxu1 }
 0x8e9   : > { %v5150_v25 = vadd.f32 %v5101_v37, %v5028_v17  ;;  %v5151_v39 = vadd.f32 %v5130_v7, %v5029_v61 }
 0x8eb   : > { %6413 = vmatmul.msk.bf16.gmra.mxu2 %vm11863_vm14, %v6878_v56 }
 0x8ec   : > { %6417 = vmatmul.msk.bf16.gmra.mxu3 %vm11864_vm8, %v6878_v56 }
 0x8ee   : > { %v4992_v22 = vpop.f32.mrf.mxu2 }
 0x8ef   : > { %v10760_v8 = vadd.f32 %v4992_v22, %v4952_v58  ;;  %v5021_v3 = vpop.f32.mrf.mxu3 }
 0x8f0   : > { %v10762_v16 = vadd.f32 %v5021_v3, %v4953_v6  ;;  %v5104_v29 = vpop.f32.mrf.mxu0  ;;  %v5133_v52 = vpop.f32.mrf.mxu1 }
 0x8f1   : > { %v5152_v15 = vadd.f32 %v5104_v29, %v5030_v4  ;;  %v5153_v18 = vadd.f32 %v5133_v52, %v5031_v40 }
 0x8f6   : > { %v4994_v47 = vpop.f32.mrf.mxu2 }
 0x8f7   : > { %v5040_v17 = vadd.f32 %v4994_v47, %v4954_v20  ;;  %v5023_v27 = vpop.f32.mrf.mxu3 }
 0x8f8   : > { %v5041_v61 = vadd.f32 %v5023_v27, %v4955_v26  ;;  %v5106_v28 = vpop.f32.mrf.mxu0  ;;  %v5135_v21 = vpop.f32.mrf.mxu1 }
 0x8f9   : > { %v5154_v43 = vadd.f32 %v5106_v28, %v5032_v30  ;;  %v5155_v10 = vadd.f32 %v5135_v21, %v5033_v53 }
 0x8fe   : > { %v5221_v2 = vpop.f32.mrf.mxu2 }
 0x8ff   : > { %v5270_v36 = vadd.f32 %v5221_v2, %v5148_v11  ;;  %v5250_v59 = vpop.f32.mrf.mxu3 }
 0x900   : > { %v5271_v44 = vadd.f32 %v5250_v59, %v5149_v51  ;;  %v5109_v41 = vpop.f32.mrf.mxu0  ;;  %v5138_v58 = vpop.f32.mrf.mxu1 }
 0x901   : > { %v5156_v6 = vadd.f32 %v5109_v41, %v5034_v63  ;;  %v5157_v46 = vadd.f32 %v5138_v58, %v5035_v35 }
 0x906   : > { %v5223_v54 = vpop.f32.mrf.mxu2 }
 0x907   : > { %v5272_v19 = vadd.f32 %v5223_v54, %v5150_v25  ;;  %v5252_v4 = vpop.f32.mrf.mxu3 }
 0x908   : > { %v5273_v40 = vadd.f32 %v5252_v4, %v5151_v39  ;;  %v5111_v23 = vpop.f32.mrf.mxu0  ;;  %v5140_v12 = vpop.f32.mrf.mxu1 }
 0x909   : > { %v5158_v20 = vadd.f32 %v5111_v23, %v5036_v33  ;;  %v5159_v26 = vadd.f32 %v5140_v12, %v5037_v48 }
 0x90e   : > { %v5226_v62 = vpop.f32.mrf.mxu2 }
 0x90f   : > { %v5274_v9 = vadd.f32 %v5226_v62, %v5152_v15  ;;  %v5255_v30 = vpop.f32.mrf.mxu3 }
 0x910   : > { %v5275_v53 = vadd.f32 %v5255_v30, %v5153_v18  ;;  %v10764_v24 = vpop.f32.mrf.mxu0  ;;  %v10766_v49 = vpop.f32.mrf.mxu1 }
 0x916   : > { %v5228_v14 = vpop.f32.mrf.mxu2 }
 0x917   : > { %v10768_v11 = vadd.f32 %v5228_v14, %v5154_v43  ;;  %v5257_v63 = vpop.f32.mrf.mxu3 }
 0x918   : > { %v10770_v35 = vadd.f32 %v5257_v63, %v5155_v10  ;;  %v5116_v51 = vpop.f32.mrf.mxu0  ;;  %v5145_v45 = vpop.f32.mrf.mxu1 }
 0x919   : > { %v5162_v5 = vadd.f32 %v5116_v51, %v5040_v17  ;;  %v5163_v37 = vadd.f32 %v5145_v45, %v5041_v61 }
 0x91e   : > { %v5231_v33 = vpop.f32.mrf.mxu2 }
 0x91f   : > { %v10772_v48 = vadd.f32 %v5231_v33, %v5156_v6  ;;  %v5260_v7 = vpop.f32.mrf.mxu3 }
 0x920   : > { %v10774_v25 = vadd.f32 %v5260_v7, %v5157_v46  ;;  %v5343_v39 = vpop.f32.mrf.mxu0  ;;  %v5372_v56 = vpop.f32.mrf.mxu1 }
 0x921   : > { %v5392_v41 = vadd.f32 %v5343_v39, %v5270_v36  ;;  %v5393_v58 = vadd.f32 %v5372_v56, %v5271_v44 }
 0x926   : > { %v5233_v22 = vpop.f32.mrf.mxu2 }
 0x927   : > { %v10776_v3 = vadd.f32 %v5233_v22, %v5158_v20  ;;  %v5262_v29 = vpop.f32.mrf.mxu3 }
 0x928   : > { %v10778_v52 = vadd.f32 %v5262_v29, %v5159_v26  ;;  %v5345_v15 = vpop.f32.mrf.mxu0  ;;  %v5374_v18 = vpop.f32.mrf.mxu1 }
 0x929   : > { %v5394_v62 = vadd.f32 %v5345_v15, %v5272_v19  ;;  %v5395_v63 = vadd.f32 %v5374_v18, %v5273_v40 }
 0x92e   : > { %v10780_v47 = vpop.f32.mrf.mxu2 }
 0x92f   : > { %v10782_v17 = vpop.f32.mrf.mxu3 }
 0x930   : > { %v5348_v27 = vpop.f32.mrf.mxu0  ;;  %v5377_v61 = vpop.f32.mrf.mxu1 }
 0x931   : > { %v5396_v19 = vadd.f32 %v5348_v27, %v5274_v9  ;;  %v5397_v56 = vadd.f32 %v5377_v61, %v5275_v53 }
 0x936   : > { %v5238_v28 = vpop.f32.mrf.mxu2 }
 0x937   : > { %v10784_v21 = vadd.f32 %v5238_v28, %v5162_v5  ;;  %v5267_v43 = vpop.f32.mrf.mxu3 }
 0x938   : > { %v10786_v10 = vadd.f32 %v5267_v43, %v5163_v37  ;;  %v5350_v2 = vpop.f32.mrf.mxu0  ;;  %v5379_v59 = vpop.f32.mrf.mxu1 }
 0x939   : > { %v5398_v61 = vadd.f32 %v5350_v2, %v10768_v11 }
 0x93e   : > { %v5465_v6 = vpop.f32.mrf.mxu2 }
 0x93f   : > { %v5514_v46 = vadd.f32 %v5465_v6, %v5392_v41  ;;  %v5494_v54 = vpop.f32.mrf.mxu3 }
 0x940   : > { %v5515_v4 = vadd.f32 %v5494_v54, %v5393_v58  ;;  %v10790_v26 = vpop.f32.mrf.mxu0  ;;  %v10792_v14 = vpop.f32.mrf.mxu1  ;;  %v5399_v54 = vadd.f32 %v5379_v59, %v10770_v35 }
 0x941   : > { %v5530_v23 = vadd.f32 %v5514_v46, %v7597_v31 }
 0x942   : > { %v5531_v12 = vadd.f32 %v5515_v4, %v7597_v31 }
 0x943   : > { %v6418_v20 = vmul.f32 -1.442695, %v5530_v23 }
 0x944   : > { %v6419_v30 = vmul.f32 -1.442695, %v5531_v12 }
 0x945   : > { %6701 = vpow2.f32 %v6418_v20 }
 0x946   : > { %v5467_v51 = vpop.f32.mrf.mxu2  ;;  %6703 = vpow2.f32 %v6419_v30 }
 0x947   : > { %v5516_v36 = vadd.f32 %v5467_v51, %v5394_v62  ;;  %v5496_v44 = vpop.f32.mrf.mxu3  ;;  %v5160_v51 = vadd.f32 %v10764_v24, %v10760_v8 }
 0x948   : > { %v5517_v45 = vadd.f32 %v5496_v44, %v5395_v63  ;;  %v5355_v22 = vpop.f32.mrf.mxu0  ;;  %v5384_v15 = vpop.f32.mrf.mxu1 }
 0x949   : > { %v5532_v5 = vadd.f32 %v5516_v36, %v7611_v42  ;;  %v5161_v36 = vadd.f32 %v10766_v49, %v10762_v16  ;;  %v5282_v8 = vadd.f32 %v10780_v47, %v5160_v51 }
 0x94a   : > { %v5533_v37 = vadd.f32 %v5517_v45, %v7611_v42 }
 0x94b   : > { %v6702_v33 = vpop.eup %6701  ;;  %v6420_v31 = vmul.f32 -1.442695, %v5532_v5  ;;  %v5283_v16 = vadd.f32 %v10782_v17, %v5161_v36 }
 0x94c   : > { %v10796_v7 = vadd.f32 1.0, %v6702_v33  ;;  %v6421_v39 = vmul.f32 -1.442695, %v5533_v37  ;;  %v6704_v40 = vpop.eup %6703 }
 0x94d   : > { %6705 = vpow2.f32 %v6420_v31  ;;  %v10800_v41 = vadd.f32 1.0, %v6704_v40  ;;  %v5403_v40 = vadd.f32 %v5384_v15, %v10778_v52 }
 0x94e   : > { %v5470_v29 = vpop.f32.mrf.mxu2  ;;  %6707 = vrcp.f32 %v10796_v7  ;;  %v5603_v17 = vand.u32 2147483647, %v10796_v7  ;;  %vm5599_vm0 = vweird.f32 %v10796_v7 }
 0x94f   : > { %v5518_v18 = vadd.f32 %v5470_v29, %v5396_v19  ;;  %v5499_v28 = vpop.f32.mrf.mxu3  ;;  %6709 = vpow2.f32 %v6421_v39  ;;  %v5401_v19 = vadd.f32 %v10792_v14, %v10774_v25  ;;  %v5605_v25 = vand.u32 2147483648, %v10796_v7 }
 0x950   : > { %v5519_v43 = vadd.f32 %v5499_v28, %v5397_v56  ;;  %v5358_v63 = vpop.f32.mrf.mxu0  ;;  %v5387_v11 = vpop.f32.mrf.mxu1  ;;  %vm10862_vm6 = vcmp.eq.f32.partialorder %v5603_v17, 8.507059e+37  ;;  %vm5614_vm13 = vweird.f32 %v10800_v41 }
 0x951   : > { %v5534_v42 = vadd.f32 %v5518_v18, %v7624_v57 }
 0x952   : > { %v5535_v58 = vadd.f32 %v5519_v43, %v7624_v57  ;;  %v10848_v43 = vadd.f32 %v5358_v63, %v5282_v8 }
 0x953   : > { %v6422_v6 = vmul.f32 -1.442695, %v5534_v42  ;;  %v6706_v9 = vpop.eup %6705 }
 0x954   : > { %v6423_v53 = vmul.f32 -1.442695, %v5535_v58  ;;  %v10803_v27 = vpop.eup %6707  ;;  %v10808_v23 = vadd.f32 1.0, %v6706_v9 }
 0x955   : > { %6711 = vpow2.f32 %v6422_v6  ;;  %v6710_v46 = vpop.eup %6709  ;;  %v5595_v57 = vmul.f32 %v10803_v27, %v10796_v7  ;;  %vm5600_vm4 = vweird.f32 %v10803_v27 }
 0x956   : > { %6713 = vrcp.f32 %v10800_v41  ;;  %v5472_v4 = vpop.f32.mrf.mxu2  ;;  %v10812_v62 = vadd.f32 1.0, %v6710_v46  ;;  %vm10886_vm2 = vmor %vm5599_vm0, %vm5600_vm4 }
 0x957   : > { %6715 = vpow2.f32 %v6423_v53  ;;  %v5520_v12 = vadd.f32 %v5472_v4, %v5398_v61  ;;  %v5501_v20 = vpop.f32.mrf.mxu3  ;;  %v5596_v5 = vsub.f32 1.0, %v5595_v57  ;;  %v5618_v53 = vand.u32 2147483647, %v10800_v41 }
 0x958   : > { %v5521_v30 = vadd.f32 %v5501_v20, %v5399_v54  ;;  %6717 = vrcp.f32 %v10808_v23  ;;  %v5360_v6 = vpop.f32.mrf.mxu0  ;;  %v5389_v9 = vpop.f32.mrf.mxu1  ;;  %v5606_v57 = vor.u32 1.1754944e-38, %v5605_v25 }
 0x959   : > { %v5536_v2 = vadd.f32 %v5520_v12, %v11676_v0  ;;  %6719 = vrcp.f32 %v10812_v62  ;;  %v5597_v47 = vmul.f32 %v10803_v27, %v5596_v5  ;;  %vm10905_vm5 = vcmp.eq.f32.partialorder %v5618_v53, 8.507059e+37 }
 0x95a   : > { %v5537_v35 = vadd.f32 %v5521_v30, %v11676_v0  ;;  %v5400_v0 = vadd.f32 %v10790_v26, %v10772_v48  ;;  %v5402_v48 = vadd.f32 %v5355_v22, %v10776_v3  ;;  %v10850_v3 = vadd.f32 %v5387_v11, %v5283_v16 }
 0x95b   : > { %v6712_v59 = vpop.eup %6711  ;;  %v6424_v44 = vmul.f32 -1.442695, %v5536_v2  ;;  %v5620_v22 = vand.u32 2147483648, %v10800_v41  ;;  %v5598_v54 = vadd.f32 %v10803_v27, %v5597_v47  ;;  %v10874_v11 = vadd.f32 %v5360_v6, %v10784_v21 }
 0x95c   : > { %v10821_v45 = vpop.eup %6713  ;;  %v10824_v37 = vadd.f32 1.0, %v6712_v59  ;;  %v6425_v33 = vmul.f32 -1.442695, %v5537_v35  ;;  %v10877_v2 = vadd.f32 %v5389_v9, %v10786_v10 }
 0x95d   : > { %v6716_v31 = vpop.eup %6715  ;;  %6721 = vpow2.f32 %v6424_v44  ;;  %v5610_v39 = vmul.f32 %v10821_v45, %v10800_v41  ;;  %v10879_v59 = vor.u32 1.1754944e-38, %v5620_v22  ;;  %vm5615_vm3 = vweird.f32 %v10821_v45 }
 0x95e   : > { %6723 = vrcp.f32 %v10824_v37  ;;  %v10831_v24 = vadd.f32 1.0, %v6716_v31  ;;  %v5475_v49 = vpop.f32.mrf.mxu2  ;;  %v10841_v26 = vpop.eup %6717  ;;  %v5665_v51 = vand.u32 2147483648, %v10824_v37  ;;  %v5602_v7 = vsel %vm10886_vm2, %v10803_v27, %v5598_v54  ;;  %vm10937_vm15 = vmor %vm5614_vm13, %vm5615_vm3 }
 0x95f   : > { %6725 = vpow2.f32 %v6425_v33  ;;  %v5522_v56 = vadd.f32 %v5475_v49, %v5400_v0  ;;  %v5504_v29 = vpop.f32.mrf.mxu3  ;;  %v10846_v14 = vpop.eup %6719  ;;  %v5611_v58 = vsub.f32 1.0, %v5610_v39  ;;  %v5625_v63 = vmul.f32 %v10841_v26, %v10808_v23 }
 0x960   : > { %6727 = vrcp.f32 %v10831_v24  ;;  %v5523_v28 = vadd.f32 %v5504_v29, %v5401_v19  ;;  %v10894_v10 = vmul.f32 %v10846_v14, %v10812_v62  ;;  %v5680_v49 = vand.u32 2147483648, %v10831_v24 }
 0x961   : > { %v5538_v18 = vadd.f32 %v5522_v56, %v11687_v55  ;;  %v5612_v21 = vmul.f32 %v10821_v45, %v5611_v58  ;;  %v5626_v16 = vsub.f32 1.0, %v5625_v63  ;;  %v5633_v19 = vand.u32 2147483647, %v10808_v23 }
 0x962   : > { %v5539_v15 = vadd.f32 %v5523_v28, %v11687_v55  ;;  %v5635_v56 = vand.u32 2147483648, %v10808_v23  ;;  %vm5659_vm1 = vweird.f32 %v10824_v37  ;;  %v10912_v27 = vor.u32 1.1754944e-38, %v5665_v51 }
 0x963   : > { %v6722_v42 = vpop.eup %6721  ;;  %v6426_v52 = vmul.f32 -1.442695, %v5538_v18  ;;  %v5613_v17 = vadd.f32 %v10821_v45, %v5612_v21  ;;  %v10922_v25 = vsel %vm10862_vm6, %v5606_v57, %v5602_v7  ;;  %v5663_v6 = vand.u32 2147483647, %v10824_v37 }
 0x964   : > { %v10856_v61 = vpop.eup %6723  ;;  %v10858_v46 = vadd.f32 1.0, %v6722_v42  ;;  %v6427_v55 = vmul.f32 -1.442695, %v5539_v15  ;;  %vm5674_vm10 = vweird.f32 %v10831_v24  ;;  %v10930_v9 = vor.u32 1.1754944e-38, %v5680_v49 }
 0x965   : > { %v6726_v12 = vpop.eup %6725  ;;  %v5655_v20 = vmul.f32 %v10856_v61, %v10824_v37  ;;  %6729 = vpow2.f32 %v6426_v52  ;;  %v5678_v54 = vand.u32 2147483647, %v10831_v24  ;;  %vm5660_vm12 = vweird.f32 %v10856_v61 }
 0x966   : > { %v10869_v30 = vpop.eup %6727  ;;  %v5477_v35 = vpop.f32.mrf.mxu2  ;;  %6731 = vpow2.f32 %v6427_v55  ;;  %v10902_v31 = vadd.f32 1.0, %v6726_v12  ;;  %v5695_v4 = vand.u32 2147483648, %v10858_v46  ;;  %v5617_v55 = vsel %vm10937_vm15, %v10821_v45, %v5613_v17  ;;  %vm10977_vm11 = vmor %vm5659_vm1, %vm5660_vm12 }
 0x967   : > { %v5670_v44 = vmul.f32 %v10869_v30, %v10831_v24  ;;  %6733 = vrcp.f32 %v10858_v46  ;;  %v5506_v5 = vpop.f32.mrf.mxu3  ;;  %v5656_v33 = vsub.f32 1.0, %v5655_v20  ;;  %v5524_v0 = vadd.f32 %v5477_v35, %v5402_v48 }
 0x968   : > { %v5525_v8 = vadd.f32 %v5506_v5, %v5403_v40  ;;  %v5641_v40 = vsub.f32 1.0, %v10894_v10  ;;  %6735 = vrcp.f32 %v10902_v31  ;;  %v5710_v12 = vand.u32 2147483648, %v10902_v31 }
 0x969   : > { %v5540_v47 = vadd.f32 %v5524_v0, %v11694_v60  ;;  %v5671_v18 = vsub.f32 1.0, %v5670_v44  ;;  %v5657_v42 = vmul.f32 %v10856_v61, %v5656_v33  ;;  %v5627_v35 = vmul.f32 %v10841_v26, %v5626_v16 }
 0x96a   : > { %v5541_v48 = vadd.f32 %v5525_v8, %v11694_v60  ;;  %vm5675_vm9 = vweird.f32 %v10869_v30  ;;  %vm10959_vm7 = vcmp.eq.f32.partialorder %v5663_v6, 8.507059e+37  ;;  %v10965_v44 = vor.u32 1.1754944e-38, %v5695_v4 }
 0x96b   : > { %v6730_v29 = vpop.eup %6729  ;;  %v6428_v58 = vmul.f32 -1.442695, %v5540_v47  ;;  %v5672_v57 = vmul.f32 %v10869_v30, %v5671_v18  ;;  %v5658_v36 = vadd.f32 %v10856_v61, %v5657_v42  ;;  %v10967_v5 = vor.u32 1.1754944e-38, %v5710_v12  ;;  %vm11008_vm6 = vmor %vm5674_vm10, %vm5675_vm9 }
 0x96c   : > { %v10918_v28 = vadd.f32 1.0, %v6730_v29  ;;  %v6732_v22 = vpop.eup %6731  ;;  %v6429_v52 = vmul.f32 -1.442695, %v5541_v48  ;;  %v5622_v33 = vsel %vm10905_vm5, %v10879_v59, %v5617_v55  ;;  %vm10982_vm14 = vcmp.eq.f32.partialorder %v5678_v54, 8.507059e+37 }
 0x96d   : > { %v10927_v60 = vpop.eup %6733  ;;  %v10944_v20 = vadd.f32 1.0, %v6732_v22  ;;  %v5673_v16 = vadd.f32 %v10869_v30, %v5672_v57  ;;  %v5662_v37 = vsel %vm10977_vm11, %v10856_v61, %v5658_v36  ;;  %vm5630_vm4 = vweird.f32 %v10841_v26 }
 0x96e   : > { %6737 = vrcp.f32 %v10918_v28  ;;  %v5480_v15 = vpop.f32.mrf.mxu2  ;;  %v5685_v51 = vmul.f32 %v10927_v60, %v10858_v46  ;;  %vm5690_vm8 = vweird.f32 %v10927_v60  ;;  %vm5719_vm0 = vweird.f32 %v10918_v28 }
 0x96f   : > { %6739 = vpow2.f32 %v6428_v58  ;;  %v5526_v41 = vadd.f32 %v5480_v15, %v10848_v43  ;;  %v5509_v63 = vpop.f32.mrf.mxu3  ;;  %v10963_v43 = vpop.eup %6735  ;;  %v11000_v18 = vor.u32 1.1754944e-38, %v5635_v56  ;;  %vm5689_vm13 = vweird.f32 %v10858_v46 }
 0x970   : > { %6741 = vrcp.f32 %v10944_v20  ;;  %v5527_v7 = vadd.f32 %v5509_v63, %v10850_v3  ;;  %v10987_v3 = vadd.f32 %v10841_v26, %v5627_v35  ;;  %v5686_v39 = vsub.f32 1.0, %v5685_v51  ;;  %vm11091_vm11 = vmor %vm5689_vm13, %vm5690_vm8 }
 0x971   : > { %6743 = vpow2.f32 %v6429_v52  ;;  %v5542_v45 = vadd.f32 %v5526_v41, %v11701_v38  ;;  %v5700_v48 = vmul.f32 %v10963_v43, %v10902_v31  ;;  %v5723_v42 = vand.u32 2147483647, %v10918_v28 }
 0x972   : > { %v5543_v29 = vadd.f32 %v5527_v7, %v11701_v38  ;;  %v5725_v6 = vand.u32 2147483648, %v10918_v28  ;;  %v5667_v24 = vsel %vm10959_vm7, %v10912_v27, %v5662_v37  ;;  %v5677_v15 = vsel %vm11008_vm6, %v10869_v30, %v5673_v16 }
 0x973   : > { %6745 = vtanh.f32 %v5542_v45  ;;  %vm5629_vm2 = vweird.f32 %v10808_v23  ;;  %v5687_v53 = vmul.f32 %v10927_v60, %v5686_v39  ;;  %v5701_v55 = vsub.f32 1.0, %v5700_v48 }
 0x974   : > { %v10973_v0 = vpop.eup %6737  ;;  %6747 = vtanh.f32 %v5543_v29  ;;  %vm5705_vm5 = vweird.f32 %v10963_v43  ;;  %v5778_v41 = vmul.f32 %v5667_v24, %v10100_v13  ;;  %v5682_v63 = vsel %vm10982_vm14, %v10930_v9, %v5677_v15 }
 0x975   : > { %v5715_v59 = vmul.f32 %v10973_v0, %v10918_v28  ;;  %v6740_v47 = vpop.eup %6739  ;;  %vm5720_vm3 = vweird.f32 %v10973_v0  ;;  %vm11046_vm1 = vcmp.eq.f32.partialorder %v5723_v42, 8.507059e+37  ;;  %v5726_v51 = vor.u32 1.1754944e-38, %v5725_v6 }
 0x976   : > { %v5482_v17 = vpop.f32.mrf.mxu2  ;;  %v11002_v22 = vpop.eup %6741  ;;  %v11014_v58 = vadd.f32 1.0, %v6740_v47  ;;  %vm5704_vm10 = vweird.f32 %v10902_v31  ;;  %v5740_v13 = vand.u32 2147483648, %v10944_v20  ;;  %vm11057_vm15 = vcmp.eq.f32.partialorder %v5633_v19, 8.507059e+37  ;;  %vm11066_vm12 = vmor %vm5719_vm0, %vm5720_vm3 }
 0x977   : > { %v5716_v61 = vsub.f32 1.0, %v5715_v59  ;;  %v6744_v56 = vpop.eup %6743  ;;  %v5730_v52 = vmul.f32 %v11002_v22, %v10944_v20  ;;  %v5528_v4 = vadd.f32 %v5482_v17, %v10874_v11  ;;  %v5688_v7 = vadd.f32 %v10927_v60, %v5687_v53  ;;  %v5511_v39 = vpop.f32.mrf.mxu3  ;;  %vm11103_vm0 = vmor %vm5629_vm2, %vm5630_vm4 }
 0x978   : > { %6749 = vrcp.f32 %v11014_v58  ;;  %v11031_v27 = vadd.f32 1.0, %v6744_v56  ;;  %vm5734_vm9 = vweird.f32 %v10944_v20  ;;  %v5738_v16 = vand.u32 2147483647, %v10944_v20  ;;  %vm11150_vm13 = vmor %vm5704_vm10, %vm5705_vm5 }
 0x979   : > { %v5717_v54 = vmul.f32 %v10973_v0, %v5716_v61  ;;  %v6746_v12 = vpop.eup %6745  ;;  %v5731_v57 = vsub.f32 1.0, %v5730_v52  ;;  %v5544_v21 = vadd.f32 %v5528_v4, %v11708_v50  ;;  %v5779_v19 = vmul.f32 %v5682_v63, %v10105_v1 }
 0x97a   : > { %v5782_v11 = vmul.f32 %v6746_v12, %v10922_v25  ;;  %6751 = vrcp.f32 %v11031_v27  ;;  %v6748_v45 = vpop.eup %6747  ;;  %vm5644_vm7 = vweird.f32 %v10812_v62  ;;  %v5702_v28 = vmul.f32 %v10963_v43, %v5701_v55 }
 0x97b   : > { %v5718_v30 = vadd.f32 %v10973_v0, %v5717_v54  ;;  %v5732_v36 = vmul.f32 %v11002_v22, %v5731_v57  ;;  %v5783_v49 = vmul.f32 %v6748_v45, %v5622_v33  ;;  %v5693_v29 = vand.u32 2147483647, %v10858_v46 }
 0x97c   : > { %v5786_v25 = vadd.f32 %v5782_v11, %v5778_v41  ;;  %vm5735_vm14 = vweird.f32 %v11002_v22  ;;  %v5692_v46 = vsel %vm11091_vm11, %v10927_v60, %v5688_v7  ;;  %v5529_v38 = vadd.f32 %v5511_v39, %v10877_v2 }
 0x97d   : > { %v5722_v37 = vsel %vm11066_vm12, %v10973_v0, %v5718_v30  ;;  %v5733_v33 = vadd.f32 %v11002_v22, %v5732_v36  ;;  %v5787_v48 = vadd.f32 %v5783_v49, %v5779_v19  ;;  %v5741_v0 = vor.u32 1.1754944e-38, %v5740_v13  ;;  %vm11125_vm8 = vmor %vm5734_vm9, %vm5735_vm14 }
 0x97e   : > { %v11080_v59 = vpop.eup %6749  ;;  %6753 = vtanh.f32 %v5786_v25  ;;  %v5727_v42 = vsel %vm11046_vm1, %v5726_v51, %v5722_v37  ;;  %v5632_v23 = vsel %vm11103_vm0, %v10841_v26, %v10987_v3  ;;  %v5642_v56 = vmul.f32 %v10846_v14, %v5641_v40 }
 0x97f   : > { %v5745_v47 = vmul.f32 %v11080_v59, %v11014_v58  ;;  %6755 = vtanh.f32 %v5544_v21  ;;  %vm5694_vm4 = vcmp.eq.f32.partialorder %v5693_v29, 8.507059e+37  ;;  %v5545_v52 = vadd.f32 %v5529_v38, %v11708_v50 }
 0x980   : > { %v11111_v61 = vpop.eup %6751  ;;  %6757 = vtanh.f32 %v5787_v48  ;;  %v5737_v26 = vsel %vm11125_vm8, %v11002_v22, %v5733_v33  ;;  %v5697_v10 = vsel %vm5694_vm4, %v10965_v44, %v5692_v46  ;;  %v5643_v40 = vadd.f32 %v10846_v14, %v5642_v56 }
 0x981   : > { %v5746_v60 = vsub.f32 1.0, %v5745_v47  ;;  %v5760_v6 = vmul.f32 %v11111_v61, %v11031_v27  ;;  %vm5645_vm6 = vweird.f32 %v10846_v14  ;;  %v5650_v3 = vand.u32 2147483648, %v10812_v62 }
 0x982   : > { %v5703_v50 = vadd.f32 %v10963_v43, %v5702_v28  ;;  %v5708_v24 = vand.u32 2147483647, %v10902_v31  ;;  %6759 = vtanh.f32 %v5545_v52  ;;  %vm5739_vm2 = vcmp.eq.f32.partialorder %v5738_v16, 8.507059e+37  ;;  %vm11163_vm3 = vmor %vm5644_vm7, %vm5645_vm6 }
 0x983   : > { %v5637_v15 = vsel %vm11057_vm15, %v11000_v18, %v5632_v23  ;;  %v5648_v53 = vand.u32 2147483647, %v10812_v62  ;;  %v5747_v4 = vmul.f32 %v11080_v59, %v5746_v60  ;;  %v5761_v12 = vsub.f32 1.0, %v5760_v6 }
 0x984   : > { %v6754_v20 = vpop.eup %6753  ;;  %v5742_v55 = vsel %vm5739_vm2, %v5741_v0, %v5737_v26  ;;  %v5707_v57 = vsel %vm11150_vm13, %v10963_v43, %v5703_v50  ;;  %v5780_v30 = vmul.f32 %v5697_v10, %v10180_v32  ;;  %v5647_v11 = vsel %vm11163_vm3, %v10846_v14, %v5643_v40 }
 0x985   : > { %v5794_v22 = vmul.f32 %v6754_v20, %v5727_v42  ;;  %v6756_v54 = vpop.eup %6755  ;;  %vm5709_vm5 = vcmp.eq.f32.partialorder %v5708_v24, 8.507059e+37  ;;  %v5651_v63 = vor.u32 1.1754944e-38, %v5650_v3  ;;  %vm5649_vm1 = vcmp.eq.f32.partialorder %v5648_v53, 8.507059e+37 }
 0x986   : > { %v6758_v18 = vpop.eup %6757  ;;  %v5784_v41 = vmul.f32 %v6756_v54, %v5637_v15  ;;  %v5712_v35 = vsel %vm5709_vm5, %v10967_v5, %v5707_v57  ;;  %v5748_v43 = vadd.f32 %v11080_v59, %v5747_v4  ;;  %vm5750_vm10 = vweird.f32 %v11080_v59 }
 0x987   : > { %5798 = vst [vmem:[%s11141_s20] sm:$0xff] %v5794_v22  ;;  %v5795_v62 = vmul.f32 %v6758_v18, %v5742_v55  ;;  %v5762_v45 = vmul.f32 %v11111_v61, %v5761_v12  ;;  %v5652_v32 = vsel %vm5649_vm1, %v5651_v63, %v5647_v11  ;;  %v5755_v13 = vand.u32 2147483648, %v11014_v58 }
 0x988   : > { %v5788_v51 = vadd.f32 %v5784_v41, %v5780_v30  ;;  %v6760_v36 = vpop.eup %6759  ;;  %v5781_v14 = vmul.f32 %v5712_v35, %v10204_v34  ;;  %vm5749_vm15 = vweird.f32 %v11014_v58  ;;  %v5753_v5 = vand.u32 2147483647, %v11014_v58 }
 0x989   : > { %5799 = vst [vmem:[%s11141_s20 + $0x8] sm:$0xff] %v5795_v62  ;;  %v5785_v25 = vmul.f32 %v6760_v36, %v5652_v32  ;;  %vm5751_vm12 = vmor %vm5749_vm15, %vm5750_vm10  ;;  %v5763_v7 = vadd.f32 %v11111_v61, %v5762_v45  ;;  %vm5765_vm9 = vweird.f32 %v11111_v61  ;;  %v5756_v8 = vor.u32 1.1754944e-38, %v5755_v13 }
 0x98a   : > { %6761 = vtanh.f32 %v5788_v51  ;;  %v5752_v9 = vsel %vm5751_vm12, %v11080_v59, %v5748_v43  ;;  %v5770_v16 = vand.u32 2147483648, %v11031_v27  ;;  %vm5754_vm7 = vcmp.eq.f32.partialorder %v5753_v5, 8.507059e+37 }
 0x98b   : > { %v5789_v21 = vadd.f32 %v5785_v25, %v5781_v14  ;;  %vm5764_vm11 = vweird.f32 %v11031_v27  ;;  %v5768_v34 = vand.u32 2147483647, %v11031_v27  ;;  %v5757_v19 = vsel %vm5754_vm7, %v5756_v8, %v5752_v9 }
 0x98c   : > { %vm5766_vm14 = vmor %vm5764_vm11, %vm5765_vm9  ;;  %v5771_v59 = vor.u32 1.1754944e-38, %v5770_v16 }
 0x98d   : > { %6763 = vtanh.f32 %v5789_v21  ;;  %v5767_v49 = vsel %vm5766_vm14, %v11111_v61, %v5763_v7  ;;  %vm5769_vm0 = vcmp.eq.f32.partialorder %v5768_v34, 8.507059e+37 }
 0x98e   : > { %v5772_v37 = vsel %vm5769_vm0, %v5771_v59, %v5767_v49 }
 0x990   : > { %v6762_v58 = vpop.eup %6761 }
 0x991   : > { %v5796_v39 = vmul.f32 %v6762_v58, %v5757_v19 }
 0x993   : > { %5800 = vst [vmem:[%s11141_s20 + $0x10] sm:$0xff] %v5796_v39  ;;  %v6764_v28 = vpop.eup %6763 }
 0x994   : > { %v5797_v29 = vmul.f32 %v6764_v28, %v5772_v37 }
 0x996   : > { %5801 = vst [vmem:[%s11141_s20 + $0x18] sm:$0xff] %v5797_v29 }
 0x997 PF: > { %p11_p9 = scmp.ge.s32.totalorder %s6955_s19, 4   ;;  %s11898_s15 = smov %s6897_s16 }
 0x998   : > { %s11899_s16 = smov %s6964_s22  ;;  %s11900_s17 = smov %s6955_s19 }
 0x999   :  { %13 = sbr.rel (!%p11_p9) target bundleno = 2 (0x2), region = 105 }

</bundles_post_ra>
